<compile_context>
chip_gen: v7x
topology: tpu7x:2x2x1
jax: 0.10.0
libtpu: 0.0.40
codegen_flags: <defaults>
</compile_context>

<pallas_src>
import functools

import jax
import jax.numpy as jnp
from jax.experimental import pallas as pl
from jax.experimental.pallas import tpu as pltpu

EPS = 1e-8
# Activations stored between layers. Set to jnp.bfloat16 on v6e/v7x to halve
# HBM traffic (all accumulation / BN statistics stay float32 regardless).
ACT_DTYPE = jnp.float32
# Scoped-VMEM cap: plenty for the chosen tiles, <= physical VMEM of every
# generation (v7x has only 64 MiB).
VMEM_LIMIT = 40 * 1024 * 1024


# ----------------------------------------------------------------------------
# Tiling helpers (trace-time Python)
# ----------------------------------------------------------------------------
def _round_up(a, b):
    return ((a + b - 1) // b) * b


def _pick_row_tile(m, cap):
    """Largest multiple-of-8 divisor of m <= cap (exact tiling), else fall back
    to a padded tiling. Returns (tile, padded_m)."""
    d = min(m, cap)
    d -= d % 8
    while d >= 8:
        if m % d == 0:
            return d, m
        d -= 8
    tile = min(cap, _round_up(m, 8))
    return tile, _round_up(m, tile)


def _pick_th(h, cap=32):
    """Row tile for the 3x3 convs: a divisor of h, preferring sublane-aligned."""
    hi = min(cap, h)
    for d in range(hi, 0, -1):
        if h % d == 0 and (d % 8 == 0 or d == h):
            return d
    for d in range(hi, 0, -1):
        if h % d == 0:
            return d
    return 1


# ----------------------------------------------------------------------------
# Fused BN (precomputed scale/shift) + 1x1 conv, row-tiled.
# Also emits per-tile sum / sum-of-squares of the conv output so the next
# layer's BN statistics need no extra pass over the activation.
# ----------------------------------------------------------------------------
def _bn_conv1x1_kernel(tm, m_valid, x_ref, scale_ref, shift_ref, w_ref,
                       o_ref, stats_ref):
    x = x_ref[...].astype(jnp.float32)
    xb = x * scale_ref[...] + shift_ref[...]
    y = jnp.dot(xb, w_ref[...], preferred_element_type=jnp.float32)
    o_ref[...] = y.astype(o_ref.dtype)

    cout = y.shape[1]
    # Partial sums over the valid (non-padded) rows of this tile.
    row = pl.program_id(0) * tm + jax.lax.broadcasted_iota(jnp.int32, (tm, 1), 0)
    yv = jnp.where(row < m_valid, y, 0.0)
    stats_ref[...] = jnp.zeros((8, cout), jnp.float32)
    stats_ref[0:1, :] = jnp.sum(yv, axis=0, keepdims=True)
    stats_ref[1:2, :] = jnp.sum(yv * yv, axis=0, keepdims=True)


def bn_conv1x1(x_nhwc, scale, shift, w):
    n, h, wd, cin = x_nhwc.shape
    cout = w.shape[1]
    m = n * h * wd
    tm, mp = _pick_row_tile(m, cap=4096)
    n_t = mp // tm

    x2d = x_nhwc.reshape(m, cin)
    if mp != m:
        x2d = jnp.pad(x2d, ((0, mp - m), (0, 0)))

    kernel = functools.partial(_bn_conv1x1_kernel, tm, m)
    y, stats = pl.pallas_call(
        kernel,
        grid=(n_t,),
        in_specs=[
            pl.BlockSpec((tm, cin), lambda i: (i, 0)),
            pl.BlockSpec((1, cin), lambda i: (0, 0)),
            pl.BlockSpec((1, cin), lambda i: (0, 0)),
            pl.BlockSpec((cin, cout), lambda i: (0, 0)),
        ],
        out_specs=[
            pl.BlockSpec((tm, cout), lambda i: (i, 0)),
            pl.BlockSpec((None, 8, cout), lambda i: (i, 0, 0)),
        ],
        out_shape=[
            jax.ShapeDtypeStruct((mp, cout), ACT_DTYPE),
            jax.ShapeDtypeStruct((n_t, 8, cout), jnp.float32),
        ],
        compiler_params=pltpu.CompilerParams(
            dimension_semantics=("parallel",),
            vmem_limit_bytes=VMEM_LIMIT),
    )(x2d, scale.reshape(1, cin), shift.reshape(1, cin), w)

    y = y[:m].reshape(n, h, wd, cout)
    s1 = jnp.sum(stats[:, 0, :], axis=0)
    s2 = jnp.sum(stats[:, 1, :], axis=0)
    return y, s1, s2


# ----------------------------------------------------------------------------
# Fused BN + 3x3 conv (pad 1), row-tiled with a 1-row halo on each side.
# Halo rows arrive as two extra 1-row BlockSpec inputs; the zero conv-padding
# (the conv pads the *BN output*) is produced inside the VMEM window scratch.
# ----------------------------------------------------------------------------
def _bn_conv3x3_kernel(th, wd, cin, cout, n_th,
                       x_ref, top_ref, bot_ref, scale_ref, shift_ref, w_ref,
                       o_ref, stats_ref, win_ref, acc_ref):
    t = pl.program_id(1)
    scale = scale_ref[...]
    shift = shift_ref[...]

    # Left / right zero-padding columns.
    zcol = jnp.zeros((th + 2, 1, cin), jnp.float32)
    win_ref[:, 0:1, :] = zcol
    win_ref[:, wd + 1:wd + 2, :] = zcol

    # Interior rows: BN affine on this row tile.
    win_ref[1:th + 1, 1:wd + 1, :] = x_ref[...].astype(jnp.float32) * scale + shift

    # One-row halos from the neighbouring tiles; zero outside the image.
    top_ok = (t > 0).astype(jnp.float32)
    bot_ok = (t < n_th - 1).astype(jnp.float32)
    win_ref[0:1, 1:wd + 1, :] = top_ok * (
        top_ref[...].astype(jnp.float32) * scale + shift)
    win_ref[th + 1:th + 2, 1:wd + 1, :] = bot_ok * (
        bot_ref[...].astype(jnp.float32) * scale + shift)

    # 3x3 conv = 9 shifted (th*wd, cin) @ (cin, cout) MXU matmuls, f32 acc.
    for dy in range(3):
        for dx in range(3):
            patch = win_ref[dy:dy + th, dx:dx + wd, :].reshape(th * wd, cin)
            contrib = jnp.dot(patch, w_ref[dy, dx],
                              preferred_element_type=jnp.float32)
            if dy == 0 and dx == 0:
                acc_ref[...] = contrib
            else:
                acc_ref[...] += contrib

    acc = acc_ref[...]
    o_ref[...] = acc.reshape(th, wd, cout).astype(o_ref.dtype)
    stats_ref[...] = jnp.zeros((8, cout), jnp.float32)
    stats_ref[0:1, :] = jnp.sum(acc, axis=0, keepdims=True)
    stats_ref[1:2, :] = jnp.sum(acc * acc, axis=0, keepdims=True)


def bn_conv3x3(x_nhwc, scale, shift, w):
    n, h, wd, cin = x_nhwc.shape
    cout = w.shape[-1]
    th = _pick_th(h)
    n_th = h // th

    kernel = functools.partial(_bn_conv3x3_kernel, th, wd, cin, cout, n_th)
    y, stats = pl.pallas_call(
        kernel,
        grid=(n, n_th),
        in_specs=[
            pl.BlockSpec((None, th, wd, cin), lambda b, t: (b, t, 0, 0)),
            pl.BlockSpec((None, 1, wd, cin),
                         lambda b, t: (b, jnp.maximum(t * th - 1, 0), 0, 0)),
            pl.BlockSpec((None, 1, wd, cin),
                         lambda b, t: (b, jnp.minimum(t * th + th, h - 1), 0, 0)),
            pl.BlockSpec((1, 1, cin), lambda b, t: (0, 0, 0)),
            pl.BlockSpec((1, 1, cin), lambda b, t: (0, 0, 0)),
            pl.BlockSpec((3, 3, cin, cout), lambda b, t: (0, 0, 0, 0)),
        ],
        out_specs=[
            pl.BlockSpec((None, th, wd, cout), lambda b, t: (b, t, 0, 0)),
            pl.BlockSpec((None, None, 8, cout), lambda b, t: (b, t, 0, 0)),
        ],
        out_shape=[
            jax.ShapeDtypeStruct((n, h, wd, cout), ACT_DTYPE),
            jax.ShapeDtypeStruct((n, n_th, 8, cout), jnp.float32),
        ],
        scratch_shapes=[
            pltpu.VMEM((th + 2, wd + 2, cin), jnp.float32),
            pltpu.VMEM((th * wd, cout), jnp.float32),
        ],
        compiler_params=pltpu.CompilerParams(
            dimension_semantics=("parallel", "parallel"),
            vmem_limit_bytes=VMEM_LIMIT),
    )(x_nhwc, x_nhwc, x_nhwc,
      scale.reshape(1, 1, cin), shift.reshape(1, 1, cin), w)

    s1 = jnp.sum(stats[:, :, 0, :], axis=(0, 1))
    s2 = jnp.sum(stats[:, :, 1, :], axis=(0, 1))
    return y, s1, s2


# ----------------------------------------------------------------------------
# Final BN + 3x3 conv with a single output channel: computed on the VPU as
# multiply + cross-lane reduce so the output block is a lane-dense (TH, W).
# ----------------------------------------------------------------------------
def _bn_conv3x3_c1_kernel(th, wd, cin, n_th,
                          x_ref, top_ref, bot_ref, scale_ref, shift_ref, w_ref,
                          o_ref, win_ref):
    t = pl.program_id(1)
    scale = scale_ref[...]
    shift = shift_ref[...]

    zcol = jnp.zeros((th + 2, 1, cin), jnp.float32)
    win_ref[:, 0:1, :] = zcol
    win_ref[:, wd + 1:wd + 2, :] = zcol
    win_ref[1:th + 1, 1:wd + 1, :] = x_ref[...].astype(jnp.float32) * scale + shift
    top_ok = (t > 0).astype(jnp.float32)
    bot_ok = (t < n_th - 1).astype(jnp.float32)
    win_ref[0:1, 1:wd + 1, :] = top_ok * (
        top_ref[...].astype(jnp.float32) * scale + shift)
    win_ref[th + 1:th + 2, 1:wd + 1, :] = bot_ok * (
        bot_ref[...].astype(jnp.float32) * scale + shift)

    acc = jnp.zeros((th, wd), jnp.float32)
    for dy in range(3):
        for dx in range(3):
            patch = win_ref[dy:dy + th, dx:dx + wd, :]        # (th, wd, cin)
            wvec = w_ref[dy:dy + 1, dx:dx + 1, :]             # (1, 1, cin)
            acc = acc + jnp.sum(patch * wvec, axis=-1)
    o_ref[...] = acc.astype(o_ref.dtype)


def bn_conv3x3_to_scalar(x_nhwc, scale, shift, w):
    """Final BN + 3x3 conv, Cout=1; returns (N, H, W) (lane-dense stores)."""
    n, h, wd, cin = x_nhwc.shape
    th = _pick_th(h)
    n_th = h // th
    w3 = w[..., 0]                                            # (3, 3, Cin)

    kernel = functools.partial(_bn_conv3x3_c1_kernel, th, wd, cin, n_th)
    out = pl.pallas_call(
        kernel,
        grid=(n, n_th),
        in_specs=[
            pl.BlockSpec((None, th, wd, cin), lambda b, t: (b, t, 0, 0)),
            pl.BlockSpec((None, 1, wd, cin),
                         lambda b, t: (b, jnp.maximum(t * th - 1, 0), 0, 0)),
            pl.BlockSpec((None, 1, wd, cin),
                         lambda b, t: (b, jnp.minimum(t * th + th, h - 1), 0, 0)),
            pl.BlockSpec((1, 1, cin), lambda b, t: (0, 0, 0)),
            pl.BlockSpec((1, 1, cin), lambda b, t: (0, 0, 0)),
            pl.BlockSpec((3, 3, cin), lambda b, t: (0, 0, 0)),
        ],
        out_specs=pl.BlockSpec((None, th, wd), lambda b, t: (b, t, 0)),
        out_shape=jax.ShapeDtypeStruct((n, h, wd), jnp.float32),
        scratch_shapes=[pltpu.VMEM((th + 2, wd + 2, cin), jnp.float32)],
        compiler_params=pltpu.CompilerParams(
            dimension_semantics=("parallel", "parallel"),
            vmem_limit_bytes=VMEM_LIMIT),
    )(x_nhwc, x_nhwc, x_nhwc,
      scale.reshape(1, 1, cin), shift.reshape(1, 1, cin), w3)
    return out


# ----------------------------------------------------------------------------
# BatchNorm scale/shift helpers (training mode: batch stats, biased variance)
# ----------------------------------------------------------------------------
def _affine_from_moments(gamma, beta, mean, var):
    scale = gamma * jax.lax.rsqrt(var + EPS)
    shift = beta - mean * scale
    return scale.astype(jnp.float32), shift.astype(jnp.float32)


def _affine_from_sums(gamma, beta, s1, s2, count):
    mean = s1 / count
    var = jnp.maximum(s2 / count - mean * mean, 0.0)          # biased variance
    return _affine_from_moments(gamma, beta, mean, var)


# ----------------------------------------------------------------------------
# Model
# ----------------------------------------------------------------------------
def init_params(key):
    """Deterministic parameter init (shapes from the nn.Module definition)."""
    ks = jax.random.split(key, 4)

    def conv_w(k, shape, fan_in):
        bound = 1.0 / jnp.sqrt(float(fan_in))
        return jax.random.uniform(k, shape, jnp.float32, -bound, bound)

    return {
        # layer1[0]: BN(3) + Conv 1x1 3->74     (w stored (Cin, Cout))
        "g1": jnp.ones((3,), jnp.float32), "b1": jnp.zeros((3,), jnp.float32),
        "w1": conv_w(ks[0], (3, 74), 3),
        # layer1[1]: BN(74) + Conv 3x3 74->74   (w stored (3,3,Cin,Cout) = HWIO)
        "g2": jnp.ones((74,), jnp.float32), "b2": jnp.zeros((74,), jnp.float32),
        "w2": conv_w(ks[1], (3, 3, 74, 74), 74 * 9),
        # layer2[0]: BN(74) + Conv 1x1 74->74
        "g3": jnp.ones((74,), jnp.float32), "b3": jnp.zeros((74,), jnp.float32),
        "w3": conv_w(ks[2], (74, 74), 74),
        # layer2[1]: BN(74) + Conv 3x3 74->1
        "g4": jnp.ones((74,), jnp.float32), "b4": jnp.zeros((74,), jnp.float32),
        "w4": conv_w(ks[3], (3, 3, 74, 1), 74 * 9),
    }


@jax.jit
def model_forward(x_nchw, params):
    x = jnp.transpose(x_nchw, (0, 2, 3, 1)).astype(jnp.float32)   # NCHW -> NHWC
    n, h, wd, _ = x.shape
    count = n * h * wd

    # BN1 statistics from the raw 3-channel input (tiny; plain JAX pass).
    mean = jnp.mean(x, axis=(0, 1, 2))
    var = jnp.mean(jnp.square(x - mean), axis=(0, 1, 2))
    sc, sh = _affine_from_moments(params["g1"], params["b1"], mean, var)
    x, s1, s2 = bn_conv1x1(x, sc, sh, params["w1"])               # (N,H,W,74)

    sc, sh = _affine_from_sums(params["g2"], params["b2"], s1, s2, count)
    x, s1, s2 = bn_conv3x3(x, sc, sh, params["w2"])               # (N,H,W,74)

    sc, sh = _affine_from_sums(params["g3"], params["b3"], s1, s2, count)
    x, s1, s2 = bn_conv1x1(x, sc, sh, params["w3"])               # (N,H,W,74)

    sc, sh = _affine_from_sums(params["g4"], params["b4"], s1, s2, count)
    out = bn_conv3x3_to_scalar(x, sc, sh, params["w4"])           # (N,H,W)
    return out                                # == torch .squeeze() for N > 1


# ----------------------------------------------------------------------------
# Pure-JAX reference (XLA convs) for a correctness check.
# ----------------------------------------------------------------------------
def reference_forward(x_nchw, params):
    def bn(x, g, b):
        m = jnp.mean(x, axis=(0, 1, 2))
        v = jnp.mean(jnp.square(x - m), axis=(0, 1, 2))
        return (x - m) * jax.lax.rsqrt(v + EPS) * g + b

    def conv(x, w_hwio, padding):
        return jax.lax.conv_general_dilated(
            x, w_hwio, (1, 1), padding,
            dimension_numbers=("NHWC", "HWIO", "NHWC"),
            precision=jax.lax.Precision.HIGHEST)

    x = jnp.transpose(x_nchw, (0, 2, 3, 1)).astype(jnp.float32)
    x = conv(bn(x, params["g1"], params["b1"]),
             params["w1"].reshape(1, 1, 3, 74), "VALID")
    x = conv(bn(x, params["g2"], params["b2"]), params["w2"], "SAME")
    x = conv(bn(x, params["g3"], params["b3"]),
             params["w3"].reshape(1, 1, 74, 74), "VALID")
    x = conv(bn(x, params["g4"], params["b4"]), params["w4"], "SAME")
    return x[..., 0]


if __name__ == "__main__":
    key = jax.random.PRNGKey(0)
    k_x, k_p = jax.random.split(key)
    # Small shapes consistent with the module (original input: 5x3x224x224).
    x1 = jax.random.normal(k_x, (2, 3, 16, 16), jnp.float32)
    params = init_params(k_p)

    out = model_forward(x1, params)
    out = jax.block_until_ready(out)
    assert out.shape == (2, 16, 16), out.shape

    ref = reference_forward(x1, params)
    err = float(jnp.max(jnp.abs(out - ref)))
    assert err < 5e-2, f"max abs error vs reference: {err}"

    print("KERNEL_OK")
</pallas_src>

<mosaic_0001>
module attributes {stable_mosaic.version = 11 : i64} {
  func.func @_bn_conv1x1_kernel(%arg0: i32, %arg1: memref<512x3xf32, #tpu.memory_space<vmem>>, %arg2: memref<1x3xf32, #tpu.memory_space<vmem>>, %arg3: memref<1x3xf32, #tpu.memory_space<vmem>>, %arg4: memref<3x74xf32, #tpu.memory_space<vmem>>, %arg5: memref<512x74xf32, #tpu.memory_space<vmem>>, %arg6: memref<1x8x74xf32, #tpu.memory_space<vmem>>) attributes {dimension_semantics = [#tpu.dimension_semantics<parallel>], iteration_bounds = array<i64: 1>, scalar_prefetch = 0 : i64, scratch_operands = 0 : i64, tpu.core_type = #tpu.core_type<tc>, window_params = [{transform_indices = @transform_0, window_bounds = array<i64: 512, 3>}, {pipeline_mode = #tpu.pipeline_mode<synchronous>, transform_indices = @transform_1, window_bounds = array<i64: 1, 3>}, {pipeline_mode = #tpu.pipeline_mode<synchronous>, transform_indices = @transform_2, window_bounds = array<i64: 1, 3>}, {pipeline_mode = #tpu.pipeline_mode<synchronous>, transform_indices = @transform_3, window_bounds = array<i64: 3, 74>}, {transform_indices = @transform_4, window_bounds = array<i64: 512, 74>}, {transform_indices = @transform_5, window_bounds = array<i64: 1, 8, 74>}]} {
    %c0 = arith.constant 0 : index
    %c0_0 = arith.constant 0 : index
    %0 = vector.load %arg1[%c0, %c0_0] : memref<512x3xf32, #tpu.memory_space<vmem>>, vector<512x3xf32>
    %c0_1 = arith.constant 0 : index
    %c0_2 = arith.constant 0 : index
    %1 = vector.load %arg2[%c0_1, %c0_2] : memref<1x3xf32, #tpu.memory_space<vmem>>, vector<1x3xf32>
    %2 = vector.broadcast %1 : vector<1x3xf32> to vector<512x3xf32>
    %3 = arith.mulf %0, %2 : vector<512x3xf32>
    %c0_3 = arith.constant 0 : index
    %c0_4 = arith.constant 0 : index
    %4 = vector.load %arg3[%c0_3, %c0_4] : memref<1x3xf32, #tpu.memory_space<vmem>>, vector<1x3xf32>
    %5 = vector.broadcast %4 : vector<1x3xf32> to vector<512x3xf32>
    %6 = arith.addf %3, %5 : vector<512x3xf32>
    %c0_5 = arith.constant 0 : index
    %c0_6 = arith.constant 0 : index
    %7 = vector.load %arg4[%c0_5, %c0_6] : memref<3x74xf32, #tpu.memory_space<vmem>>, vector<3x74xf32>
    %cst = arith.constant dense<0.000000e+00> : vector<512x74xf32>
    %8 = tpu.matmul %6, %7, %cst {dimension_numbers = #tpu.dot_dimension_numbers<[1], [0], [0], [1], [0, 0, 1, 1], [], []>} : vector<512x3xf32>, vector<3x74xf32>, vector<512x74xf32> -> vector<512x74xf32>
    %c0_7 = arith.constant 0 : index
    %c0_8 = arith.constant 0 : index
    %9 = vector.load %arg5[%c0_7, %c0_8] : memref<512x74xf32, #tpu.memory_space<vmem>>, vector<512x74xf32>
    tpu.vector_store %arg5[%c0_7, %c0_8], %8 {strides = array<i32>} : memref<512x74xf32, #tpu.memory_space<vmem>>, vector<512x74xf32>,
    %c512_i32 = arith.constant 512 : i32
    %10 = arith.muli %arg0, %c512_i32 : i32
    %11 = tpu.iota {dimensions = array<i32: 0>} : vector<512x1xi32>
    %12 = vector.broadcast %10 : i32 to vector<512x1xi32>
    %13 = arith.addi %12, %11 : vector<512x1xi32>
    %c512_i32_9 = arith.constant 512 : i32
    %14 = vector.broadcast %c512_i32_9 : i32 to vector<512x1xi32>
    %15 = arith.cmpi slt, %13, %14 : vector<512x1xi32>
    %cst_10 = arith.constant 0.000000e+00 : f32
    %16 = vector.shape_cast %15 : vector<512x1xi1> to vector<512x1xi1>
    %17 = vector.broadcast %16 : vector<512x1xi1> to vector<512x74xi1>
    %18 = vector.broadcast %cst_10 : f32 to vector<512x74xf32>
    %19 = arith.select %17, %8, %18 : vector<512x74xi1>, vector<512x74xf32>
    %cst_11 = arith.constant 0.000000e+00 : f32
    %20 = vector.broadcast %cst_11 : f32 to vector<8x74xf32>
    %c0_12 = arith.constant 0 : index
    %c0_13 = arith.constant 0 : index
    %c0_14 = arith.constant 0 : index
    %21 = vector.load %arg6[%c0_12, %c0_13, %c0_14] : memref<1x8x74xf32, #tpu.memory_space<vmem>>, vector<1x8x74xf32>
    %22 = vector.shape_cast %21 : vector<1x8x74xf32> to vector<8x74xf32>
    %23 = vector.shape_cast %20 : vector<8x74xf32> to vector<1x8x74xf32>
    tpu.vector_store %arg6[%c0_12, %c0_13, %c0_14], %23 {strides = array<i32>} : memref<1x8x74xf32, #tpu.memory_space<vmem>>, vector<1x8x74xf32>,
    %cst_15 = arith.constant dense<0.000000e+00> : vector<74xf32>
    %24 = vector.multi_reduction <add>, %19, %cst_15 [0] : vector<512x74xf32> to vector<74xf32>
    %25 = vector.shape_cast %24 : vector<74xf32> to vector<1x74xf32>
    %c0_16 = arith.constant 0 : index
    %c0_17 = arith.constant 0 : index
    %c0_18 = arith.constant 0 : index
    %26 = vector.load %arg6[%c0_16, %c0_17, %c0_18] : memref<1x8x74xf32, #tpu.memory_space<vmem>>, vector<1x1x74xf32>
    %27 = vector.shape_cast %26 : vector<1x1x74xf32> to vector<1x74xf32>
    %28 = vector.shape_cast %25 : vector<1x74xf32> to vector<1x1x74xf32>
    tpu.vector_store %arg6[%c0_16, %c0_17, %c0_18], %28 {strides = array<i32>} : memref<1x8x74xf32, #tpu.memory_space<vmem>>, vector<1x1x74xf32>,
    %29 = arith.mulf %19, %19 : vector<512x74xf32>
    %cst_19 = arith.constant dense<0.000000e+00> : vector<74xf32>
    %30 = vector.multi_reduction <add>, %29, %cst_19 [0] : vector<512x74xf32> to vector<74xf32>
    %31 = vector.shape_cast %30 : vector<74xf32> to vector<1x74xf32>
    %c0_20 = arith.constant 0 : index
    %c1 = arith.constant 1 : index
    %c0_21 = arith.constant 0 : index
    %32 = vector.load %arg6[%c0_20, %c1, %c0_21] : memref<1x8x74xf32, #tpu.memory_space<vmem>>, vector<1x1x74xf32>
    %33 = vector.shape_cast %32 : vector<1x1x74xf32> to vector<1x74xf32>
    %34 = vector.shape_cast %31 : vector<1x74xf32> to vector<1x1x74xf32>
    tpu.vector_store %arg6[%c0_20, %c1, %c0_21], %34 {strides = array<i32>} : memref<1x8x74xf32, #tpu.memory_space<vmem>>, vector<1x1x74xf32>,
    return
  }
  func.func @transform_0(%arg0: i32) -> (i32, i32) {
    %c0_i32 = arith.constant 0 : i32
    %c0_i32_0 = arith.constant 0 : i32
    return %arg0, %c0_i32 : i32, i32
  }
  func.func @transform_1(%arg0: i32) -> (i32, i32) {
    %c0_i32 = arith.constant 0 : i32
    %c0_i32_0 = arith.constant 0 : i32
    %c0_i32_1 = arith.constant 0 : i32
    return %c0_i32, %c0_i32_0 : i32, i32
  }
  func.func @transform_2(%arg0: i32) -> (i32, i32) {
    %c0_i32 = arith.constant 0 : i32
    %c0_i32_0 = arith.constant 0 : i32
    %c0_i32_1 = arith.constant 0 : i32
    return %c0_i32, %c0_i32_0 : i32, i32
  }
  func.func @transform_3(%arg0: i32) -> (i32, i32) {
    %c0_i32 = arith.constant 0 : i32
    %c0_i32_0 = arith.constant 0 : i32
    %c0_i32_1 = arith.constant 0 : i32
    return %c0_i32, %c0_i32_0 : i32, i32
  }
  func.func @transform_4(%arg0: i32) -> (i32, i32) {
    %c0_i32 = arith.constant 0 : i32
    %c0_i32_0 = arith.constant 0 : i32
    return %arg0, %c0_i32 : i32, i32
  }
  func.func @transform_5(%arg0: i32) -> (i32, i32, i32) {
    %c0_i32 = arith.constant 0 : i32
    %c0_i32_0 = arith.constant 0 : i32
    %c0_i32_1 = arith.constant 0 : i32
    return %arg0, %c0_i32, %c0_i32_0 : i32, i32, i32
  }
}

module attributes {stable_mosaic.version = 11 : i64} {
  func.func @_bn_conv3x3_kernel(%arg0: i32, %arg1: i32, %arg2: memref<1x16x16x74xf32, #tpu.memory_space<vmem>>, %arg3: memref<1x1x16x74xf32, #tpu.memory_space<vmem>>, %arg4: memref<1x1x16x74xf32, #tpu.memory_space<vmem>>, %arg5: memref<1x1x74xf32, #tpu.memory_space<vmem>>, %arg6: memref<1x1x74xf32, #tpu.memory_space<vmem>>, %arg7: memref<3x3x74x74xf32, #tpu.memory_space<vmem>>, %arg8: memref<1x16x16x74xf32, #tpu.memory_space<vmem>>, %arg9: memref<1x1x8x74xf32, #tpu.memory_space<vmem>>, %arg10: memref<18x18x74xf32, #tpu.memory_space<vmem>>, %arg11: memref<256x74xf32, #tpu.memory_space<vmem>>) attributes {dimension_semantics = [#tpu.dimension_semantics<parallel>, #tpu.dimension_semantics<parallel>], iteration_bounds = array<i64: 2, 1>, scalar_prefetch = 0 : i64, scratch_operands = 2 : i64, tpu.core_type = #tpu.core_type<tc>, window_params = [{transform_indices = @transform_0, window_bounds = array<i64: 1, 16, 16, 74>}, {transform_indices = @transform_1, window_bounds = array<i64: 1, 1, 16, 74>}, {transform_indices = @transform_2, window_bounds = array<i64: 1, 1, 16, 74>}, {pipeline_mode = #tpu.pipeline_mode<synchronous>, transform_indices = @transform_3, window_bounds = array<i64: 1, 1, 74>}, {pipeline_mode = #tpu.pipeline_mode<synchronous>, transform_indices = @transform_4, window_bounds = array<i64: 1, 1, 74>}, {pipeline_mode = #tpu.pipeline_mode<synchronous>, transform_indices = @transform_5, window_bounds = array<i64: 3, 3, 74, 74>}, {transform_indices = @transform_6, window_bounds = array<i64: 1, 16, 16, 74>}, {transform_indices = @transform_7, window_bounds = array<i64: 1, 1, 8, 74>}]} {
    %c0 = arith.constant 0 : index
    %c0_0 = arith.constant 0 : index
    %c0_1 = arith.constant 0 : index
    %0 = vector.load %arg5[%c0, %c0_0, %c0_1] : memref<1x1x74xf32, #tpu.memory_space<vmem>>, vector<1x1x74xf32>
    %c0_2 = arith.constant 0 : index
    %c0_3 = arith.constant 0 : index
    %c0_4 = arith.constant 0 : index
    %1 = vector.load %arg6[%c0_2, %c0_3, %c0_4] : memref<1x1x74xf32, #tpu.memory_space<vmem>>, vector<1x1x74xf32>
    %cst = arith.constant 0.000000e+00 : f32
    %2 = vector.broadcast %cst : f32 to vector<18x1x74xf32>
    %c0_5 = arith.constant 0 : index
    %c0_6 = arith.constant 0 : index
    %c0_7 = arith.constant 0 : index
    %3 = vector.load %arg10[%c0_5, %c0_6, %c0_7] : memref<18x18x74xf32, #tpu.memory_space<vmem>>, vector<18x1x74xf32>
    tpu.vector_store %arg10[%c0_5, %c0_6, %c0_7], %2 {strides = array<i32>} : memref<18x18x74xf32, #tpu.memory_space<vmem>>, vector<18x1x74xf32>,
    %c0_8 = arith.constant 0 : index
    %c17 = arith.constant 17 : index
    %c0_9 = arith.constant 0 : index
    %4 = vector.load %arg10[%c0_8, %c17, %c0_9] : memref<18x18x74xf32, #tpu.memory_space<vmem>>, vector<18x1x74xf32>
    tpu.vector_store %arg10[%c0_8, %c17, %c0_9], %2 {strides = array<i32>} : memref<18x18x74xf32, #tpu.memory_space<vmem>>, vector<18x1x74xf32>,
    %c0_10 = arith.constant 0 : index
    %c0_11 = arith.constant 0 : index
    %c0_12 = arith.constant 0 : index
    %c0_13 = arith.constant 0 : index
    %5 = vector.load %arg2[%c0_10, %c0_11, %c0_12, %c0_13] : memref<1x16x16x74xf32, #tpu.memory_space<vmem>>, vector<1x16x16x74xf32>
    %6 = vector.shape_cast %5 : vector<1x16x16x74xf32> to vector<16x16x74xf32>
    %7 = vector.broadcast %0 : vector<1x1x74xf32> to vector<16x16x74xf32>
    %8 = arith.mulf %6, %7 : vector<16x16x74xf32>
    %9 = vector.broadcast %1 : vector<1x1x74xf32> to vector<16x16x74xf32>
    %10 = arith.addf %8, %9 : vector<16x16x74xf32>
    %c1 = arith.constant 1 : index
    %c1_14 = arith.constant 1 : index
    %c0_15 = arith.constant 0 : index
    %11 = vector.load %arg10[%c1, %c1_14, %c0_15] : memref<18x18x74xf32, #tpu.memory_space<vmem>>, vector<16x16x74xf32>
    tpu.vector_store %arg10[%c1, %c1_14, %c0_15], %10 {strides = array<i32>} : memref<18x18x74xf32, #tpu.memory_space<vmem>>, vector<16x16x74xf32>,
    %c0_i32 = arith.constant 0 : i32
    %12 = arith.cmpi sgt, %arg1, %c0_i32 : i32
    %13 = arith.extui %12 : i1 to i32
    %14 = arith.sitofp %13 : i32 to f32
    %c0_i32_16 = arith.constant 0 : i32
    %15 = arith.cmpi slt, %arg1, %c0_i32_16 : i32
    %16 = arith.extui %15 : i1 to i32
    %17 = arith.sitofp %16 : i32 to f32
    %c0_17 = arith.constant 0 : index
    %c0_18 = arith.constant 0 : index
    %c0_19 = arith.constant 0 : index
    %c0_20 = arith.constant 0 : index
    %18 = vector.load %arg3[%c0_17, %c0_18, %c0_19, %c0_20] : memref<1x1x16x74xf32, #tpu.memory_space<vmem>>, vector<1x1x16x74xf32>
    %19 = vector.shape_cast %18 : vector<1x1x16x74xf32> to vector<1x16x74xf32>
    %20 = vector.broadcast %0 : vector<1x1x74xf32> to vector<1x16x74xf32>
    %21 = arith.mulf %19, %20 : vector<1x16x74xf32>
    %22 = vector.broadcast %1 : vector<1x1x74xf32> to vector<1x16x74xf32>
    %23 = arith.addf %21, %22 : vector<1x16x74xf32>
    %24 = vector.broadcast %14 : f32 to vector<1x16x74xf32>
    %25 = arith.mulf %24, %23 : vector<1x16x74xf32>
    %c0_21 = arith.constant 0 : index
    %c1_22 = arith.constant 1 : index
    %c0_23 = arith.constant 0 : index
    %26 = vector.load %arg10[%c0_21, %c1_22, %c0_23] : memref<18x18x74xf32, #tpu.memory_space<vmem>>, vector<1x16x74xf32>
    tpu.vector_store %arg10[%c0_21, %c1_22, %c0_23], %25 {strides = array<i32>} : memref<18x18x74xf32, #tpu.memory_space<vmem>>, vector<1x16x74xf32>,
    %c0_24 = arith.constant 0 : index
    %c0_25 = arith.constant 0 : index
    %c0_26 = arith.constant 0 : index
    %c0_27 = arith.constant 0 : index
    %27 = vector.load %arg4[%c0_24, %c0_25, %c0_26, %c0_27] : memref<1x1x16x74xf32, #tpu.memory_space<vmem>>, vector<1x1x16x74xf32>
    %28 = vector.shape_cast %27 : vector<1x1x16x74xf32> to vector<1x16x74xf32>
    %29 = vector.broadcast %0 : vector<1x1x74xf32> to vector<1x16x74xf32>
    %30 = arith.mulf %28, %29 : vector<1x16x74xf32>
    %31 = vector.broadcast %1 : vector<1x1x74xf32> to vector<1x16x74xf32>
    %32 = arith.addf %30, %31 : vector<1x16x74xf32>
    %33 = vector.broadcast %17 : f32 to vector<1x16x74xf32>
    %34 = arith.mulf %33, %32 : vector<1x16x74xf32>
    %c17_28 = arith.constant 17 : index
    %c1_29 = arith.constant 1 : index
    %c0_30 = arith.constant 0 : index
    %35 = vector.load %arg10[%c17_28, %c1_29, %c0_30] : memref<18x18x74xf32, #tpu.memory_space<vmem>>, vector<1x16x74xf32>
    tpu.vector_store %arg10[%c17_28, %c1_29, %c0_30], %34 {strides = array<i32>} : memref<18x18x74xf32, #tpu.memory_space<vmem>>, vector<1x16x74xf32>,
    %c0_31 = arith.constant 0 : index
    %c0_32 = arith.constant 0 : index
    %c0_33 = arith.constant 0 : index
    %36 = vector.load %arg10[%c0_31, %c0_32, %c0_33] : memref<18x18x74xf32, #tpu.memory_space<vmem>>, vector<16x16x74xf32>
    %37 = vector.shape_cast %36 : vector<16x16x74xf32> to vector<256x74xf32>
    %c0_34 = arith.constant 0 : index
    %c0_35 = arith.constant 0 : index
    %c0_36 = arith.constant 0 : index
    %c0_37 = arith.constant 0 : index
    %38 = vector.load %arg7[%c0_34, %c0_35, %c0_36, %c0_37] : memref<3x3x74x74xf32, #tpu.memory_space<vmem>>, vector<1x1x74x74xf32>
    %39 = vector.shape_cast %38 : vector<1x1x74x74xf32> to vector<74x74xf32>
    %cst_38 = arith.constant dense<0.000000e+00> : vector<256x74xf32>
    %40 = tpu.matmul %37, %39, %cst_38 {dimension_numbers = #tpu.dot_dimension_numbers<[1], [0], [0], [1], [0, 0, 1, 1], [], []>} : vector<256x74xf32>, vector<74x74xf32>, vector<256x74xf32> -> vector<256x74xf32>
    %c0_39 = arith.constant 0 : index
    %c0_40 = arith.constant 0 : index
    %41 = vector.load %arg11[%c0_39, %c0_40] : memref<256x74xf32, #tpu.memory_space<vmem>>, vector<256x74xf32>
    tpu.vector_store %arg11[%c0_39, %c0_40], %40 {strides = array<i32>} : memref<256x74xf32, #tpu.memory_space<vmem>>, vector<256x74xf32>,
    %c0_41 = arith.constant 0 : index
    %c1_42 = arith.constant 1 : index
    %c0_43 = arith.constant 0 : index
    %42 = vector.load %arg10[%c0_41, %c1_42, %c0_43] : memref<18x18x74xf32, #tpu.memory_space<vmem>>, vector<16x16x74xf32>
    %43 = vector.shape_cast %42 : vector<16x16x74xf32> to vector<256x74xf32>
    %c0_44 = arith.constant 0 : index
    %c1_45 = arith.constant 1 : index
    %c0_46 = arith.constant 0 : index
    %c0_47 = arith.constant 0 : index
    %44 = vector.load %arg7[%c0_44, %c1_45, %c0_46, %c0_47] : memref<3x3x74x74xf32, #tpu.memory_space<vmem>>, vector<1x1x74x74xf32>
    %45 = vector.shape_cast %44 : vector<1x1x74x74xf32> to vector<74x74xf32>
    %cst_48 = arith.constant dense<0.000000e+00> : vector<256x74xf32>
    %46 = tpu.matmul %43, %45, %cst_48 {dimension_numbers = #tpu.dot_dimension_numbers<[1], [0], [0], [1], [0, 0, 1, 1], [], []>} : vector<256x74xf32>, vector<74x74xf32>, vector<256x74xf32> -> vector<256x74xf32>
    %c0_49 = arith.constant 0 : index
    %c0_50 = arith.constant 0 : index
    %47 = vector.load %arg11[%c0_49, %c0_50] : memref<256x74xf32, #tpu.memory_space<vmem>>, vector<256x74xf32>
    %48 = arith.addf %47, %46 : vector<256x74xf32>
    %c0_51 = arith.constant 0 : index
    %c0_52 = arith.constant 0 : index
    %49 = vector.load %arg11[%c0_51, %c0_52] : memref<256x74xf32, #tpu.memory_space<vmem>>, vector<256x74xf32>
    tpu.vector_store %arg11[%c0_51, %c0_52], %48 {strides = array<i32>} : memref<256x74xf32, #tpu.memory_space<vmem>>, vector<256x74xf32>,
    %c0_53 = arith.constant 0 : index
    %c2 = arith.constant 2 : index
    %c0_54 = arith.constant 0 : index
    %50 = vector.load %arg10[%c0_53, %c2, %c0_54] : memref<18x18x74xf32, #tpu.memory_space<vmem>>, vector<16x16x74xf32>
    %51 = vector.shape_cast %50 : vector<16x16x74xf32> to vector<256x74xf32>
    %c0_55 = arith.constant 0 : index
    %c2_56 = arith.constant 2 : index
    %c0_57 = arith.constant 0 : index
    %c0_58 = arith.constant 0 : index
    %52 = vector.load %arg7[%c0_55, %c2_56, %c0_57, %c0_58] : memref<3x3x74x74xf32, #tpu.memory_space<vmem>>, vector<1x1x74x74xf32>
    %53 = vector.shape_cast %52 : vector<1x1x74x74xf32> to vector<74x74xf32>
    %cst_59 = arith.constant dense<0.000000e+00> : vector<256x74xf32>
    %54 = tpu.matmul %51, %53, %cst_59 {dimension_numbers = #tpu.dot_dimension_numbers<[1], [0], [0], [1], [0, 0, 1, 1], [], []>} : vector<256x74xf32>, vector<74x74xf32>, vector<256x74xf32> -> vector<256x74xf32>
    %c0_60 = arith.constant 0 : index
    %c0_61 = arith.constant 0 : index
    %55 = vector.load %arg11[%c0_60, %c0_61] : memref<256x74xf32, #tpu.memory_space<vmem>>, vector<256x74xf32>
    %56 = arith.addf %55, %54 : vector<256x74xf32>
    %c0_62 = arith.constant 0 : index
    %c0_63 = arith.constant 0 : index
    %57 = vector.load %arg11[%c0_62, %c0_63] : memref<256x74xf32, #tpu.memory_space<vmem>>, vector<256x74xf32>
    tpu.vector_store %arg11[%c0_62, %c0_63], %56 {strides = array<i32>} : memref<256x74xf32, #tpu.memory_space<vmem>>, vector<256x74xf32>,
    %c1_64 = arith.constant 1 : index
    %c0_65 = arith.constant 0 : index
    %c0_66 = arith.constant 0 : index
    %58 = vector.load %arg10[%c1_64, %c0_65, %c0_66] : memref<18x18x74xf32, #tpu.memory_space<vmem>>, vector<16x16x74xf32>
    %59 = vector.shape_cast %58 : vector<16x16x74xf32> to vector<256x74xf32>
    %c1_67 = arith.constant 1 : index
    %c0_68 = arith.constant 0 : index
    %c0_69 = arith.constant 0 : index
    %c0_70 = arith.constant 0 : index
    %60 = vector.load %arg7[%c1_67, %c0_68, %c0_69, %c0_70] : memref<3x3x74x74xf32, #tpu.memory_space<vmem>>, vector<1x1x74x74xf32>
    %61 = vector.shape_cast %60 : vector<1x1x74x74xf32> to vector<74x74xf32>
    %cst_71 = arith.constant dense<0.000000e+00> : vector<256x74xf32>
    %62 = tpu.matmul %59, %61, %cst_71 {dimension_numbers = #tpu.dot_dimension_numbers<[1], [0], [0], [1], [0, 0, 1, 1], [], []>} : vector<256x74xf32>, vector<74x74xf32>, vector<256x74xf32> -> vector<256x74xf32>
    %c0_72 = arith.constant 0 : index
    %c0_73 = arith.constant 0 : index
    %63 = vector.load %arg11[%c0_72, %c0_73] : memref<256x74xf32, #tpu.memory_space<vmem>>, vector<256x74xf32>
    %64 = arith.addf %63, %62 : vector<256x74xf32>
    %c0_74 = arith.constant 0 : index
    %c0_75 = arith.constant 0 : index
    %65 = vector.load %arg11[%c0_74, %c0_75] : memref<256x74xf32, #tpu.memory_space<vmem>>, vector<256x74xf32>
    tpu.vector_store %arg11[%c0_74, %c0_75], %64 {strides = array<i32>} : memref<256x74xf32, #tpu.memory_space<vmem>>, vector<256x74xf32>,
    %c1_76 = arith.constant 1 : index
    %c1_77 = arith.constant 1 : index
    %c0_78 = arith.constant 0 : index
    %66 = vector.load %arg10[%c1_76, %c1_77, %c0_78] : memref<18x18x74xf32, #tpu.memory_space<vmem>>, vector<16x16x74xf32>
    %67 = vector.shape_cast %66 : vector<16x16x74xf32> to vector<256x74xf32>
    %c1_79 = arith.constant 1 : index
    %c1_80 = arith.constant 1 : index
    %c0_81 = arith.constant 0 : index
    %c0_82 = arith.constant 0 : index
    %68 = vector.load %arg7[%c1_79, %c1_80, %c0_81, %c0_82] : memref<3x3x74x74xf32, #tpu.memory_space<vmem>>, vector<1x1x74x74xf32>
    %69 = vector.shape_cast %68 : vector<1x1x74x74xf32> to vector<74x74xf32>
    %cst_83 = arith.constant dense<0.000000e+00> : vector<256x74xf32>
    %70 = tpu.matmul %67, %69, %cst_83 {dimension_numbers = #tpu.dot_dimension_numbers<[1], [0], [0], [1], [0, 0, 1, 1], [], []>} : vector<256x74xf32>, vector<74x74xf32>, vector<256x74xf32> -> vector<256x74xf32>
    %c0_84 = arith.constant 0 : index
    %c0_85 = arith.constant 0 : index
    %71 = vector.load %arg11[%c0_84, %c0_85] : memref<256x74xf32, #tpu.memory_space<vmem>>, vector<256x74xf32>
    %72 = arith.addf %71, %70 : vector<256x74xf32>
    %c0_86 = arith.constant 0 : index
    %c0_87 = arith.constant 0 : index
    %73 = vector.load %arg11[%c0_86, %c0_87] : memref<256x74xf32, #tpu.memory_space<vmem>>, vector<256x74xf32>
    tpu.vector_store %arg11[%c0_86, %c0_87], %72 {strides = array<i32>} : memref<256x74xf32, #tpu.memory_space<vmem>>, vector<256x74xf32>,
    %c1_88 = arith.constant 1 : index
    %c2_89 = arith.constant 2 : index
    %c0_90 = arith.constant 0 : index
    %74 = vector.load %arg10[%c1_88, %c2_89, %c0_90] : memref<18x18x74xf32, #tpu.memory_space<vmem>>, vector<16x16x74xf32>
    %75 = vector.shape_cast %74 : vector<16x16x74xf32> to vector<256x74xf32>
    %c1_91 = arith.constant 1 : index
    %c2_92 = arith.constant 2 : index
    %c0_93 = arith.constant 0 : index
    %c0_94 = arith.constant 0 : index
    %76 = vector.load %arg7[%c1_91, %c2_92, %c0_93, %c0_94] : memref<3x3x74x74xf32, #tpu.memory_space<vmem>>, vector<1x1x74x74xf32>
    %77 = vector.shape_cast %76 : vector<1x1x74x74xf32> to vector<74x74xf32>
    %cst_95 = arith.constant dense<0.000000e+00> : vector<256x74xf32>
    %78 = tpu.matmul %75, %77, %cst_95 {dimension_numbers = #tpu.dot_dimension_numbers<[1], [0], [0], [1], [0, 0, 1, 1], [], []>} : vector<256x74xf32>, vector<74x74xf32>, vector<256x74xf32> -> vector<256x74xf32>
    %c0_96 = arith.constant 0 : index
    %c0_97 = arith.constant 0 : index
    %79 = vector.load %arg11[%c0_96, %c0_97] : memref<256x74xf32, #tpu.memory_space<vmem>>, vector<256x74xf32>
    %80 = arith.addf %79, %78 : vector<256x74xf32>
    %c0_98 = arith.constant 0 : index
    %c0_99 = arith.constant 0 : index
    %81 = vector.load %arg11[%c0_98, %c0_99] : memref<256x74xf32, #tpu.memory_space<vmem>>, vector<256x74xf32>
    tpu.vector_store %arg11[%c0_98, %c0_99], %80 {strides = array<i32>} : memref<256x74xf32, #tpu.memory_space<vmem>>, vector<256x74xf32>,
    %c2_100 = arith.constant 2 : index
    %c0_101 = arith.constant 0 : index
    %c0_102 = arith.constant 0 : index
    %82 = vector.load %arg10[%c2_100, %c0_101, %c0_102] : memref<18x18x74xf32, #tpu.memory_space<vmem>>, vector<16x16x74xf32>
    %83 = vector.shape_cast %82 : vector<16x16x74xf32> to vector<256x74xf32>
    %c2_103 = arith.constant 2 : index
    %c0_104 = arith.constant 0 : index
    %c0_105 = arith.constant 0 : index
    %c0_106 = arith.constant 0 : index
    %84 = vector.load %arg7[%c2_103, %c0_104, %c0_105, %c0_106] : memref<3x3x74x74xf32, #tpu.memory_space<vmem>>, vector<1x1x74x74xf32>
    %85 = vector.shape_cast %84 : vector<1x1x74x74xf32> to vector<74x74xf32>
    %cst_107 = arith.constant dense<0.000000e+00> : vector<256x74xf32>
    %86 = tpu.matmul %83, %85, %cst_107 {dimension_numbers = #tpu.dot_dimension_numbers<[1], [0], [0], [1], [0, 0, 1, 1], [], []>} : vector<256x74xf32>, vector<74x74xf32>, vector<256x74xf32> -> vector<256x74xf32>
    %c0_108 = arith.constant 0 : index
    %c0_109 = arith.constant 0 : index
    %87 = vector.load %arg11[%c0_108, %c0_109] : memref<256x74xf32, #tpu.memory_space<vmem>>, vector<256x74xf32>
    %88 = arith.addf %87, %86 : vector<256x74xf32>
    %c0_110 = arith.constant 0 : index
    %c0_111 = arith.constant 0 : index
    %89 = vector.load %arg11[%c0_110, %c0_111] : memref<256x74xf32, #tpu.memory_space<vmem>>, vector<256x74xf32>
    tpu.vector_store %arg11[%c0_110, %c0_111], %88 {strides = array<i32>} : memref<256x74xf32, #tpu.memory_space<vmem>>, vector<256x74xf32>,
    %c2_112 = arith.constant 2 : index
    %c1_113 = arith.constant 1 : index
    %c0_114 = arith.constant 0 : index
    %90 = vector.load %arg10[%c2_112, %c1_113, %c0_114] : memref<18x18x74xf32, #tpu.memory_space<vmem>>, vector<16x16x74xf32>
    %91 = vector.shape_cast %90 : vector<16x16x74xf32> to vector<256x74xf32>
    %c2_115 = arith.constant 2 : index
    %c1_116 = arith.constant 1 : index
    %c0_117 = arith.constant 0 : index
    %c0_118 = arith.constant 0 : index
    %92 = vector.load %arg7[%c2_115, %c1_116, %c0_117, %c0_118] : memref<3x3x74x74xf32, #tpu.memory_space<vmem>>, vector<1x1x74x74xf32>
    %93 = vector.shape_cast %92 : vector<1x1x74x74xf32> to vector<74x74xf32>
    %cst_119 = arith.constant dense<0.000000e+00> : vector<256x74xf32>
    %94 = tpu.matmul %91, %93, %cst_119 {dimension_numbers = #tpu.dot_dimension_numbers<[1], [0], [0], [1], [0, 0, 1, 1], [], []>} : vector<256x74xf32>, vector<74x74xf32>, vector<256x74xf32> -> vector<256x74xf32>
    %c0_120 = arith.constant 0 : index
    %c0_121 = arith.constant 0 : index
    %95 = vector.load %arg11[%c0_120, %c0_121] : memref<256x74xf32, #tpu.memory_space<vmem>>, vector<256x74xf32>
    %96 = arith.addf %95, %94 : vector<256x74xf32>
    %c0_122 = arith.constant 0 : index
    %c0_123 = arith.constant 0 : index
    %97 = vector.load %arg11[%c0_122, %c0_123] : memref<256x74xf32, #tpu.memory_space<vmem>>, vector<256x74xf32>
    tpu.vector_store %arg11[%c0_122, %c0_123], %96 {strides = array<i32>} : memref<256x74xf32, #tpu.memory_space<vmem>>, vector<256x74xf32>,
    %c2_124 = arith.constant 2 : index
    %c2_125 = arith.constant 2 : index
    %c0_126 = arith.constant 0 : index
    %98 = vector.load %arg10[%c2_124, %c2_125, %c0_126] : memref<18x18x74xf32, #tpu.memory_space<vmem>>, vector<16x16x74xf32>
    %99 = vector.shape_cast %98 : vector<16x16x74xf32> to vector<256x74xf32>
    %c2_127 = arith.constant 2 : index
    %c2_128 = arith.constant 2 : index
    %c0_129 = arith.constant 0 : index
    %c0_130 = arith.constant 0 : index
    %100 = vector.load %arg7[%c2_127, %c2_128, %c0_129, %c0_130] : memref<3x3x74x74xf32, #tpu.memory_space<vmem>>, vector<1x1x74x74xf32>
    %101 = vector.shape_cast %100 : vector<1x1x74x74xf32> to vector<74x74xf32>
    %cst_131 = arith.constant dense<0.000000e+00> : vector<256x74xf32>
    %102 = tpu.matmul %99, %101, %cst_131 {dimension_numbers = #tpu.dot_dimension_numbers<[1], [0], [0], [1], [0, 0, 1, 1], [], []>} : vector<256x74xf32>, vector<74x74xf32>, vector<256x74xf32> -> vector<256x74xf32>
    %c0_132 = arith.constant 0 : index
    %c0_133 = arith.constant 0 : index
    %103 = vector.load %arg11[%c0_132, %c0_133] : memref<256x74xf32, #tpu.memory_space<vmem>>, vector<256x74xf32>
    %104 = arith.addf %103, %102 : vector<256x74xf32>
    %c0_134 = arith.constant 0 : index
    %c0_135 = arith.constant 0 : index
    %105 = vector.load %arg11[%c0_134, %c0_135] : memref<256x74xf32, #tpu.memory_space<vmem>>, vector<256x74xf32>
    tpu.vector_store %arg11[%c0_134, %c0_135], %104 {strides = array<i32>} : memref<256x74xf32, #tpu.memory_space<vmem>>, vector<256x74xf32>,
    %c0_136 = arith.constant 0 : index
    %c0_137 = arith.constant 0 : index
    %106 = vector.load %arg11[%c0_136, %c0_137] : memref<256x74xf32, #tpu.memory_space<vmem>>, vector<256x74xf32>
    %107 = vector.shape_cast %106 : vector<256x74xf32> to vector<16x16x74xf32>
    %c0_138 = arith.constant 0 : index
    %c0_139 = arith.constant 0 : index
    %c0_140 = arith.constant 0 : index
    %c0_141 = arith.constant 0 : index
    %108 = vector.load %arg8[%c0_138, %c0_139, %c0_140, %c0_141] : memref<1x16x16x74xf32, #tpu.memory_space<vmem>>, vector<1x16x16x74xf32>
    %109 = vector.shape_cast %108 : vector<1x16x16x74xf32> to vector<16x16x74xf32>
    %110 = vector.shape_cast %107 : vector<16x16x74xf32> to vector<1x16x16x74xf32>
    tpu.vector_store %arg8[%c0_138, %c0_139, %c0_140, %c0_141], %110 {strides = array<i32>} : memref<1x16x16x74xf32, #tpu.memory_space<vmem>>, vector<1x16x16x74xf32>,
    %cst_142 = arith.constant 0.000000e+00 : f32
    %111 = vector.broadcast %cst_142 : f32 to vector<8x74xf32>
    %c0_143 = arith.constant 0 : index
    %c0_144 = arith.constant 0 : index
    %c0_145 = arith.constant 0 : index
    %c0_146 = arith.constant 0 : index
    %112 = vector.load %arg9[%c0_143, %c0_144, %c0_145, %c0_146] : memref<1x1x8x74xf32, #tpu.memory_space<vmem>>, vector<1x1x8x74xf32>
    %113 = vector.shape_cast %112 : vector<1x1x8x74xf32> to vector<8x74xf32>
    %114 = vector.shape_cast %111 : vector<8x74xf32> to vector<1x1x8x74xf32>
    tpu.vector_store %arg9[%c0_143, %c0_144, %c0_145, %c0_146], %114 {strides = array<i32>} : memref<1x1x8x74xf32, #tpu.memory_space<vmem>>, vector<1x1x8x74xf32>,
    %cst_147 = arith.constant dense<0.000000e+00> : vector<74xf32>
    %115 = vector.multi_reduction <add>, %106, %cst_147 [0] : vector<256x74xf32> to vector<74xf32>
    %116 = vector.shape_cast %115 : vector<74xf32> to vector<1x74xf32>
    %c0_148 = arith.constant 0 : index
    %c0_149 = arith.constant 0 : index
    %c0_150 = arith.constant 0 : index
    %c0_151 = arith.constant 0 : index
    %117 = vector.load %arg9[%c0_148, %c0_149, %c0_150, %c0_151] : memref<1x1x8x74xf32, #tpu.memory_space<vmem>>, vector<1x1x1x74xf32>
    %118 = vector.shape_cast %117 : vector<1x1x1x74xf32> to vector<1x74xf32>
    %119 = vector.shape_cast %116 : vector<1x74xf32> to vector<1x1x1x74xf32>
    tpu.vector_store %arg9[%c0_148, %c0_149, %c0_150, %c0_151], %119 {strides = array<i32>} : memref<1x1x8x74xf32, #tpu.memory_space<vmem>>, vector<1x1x1x74xf32>,
    %120 = arith.mulf %106, %106 : vector<256x74xf32>
    %cst_152 = arith.constant dense<0.000000e+00> : vector<74xf32>
    %121 = vector.multi_reduction <add>, %120, %cst_152 [0] : vector<256x74xf32> to vector<74xf32>
    %122 = vector.shape_cast %121 : vector<74xf32> to vector<1x74xf32>
    %c0_153 = arith.constant 0 : index
    %c0_154 = arith.constant 0 : index
    %c1_155 = arith.constant 1 : index
    %c0_156 = arith.constant 0 : index
    %123 = vector.load %arg9[%c0_153, %c0_154, %c1_155, %c0_156] : memref<1x1x8x74xf32, #tpu.memory_space<vmem>>, vector<1x1x1x74xf32>
    %124 = vector.shape_cast %123 : vector<1x1x1x74xf32> to vector<1x74xf32>
    %125 = vector.shape_cast %122 : vector<1x74xf32> to vector<1x1x1x74xf32>
    tpu.vector_store %arg9[%c0_153, %c0_154, %c1_155, %c0_156], %125 {strides = array<i32>} : memref<1x1x8x74xf32, #tpu.memory_space<vmem>>, vector<1x1x1x74xf32>,
    return
  }
  func.func @transform_0(%arg0: i32, %arg1: i32) -> (i32, i32, i32, i32) {
    %c0_i32 = arith.constant 0 : i32
    %c0_i32_0 = arith.constant 0 : i32
    %c0_i32_1 = arith.constant 0 : i32
    return %arg0, %arg1, %c0_i32, %c0_i32_0 : i32, i32, i32, i32
  }
  func.func @transform_1(%arg0: i32, %arg1: i32) -> (i32, i32, i32, i32) {
    %c16_i32 = arith.constant 16 : i32
    %0 = arith.muli %arg1, %c16_i32 : i32
    %c1_i32 = arith.constant 1 : i32
    %1 = arith.subi %0, %c1_i32 : i32
    %c0_i32 = arith.constant 0 : i32
    %2 = arith.maxsi %1, %c0_i32 : i32
    %c0_i32_0 = arith.constant 0 : i32
    %c0_i32_1 = arith.constant 0 : i32
    %c0_i32_2 = arith.constant 0 : i32
    return %arg0, %2, %c0_i32_0, %c0_i32_1 : i32, i32, i32, i32
  }
  func.func @transform_2(%arg0: i32, %arg1: i32) -> (i32, i32, i32, i32) {
    %c16_i32 = arith.constant 16 : i32
    %0 = arith.muli %arg1, %c16_i32 : i32
    %c16_i32_0 = arith.constant 16 : i32
    %1 = arith.addi %0, %c16_i32_0 : i32
    %c15_i32 = arith.constant 15 : i32
    %2 = arith.minsi %1, %c15_i32 : i32
    %c0_i32 = arith.constant 0 : i32
    %c0_i32_1 = arith.constant 0 : i32
    %c0_i32_2 = arith.constant 0 : i32
    return %arg0, %2, %c0_i32, %c0_i32_1 : i32, i32, i32, i32
  }
  func.func @transform_3(%arg0: i32, %arg1: i32) -> (i32, i32, i32) {
    %c0_i32 = arith.constant 0 : i32
    %c0_i32_0 = arith.constant 0 : i32
    %c0_i32_1 = arith.constant 0 : i32
    %c0_i32_2 = arith.constant 0 : i32
    return %c0_i32, %c0_i32_0, %c0_i32_1 : i32, i32, i32
  }
  func.func @transform_4(%arg0: i32, %arg1: i32) -> (i32, i32, i32) {
    %c0_i32 = arith.constant 0 : i32
    %c0_i32_0 = arith.constant 0 : i32
    %c0_i32_1 = arith.constant 0 : i32
    %c0_i32_2 = arith.constant 0 : i32
    return %c0_i32, %c0_i32_0, %c0_i32_1 : i32, i32, i32
  }
  func.func @transform_5(%arg0: i32, %arg1: i32) -> (i32, i32, i32, i32) {
    %c0_i32 = arith.constant 0 : i32
    %c0_i32_0 = arith.constant 0 : i32
    %c0_i32_1 = arith.constant 0 : i32
    %c0_i32_2 = arith.constant 0 : i32
    %c0_i32_3 = arith.constant 0 : i32
    return %c0_i32, %c0_i32_0, %c0_i32_1, %c0_i32_2 : i32, i32, i32, i32
  }
  func.func @transform_6(%arg0: i32, %arg1: i32) -> (i32, i32, i32, i32) {
    %c0_i32 = arith.constant 0 : i32
    %c0_i32_0 = arith.constant 0 : i32
    %c0_i32_1 = arith.constant 0 : i32
    return %arg0, %arg1, %c0_i32, %c0_i32_0 : i32, i32, i32, i32
  }
  func.func @transform_7(%arg0: i32, %arg1: i32) -> (i32, i32, i32, i32) {
    %c0_i32 = arith.constant 0 : i32
    %c0_i32_0 = arith.constant 0 : i32
    %c0_i32_1 = arith.constant 0 : i32
    return %arg0, %arg1, %c0_i32, %c0_i32_0 : i32, i32, i32, i32
  }
}

module attributes {stable_mosaic.version = 11 : i64} {
  func.func @_bn_conv1x1_kernel(%arg0: i32, %arg1: memref<512x74xf32, #tpu.memory_space<vmem>>, %arg2: memref<1x74xf32, #tpu.memory_space<vmem>>, %arg3: memref<1x74xf32, #tpu.memory_space<vmem>>, %arg4: memref<74x74xf32, #tpu.memory_space<vmem>>, %arg5: memref<512x74xf32, #tpu.memory_space<vmem>>, %arg6: memref<1x8x74xf32, #tpu.memory_space<vmem>>) attributes {dimension_semantics = [#tpu.dimension_semantics<parallel>], iteration_bounds = array<i64: 1>, scalar_prefetch = 0 : i64, scratch_operands = 0 : i64, tpu.core_type = #tpu.core_type<tc>, window_params = [{transform_indices = @transform_0, window_bounds = array<i64: 512, 74>}, {pipeline_mode = #tpu.pipeline_mode<synchronous>, transform_indices = @transform_1, window_bounds = array<i64: 1, 74>}, {pipeline_mode = #tpu.pipeline_mode<synchronous>, transform_indices = @transform_2, window_bounds = array<i64: 1, 74>}, {pipeline_mode = #tpu.pipeline_mode<synchronous>, transform_indices = @transform_3, window_bounds = array<i64: 74, 74>}, {transform_indices = @transform_4, window_bounds = array<i64: 512, 74>}, {transform_indices = @transform_5, window_bounds = array<i64: 1, 8, 74>}]} {
    %c0 = arith.constant 0 : index
    %c0_0 = arith.constant 0 : index
    %0 = vector.load %arg1[%c0, %c0_0] : memref<512x74xf32, #tpu.memory_space<vmem>>, vector<512x74xf32>
    %c0_1 = arith.constant 0 : index
    %c0_2 = arith.constant 0 : index
    %1 = vector.load %arg2[%c0_1, %c0_2] : memref<1x74xf32, #tpu.memory_space<vmem>>, vector<1x74xf32>
    %2 = vector.broadcast %1 : vector<1x74xf32> to vector<512x74xf32>
    %3 = arith.mulf %0, %2 : vector<512x74xf32>
    %c0_3 = arith.constant 0 : index
    %c0_4 = arith.constant 0 : index
    %4 = vector.load %arg3[%c0_3, %c0_4] : memref<1x74xf32, #tpu.memory_space<vmem>>, vector<1x74xf32>
    %5 = vector.broadcast %4 : vector<1x74xf32> to vector<512x74xf32>
    %6 = arith.addf %3, %5 : vector<512x74xf32>
    %c0_5 = arith.constant 0 : index
    %c0_6 = arith.constant 0 : index
    %7 = vector.load %arg4[%c0_5, %c0_6] : memref<74x74xf32, #tpu.memory_space<vmem>>, vector<74x74xf32>
    %cst = arith.constant dense<0.000000e+00> : vector<512x74xf32>
    %8 = tpu.matmul %6, %7, %cst {dimension_numbers = #tpu.dot_dimension_numbers<[1], [0], [0], [1], [0, 0, 1, 1], [], []>} : vector<512x74xf32>, vector<74x74xf32>, vector<512x74xf32> -> vector<512x74xf32>
    %c0_7 = arith.constant 0 : index
    %c0_8 = arith.constant 0 : index
    %9 = vector.load %arg5[%c0_7, %c0_8] : memref<512x74xf32, #tpu.memory_space<vmem>>, vector<512x74xf32>
    tpu.vector_store %arg5[%c0_7, %c0_8], %8 {strides = array<i32>} : memref<512x74xf32, #tpu.memory_space<vmem>>, vector<512x74xf32>,
    %c512_i32 = arith.constant 512 : i32
    %10 = arith.muli %arg0, %c512_i32 : i32
    %11 = tpu.iota {dimensions = array<i32: 0>} : vector<512x1xi32>
    %12 = vector.broadcast %10 : i32 to vector<512x1xi32>
    %13 = arith.addi %12, %11 : vector<512x1xi32>
    %c512_i32_9 = arith.constant 512 : i32
    %14 = vector.broadcast %c512_i32_9 : i32 to vector<512x1xi32>
    %15 = arith.cmpi slt, %13, %14 : vector<512x1xi32>
    %cst_10 = arith.constant 0.000000e+00 : f32
    %16 = vector.shape_cast %15 : vector<512x1xi1> to vector<512x1xi1>
    %17 = vector.broadcast %16 : vector<512x1xi1> to vector<512x74xi1>
    %18 = vector.broadcast %cst_10 : f32 to vector<512x74xf32>
    %19 = arith.select %17, %8, %18 : vector<512x74xi1>, vector<512x74xf32>
    %cst_11 = arith.constant 0.000000e+00 : f32
    %20 = vector.broadcast %cst_11 : f32 to vector<8x74xf32>
    %c0_12 = arith.constant 0 : index
    %c0_13 = arith.constant 0 : index
    %c0_14 = arith.constant 0 : index
    %21 = vector.load %arg6[%c0_12, %c0_13, %c0_14] : memref<1x8x74xf32, #tpu.memory_space<vmem>>, vector<1x8x74xf32>
    %22 = vector.shape_cast %21 : vector<1x8x74xf32> to vector<8x74xf32>
    %23 = vector.shape_cast %20 : vector<8x74xf32> to vector<1x8x74xf32>
    tpu.vector_store %arg6[%c0_12, %c0_13, %c0_14], %23 {strides = array<i32>} : memref<1x8x74xf32, #tpu.memory_space<vmem>>, vector<1x8x74xf32>,
    %cst_15 = arith.constant dense<0.000000e+00> : vector<74xf32>
    %24 = vector.multi_reduction <add>, %19, %cst_15 [0] : vector<512x74xf32> to vector<74xf32>
    %25 = vector.shape_cast %24 : vector<74xf32> to vector<1x74xf32>
    %c0_16 = arith.constant 0 : index
    %c0_17 = arith.constant 0 : index
    %c0_18 = arith.constant 0 : index
    %26 = vector.load %arg6[%c0_16, %c0_17, %c0_18] : memref<1x8x74xf32, #tpu.memory_space<vmem>>, vector<1x1x74xf32>
    %27 = vector.shape_cast %26 : vector<1x1x74xf32> to vector<1x74xf32>
    %28 = vector.shape_cast %25 : vector<1x74xf32> to vector<1x1x74xf32>
    tpu.vector_store %arg6[%c0_16, %c0_17, %c0_18], %28 {strides = array<i32>} : memref<1x8x74xf32, #tpu.memory_space<vmem>>, vector<1x1x74xf32>,
    %29 = arith.mulf %19, %19 : vector<512x74xf32>
    %cst_19 = arith.constant dense<0.000000e+00> : vector<74xf32>
    %30 = vector.multi_reduction <add>, %29, %cst_19 [0] : vector<512x74xf32> to vector<74xf32>
    %31 = vector.shape_cast %30 : vector<74xf32> to vector<1x74xf32>
    %c0_20 = arith.constant 0 : index
    %c1 = arith.constant 1 : index
    %c0_21 = arith.constant 0 : index
    %32 = vector.load %arg6[%c0_20, %c1, %c0_21] : memref<1x8x74xf32, #tpu.memory_space<vmem>>, vector<1x1x74xf32>
    %33 = vector.shape_cast %32 : vector<1x1x74xf32> to vector<1x74xf32>
    %34 = vector.shape_cast %31 : vector<1x74xf32> to vector<1x1x74xf32>
    tpu.vector_store %arg6[%c0_20, %c1, %c0_21], %34 {strides = array<i32>} : memref<1x8x74xf32, #tpu.memory_space<vmem>>, vector<1x1x74xf32>,
    return
  }
  func.func @transform_0(%arg0: i32) -> (i32, i32) {
    %c0_i32 = arith.constant 0 : i32
    %c0_i32_0 = arith.constant 0 : i32
    return %arg0, %c0_i32 : i32, i32
  }
  func.func @transform_1(%arg0: i32) -> (i32, i32) {
    %c0_i32 = arith.constant 0 : i32
    %c0_i32_0 = arith.constant 0 : i32
    %c0_i32_1 = arith.constant 0 : i32
    return %c0_i32, %c0_i32_0 : i32, i32
  }
  func.func @transform_2(%arg0: i32) -> (i32, i32) {
    %c0_i32 = arith.constant 0 : i32
    %c0_i32_0 = arith.constant 0 : i32
    %c0_i32_1 = arith.constant 0 : i32
    return %c0_i32, %c0_i32_0 : i32, i32
  }
  func.func @transform_3(%arg0: i32) -> (i32, i32) {
    %c0_i32 = arith.constant 0 : i32
    %c0_i32_0 = arith.constant 0 : i32
    %c0_i32_1 = arith.constant 0 : i32
    return %c0_i32, %c0_i32_0 : i32, i32
  }
  func.func @transform_4(%arg0: i32) -> (i32, i32) {
    %c0_i32 = arith.constant 0 : i32
    %c0_i32_0 = arith.constant 0 : i32
    return %arg0, %c0_i32 : i32, i32
  }
  func.func @transform_5(%arg0: i32) -> (i32, i32, i32) {
    %c0_i32 = arith.constant 0 : i32
    %c0_i32_0 = arith.constant 0 : i32
    %c0_i32_1 = arith.constant 0 : i32
    return %arg0, %c0_i32, %c0_i32_0 : i32, i32, i32
  }
}

module attributes {stable_mosaic.version = 11 : i64} {
  func.func @_bn_conv3x3_c1_kernel(%arg0: i32, %arg1: i32, %arg2: memref<1x16x16x74xf32, #tpu.memory_space<vmem>>, %arg3: memref<1x1x16x74xf32, #tpu.memory_space<vmem>>, %arg4: memref<1x1x16x74xf32, #tpu.memory_space<vmem>>, %arg5: memref<1x1x74xf32, #tpu.memory_space<vmem>>, %arg6: memref<1x1x74xf32, #tpu.memory_space<vmem>>, %arg7: memref<3x3x74xf32, #tpu.memory_space<vmem>>, %arg8: memref<1x16x16xf32, #tpu.memory_space<vmem>>, %arg9: memref<18x18x74xf32, #tpu.memory_space<vmem>>) attributes {dimension_semantics = [#tpu.dimension_semantics<parallel>, #tpu.dimension_semantics<parallel>], iteration_bounds = array<i64: 2, 1>, scalar_prefetch = 0 : i64, scratch_operands = 1 : i64, tpu.core_type = #tpu.core_type<tc>, window_params = [{transform_indices = @transform_0, window_bounds = array<i64: 1, 16, 16, 74>}, {transform_indices = @transform_1, window_bounds = array<i64: 1, 1, 16, 74>}, {transform_indices = @transform_2, window_bounds = array<i64: 1, 1, 16, 74>}, {pipeline_mode = #tpu.pipeline_mode<synchronous>, transform_indices = @transform_3, window_bounds = array<i64: 1, 1, 74>}, {pipeline_mode = #tpu.pipeline_mode<synchronous>, transform_indices = @transform_4, window_bounds = array<i64: 1, 1, 74>}, {pipeline_mode = #tpu.pipeline_mode<synchronous>, transform_indices = @transform_5, window_bounds = array<i64: 3, 3, 74>}, {transform_indices = @transform_6, window_bounds = array<i64: 1, 16, 16>}]} {
    %c0 = arith.constant 0 : index
    %c0_0 = arith.constant 0 : index
    %c0_1 = arith.constant 0 : index
    %0 = vector.load %arg5[%c0, %c0_0, %c0_1] : memref<1x1x74xf32, #tpu.memory_space<vmem>>, vector<1x1x74xf32>
    %c0_2 = arith.constant 0 : index
    %c0_3 = arith.constant 0 : index
    %c0_4 = arith.constant 0 : index
    %1 = vector.load %arg6[%c0_2, %c0_3, %c0_4] : memref<1x1x74xf32, #tpu.memory_space<vmem>>, vector<1x1x74xf32>
    %cst = arith.constant 0.000000e+00 : f32
    %2 = vector.broadcast %cst : f32 to vector<18x1x74xf32>
    %c0_5 = arith.constant 0 : index
    %c0_6 = arith.constant 0 : index
    %c0_7 = arith.constant 0 : index
    %3 = vector.load %arg9[%c0_5, %c0_6, %c0_7] : memref<18x18x74xf32, #tpu.memory_space<vmem>>, vector<18x1x74xf32>
    tpu.vector_store %arg9[%c0_5, %c0_6, %c0_7], %2 {strides = array<i32>} : memref<18x18x74xf32, #tpu.memory_space<vmem>>, vector<18x1x74xf32>,
    %c0_8 = arith.constant 0 : index
    %c17 = arith.constant 17 : index
    %c0_9 = arith.constant 0 : index
    %4 = vector.load %arg9[%c0_8, %c17, %c0_9] : memref<18x18x74xf32, #tpu.memory_space<vmem>>, vector<18x1x74xf32>
    tpu.vector_store %arg9[%c0_8, %c17, %c0_9], %2 {strides = array<i32>} : memref<18x18x74xf32, #tpu.memory_space<vmem>>, vector<18x1x74xf32>,
    %c0_10 = arith.constant 0 : index
    %c0_11 = arith.constant 0 : index
    %c0_12 = arith.constant 0 : index
    %c0_13 = arith.constant 0 : index
    %5 = vector.load %arg2[%c0_10, %c0_11, %c0_12, %c0_13] : memref<1x16x16x74xf32, #tpu.memory_space<vmem>>, vector<1x16x16x74xf32>
    %6 = vector.shape_cast %5 : vector<1x16x16x74xf32> to vector<16x16x74xf32>
    %7 = vector.broadcast %0 : vector<1x1x74xf32> to vector<16x16x74xf32>
    %8 = arith.mulf %6, %7 : vector<16x16x74xf32>
    %9 = vector.broadcast %1 : vector<1x1x74xf32> to vector<16x16x74xf32>
    %10 = arith.addf %8, %9 : vector<16x16x74xf32>
    %c1 = arith.constant 1 : index
    %c1_14 = arith.constant 1 : index
    %c0_15 = arith.constant 0 : index
    %11 = vector.load %arg9[%c1, %c1_14, %c0_15] : memref<18x18x74xf32, #tpu.memory_space<vmem>>, vector<16x16x74xf32>
    tpu.vector_store %arg9[%c1, %c1_14, %c0_15], %10 {strides = array<i32>} : memref<18x18x74xf32, #tpu.memory_space<vmem>>, vector<16x16x74xf32>,
    %c0_i32 = arith.constant 0 : i32
    %12 = arith.cmpi sgt, %arg1, %c0_i32 : i32
    %13 = arith.extui %12 : i1 to i32
    %14 = arith.sitofp %13 : i32 to f32
    %c0_i32_16 = arith.constant 0 : i32
    %15 = arith.cmpi slt, %arg1, %c0_i32_16 : i32
    %16 = arith.extui %15 : i1 to i32
    %17 = arith.sitofp %16 : i32 to f32
    %c0_17 = arith.constant 0 : index
    %c0_18 = arith.constant 0 : index
    %c0_19 = arith.constant 0 : index
    %c0_20 = arith.constant 0 : index
    %18 = vector.load %arg3[%c0_17, %c0_18, %c0_19, %c0_20] : memref<1x1x16x74xf32, #tpu.memory_space<vmem>>, vector<1x1x16x74xf32>
    %19 = vector.shape_cast %18 : vector<1x1x16x74xf32> to vector<1x16x74xf32>
    %20 = vector.broadcast %0 : vector<1x1x74xf32> to vector<1x16x74xf32>
    %21 = arith.mulf %19, %20 : vector<1x16x74xf32>
    %22 = vector.broadcast %1 : vector<1x1x74xf32> to vector<1x16x74xf32>
    %23 = arith.addf %21, %22 : vector<1x16x74xf32>
    %24 = vector.broadcast %14 : f32 to vector<1x16x74xf32>
    %25 = arith.mulf %24, %23 : vector<1x16x74xf32>
    %c0_21 = arith.constant 0 : index
    %c1_22 = arith.constant 1 : index
    %c0_23 = arith.constant 0 : index
    %26 = vector.load %arg9[%c0_21, %c1_22, %c0_23] : memref<18x18x74xf32, #tpu.memory_space<vmem>>, vector<1x16x74xf32>
    tpu.vector_store %arg9[%c0_21, %c1_22, %c0_23], %25 {strides = array<i32>} : memref<18x18x74xf32, #tpu.memory_space<vmem>>, vector<1x16x74xf32>,
    %c0_24 = arith.constant 0 : index
    %c0_25 = arith.constant 0 : index
    %c0_26 = arith.constant 0 : index
    %c0_27 = arith.constant 0 : index
    %27 = vector.load %arg4[%c0_24, %c0_25, %c0_26, %c0_27] : memref<1x1x16x74xf32, #tpu.memory_space<vmem>>, vector<1x1x16x74xf32>
    %28 = vector.shape_cast %27 : vector<1x1x16x74xf32> to vector<1x16x74xf32>
    %29 = vector.broadcast %0 : vector<1x1x74xf32> to vector<1x16x74xf32>
    %30 = arith.mulf %28, %29 : vector<1x16x74xf32>
    %31 = vector.broadcast %1 : vector<1x1x74xf32> to vector<1x16x74xf32>
    %32 = arith.addf %30, %31 : vector<1x16x74xf32>
    %33 = vector.broadcast %17 : f32 to vector<1x16x74xf32>
    %34 = arith.mulf %33, %32 : vector<1x16x74xf32>
    %c17_28 = arith.constant 17 : index
    %c1_29 = arith.constant 1 : index
    %c0_30 = arith.constant 0 : index
    %35 = vector.load %arg9[%c17_28, %c1_29, %c0_30] : memref<18x18x74xf32, #tpu.memory_space<vmem>>, vector<1x16x74xf32>
    tpu.vector_store %arg9[%c17_28, %c1_29, %c0_30], %34 {strides = array<i32>} : memref<18x18x74xf32, #tpu.memory_space<vmem>>, vector<1x16x74xf32>,
    %cst_31 = arith.constant 0.000000e+00 : f32
    %36 = vector.broadcast %cst_31 : f32 to vector<16x16xf32>
    %c0_32 = arith.constant 0 : index
    %c0_33 = arith.constant 0 : index
    %c0_34 = arith.constant 0 : index
    %37 = vector.load %arg9[%c0_32, %c0_33, %c0_34] : memref<18x18x74xf32, #tpu.memory_space<vmem>>, vector<16x16x74xf32>
    %c0_35 = arith.constant 0 : index
    %c0_36 = arith.constant 0 : index
    %c0_37 = arith.constant 0 : index
    %38 = vector.load %arg7[%c0_35, %c0_36, %c0_37] : memref<3x3x74xf32, #tpu.memory_space<vmem>>, vector<1x1x74xf32>
    %39 = vector.broadcast %38 : vector<1x1x74xf32> to vector<16x16x74xf32>
    %40 = arith.mulf %37, %39 : vector<16x16x74xf32>
    %cst_38 = arith.constant dense<0.000000e+00> : vector<16x16xf32>
    %41 = vector.multi_reduction <add>, %40, %cst_38 [2] : vector<16x16x74xf32> to vector<16x16xf32>
    %42 = arith.addf %36, %41 : vector<16x16xf32>
    %c0_39 = arith.constant 0 : index
    %c1_40 = arith.constant 1 : index
    %c0_41 = arith.constant 0 : index
    %43 = vector.load %arg9[%c0_39, %c1_40, %c0_41] : memref<18x18x74xf32, #tpu.memory_space<vmem>>, vector<16x16x74xf32>
    %c0_42 = arith.constant 0 : index
    %c1_43 = arith.constant 1 : index
    %c0_44 = arith.constant 0 : index
    %44 = vector.load %arg7[%c0_42, %c1_43, %c0_44] : memref<3x3x74xf32, #tpu.memory_space<vmem>>, vector<1x1x74xf32>
    %45 = vector.broadcast %44 : vector<1x1x74xf32> to vector<16x16x74xf32>
    %46 = arith.mulf %43, %45 : vector<16x16x74xf32>
    %cst_45 = arith.constant dense<0.000000e+00> : vector<16x16xf32>
    %47 = vector.multi_reduction <add>, %46, %cst_45 [2] : vector<16x16x74xf32> to vector<16x16xf32>
    %48 = arith.addf %42, %47 : vector<16x16xf32>
    %c0_46 = arith.constant 0 : index
    %c2 = arith.constant 2 : index
    %c0_47 = arith.constant 0 : index
    %49 = vector.load %arg9[%c0_46, %c2, %c0_47] : memref<18x18x74xf32, #tpu.memory_space<vmem>>, vector<16x16x74xf32>
    %c0_48 = arith.constant 0 : index
    %c2_49 = arith.constant 2 : index
    %c0_50 = arith.constant 0 : index
    %50 = vector.load %arg7[%c0_48, %c2_49, %c0_50] : memref<3x3x74xf32, #tpu.memory_space<vmem>>, vector<1x1x74xf32>
    %51 = vector.broadcast %50 : vector<1x1x74xf32> to vector<16x16x74xf32>
    %52 = arith.mulf %49, %51 : vector<16x16x74xf32>
    %cst_51 = arith.constant dense<0.000000e+00> : vector<16x16xf32>
    %53 = vector.multi_reduction <add>, %52, %cst_51 [2] : vector<16x16x74xf32> to vector<16x16xf32>
    %54 = arith.addf %48, %53 : vector<16x16xf32>
    %c1_52 = arith.constant 1 : index
    %c0_53 = arith.constant 0 : index
    %c0_54 = arith.constant 0 : index
    %55 = vector.load %arg9[%c1_52, %c0_53, %c0_54] : memref<18x18x74xf32, #tpu.memory_space<vmem>>, vector<16x16x74xf32>
    %c1_55 = arith.constant 1 : index
    %c0_56 = arith.constant 0 : index
    %c0_57 = arith.constant 0 : index
    %56 = vector.load %arg7[%c1_55, %c0_56, %c0_57] : memref<3x3x74xf32, #tpu.memory_space<vmem>>, vector<1x1x74xf32>
    %57 = vector.broadcast %56 : vector<1x1x74xf32> to vector<16x16x74xf32>
    %58 = arith.mulf %55, %57 : vector<16x16x74xf32>
    %cst_58 = arith.constant dense<0.000000e+00> : vector<16x16xf32>
    %59 = vector.multi_reduction <add>, %58, %cst_58 [2] : vector<16x16x74xf32> to vector<16x16xf32>
    %60 = arith.addf %54, %59 : vector<16x16xf32>
    %c1_59 = arith.constant 1 : index
    %c1_60 = arith.constant 1 : index
    %c0_61 = arith.constant 0 : index
    %61 = vector.load %arg9[%c1_59, %c1_60, %c0_61] : memref<18x18x74xf32, #tpu.memory_space<vmem>>, vector<16x16x74xf32>
    %c1_62 = arith.constant 1 : index
    %c1_63 = arith.constant 1 : index
    %c0_64 = arith.constant 0 : index
    %62 = vector.load %arg7[%c1_62, %c1_63, %c0_64] : memref<3x3x74xf32, #tpu.memory_space<vmem>>, vector<1x1x74xf32>
    %63 = vector.broadcast %62 : vector<1x1x74xf32> to vector<16x16x74xf32>
    %64 = arith.mulf %61, %63 : vector<16x16x74xf32>
    %cst_65 = arith.constant dense<0.000000e+00> : vector<16x16xf32>
    %65 = vector.multi_reduction <add>, %64, %cst_65 [2] : vector<16x16x74xf32> to vector<16x16xf32>
    %66 = arith.addf %60, %65 : vector<16x16xf32>
    %c1_66 = arith.constant 1 : index
    %c2_67 = arith.constant 2 : index
    %c0_68 = arith.constant 0 : index
    %67 = vector.load %arg9[%c1_66, %c2_67, %c0_68] : memref<18x18x74xf32, #tpu.memory_space<vmem>>, vector<16x16x74xf32>
    %c1_69 = arith.constant 1 : index
    %c2_70 = arith.constant 2 : index
    %c0_71 = arith.constant 0 : index
    %68 = vector.load %arg7[%c1_69, %c2_70, %c0_71] : memref<3x3x74xf32, #tpu.memory_space<vmem>>, vector<1x1x74xf32>
    %69 = vector.broadcast %68 : vector<1x1x74xf32> to vector<16x16x74xf32>
    %70 = arith.mulf %67, %69 : vector<16x16x74xf32>
    %cst_72 = arith.constant dense<0.000000e+00> : vector<16x16xf32>
    %71 = vector.multi_reduction <add>, %70, %cst_72 [2] : vector<16x16x74xf32> to vector<16x16xf32>
    %72 = arith.addf %66, %71 : vector<16x16xf32>
    %c2_73 = arith.constant 2 : index
    %c0_74 = arith.constant 0 : index
    %c0_75 = arith.constant 0 : index
    %73 = vector.load %arg9[%c2_73, %c0_74, %c0_75] : memref<18x18x74xf32, #tpu.memory_space<vmem>>, vector<16x16x74xf32>
    %c2_76 = arith.constant 2 : index
    %c0_77 = arith.constant 0 : index
    %c0_78 = arith.constant 0 : index
    %74 = vector.load %arg7[%c2_76, %c0_77, %c0_78] : memref<3x3x74xf32, #tpu.memory_space<vmem>>, vector<1x1x74xf32>
    %75 = vector.broadcast %74 : vector<1x1x74xf32> to vector<16x16x74xf32>
    %76 = arith.mulf %73, %75 : vector<16x16x74xf32>
    %cst_79 = arith.constant dense<0.000000e+00> : vector<16x16xf32>
    %77 = vector.multi_reduction <add>, %76, %cst_79 [2] : vector<16x16x74xf32> to vector<16x16xf32>
    %78 = arith.addf %72, %77 : vector<16x16xf32>
    %c2_80 = arith.constant 2 : index
    %c1_81 = arith.constant 1 : index
    %c0_82 = arith.constant 0 : index
    %79 = vector.load %arg9[%c2_80, %c1_81, %c0_82] : memref<18x18x74xf32, #tpu.memory_space<vmem>>, vector<16x16x74xf32>
    %c2_83 = arith.constant 2 : index
    %c1_84 = arith.constant 1 : index
    %c0_85 = arith.constant 0 : index
    %80 = vector.load %arg7[%c2_83, %c1_84, %c0_85] : memref<3x3x74xf32, #tpu.memory_space<vmem>>, vector<1x1x74xf32>
    %81 = vector.broadcast %80 : vector<1x1x74xf32> to vector<16x16x74xf32>
    %82 = arith.mulf %79, %81 : vector<16x16x74xf32>
    %cst_86 = arith.constant dense<0.000000e+00> : vector<16x16xf32>
    %83 = vector.multi_reduction <add>, %82, %cst_86 [2] : vector<16x16x74xf32> to vector<16x16xf32>
    %84 = arith.addf %78, %83 : vector<16x16xf32>
    %c2_87 = arith.constant 2 : index
    %c2_88 = arith.constant 2 : index
    %c0_89 = arith.constant 0 : index
    %85 = vector.load %arg9[%c2_87, %c2_88, %c0_89] : memref<18x18x74xf32, #tpu.memory_space<vmem>>, vector<16x16x74xf32>
    %c2_90 = arith.constant 2 : index
    %c2_91 = arith.constant 2 : index
    %c0_92 = arith.constant 0 : index
    %86 = vector.load %arg7[%c2_90, %c2_91, %c0_92] : memref<3x3x74xf32, #tpu.memory_space<vmem>>, vector<1x1x74xf32>
    %87 = vector.broadcast %86 : vector<1x1x74xf32> to vector<16x16x74xf32>
    %88 = arith.mulf %85, %87 : vector<16x16x74xf32>
    %cst_93 = arith.constant dense<0.000000e+00> : vector<16x16xf32>
    %89 = vector.multi_reduction <add>, %88, %cst_93 [2] : vector<16x16x74xf32> to vector<16x16xf32>
    %90 = arith.addf %84, %89 : vector<16x16xf32>
    %c0_94 = arith.constant 0 : index
    %c0_95 = arith.constant 0 : index
    %c0_96 = arith.constant 0 : index
    %91 = vector.load %arg8[%c0_94, %c0_95, %c0_96] : memref<1x16x16xf32, #tpu.memory_space<vmem>>, vector<1x16x16xf32>
    %92 = vector.shape_cast %91 : vector<1x16x16xf32> to vector<16x16xf32>
    %93 = vector.shape_cast %90 : vector<16x16xf32> to vector<1x16x16xf32>
    tpu.vector_store %arg8[%c0_94, %c0_95, %c0_96], %93 {strides = array<i32>} : memref<1x16x16xf32, #tpu.memory_space<vmem>>, vector<1x16x16xf32>,
    return
  }
  func.func @transform_0(%arg0: i32, %arg1: i32) -> (i32, i32, i32, i32) {
    %c0_i32 = arith.constant 0 : i32
    %c0_i32_0 = arith.constant 0 : i32
    %c0_i32_1 = arith.constant 0 : i32
    return %arg0, %arg1, %c0_i32, %c0_i32_0 : i32, i32, i32, i32
  }
  func.func @transform_1(%arg0: i32, %arg1: i32) -> (i32, i32, i32, i32) {
    %c16_i32 = arith.constant 16 : i32
    %0 = arith.muli %arg1, %c16_i32 : i32
    %c1_i32 = arith.constant 1 : i32
    %1 = arith.subi %0, %c1_i32 : i32
    %c0_i32 = arith.constant 0 : i32
    %2 = arith.maxsi %1, %c0_i32 : i32
    %c0_i32_0 = arith.constant 0 : i32
    %c0_i32_1 = arith.constant 0 : i32
    %c0_i32_2 = arith.constant 0 : i32
    return %arg0, %2, %c0_i32_0, %c0_i32_1 : i32, i32, i32, i32
  }
  func.func @transform_2(%arg0: i32, %arg1: i32) -> (i32, i32, i32, i32) {
    %c16_i32 = arith.constant 16 : i32
    %0 = arith.muli %arg1, %c16_i32 : i32
    %c16_i32_0 = arith.constant 16 : i32
    %1 = arith.addi %0, %c16_i32_0 : i32
    %c15_i32 = arith.constant 15 : i32
    %2 = arith.minsi %1, %c15_i32 : i32
    %c0_i32 = arith.constant 0 : i32
    %c0_i32_1 = arith.constant 0 : i32
    %c0_i32_2 = arith.constant 0 : i32
    return %arg0, %2, %c0_i32, %c0_i32_1 : i32, i32, i32, i32
  }
  func.func @transform_3(%arg0: i32, %arg1: i32) -> (i32, i32, i32) {
    %c0_i32 = arith.constant 0 : i32
    %c0_i32_0 = arith.constant 0 : i32
    %c0_i32_1 = arith.constant 0 : i32
    %c0_i32_2 = arith.constant 0 : i32
    return %c0_i32, %c0_i32_0, %c0_i32_1 : i32, i32, i32
  }
  func.func @transform_4(%arg0: i32, %arg1: i32) -> (i32, i32, i32) {
    %c0_i32 = arith.constant 0 : i32
    %c0_i32_0 = arith.constant 0 : i32
    %c0_i32_1 = arith.constant 0 : i32
    %c0_i32_2 = arith.constant 0 : i32
    return %c0_i32, %c0_i32_0, %c0_i32_1 : i32, i32, i32
  }
  func.func @transform_5(%arg0: i32, %arg1: i32) -> (i32, i32, i32) {
    %c0_i32 = arith.constant 0 : i32
    %c0_i32_0 = arith.constant 0 : i32
    %c0_i32_1 = arith.constant 0 : i32
    %c0_i32_2 = arith.constant 0 : i32
    return %c0_i32, %c0_i32_0, %c0_i32_1 : i32, i32, i32
  }
  func.func @transform_6(%arg0: i32, %arg1: i32) -> (i32, i32, i32) {
    %c0_i32 = arith.constant 0 : i32
    %c0_i32_0 = arith.constant 0 : i32
    return %arg0, %arg1, %c0_i32 : i32, i32, i32
  }
}

</mosaic_0001>

<bundles_post_ra>
// kernel: model_forward.6
= control target key start
LH: loop header
LB: loop body
LE: loop exit
PB: predicated region body
PF: predicated region fallthrough
CT: control target
= control target key end

     0   :  { %vm235_vm0 = vcmask 605184   ;;  %vm428_vm1 = vcmask 1041408   ;;  %vm1901_vm2 = vmmov 1   ;;  %vm1402_vm4 = vcmask 598016   ;;  %s2991_s3 = inlined_call_operand.vmem [shape: f32[74,74], index: 3, kind: input, shape index: {}]   ;;  %s2992_s0 = inlined_call_operand.vmem [shape: f32[512,74], index: 0, kind: input, shape index: {}]   ;;  %s2993_s1 = inlined_call_operand.vmem [shape: f32[1,74], index: 1, kind: input, shape index: {}]   ;;  %s2994_s2 = inlined_call_operand.vmem [shape: f32[1,74], index: 2, kind: input, shape index: {}]   ;;  %s2995_s5 = inlined_call_operand.vmem [shape: f32[1,8,74], index: 5, kind: output, shape index: {1}]   ;;  %s2996_s4 = inlined_call_operand.vmem [shape: f32[512,74], index: 4, kind: output, shape index: {0}]  }
   0x1   :  { %v225_v0 = vld [vmem:[%s2991_s3] sm:$0xff]  ;;  %v226_v1 = vld [vmem:[%s2991_s3 + $0x8] sm:$0xff]  ;;  %v227_v2 = vld [vmem:[%s2991_s3 + $0x10] sm:$0xff] }
   0x2   :  { %v1867_v3 = vpack.c.bf16 %v226_v1, %v225_v0  ;;  %v228_v4 = vld [vmem:[%s2991_s3 + $0x18] sm:$0xff]  ;;  %v229_v6 = vld [vmem:[%s2991_s3 + $0x20] sm:$0xff]  ;;  %v230_v7 = vld [vmem:[%s2991_s3 + $0x28] sm:$0xff] }
   0x3   :  { %v1871_v5 = vpack.c.bf16 %v228_v4, %v227_v2  ;;  %v19_v8 = vld [vmem:[%s2992_s0] sm:$0xff]  ;;  %v1875_v11 = vpack.c.bf16 %v230_v7, %v229_v6  ;;  %v231_v13 = vld [vmem:[%s2991_s3 + $0x30] sm:$0xff]  ;;  %v232_v14 = vld [vmem:[%s2991_s3 + $0x38] sm:$0xff] }
   0x4   :  { %1868 = vmatprep.subr.bf16.mxu0 %v1867_v3  ;;  %1889 = vmatprep.subr.bf16.mxu1 %v1867_v3  ;;  %v1957_v9 = vld [vmem:[%s2993_s1] ss:$0 sm:$0xff]  ;;  %v1879_v16 = vpack.c.bf16 %v232_v14, %v231_v13  ;;  %v234_v18 = vld [vmem:[%s2991_s3 + $0x48] sm:$0x3]  ;;  %v21_v21 = vld [vmem:[%s2992_s0 + $0x10] sm:$0xff] }
   0x5   :  { %1870 = vmatpush3.bf16.msra.mxu0 %v1867_v3  ;;  %v1962_v10 = vld [vmem:[%s2994_s2] ss:$0 sm:$0xff]  ;;  %1894 = vmatpush3.bf16.msra.mxu1 %v1867_v3  ;;  %v90_v12 = vmul.f32 %v1957_v9, %v19_v8  ;;  %v20_v19 = vld [vmem:[%s2992_s0 + $0x8] sm:$0xff]  ;;  %vm1985_vm3 = vmpackc.low %vm428_vm1, %vm1901_vm2  ;;  %v92_v26 = vmul.f32 %v1957_v9, %v21_v21 }
   0x6   :  { %1872 = vmatprep.subr.bf16.mxu0 %v1871_v5  ;;  %1890 = vmatprep.subr.bf16.mxu1 %v1871_v5  ;;  %v233_v17 = vld [vmem:[%s2991_s3 + $0x40] sm:$0xff]  ;;  %v91_v23 = vmul.f32 %v1957_v9, %v20_v19  ;;  %v22_v24 = vld [vmem:[%s2992_s0 + $0x18] sm:$0xff]  ;;  %v48_v28 = vld [vmem:[%s2992_s0 + $0xe8] sm:$0xff] }
   0x7   :  { %v161_v15 = vadd.f32 %v1962_v10, %v90_v12  ;;  %v1883_v20 = vpack.c.bf16 %v234_v18, %v233_v17  ;;  %v46_v25 = vld [vmem:[%s2992_s0 + $0xd8] sm:$0xff]  ;;  %v47_v27 = vld [vmem:[%s2992_s0 + $0xe0] sm:$0xff]  ;;  %v49_v29 = vld [vmem:[%s2992_s0 + $0xf0] sm:$0xff]  ;;  %v93_v32 = vmul.f32 %v1957_v9, %v22_v24  ;;  %v119_v37 = vmul.f32 %v1957_v9, %v48_v28 }
   0x8   :  { %v23_v30 = vld [vmem:[%s2992_s0 + $0x20] sm:$0xff]  ;;  %v50_v31 = vld [vmem:[%s2992_s0 + $0xf8] sm:$0xff]  ;;  %v117_v33 = vmul.f32 %v1957_v9, %v46_v25  ;;  %v162_v35 = vadd.f32 %v1962_v10, %v91_v23  ;;  %v118_v36 = vmul.f32 %v1957_v9, %v47_v27  ;;  %v120_v38 = vmul.f32 %v1957_v9, %v49_v29  ;;  %v52_v39 = vld [vmem:[%s2992_s0 + $0x108] sm:$0xff] }
   0x9   :  { %1874 = vmatpush3.bf16.msra.mxu0 %v1871_v5  ;;  %1771 = vmatprep.mubr.msk.f32.mxu0 %vm235_vm0, %v161_v15  ;;  %v51_v34 = vld [vmem:[%s2992_s0 + $0x100] sm:$0xff]  ;;  %v53_v40 = vld [vmem:[%s2992_s0 + $0x110] sm:$0xff]  ;;  %v54_v41 = vld [vmem:[%s2992_s0 + $0x118] sm:$0xff]  ;;  %v163_v42 = vadd.f32 %v1962_v10, %v92_v26  ;;  %v94_v43 = vmul.f32 %v1957_v9, %v23_v30  ;;  %v121_v46 = vmul.f32 %v1957_v9, %v50_v31 }
   0xa   :  { %1876 = vmatprep.subr.bf16.mxu0 %v1875_v11  ;;  %1895 = vmatpush3.bf16.msra.mxu1 %v1871_v5  ;;  %v24_v44 = vld [vmem:[%s2992_s0 + $0x28] sm:$0xff]  ;;  %v2042_v45 = vadd.f32 %v1962_v10, %v117_v33  ;;  %v55_v47 = vld [vmem:[%s2992_s0 + $0x120] sm:$0xff]  ;;  %v25_v48 = vld [vmem:[%s2992_s0 + $0x30] sm:$0xff]  ;;  %v2052_v49 = vadd.f32 %v1962_v10, %v118_v36  ;;  %v2055_v50 = vadd.f32 %v1962_v10, %v119_v37 }
   0xb   :  { %1891 = vmatprep.subr.bf16.mxu1 %v1875_v11  ;;  %v2058_v51 = vadd.f32 %v1962_v10, %v120_v38  ;;  %v122_v52 = vmul.f32 %v1957_v9, %v51_v34  ;;  %v2064_v53 = vadd.f32 %v1962_v10, %v121_v46  ;;  %v123_v54 = vmul.f32 %v1957_v9, %v52_v39  ;;  %v26_v59 = vld [vmem:[%s2992_s0 + $0x38] sm:$0xff]  ;;  %v56_v62 = vld [vmem:[%s2992_s0 + $0x128] sm:$0xff]  ;;  %v57_v3 = vld [vmem:[%s2992_s0 + $0x130] sm:$0xff] }
   0xc   :  { %v124_v55 = vmul.f32 %v1957_v9, %v53_v40  ;;  %v125_v56 = vmul.f32 %v1957_v9, %v54_v41  ;;  %v164_v57 = vadd.f32 %v1962_v10, %v93_v32  ;;  %v95_v58 = vmul.f32 %v1957_v9, %v24_v44  ;;  %v27_v4 = vld [vmem:[%s2992_s0 + $0x40] sm:$0xff]  ;;  %v28_v6 = vld [vmem:[%s2992_s0 + $0x48] sm:$0xff]  ;;  %v29_v13 = vld [vmem:[%s2992_s0 + $0x50] sm:$0xff] }
   0xd   :  { %1878 = vmatpush3.bf16.msra.mxu0 %v1875_v11  ;;  %v193_v60 = vadd.f32 %v1962_v10, %v122_v52  ;;  %v126_v61 = vmul.f32 %v1957_v9, %v55_v47  ;;  %v165_v63 = vadd.f32 %v1962_v10, %v94_v43  ;;  %v96_v0 = vmul.f32 %v1957_v9, %v25_v48  ;;  %v30_v18 = vld [vmem:[%s2992_s0 + $0x58] sm:$0xff]  ;;  %v59_v19 = vld [vmem:[%s2992_s0 + $0x140] sm:$0xff]  ;;  %v32_v25 = vld [vmem:[%s2992_s0 + $0x68] sm:$0xff] }
   0xe   :  { %1880 = vmatprep.subr.bf16.mxu0 %v1879_v16  ;;  %1896 = vmatpush3.bf16.msra.mxu1 %v1875_v11  ;;  %v194_v1 = vadd.f32 %v1962_v10, %v123_v54  ;;  %v195_v2 = vadd.f32 %v1962_v10, %v124_v55  ;;  %v97_v5 = vmul.f32 %v1957_v9, %v26_v59  ;;  %v58_v11 = vld [vmem:[%s2992_s0 + $0x138] sm:$0xff]  ;;  %v31_v21 = vld [vmem:[%s2992_s0 + $0x60] sm:$0xff]  ;;  %v60_v27 = vld [vmem:[%s2992_s0 + $0x148] sm:$0xff] }
   0xf   :  { %1892 = vmatprep.subr.bf16.mxu1 %v1879_v16  ;;  %1819 = vmatprep.mubr.msk.f32.mxu1 %vm235_vm0, %v193_v60  ;;  %v196_v7 = vadd.f32 %v1962_v10, %v125_v56  ;;  %v127_v8 = vmul.f32 %v1957_v9, %v56_v62  ;;  %v166_v12 = vadd.f32 %v1962_v10, %v95_v58  ;;  %v61_v28 = vld [vmem:[%s2992_s0 + $0x150] sm:$0xff]  ;;  %v76_v32 = vld [vmem:[%s2992_s0 + $0x1c8] sm:$0xff]  ;;  %v78_v34 = vld [vmem:[%s2992_s0 + $0x1d8] sm:$0xff] }
  0x10   :  { %v197_v14 = vadd.f32 %v1962_v10, %v126_v61  ;;  %v128_v15 = vmul.f32 %v1957_v9, %v57_v3  ;;  %v98_v17 = vmul.f32 %v1957_v9, %v27_v4  ;;  %v129_v22 = vmul.f32 %v1957_v9, %v58_v11  ;;  %v77_v33 = vld [vmem:[%s2992_s0 + $0x1d0] sm:$0xff]  ;;  %v62_v41 = vld [vmem:[%s2992_s0 + $0x158] sm:$0xff]  ;;  %v80_v48 = vld [vmem:[%s2992_s0 + $0x1e8] sm:$0xff] }
  0x11   :  { %1882 = vmatpush3.bf16.msra.mxu0 %v1879_v16  ;;  %v168_v23 = vadd.f32 %v1962_v10, %v97_v5  ;;  %v100_v24 = vmul.f32 %v1957_v9, %v29_v13  ;;  %v198_v26 = vadd.f32 %v1962_v10, %v127_v8  ;;  %v101_v29 = vmul.f32 %v1957_v9, %v30_v18  ;;  %v81_v52 = vld [vmem:[%s2992_s0 + $0x1f0] sm:$0xff]  ;;  %v82_v54 = vld [vmem:[%s2992_s0 + $0x1f8] sm:$0xff]  ;;  %v63_v58 = vld [vmem:[%s2992_s0 + $0x160] sm:$0xff] }
  0x12   :  { %1885 = vmatprep.subr.msk.bf16.mxu0 %vm1985_vm3, %v1883_v20  ;;  %1897 = vmatpush3.bf16.msra.mxu1 %v1879_v16  ;;  %v167_v16 = vadd.f32 %v1962_v10, %v96_v0  ;;  %v199_v30 = vadd.f32 %v1962_v10, %v128_v15  ;;  %v130_v31 = vmul.f32 %v1957_v9, %v59_v19  ;;  %v34_v8 = vld [vmem:[%s2992_s0 + $0x78] sm:$0xff]  ;;  %v64_v11 = vld [vmem:[%s2992_s0 + $0x168] sm:$0xff]  ;;  %v35_v18 = vld [vmem:[%s2992_s0 + $0x80] sm:$0xff] }
  0x13   :  { %1893 = vmatprep.subr.msk.bf16.mxu1 %vm1985_vm3, %v1883_v20  ;;  %v102_v36 = vmul.f32 %v1957_v9, %v31_v21  ;;  %v103_v38 = vmul.f32 %v1957_v9, %v32_v25  ;;  %v200_v39 = vadd.f32 %v1962_v10, %v129_v22  ;;  %v131_v40 = vmul.f32 %v1957_v9, %v60_v27  ;;  %v66_v25 = vld [vmem:[%s2992_s0 + $0x178] sm:$0xff] }
  0x14   :  { %v132_v43 = vmul.f32 %v1957_v9, %v61_v28  ;;  %v147_v44 = vmul.f32 %v1957_v9, %v76_v32  ;;  %v148_v46 = vmul.f32 %v1957_v9, %v77_v33  ;;  %v149_v47 = vmul.f32 %v1957_v9, %v78_v34  ;;  %v36_v28 = vld [vmem:[%s2992_s0 + $0x88] sm:$0xff] }
  0x15   :  { %1888 = vmatpush3.bf16.msk.msra.mxu0 %vm1985_vm3, %v1883_v20  ;;  %v171_v55 = vadd.f32 %v1962_v10, %v100_v24  ;;  %v172_v56 = vadd.f32 %v1962_v10, %v101_v29  ;;  %v133_v0 = vmul.f32 %v1957_v9, %v62_v41  ;;  %v153_v3 = vmul.f32 %v1957_v9, %v82_v54  ;;  %v67_v29 = vld [vmem:[%s2992_s0 + $0x180] sm:$0xff]  ;;  %v69_v41 = vld [vmem:[%s2992_s0 + $0x190] sm:$0xff] }
  0x16   :  { %1898 = vmatpush3.bf16.msk.msra.mxu1 %vm1985_vm3, %v1883_v20  ;;  %v99_v20 = vmul.f32 %v1957_v9, %v28_v6  ;;  %v2188_v59 = vadd.f32 %v1962_v10, %v147_v44  ;;  %v2191_v60 = vadd.f32 %v1962_v10, %v148_v46  ;;  %v2194_v61 = vadd.f32 %v1962_v10, %v149_v47 }
  0x17   :  { %v202_v4 = vadd.f32 %v1962_v10, %v131_v40  ;;  %v203_v5 = vadd.f32 %v1962_v10, %v132_v43  ;;  %v134_v6 = vmul.f32 %v1957_v9, %v63_v58  ;;  %v173_v15 = vadd.f32 %v1962_v10, %v102_v36  ;;  %v71_v58 = vld [vmem:[%s2992_s0 + $0x1a0] sm:$0xff] }
  0x18   :  { %1772 = vmatmul.mubr.msk.f32.vlgmr.msra.gmra.mrb[0].mxu0 %vm235_vm0, %v162_v35  ;;  %v169_v35 = vadd.f32 %v1962_v10, %v98_v17  ;;  %v170_v37 = vadd.f32 %v1962_v10, %v99_v20  ;;  %v65_v17 = vld [vmem:[%s2992_s0 + $0x170] sm:$0xff]  ;;  %v105_v19 = vmul.f32 %v1957_v9, %v34_v8  ;;  %v204_v20 = vadd.f32 %v1962_v10, %v133_v0 }
  0x19   :  { %1774 = vmatprep.mubr.msk.f32.mxu0 %vm235_vm0, %v163_v42  ;;  %1820 = vmatmul.mubr.msk.f32.vlgmr.msra.gmra.mrb[0].mxu1 %vm235_vm0, %v194_v1  ;;  %v79_v42 = vld [vmem:[%s2992_s0 + $0x1e0] sm:$0xff]  ;;  %v151_v1 = vmul.f32 %v1957_v9, %v80_v48  ;;  %v135_v21 = vmul.f32 %v1957_v9, %v64_v11  ;;  %v174_v22 = vadd.f32 %v1962_v10, %v103_v38  ;;  %v68_v38 = vld [vmem:[%s2992_s0 + $0x188] sm:$0xff] }
  0x1a   :  { %1822 = vmatprep.mubr.msk.f32.mxu1 %vm235_vm0, %v195_v2  ;;  %v150_v62 = vmul.f32 %v1957_v9, %v79_v42  ;;  %v152_v2 = vmul.f32 %v1957_v9, %v81_v52  ;;  %v136_v24 = vmul.f32 %v1957_v9, %v65_v17  ;;  %v106_v27 = vmul.f32 %v1957_v9, %v35_v18  ;;  %v39_v42 = vld [vmem:[%s2992_s0 + $0xa0] sm:$0xff]  ;;  %v40_v48 = vld [vmem:[%s2992_s0 + $0xa8] sm:$0xff] }
  0x1b   :  { %v206_v32 = vadd.f32 %v1962_v10, %v135_v21  ;;  %v137_v33 = vmul.f32 %v1957_v9, %v66_v25  ;;  %v107_v34 = vmul.f32 %v1957_v9, %v36_v28  ;;  %v139_v46 = vmul.f32 %v1957_v9, %v68_v38  ;;  %v45_v28 = vld [vmem:[%s2992_s0 + $0xd0] sm:$0xff] }
  0x1c   :  { %1775 = vmatmul.mubr.msk.f32.gmra.mrb[2].mxu0 %vm235_vm0, %v164_v57  ;;  %v201_v57 = vadd.f32 %v1962_v10, %v130_v31  ;;  %v2223_v13 = vadd.f32 %v1962_v10, %v152_v2  ;;  %v176_v31 = vadd.f32 %v1962_v10, %v105_v19  ;;  %v207_v36 = vadd.f32 %v1962_v10, %v136_v24 }
  0x1d   :  { %1777 = vmatprep.mubr.msk.f32.mxu0 %vm235_vm0, %v165_v63  ;;  %1823 = vmatmul.mubr.msk.f32.gmra.mrb[2].mxu1 %vm235_vm0, %v196_v7  ;;  %v33_v63 = vld [vmem:[%s2992_s0 + $0x70] sm:$0xff]  ;;  %v2209_v7 = vadd.f32 %v1962_v10, %v150_v62  ;;  %v208_v44 = vadd.f32 %v1962_v10, %v137_v33  ;;  %v178_v47 = vadd.f32 %v1962_v10, %v107_v34 }
  0x1e   :  { %1825 = vmatprep.mubr.msk.f32.mxu1 %vm235_vm0, %v197_v14  ;;  %v2226_v14 = vadd.f32 %v1962_v10, %v153_v3  ;;  %v140_v54 = vmul.f32 %v1957_v9, %v69_v41  ;;  %v41_v62 = vld [vmem:[%s2992_s0 + $0xb0] sm:$0xff]  ;;  %v210_v0 = vadd.f32 %v1962_v10, %v139_v46  ;;  %v42_v3 = vld [vmem:[%s2992_s0 + $0xb8] sm:$0xff] }
  0x1f   :  { %v112_v11 = vmul.f32 %v1957_v9, %v41_v62  ;;  %v113_v17 = vmul.f32 %v1957_v9, %v42_v3 }
  0x20   :  { %1778 = vmatmul.mubr.msk.f32.gmra.mrb[4].mxu0 %vm235_vm0, %v166_v12  ;;  %v2220_v12 = vadd.f32 %v1962_v10, %v151_v1 }
  0x21   :  { %1780 = vmatprep.mubr.msk.f32.mxu0 %vm235_vm0, %v167_v16  ;;  %1826 = vmatmul.mubr.msk.f32.gmra.mrb[4].mxu1 %vm235_vm0, %v198_v26  ;;  %v104_v16 = vmul.f32 %v1957_v9, %v33_v63  ;;  %v111_v63 = vmul.f32 %v1957_v9, %v40_v48  ;;  %v183_v24 = vadd.f32 %v1962_v10, %v112_v11 }
  0x22   :  { %1828 = vmatprep.mubr.msk.f32.mxu1 %vm235_vm0, %v199_v30  ;;  %v37_v30 = vld [vmem:[%s2992_s0 + $0x90] sm:$0xff] }
  0x23   :  { %v175_v26 = vadd.f32 %v1962_v10, %v104_v16  ;;  %v108_v40 = vmul.f32 %v1957_v9, %v37_v30  ;;  %v43_v16 = vld [vmem:[%s2992_s0 + $0xc0] sm:$0xff] }
  0x24   :  { %1781 = vmatmul.mubr.msk.f32.gmra.mrb[6].mxu0 %vm235_vm0, %v168_v23  ;;  %v205_v23 = vadd.f32 %v1962_v10, %v134_v6  ;;  %v72_v6 = vld [vmem:[%s2992_s0 + $0x1a8] sm:$0xff]  ;;  %v114_v25 = vmul.f32 %v1957_v9, %v43_v16 }
  0x25   :  { %1783 = vmatprep.mubr.msk.f32.mxu0 %vm235_vm0, %v169_v35  ;;  %1829 = vmatmul.mubr.msk.f32.gmra.mrb[6].mxu1 %vm235_vm0, %v200_v39  ;;  %v38_v35 = vld [vmem:[%s2992_s0 + $0x98] sm:$0xff]  ;;  %v177_v39 = vadd.f32 %v1962_v10, %v106_v27  ;;  %v143_v19 = vmul.f32 %v1957_v9, %v72_v6  ;;  %v75_v27 = vld [vmem:[%s2992_s0 + $0x1c0] sm:$0xff] }
  0x26   :  { %1831 = vmatprep.mubr.msk.f32.mxu1 %vm235_vm0, %v201_v57  ;;  %v109_v43 = vmul.f32 %v1957_v9, %v38_v35  ;;  %v110_v57 = vmul.f32 %v1957_v9, %v39_v42  ;;  %v146_v34 = vmul.f32 %v1957_v9, %v75_v27  ;;  %v185_v35 = vadd.f32 %v1962_v10, %v114_v25 }
  0x27   :  { %v214_v30 = vadd.f32 %v1962_v10, %v143_v19 }
  0x28   :  { %1784 = vmatmul.mubr.msk.f32.gmra.mrb[8].mxu0 %vm235_vm0, %v170_v37  ;;  %v138_v37 = vmul.f32 %v1957_v9, %v67_v29  ;;  %v180_v2 = vadd.f32 %v1962_v10, %v109_v43  ;;  %v181_v8 = vadd.f32 %v1962_v10, %v110_v57  ;;  %v184_v29 = vadd.f32 %v1962_v10, %v113_v17 }
  0x29   :  { %1786 = vmatprep.mubr.msk.f32.mxu0 %vm235_vm0, %v171_v55  ;;  %1832 = vmatmul.mubr.msk.f32.gmra.mrb[8].mxu1 %vm235_vm0, %v202_v4  ;;  %v70_v55 = vld [vmem:[%s2992_s0 + $0x198] sm:$0xff]  ;;  %v211_v4 = vadd.f32 %v1962_v10, %v140_v54 }
  0x2a   :  { %1834 = vmatprep.mubr.msk.f32.mxu1 %vm235_vm0, %v203_v5  ;;  %v209_v52 = vadd.f32 %v1962_v10, %v138_v37  ;;  %v141_v1 = vmul.f32 %v1957_v9, %v70_v55  ;;  %v142_v5 = vmul.f32 %v1957_v9, %v71_v58 }
  0x2c   :  { %1787 = vmatmul.mubr.msk.f32.gmra.mrb[10].mxu0 %vm235_vm0, %v172_v56  ;;  %v179_v56 = vadd.f32 %v1962_v10, %v108_v40  ;;  %v212_v18 = vadd.f32 %v1962_v10, %v141_v1  ;;  %v213_v21 = vadd.f32 %v1962_v10, %v142_v5 }
  0x2d   :  { %1789 = vmatprep.mubr.msk.f32.mxu0 %vm235_vm0, %v173_v15  ;;  %1835 = vmatmul.mubr.msk.f32.gmra.mrb[10].mxu1 %vm235_vm0, %v204_v20  ;;  %v73_v15 = vld [vmem:[%s2992_s0 + $0x1b0] sm:$0xff]  ;;  %v182_v20 = vadd.f32 %v1962_v10, %v111_v63 }
  0x2e   :  { %1837 = vmatprep.mubr.msk.f32.mxu1 %vm235_vm0, %v205_v23  ;;  %v74_v23 = vld [vmem:[%s2992_s0 + $0x1b8] sm:$0xff] }
  0x30   :  { %1790 = vmatmul.mubr.msk.f32.gmra.mrb[12].mxu0 %vm235_vm0, %v174_v22  ;;  %v144_v22 = vmul.f32 %v1957_v9, %v73_v15 }
  0x31   :  { %1792 = vmatprep.mubr.msk.f32.mxu0 %vm235_vm0, %v175_v26  ;;  %1838 = vmatmul.mubr.msk.f32.gmra.mrb[12].mxu1 %vm235_vm0, %v206_v32  ;;  %v44_v26 = vld [vmem:[%s2992_s0 + $0xc8] sm:$0xff] }
  0x32   :  { %1840 = vmatprep.mubr.msk.f32.mxu1 %vm235_vm0, %v207_v36  ;;  %v115_v32 = vmul.f32 %v1957_v9, %v44_v26  ;;  %v215_v33 = vadd.f32 %v1962_v10, %v144_v22  ;;  %v116_v36 = vmul.f32 %v1957_v9, %v45_v28 }
  0x34   :  { %1793 = vmatmul.mubr.msk.f32.gmra.mrb[14].mxu0 %vm235_vm0, %v176_v31  ;;  %v145_v31 = vmul.f32 %v1957_v9, %v74_v23  ;;  %v186_v38 = vadd.f32 %v1962_v10, %v115_v32  ;;  %v187_v40 = vadd.f32 %v1962_v10, %v116_v36  ;;  %v1902_v9 = vmov 0.0  }
  0x35   :  { %1795 = vmatprep.mubr.msk.f32.mxu0 %vm235_vm0, %v177_v39  ;;  %1841 = vmatmul.mubr.msk.f32.gmra.mrb[14].mxu1 %vm235_vm0, %v208_v44  ;;  %v217_v39 = vadd.f32 %v1962_v10, %v146_v34  ;;  %1268 = vst.msk [vmem:[%s2995_s5] sm:$0xff] %vm235_vm0, %v1902_v9 }
  0x36   :  { %1843 = vmatprep.mubr.msk.f32.mxu1 %vm235_vm0, %v209_v52  ;;  %v216_v37 = vadd.f32 %v1962_v10, %v145_v31 }
  0x38   :  { %1796 = vmatmul.mubr.msk.f32.gmra.mrb[16].mxu0 %vm235_vm0, %v178_v47 }
  0x39   :  { %1798 = vmatprep.mubr.msk.f32.mxu0 %vm235_vm0, %v179_v56  ;;  %1844 = vmatmul.mubr.msk.f32.gmra.mrb[16].mxu1 %vm235_vm0, %v210_v0 }
  0x3a   :  { %1846 = vmatprep.mubr.msk.f32.mxu1 %vm235_vm0, %v211_v4 }
  0x3c   :  { %1799 = vmatmul.mubr.msk.f32.gmra.mrb[18].mxu0 %vm235_vm0, %v180_v2 }
  0x3d   :  { %1801 = vmatprep.mubr.msk.f32.mxu0 %vm235_vm0, %v181_v8  ;;  %1847 = vmatmul.mubr.msk.f32.gmra.mrb[18].mxu1 %vm235_vm0, %v212_v18 }
  0x3e   :  { %1849 = vmatprep.mubr.msk.f32.mxu1 %vm235_vm0, %v213_v21 }
  0x40   :  { %1802 = vmatmul.mubr.msk.f32.gmra.mrb[20].mxu0 %vm235_vm0, %v182_v20 }
  0x41   :  { %1804 = vmatprep.mubr.msk.f32.mxu0 %vm235_vm0, %v183_v24  ;;  %1850 = vmatmul.mubr.msk.f32.gmra.mrb[20].mxu1 %vm235_vm0, %v214_v30 }
  0x42   :  { %1852 = vmatprep.mubr.msk.f32.mxu1 %vm235_vm0, %v215_v33 }
  0x44   :  { %1805 = vmatmul.mubr.msk.f32.gmra.mrb[22].mxu0 %vm235_vm0, %v184_v29 }
  0x45   :  { %1807 = vmatprep.mubr.msk.f32.mxu0 %vm235_vm0, %v185_v35  ;;  %1853 = vmatmul.mubr.msk.f32.gmra.mrb[22].mxu1 %vm235_vm0, %v216_v37 }
  0x46   :  { %1855 = vmatprep.mubr.msk.f32.mxu1 %vm235_vm0, %v217_v39 }
  0x48   :  { %1808 = vmatmul.mubr.msk.f32.gmra.mrb[24].mxu0 %vm235_vm0, %v186_v38 }
  0x49   :  { %1810 = vmatprep.mubr.msk.f32.mxu0 %vm235_vm0, %v187_v40  ;;  %1856 = vmatmul.mubr.msk.f32.gmra.mrb[24].mxu1 %vm235_vm0, %v2188_v59 }
  0x4a   :  { %1858 = vmatprep.mubr.msk.f32.mxu1 %vm235_vm0, %v2191_v60 }
  0x4c   :  { %1811 = vmatmul.mubr.msk.f32.gmra.mrb[26].mxu0 %vm235_vm0, %v2042_v45 }
  0x4d   :  { %1813 = vmatprep.mubr.msk.f32.mxu0 %vm235_vm0, %v2052_v49  ;;  %1859 = vmatmul.mubr.msk.f32.gmra.mrb[26].mxu1 %vm235_vm0, %v2194_v61 }
  0x4e   :  { %1861 = vmatprep.mubr.msk.f32.mxu1 %vm235_vm0, %v2209_v7 }
  0x50   :  { %1814 = vmatmul.mubr.msk.f32.gmra.mrb[28].mxu0 %vm235_vm0, %v2055_v50 }
  0x51   :  { %1816 = vmatprep.mubr.msk.f32.mxu0 %vm235_vm0, %v2058_v51  ;;  %1862 = vmatmul.mubr.msk.f32.gmra.mrb[28].mxu1 %vm235_vm0, %v2220_v12 }
  0x52   :  { %1864 = vmatprep.mubr.msk.f32.mxu1 %vm235_vm0, %v2223_v13 }
  0x54   :  { %1817 = vmatmul.mubr.msk.f32.gmra.mrb[30].mxu0 %vm235_vm0, %v2064_v53 }
  0x55   :  { %1865 = vmatmul.mubr.msk.f32.gmra.mrb[30].mxu1 %vm235_vm0, %v2226_v14 }
  0xeb   :  { %v1773_v10 = vpop.f32.mrb[0].mxu0 }
  0xec   :  { %818 = vst.msk [vmem:[%s2996_s4 + $0x8] sm:$0xff] %vm235_vm0, %v1773_v10  ;;  %v1270_v45 = vsel %vm235_vm0, %v1773_v10, 0.0  ;;  %v1405_v49 = vmul.f32 %v1773_v10, %v1773_v10  ;;  %v498_v50 = vpop.f32.mrb[1].mxu0  ;;  %v2420_v61 = vpop.f32.mrb[0].mxu1 }
  0xed   :  { %817 = vst.msk [vmem:[%s2996_s4] sm:$0xff] %vm235_vm0, %v498_v50  ;;  %v1269_v51 = vsel %vm235_vm0, %v498_v50, 0.0  ;;  %v1404_v53 = vmul.f32 %v498_v50, %v498_v50  ;;  %850 = vst.msk [vmem:[%s2996_s4 + $0x108] sm:$0xff] %vm235_vm0, %v2420_v61  ;;  %v2428_v13 = vpop.f32.mrb[1].mxu1 }
  0xee   :  { %v1469_v59 = vsel %vm235_vm0, %v1405_v49, 0.0  ;;  %v1271_v60 = vadd.f32 %v1270_v45, %v1269_v51  ;;  %849 = vst.msk [vmem:[%s2996_s4 + $0x100] sm:$0xff] %vm235_vm0, %v2428_v13 }
  0xef   :  { %v1468_v7 = vsel %vm235_vm0, %v1404_v53, 0.0  ;;  %v1776_v12 = vpop.f32.mrb[2].mxu0 }
  0xf0   :  { %v1470_v14 = vadd.f32 %v1469_v59, %v1468_v7  ;;  %820 = vst.msk [vmem:[%s2996_s4 + $0x18] sm:$0xff] %vm235_vm0, %v1776_v12  ;;  %v508_v41 = vpop.f32.mrb[3].mxu0  ;;  %v1407_v42 = vmul.f32 %v1776_v12, %v1776_v12  ;;  %v2444_v47 = vpop.f32.mrb[2].mxu1  ;;  %v1274_v48 = vsel %vm235_vm0, %v1776_v12, 0.0 }
  0xf1   :  { %819 = vst.msk [vmem:[%s2996_s4 + $0x10] sm:$0xff] %vm235_vm0, %v508_v41  ;;  %v1272_v43 = vsel %vm235_vm0, %v508_v41, 0.0  ;;  %v1406_v44 = vmul.f32 %v508_v41, %v508_v41  ;;  %852 = vst.msk [vmem:[%s2996_s4 + $0x118] sm:$0xff] %vm235_vm0, %v2444_v47  ;;  %v2453_v55 = vpop.f32.mrb[3].mxu1 }
  0xf2   :  { %v1273_v46 = vadd.f32 %v1272_v43, %v1271_v60  ;;  %851 = vst.msk [vmem:[%s2996_s4 + $0x110] sm:$0xff] %vm235_vm0, %v2453_v55  ;;  %v1473_v62 = vsel %vm235_vm0, %v1407_v42, 0.0 }
  0xf3   :  { %v1471_v52 = vsel %vm235_vm0, %v1406_v44, 0.0  ;;  %v1779_v54 = vpop.f32.mrb[4].mxu0 }
  0xf4   :  { %v1472_v56 = vadd.f32 %v1471_v52, %v1470_v14  ;;  %822 = vst.msk [vmem:[%s2996_s4 + $0x28] sm:$0xff] %vm235_vm0, %v1779_v54  ;;  %v518_v57 = vpop.f32.mrb[5].mxu0  ;;  %v1275_v58 = vadd.f32 %v1274_v48, %v1273_v46  ;;  %v1409_v63 = vmul.f32 %v1779_v54, %v1779_v54  ;;  %v2470_v4 = vpop.f32.mrb[4].mxu1  ;;  %v1278_v5 = vsel %vm235_vm0, %v1779_v54, 0.0 }
  0xf5   :  { %821 = vst.msk [vmem:[%s2996_s4 + $0x20] sm:$0xff] %vm235_vm0, %v518_v57  ;;  %v1276_v0 = vsel %vm235_vm0, %v518_v57, 0.0  ;;  %v1408_v1 = vmul.f32 %v518_v57, %v518_v57  ;;  %854 = vst.msk [vmem:[%s2996_s4 + $0x128] sm:$0xff] %vm235_vm0, %v2470_v4  ;;  %v2479_v11 = vpop.f32.mrb[5].mxu1 }
  0xf6   :  { %v1277_v2 = vadd.f32 %v1276_v0, %v1275_v58  ;;  %v1474_v3 = vadd.f32 %v1473_v62, %v1472_v56  ;;  %853 = vst.msk [vmem:[%s2996_s4 + $0x120] sm:$0xff] %vm235_vm0, %v2479_v11  ;;  %v1477_v18 = vsel %vm235_vm0, %v1409_v63, 0.0 }
  0xf7   :  { %v1475_v6 = vsel %vm235_vm0, %v1408_v1, 0.0  ;;  %v1782_v8 = vpop.f32.mrb[6].mxu0 }
  0xf8   :  { %v1476_v15 = vadd.f32 %v1475_v6, %v1474_v3  ;;  %824 = vst.msk [vmem:[%s2996_s4 + $0x38] sm:$0xff] %vm235_vm0, %v1782_v8  ;;  %v528_v16 = vpop.f32.mrb[7].mxu0  ;;  %v1279_v17 = vadd.f32 %v1278_v5, %v1277_v2  ;;  %v1411_v19 = vmul.f32 %v1782_v8, %v1782_v8  ;;  %v2496_v24 = vpop.f32.mrb[6].mxu1  ;;  %v1282_v25 = vsel %vm235_vm0, %v1782_v8, 0.0 }
  0xf9   :  { %823 = vst.msk [vmem:[%s2996_s4 + $0x30] sm:$0xff] %vm235_vm0, %v528_v16  ;;  %v1280_v20 = vsel %vm235_vm0, %v528_v16, 0.0  ;;  %v1410_v21 = vmul.f32 %v528_v16, %v528_v16  ;;  %856 = vst.msk [vmem:[%s2996_s4 + $0x138] sm:$0xff] %vm235_vm0, %v2496_v24  ;;  %v2505_v28 = vpop.f32.mrb[7].mxu1 }
  0xfa   :  { %v1281_v22 = vadd.f32 %v1280_v20, %v1279_v17  ;;  %v1478_v23 = vadd.f32 %v1477_v18, %v1476_v15  ;;  %855 = vst.msk [vmem:[%s2996_s4 + $0x130] sm:$0xff] %vm235_vm0, %v2505_v28  ;;  %v1481_v32 = vsel %vm235_vm0, %v1411_v19, 0.0 }
  0xfb   :  { %v1479_v26 = vsel %vm235_vm0, %v1410_v21, 0.0  ;;  %v1785_v27 = vpop.f32.mrb[8].mxu0 }
  0xfc   :  { %v1480_v29 = vadd.f32 %v1479_v26, %v1478_v23  ;;  %826 = vst.msk [vmem:[%s2996_s4 + $0x48] sm:$0xff] %vm235_vm0, %v1785_v27  ;;  %v538_v30 = vpop.f32.mrb[9].mxu0  ;;  %v1283_v31 = vadd.f32 %v1282_v25, %v1281_v22  ;;  %v1413_v33 = vmul.f32 %v1785_v27, %v1785_v27  ;;  %v2522_v38 = vpop.f32.mrb[8].mxu1  ;;  %v1286_v39 = vsel %vm235_vm0, %v1785_v27, 0.0 }
  0xfd   :  { %825 = vst.msk [vmem:[%s2996_s4 + $0x40] sm:$0xff] %vm235_vm0, %v538_v30  ;;  %v1284_v34 = vsel %vm235_vm0, %v538_v30, 0.0  ;;  %v1412_v35 = vmul.f32 %v538_v30, %v538_v30  ;;  %858 = vst.msk [vmem:[%s2996_s4 + $0x148] sm:$0xff] %vm235_vm0, %v2522_v38  ;;  %v2531_v10 = vpop.f32.mrb[9].mxu1 }
  0xfe   :  { %v1285_v36 = vadd.f32 %v1284_v34, %v1283_v31  ;;  %v1482_v37 = vadd.f32 %v1481_v32, %v1480_v29  ;;  %857 = vst.msk [vmem:[%s2996_s4 + $0x140] sm:$0xff] %vm235_vm0, %v2531_v10  ;;  %v1485_v51 = vsel %vm235_vm0, %v1413_v33, 0.0 }
  0xff   :  { %v1483_v40 = vsel %vm235_vm0, %v1412_v35, 0.0  ;;  %v1788_v9 = vpop.f32.mrb[10].mxu0 }
 0x100   :  { %v1484_v45 = vadd.f32 %v1483_v40, %v1482_v37  ;;  %828 = vst.msk [vmem:[%s2996_s4 + $0x58] sm:$0xff] %vm235_vm0, %v1788_v9  ;;  %v548_v49 = vpop.f32.mrb[11].mxu0  ;;  %v1287_v50 = vadd.f32 %v1286_v39, %v1285_v36  ;;  %v1415_v53 = vmul.f32 %v1788_v9, %v1788_v9  ;;  %v2548_v14 = vpop.f32.mrb[10].mxu1  ;;  %v1290_v41 = vsel %vm235_vm0, %v1788_v9, 0.0 }
 0x101   :  { %827 = vst.msk [vmem:[%s2996_s4 + $0x50] sm:$0xff] %vm235_vm0, %v548_v49  ;;  %v1288_v59 = vsel %vm235_vm0, %v548_v49, 0.0  ;;  %v1414_v60 = vmul.f32 %v548_v49, %v548_v49  ;;  %860 = vst.msk [vmem:[%s2996_s4 + $0x158] sm:$0xff] %vm235_vm0, %v2548_v14  ;;  %v2557_v44 = vpop.f32.mrb[11].mxu1 }
 0x102   :  { %v1289_v7 = vadd.f32 %v1288_v59, %v1287_v50  ;;  %v1486_v12 = vadd.f32 %v1485_v51, %v1484_v45  ;;  %859 = vst.msk [vmem:[%s2996_s4 + $0x150] sm:$0xff] %vm235_vm0, %v2557_v44  ;;  %v1489_v54 = vsel %vm235_vm0, %v1415_v53, 0.0 }
 0x103   :  { %v1487_v42 = vsel %vm235_vm0, %v1414_v60, 0.0  ;;  %v1791_v43 = vpop.f32.mrb[12].mxu0 }
 0x104   :  { %v1488_v46 = vadd.f32 %v1487_v42, %v1486_v12  ;;  %830 = vst.msk [vmem:[%s2996_s4 + $0x68] sm:$0xff] %vm235_vm0, %v1791_v43  ;;  %v558_v48 = vpop.f32.mrb[13].mxu0  ;;  %v1291_v52 = vadd.f32 %v1290_v41, %v1289_v7  ;;  %v1417_v56 = vmul.f32 %v1791_v43, %v1791_v43  ;;  %v2574_v0 = vpop.f32.mrb[12].mxu1  ;;  %v1294_v1 = vsel %vm235_vm0, %v1791_v43, 0.0 }
 0x105   :  { %829 = vst.msk [vmem:[%s2996_s4 + $0x60] sm:$0xff] %vm235_vm0, %v558_v48  ;;  %v1292_v57 = vsel %vm235_vm0, %v558_v48, 0.0  ;;  %v1416_v58 = vmul.f32 %v558_v48, %v558_v48  ;;  %862 = vst.msk [vmem:[%s2996_s4 + $0x168] sm:$0xff] %vm235_vm0, %v2574_v0  ;;  %v2583_v5 = vpop.f32.mrb[13].mxu1 }
 0x106   :  { %v1293_v62 = vadd.f32 %v1292_v57, %v1291_v52  ;;  %v1490_v63 = vadd.f32 %v1489_v54, %v1488_v46  ;;  %861 = vst.msk [vmem:[%s2996_s4 + $0x160] sm:$0xff] %vm235_vm0, %v2583_v5  ;;  %v1493_v16 = vsel %vm235_vm0, %v1417_v56, 0.0 }
 0x107   :  { %v1491_v2 = vsel %vm235_vm0, %v1416_v58, 0.0  ;;  %v1794_v3 = vpop.f32.mrb[14].mxu0 }
 0x108   :  { %v1492_v6 = vadd.f32 %v1491_v2, %v1490_v63  ;;  %832 = vst.msk [vmem:[%s2996_s4 + $0x78] sm:$0xff] %vm235_vm0, %v1794_v3  ;;  %v568_v8 = vpop.f32.mrb[15].mxu0  ;;  %v1295_v15 = vadd.f32 %v1294_v1, %v1293_v62  ;;  %v1419_v17 = vmul.f32 %v1794_v3, %v1794_v3  ;;  %v2600_v22 = vpop.f32.mrb[14].mxu1  ;;  %v1298_v23 = vsel %vm235_vm0, %v1794_v3, 0.0 }
 0x109   :  { %831 = vst.msk [vmem:[%s2996_s4 + $0x70] sm:$0xff] %vm235_vm0, %v568_v8  ;;  %v1296_v18 = vsel %vm235_vm0, %v568_v8, 0.0  ;;  %v1418_v19 = vmul.f32 %v568_v8, %v568_v8  ;;  %864 = vst.msk [vmem:[%s2996_s4 + $0x178] sm:$0xff] %vm235_vm0, %v2600_v22  ;;  %v2609_v27 = vpop.f32.mrb[15].mxu1 }
 0x10a   :  { %v1297_v20 = vadd.f32 %v1296_v18, %v1295_v15  ;;  %v1494_v21 = vadd.f32 %v1493_v16, %v1492_v6  ;;  %863 = vst.msk [vmem:[%s2996_s4 + $0x170] sm:$0xff] %vm235_vm0, %v2609_v27  ;;  %v1497_v32 = vsel %vm235_vm0, %v1419_v17, 0.0 }
 0x10b   :  { %v1495_v25 = vsel %vm235_vm0, %v1418_v19, 0.0  ;;  %v1797_v26 = vpop.f32.mrb[16].mxu0 }
 0x10c   :  { %v1496_v29 = vadd.f32 %v1495_v25, %v1494_v21  ;;  %834 = vst.msk [vmem:[%s2996_s4 + $0x88] sm:$0xff] %vm235_vm0, %v1797_v26  ;;  %v578_v30 = vpop.f32.mrb[17].mxu0  ;;  %v1299_v31 = vadd.f32 %v1298_v23, %v1297_v20  ;;  %v1421_v33 = vmul.f32 %v1797_v26, %v1797_v26  ;;  %v2626_v39 = vpop.f32.mrb[16].mxu1  ;;  %v1302_v40 = vsel %vm235_vm0, %v1797_v26, 0.0 }
 0x10d   :  { %833 = vst.msk [vmem:[%s2996_s4 + $0x80] sm:$0xff] %vm235_vm0, %v578_v30  ;;  %v1300_v34 = vsel %vm235_vm0, %v578_v30, 0.0  ;;  %v1420_v35 = vmul.f32 %v578_v30, %v578_v30  ;;  %866 = vst.msk [vmem:[%s2996_s4 + $0x188] sm:$0xff] %vm235_vm0, %v2626_v39  ;;  %v2635_v49 = vpop.f32.mrb[17].mxu1 }
 0x10e   :  { %v1301_v36 = vadd.f32 %v1300_v34, %v1299_v31  ;;  %v1498_v37 = vadd.f32 %v1497_v32, %v1496_v29  ;;  %865 = vst.msk [vmem:[%s2996_s4 + $0x180] sm:$0xff] %vm235_vm0, %v2635_v49  ;;  %v1501_v59 = vsel %vm235_vm0, %v1421_v33, 0.0 }
 0x10f   :  { %v1499_v9 = vsel %vm235_vm0, %v1420_v35, 0.0  ;;  %v1800_v45 = vpop.f32.mrb[18].mxu0 }
 0x110   :  { %v1500_v50 = vadd.f32 %v1499_v9, %v1498_v37  ;;  %836 = vst.msk [vmem:[%s2996_s4 + $0x98] sm:$0xff] %vm235_vm0, %v1800_v45  ;;  %v588_v51 = vpop.f32.mrb[19].mxu0  ;;  %v1303_v53 = vadd.f32 %v1302_v40, %v1301_v36  ;;  %v1423_v60 = vmul.f32 %v1800_v45, %v1800_v45  ;;  %v2652_v43 = vpop.f32.mrb[18].mxu1  ;;  %v1306_v46 = vsel %vm235_vm0, %v1800_v45, 0.0 }
 0x111   :  { %835 = vst.msk [vmem:[%s2996_s4 + $0x90] sm:$0xff] %vm235_vm0, %v588_v51  ;;  %v1304_v7 = vsel %vm235_vm0, %v588_v51, 0.0  ;;  %v1422_v12 = vmul.f32 %v588_v51, %v588_v51  ;;  %868 = vst.msk [vmem:[%s2996_s4 + $0x198] sm:$0xff] %vm235_vm0, %v2652_v43  ;;  %v2661_v54 = vpop.f32.mrb[19].mxu1 }
 0x112   :  { %v1305_v41 = vadd.f32 %v1304_v7, %v1303_v53  ;;  %v1502_v42 = vadd.f32 %v1501_v59, %v1500_v50  ;;  %867 = vst.msk [vmem:[%s2996_s4 + $0x190] sm:$0xff] %vm235_vm0, %v2661_v54  ;;  %v1505_v62 = vsel %vm235_vm0, %v1423_v60, 0.0 }
 0x113   :  { %v1503_v48 = vsel %vm235_vm0, %v1422_v12, 0.0  ;;  %v1803_v52 = vpop.f32.mrb[20].mxu0 }
 0x114   :  { %v1504_v56 = vadd.f32 %v1503_v48, %v1502_v42  ;;  %838 = vst.msk [vmem:[%s2996_s4 + $0xa8] sm:$0xff] %vm235_vm0, %v1803_v52  ;;  %v598_v57 = vpop.f32.mrb[21].mxu0  ;;  %v1307_v58 = vadd.f32 %v1306_v46, %v1305_v41  ;;  %v1425_v63 = vmul.f32 %v1803_v52, %v1803_v52  ;;  %v2678_v8 = vpop.f32.mrb[20].mxu1  ;;  %v1310_v15 = vsel %vm235_vm0, %v1803_v52, 0.0 }
 0x115   :  { %837 = vst.msk [vmem:[%s2996_s4 + $0xa0] sm:$0xff] %vm235_vm0, %v598_v57  ;;  %v1308_v1 = vsel %vm235_vm0, %v598_v57, 0.0  ;;  %v1424_v2 = vmul.f32 %v598_v57, %v598_v57  ;;  %870 = vst.msk [vmem:[%s2996_s4 + $0x1a8] sm:$0xff] %vm235_vm0, %v2678_v8  ;;  %v2687_v18 = vpop.f32.mrb[21].mxu1 }
 0x116   :  { %v1309_v3 = vadd.f32 %v1308_v1, %v1307_v58  ;;  %v1506_v6 = vadd.f32 %v1505_v62, %v1504_v56  ;;  %869 = vst.msk [vmem:[%s2996_s4 + $0x1a0] sm:$0xff] %vm235_vm0, %v2687_v18  ;;  %v1509_v23 = vsel %vm235_vm0, %v1425_v63, 0.0 }
 0x117   :  { %v1507_v16 = vsel %vm235_vm0, %v1424_v2, 0.0  ;;  %v1806_v17 = vpop.f32.mrb[22].mxu0 }
 0x118   :  { %v1508_v19 = vadd.f32 %v1507_v16, %v1506_v6  ;;  %840 = vst.msk [vmem:[%s2996_s4 + $0xb8] sm:$0xff] %vm235_vm0, %v1806_v17  ;;  %v608_v20 = vpop.f32.mrb[23].mxu0  ;;  %v1311_v21 = vadd.f32 %v1310_v15, %v1309_v3  ;;  %v1427_v25 = vmul.f32 %v1806_v17, %v1806_v17  ;;  %v2704_v32 = vpop.f32.mrb[22].mxu1  ;;  %v1314_v33 = vsel %vm235_vm0, %v1806_v17, 0.0 }
 0x119   :  { %839 = vst.msk [vmem:[%s2996_s4 + $0xb0] sm:$0xff] %vm235_vm0, %v608_v20  ;;  %v1312_v26 = vsel %vm235_vm0, %v608_v20, 0.0  ;;  %v1426_v29 = vmul.f32 %v608_v20, %v608_v20  ;;  %872 = vst.msk [vmem:[%s2996_s4 + $0x1b8] sm:$0xff] %vm235_vm0, %v2704_v32  ;;  %v2713_v36 = vpop.f32.mrb[23].mxu1 }
 0x11a   :  { %v1313_v30 = vadd.f32 %v1312_v26, %v1311_v21  ;;  %v1510_v31 = vadd.f32 %v1509_v23, %v1508_v19  ;;  %871 = vst.msk [vmem:[%s2996_s4 + $0x1b0] sm:$0xff] %vm235_vm0, %v2713_v36  ;;  %v1513_v45 = vsel %vm235_vm0, %v1427_v25, 0.0 }
 0x11b   :  { %v1511_v34 = vsel %vm235_vm0, %v1426_v29, 0.0  ;;  %v1809_v35 = vpop.f32.mrb[24].mxu0 }
 0x11c   :  { %v1512_v37 = vadd.f32 %v1511_v34, %v1510_v31  ;;  %842 = vst.msk [vmem:[%s2996_s4 + $0xc8] sm:$0xff] %vm235_vm0, %v1809_v35  ;;  %v618_v40 = vpop.f32.mrb[25].mxu0  ;;  %v1315_v9 = vadd.f32 %v1314_v33, %v1313_v30  ;;  %v1429_v50 = vmul.f32 %v1809_v35, %v1809_v35  ;;  %v2730_v7 = vpop.f32.mrb[24].mxu1  ;;  %v1318_v12 = vsel %vm235_vm0, %v1809_v35, 0.0 }
 0x11d   :  { %841 = vst.msk [vmem:[%s2996_s4 + $0xc0] sm:$0xff] %vm235_vm0, %v618_v40  ;;  %v1316_v51 = vsel %vm235_vm0, %v618_v40, 0.0  ;;  %v1428_v53 = vmul.f32 %v618_v40, %v618_v40  ;;  %874 = vst.msk [vmem:[%s2996_s4 + $0x1c8] sm:$0xff] %vm235_vm0, %v2730_v7  ;;  %v2739_v46 = vpop.f32.mrb[25].mxu1 }
 0x11e   :  { %v1317_v59 = vadd.f32 %v1316_v51, %v1315_v9  ;;  %v1514_v60 = vadd.f32 %v1513_v45, %v1512_v37  ;;  %873 = vst.msk [vmem:[%s2996_s4 + $0x1c0] sm:$0xff] %vm235_vm0, %v2739_v46  ;;  %v1517_v57 = vsel %vm235_vm0, %v1429_v50, 0.0  ;;  %v1436_v51 = vmul.f32 %v2428_v13, %v2428_v13 }
 0x11f   :  { %v1515_v41 = vsel %vm235_vm0, %v1428_v53, 0.0  ;;  %v1812_v42 = vpop.f32.mrb[26].mxu0 }
 0x120   :  { %v1516_v48 = vadd.f32 %v1515_v41, %v1514_v60  ;;  %844 = vst.msk [vmem:[%s2996_s4 + $0xd8] sm:$0xff] %vm235_vm0, %v1812_v42  ;;  %v628_v52 = vpop.f32.mrb[27].mxu0  ;;  %v1319_v56 = vadd.f32 %v1318_v12, %v1317_v59  ;;  %v1431_v58 = vmul.f32 %v1812_v42, %v1812_v42  ;;  %v2756_v3 = vpop.f32.mrb[26].mxu1  ;;  %v1322_v6 = vsel %vm235_vm0, %v1812_v42, 0.0 }
 0x121   :  { %843 = vst.msk [vmem:[%s2996_s4 + $0xd0] sm:$0xff] %vm235_vm0, %v628_v52  ;;  %v1320_v62 = vsel %vm235_vm0, %v628_v52, 0.0  ;;  %v1430_v63 = vmul.f32 %v628_v52, %v628_v52  ;;  %876 = vst.msk [vmem:[%s2996_s4 + $0x1d8] sm:$0xff] %vm235_vm0, %v2756_v3  ;;  %v2765_v17 = vpop.f32.mrb[27].mxu1 }
 0x122   :  { %v1321_v1 = vadd.f32 %v1320_v62, %v1319_v56  ;;  %v1518_v2 = vadd.f32 %v1517_v57, %v1516_v48  ;;  %875 = vst.msk [vmem:[%s2996_s4 + $0x1d0] sm:$0xff] %vm235_vm0, %v2765_v17  ;;  %v1521_v23 = vsel %vm235_vm0, %v1431_v58, 0.0  ;;  %v1332_v57 = vsel %vm235_vm0, %v2428_v13, 0.0 }
 0x123   :  { %v1519_v15 = vsel %vm235_vm0, %v1430_v63, 0.0  ;;  %v1815_v16 = vpop.f32.mrb[28].mxu0  ;;  %v1437_v13 = vmul.f32 %v2420_v61, %v2420_v61 }
 0x124   :  { %v1520_v19 = vadd.f32 %v1519_v15, %v1518_v2  ;;  %846 = vst.msk [vmem:[%s2996_s4 + $0xe8] sm:$0xff] %vm235_vm0, %v1815_v16  ;;  %v638_v20 = vpop.f32.mrb[29].mxu0  ;;  %v1323_v21 = vadd.f32 %v1322_v6, %v1321_v1  ;;  %v1433_v25 = vmul.f32 %v1815_v16, %v1815_v16  ;;  %v2782_v33 = vpop.f32.mrb[28].mxu1  ;;  %v1326_v34 = vsel %vm235_vm0, %v1815_v16, 0.0 }
 0x125   :  { %845 = vst.msk [vmem:[%s2996_s4 + $0xe0] sm:$0xff] %vm235_vm0, %v638_v20  ;;  %v1324_v26 = vsel %vm235_vm0, %v638_v20, 0.0  ;;  %v1432_v29 = vmul.f32 %v638_v20, %v638_v20  ;;  %878 = vst.msk [vmem:[%s2996_s4 + $0x1e8] sm:$0xff] %vm235_vm0, %v2782_v33  ;;  %v2791_v40 = vpop.f32.mrb[29].mxu1  ;;  %v1531_v2 = vsel %vm235_vm0, %v1436_v51, 0.0  ;;  %v1438_v6 = vmul.f32 %v2453_v55, %v2453_v55 }
 0x126   :  { %v1325_v30 = vadd.f32 %v1324_v26, %v1323_v21  ;;  %v1522_v31 = vadd.f32 %v1521_v23, %v1520_v19  ;;  %877 = vst.msk [vmem:[%s2996_s4 + $0x1e0] sm:$0xff] %vm235_vm0, %v2791_v40  ;;  %v1525_v53 = vsel %vm235_vm0, %v1433_v25, 0.0  ;;  %v1334_v19 = vsel %vm235_vm0, %v2420_v61, 0.0 }
 0x127   :  { %v1523_v35 = vsel %vm235_vm0, %v1432_v29, 0.0  ;;  %v1818_v37 = vpop.f32.mrb[30].mxu0  ;;  %v1336_v20 = vsel %vm235_vm0, %v2453_v55, 0.0  ;;  %v1533_v25 = vsel %vm235_vm0, %v1437_v13, 0.0  ;;  %v1439_v26 = vmul.f32 %v2444_v47, %v2444_v47 }
 0x128   :  { %v1524_v9 = vadd.f32 %v1523_v35, %v1522_v31  ;;  %848 = vst.msk [vmem:[%s2996_s4 + $0xf8] sm:$0xff] %vm235_vm0, %v1818_v37  ;;  %v648_v45 = vpop.f32.mrb[31].mxu0  ;;  %v1327_v50 = vadd.f32 %v1326_v34, %v1325_v30  ;;  %v1435_v59 = vmul.f32 %v1818_v37, %v1818_v37  ;;  %v2810_v48 = vpop.f32.mrb[30].mxu1  ;;  %v1330_v52 = vsel %vm235_vm0, %v1818_v37, 0.0 }
 0x129   :  { %847 = vst.msk [vmem:[%s2996_s4 + $0xf0] sm:$0xff] %vm235_vm0, %v648_v45  ;;  %v1328_v60 = vsel %vm235_vm0, %v648_v45, 0.0  ;;  %v1434_v12 = vmul.f32 %v648_v45, %v648_v45  ;;  %880 = vst.msk [vmem:[%s2996_s4 + $0x1f8] sm:$0xff] %vm235_vm0, %v2810_v48  ;;  %v2821_v58 = vpop.f32.mrb[31].mxu1  ;;  %v1535_v29 = vsel %vm235_vm0, %v1438_v6, 0.0  ;;  %v1440_v30 = vmul.f32 %v2479_v11, %v2479_v11 }
 0x12a   :  { %v1329_v41 = vadd.f32 %v1328_v60, %v1327_v50  ;;  %v1526_v42 = vadd.f32 %v1525_v53, %v1524_v9  ;;  %879 = vst.msk [vmem:[%s2996_s4 + $0x1f0] sm:$0xff] %vm235_vm0, %v2821_v58  ;;  %v1529_v1 = vsel %vm235_vm0, %v1435_v59, 0.0  ;;  %v1338_v61 = vsel %vm235_vm0, %v2444_v47, 0.0 }
 0x12b   :  { %v1527_v56 = vsel %vm235_vm0, %v1434_v12, 0.0  ;;  %v1340_v55 = vsel %vm235_vm0, %v2479_v11, 0.0  ;;  %v1537_v9 = vsel %vm235_vm0, %v1439_v26, 0.0  ;;  %v1441_v45 = vmul.f32 %v2470_v4, %v2470_v4 }
 0x12c   :  { %v1331_v62 = vadd.f32 %v1330_v52, %v1329_v41  ;;  %v1528_v63 = vadd.f32 %v1527_v56, %v1526_v42  ;;  %v1539_v50 = vsel %vm235_vm0, %v1440_v30, 0.0  ;;  %v1442_v51 = vmul.f32 %v2505_v28, %v2505_v28 }
 0x12d   :  { %v1342_v47 = vsel %vm235_vm0, %v2470_v4, 0.0  ;;  %v1344_v11 = vsel %vm235_vm0, %v2505_v28, 0.0  ;;  %v1541_v41 = vsel %vm235_vm0, %v1441_v45, 0.0  ;;  %v1443_v42 = vmul.f32 %v2496_v24, %v2496_v24 }
 0x12e   :  { %v1530_v15 = vadd.f32 %v1529_v1, %v1528_v63  ;;  %v1333_v16 = vadd.f32 %v1332_v57, %v1331_v62  ;;  %v1543_v52 = vsel %vm235_vm0, %v1442_v51, 0.0  ;;  %v1444_v56 = vmul.f32 %v2531_v10, %v2531_v10 }
 0x12f   :  { %v1346_v4 = vsel %vm235_vm0, %v2496_v24, 0.0  ;;  %v1348_v28 = vsel %vm235_vm0, %v2531_v10, 0.0  ;;  %v1545_v13 = vsel %vm235_vm0, %v1443_v42, 0.0  ;;  %v1350_v24 = vsel %vm235_vm0, %v2522_v38, 0.0 }
 0x130   :  { %v1532_v21 = vadd.f32 %v1531_v2, %v1530_v15  ;;  %v1335_v23 = vadd.f32 %v1334_v19, %v1333_v16  ;;  %v1445_v2 = vmul.f32 %v2522_v38, %v2522_v38  ;;  %v1547_v6 = vsel %vm235_vm0, %v1444_v56, 0.0 }
 0x131   :  { %v1446_v15 = vmul.f32 %v2557_v44, %v2557_v44  ;;  %v1352_v10 = vsel %vm235_vm0, %v2557_v44, 0.0  ;;  %v1354_v38 = vsel %vm235_vm0, %v2548_v14, 0.0  ;;  %v1356_v44 = vsel %vm235_vm0, %v2583_v5, 0.0 }
 0x132   :  { %v1337_v31 = vadd.f32 %v1336_v20, %v1335_v23  ;;  %v1534_v34 = vadd.f32 %v1533_v25, %v1532_v21  ;;  %v1549_v23 = vsel %vm235_vm0, %v1445_v2, 0.0  ;;  %v1447_v25 = vmul.f32 %v2548_v14, %v2548_v14 }
 0x133   :  { %v1551_v26 = vsel %vm235_vm0, %v1446_v15, 0.0  ;;  %v1358_v14 = vsel %vm235_vm0, %v2574_v0, 0.0 }
 0x134   :  { %v1536_v35 = vadd.f32 %v1535_v29, %v1534_v34  ;;  %v1339_v37 = vadd.f32 %v1338_v61, %v1337_v31  ;;  %v1448_v29 = vmul.f32 %v2583_v5, %v2583_v5  ;;  %v1360_v5 = vsel %vm235_vm0, %v2609_v27, 0.0 }
 0x136   :  { %v1341_v53 = vadd.f32 %v1340_v55, %v1339_v37  ;;  %v1538_v59 = vadd.f32 %v1537_v9, %v1536_v35  ;;  %v1553_v55 = vsel %vm235_vm0, %v1447_v25, 0.0  ;;  %v1449_v35 = vmul.f32 %v2574_v0, %v2574_v0 }
 0x137   :  { %v1555_v37 = vsel %vm235_vm0, %v1448_v29, 0.0  ;;  %v1450_v9 = vmul.f32 %v2609_v27, %v2609_v27  ;;  %v1362_v0 = vsel %vm235_vm0, %v2600_v22, 0.0  ;;  %v1364_v27 = vsel %vm235_vm0, %v2635_v49, 0.0 }
 0x138   :  { %v1540_v60 = vadd.f32 %v1539_v50, %v1538_v59  ;;  %v1343_v12 = vadd.f32 %v1342_v47, %v1341_v53  ;;  %v1557_v59 = vsel %vm235_vm0, %v1449_v35, 0.0  ;;  %v1451_v47 = vmul.f32 %v2600_v22, %v2600_v22 }
 0x139   :  { %v1366_v22 = vsel %vm235_vm0, %v2626_v39, 0.0 }
 0x13a   :  { %v1345_v57 = vadd.f32 %v1344_v11, %v1343_v12  ;;  %v1542_v62 = vadd.f32 %v1541_v41, %v1540_v60  ;;  %v1559_v11 = vsel %vm235_vm0, %v1450_v9, 0.0  ;;  %v1452_v60 = vmul.f32 %v2635_v49, %v2635_v49 }
 0x13b   :  { %v1561_v56 = vsel %vm235_vm0, %v1451_v47, 0.0  ;;  %v1368_v49 = vsel %vm235_vm0, %v2661_v54, 0.0 }
 0x13c   :  { %v1544_v63 = vadd.f32 %v1543_v52, %v1542_v62  ;;  %v1347_v1 = vadd.f32 %v1346_v4, %v1345_v57  ;;  %v1453_v57 = vmul.f32 %v2626_v39, %v2626_v39  ;;  %v1563_v62 = vsel %vm235_vm0, %v1452_v60, 0.0 }
 0x13d   :  { %v1454_v4 = vmul.f32 %v2661_v54, %v2661_v54  ;;  %v1370_v39 = vsel %vm235_vm0, %v2652_v43, 0.0  ;;  %v1372_v54 = vsel %vm235_vm0, %v2687_v18, 0.0 }
 0x13e   :  { %v1349_v16 = vadd.f32 %v1348_v28, %v1347_v1  ;;  %v1546_v19 = vadd.f32 %v1545_v13, %v1544_v63  ;;  %v1565_v2 = vsel %vm235_vm0, %v1453_v57, 0.0 }
 0x13f   :  { %v1567_v15 = vsel %vm235_vm0, %v1454_v4, 0.0 }
 0x140   :  { %v1548_v20 = vadd.f32 %v1547_v6, %v1546_v19  ;;  %v1351_v21 = vadd.f32 %v1350_v24, %v1349_v16  ;;  %v1455_v6 = vmul.f32 %v2652_v43, %v2652_v43  ;;  %v1456_v16 = vmul.f32 %v2687_v18, %v2687_v18 }
 0x141   :  { %v1374_v43 = vsel %vm235_vm0, %v2678_v8, 0.0  ;;  %v1376_v18 = vsel %vm235_vm0, %v2713_v36, 0.0 }
 0x142   :  { %v1353_v30 = vadd.f32 %v1352_v10, %v1351_v21  ;;  %v1550_v31 = vadd.f32 %v1549_v23, %v1548_v20  ;;  %v1569_v21 = vsel %vm235_vm0, %v1455_v6, 0.0  ;;  %v1457_v23 = vmul.f32 %v2678_v8, %v2678_v8 }
 0x143   :  { %v1571_v25 = vsel %vm235_vm0, %v1456_v16, 0.0  ;;  %v1378_v8 = vsel %vm235_vm0, %v2704_v32, 0.0 }
 0x144   :  { %v1552_v34 = vadd.f32 %v1551_v26, %v1550_v31  ;;  %v1355_v61 = vadd.f32 %v1354_v38, %v1353_v30  ;;  %v1458_v26 = vmul.f32 %v2713_v36, %v2713_v36  ;;  %v1380_v36 = vsel %vm235_vm0, %v2739_v46, 0.0 }
 0x146   :  { %v1357_v45 = vadd.f32 %v1356_v44, %v1355_v61  ;;  %v1554_v50 = vadd.f32 %v1553_v55, %v1552_v34  ;;  %v1573_v44 = vsel %vm235_vm0, %v1457_v23, 0.0  ;;  %v1459_v34 = vmul.f32 %v2704_v32, %v2704_v32 }
 0x147   :  { %v1575_v61 = vsel %vm235_vm0, %v1458_v26, 0.0  ;;  %v1460_v55 = vmul.f32 %v2739_v46, %v2739_v46  ;;  %v1382_v32 = vsel %vm235_vm0, %v2730_v7, 0.0  ;;  %v1384_v46 = vsel %vm235_vm0, %v2765_v17, 0.0 }
 0x148   :  { %v1556_v51 = vadd.f32 %v1555_v37, %v1554_v50  ;;  %v1359_v53 = vadd.f32 %v1358_v14, %v1357_v45  ;;  %v1577_v50 = vsel %vm235_vm0, %v1459_v34, 0.0  ;;  %v1461_v14 = vmul.f32 %v2730_v7, %v2730_v7 }
 0x149   :  { %v1386_v7 = vsel %vm235_vm0, %v2756_v3, 0.0 }
 0x14a   :  { %v1361_v12 = vadd.f32 %v1360_v5, %v1359_v53  ;;  %v1558_v41 = vadd.f32 %v1557_v59, %v1556_v51  ;;  %v1579_v5 = vsel %vm235_vm0, %v1460_v55, 0.0  ;;  %v1462_v51 = vmul.f32 %v2765_v17, %v2765_v17 }
 0x14b   :  { %v1581_v60 = vsel %vm235_vm0, %v1461_v14, 0.0  ;;  %v1388_v17 = vsel %vm235_vm0, %v2791_v40, 0.0 }
 0x14c   :  { %v1560_v42 = vadd.f32 %v1559_v11, %v1558_v41  ;;  %v1363_v52 = vadd.f32 %v1362_v0, %v1361_v12  ;;  %v1463_v12 = vmul.f32 %v2756_v3, %v2756_v3  ;;  %v1583_v41 = vsel %vm235_vm0, %v1462_v51, 0.0 }
 0x14d   :  { %v1464_v0 = vmul.f32 %v2791_v40, %v2791_v40  ;;  %v1390_v3 = vsel %vm235_vm0, %v2782_v33, 0.0  ;;  %v1392_v40 = vsel %vm235_vm0, %v2821_v58, 0.0 }
 0x14e   :  { %v1365_v28 = vadd.f32 %v1364_v27, %v1363_v52  ;;  %v1562_v63 = vadd.f32 %v1561_v56, %v1560_v42  ;;  %v1585_v57 = vsel %vm235_vm0, %v1463_v12, 0.0 }
 0x14f   :  { %v1587_v4 = vsel %vm235_vm0, %v1464_v0, 0.0 }
 0x150   :  { %v1564_v1 = vadd.f32 %v1563_v62, %v1562_v63  ;;  %v1367_v13 = vadd.f32 %v1366_v22, %v1365_v28  ;;  %v1465_v62 = vmul.f32 %v2782_v33, %v2782_v33  ;;  %v1466_v28 = vmul.f32 %v2821_v58, %v2821_v58 }
 0x152   :  { %v1369_v19 = vadd.f32 %v1368_v49, %v1367_v13  ;;  %v1566_v24 = vadd.f32 %v1565_v2, %v1564_v1  ;;  %v1589_v13 = vsel %vm235_vm0, %v1465_v62, 0.0  ;;  %v1467_v2 = vmul.f32 %v2810_v48, %v2810_v48 }
 0x153   :  { %v1591_v6 = vsel %vm235_vm0, %v1466_v28, 0.0 }
 0x154   :  { %v1568_v10 = vadd.f32 %v1567_v15, %v1566_v24  ;;  %v1371_v20 = vadd.f32 %v1370_v39, %v1369_v19  ;;  %v1394_v19 = vsel %vm235_vm0, %v2810_v48, 0.0  ;;  %v1593_v33 = vsel %vm235_vm0, %v1467_v2, 0.0 }
 0x156   :  { %v1373_v29 = vadd.f32 %v1372_v54, %v1371_v20  ;;  %v1570_v30 = vadd.f32 %v1569_v21, %v1568_v10 }
 0x158   :  { %v1572_v31 = vadd.f32 %v1571_v25, %v1570_v30  ;;  %v1375_v38 = vadd.f32 %v1374_v43, %v1373_v29 }
 0x15a   :  { %v1377_v35 = vadd.f32 %v1376_v18, %v1375_v38  ;;  %v1574_v37 = vadd.f32 %v1573_v44, %v1572_v31 }
 0x15c   :  { %v1576_v9 = vadd.f32 %v1575_v61, %v1574_v37  ;;  %v1379_v45 = vadd.f32 %v1378_v8, %v1377_v35 }
 0x15e   :  { %v1381_v53 = vadd.f32 %v1380_v36, %v1379_v45  ;;  %v1578_v59 = vadd.f32 %v1577_v50, %v1576_v9 }
 0x160   :  { %v1580_v47 = vadd.f32 %v1579_v5, %v1578_v59  ;;  %v1383_v11 = vadd.f32 %v1382_v32, %v1381_v53 }
 0x162   :  { %v1385_v27 = vadd.f32 %v1384_v46, %v1383_v11  ;;  %v1582_v42 = vadd.f32 %v1581_v60, %v1580_v47 }
 0x164   :  { %v1584_v52 = vadd.f32 %v1583_v41, %v1582_v42  ;;  %v1387_v56 = vadd.f32 %v1386_v7, %v1385_v27 }
 0x166   :  { %v1389_v63 = vadd.f32 %v1388_v17, %v1387_v56  ;;  %v1586_v22 = vadd.f32 %v1585_v57, %v1584_v52 }
 0x168   :  { %v1588_v49 = vadd.f32 %v1587_v4, %v1586_v22  ;;  %v1391_v1 = vadd.f32 %v1390_v3, %v1389_v63 }
 0x16a   :  { %v1393_v15 = vadd.f32 %v1392_v40, %v1391_v1  ;;  %v1590_v16 = vadd.f32 %v1589_v13, %v1588_v49 }
 0x16c   :  { %v1395_v24 = vadd.f32 %v1394_v19, %v1393_v15  ;;  %v1592_v39 = vadd.f32 %v1591_v6, %v1590_v16 }
 0x16e   :  { %v1396_v54 = vrot.slane %v1395_v24, 4  ;;  %v1594_v58 = vadd.f32 %v1593_v33, %v1592_v39 }
 0x170   :  { %v1397_v10 = vadd.f32 %v1396_v54, %v1395_v24  ;;  %v1595_v20 = vrot.slane %v1594_v58, 4 }
 0x172   :  { %v1398_v21 = vrot.slane %v1397_v10, 2  ;;  %v1596_v23 = vadd.f32 %v1595_v20, %v1594_v58 }
 0x174   :  { %v1399_v25 = vadd.f32 %v1398_v21, %v1397_v10  ;;  %v1597_v26 = vrot.slane %v1596_v23, 2 }
 0x176   :  { %v1400_v29 = vrot.slane %v1399_v25, 1  ;;  %v1598_v30 = vadd.f32 %v1597_v26, %v1596_v23 }
 0x178   :  { %v1401_v43 = vadd.f32 %v1400_v29, %v1399_v25  ;;  %v1599_v18 = vrot.slane %v1598_v30, 1 }
 0x17a   :  { %1403 = vst.msk [vmem:[%s2995_s5] sm:$0x1] %vm1402_vm4, %v1401_v43  ;;  %v1600_v48 = vadd.f32 %v1599_v18, %v1598_v30 }
 0x17c   :  { %1601 = vst.msk [vmem:[%s2995_s5 + $0x1] sm:$0x1] %vm1402_vm4, %v1600_v48 }

// kernel: model_forward.4
= control target key start
LH: loop header
LB: loop body
LE: loop exit
PB: predicated region body
PF: predicated region fallthrough
CT: control target
= control target key end

     0   :  { %vm419_vm0 = vcmask 1042432   ;;  %vm226_vm1 = vcmask 23552   ;;  %vm808_vm2 = vcmask 605184   ;;  %vm1394_vm3 = vcmask 598016   ;;  %s2874_s3 = inlined_call_operand.vmem [shape: f32[3,74], index: 3, kind: input, shape index: {}]   ;;  %s2875_s0 = inlined_call_operand.vmem [shape: f32[512,3], index: 0, kind: input, shape index: {}]   ;;  %s2876_s1 = inlined_call_operand.vmem [shape: f32[1,3], index: 1, kind: input, shape index: {}]   ;;  %s2877_s2 = inlined_call_operand.vmem [shape: f32[1,3], index: 2, kind: input, shape index: {}]   ;;  %s2878_s5 = inlined_call_operand.vmem [shape: f32[1,8,74], index: 5, kind: output, shape index: {1}]   ;;  %s2879_s4 = inlined_call_operand.vmem [shape: f32[512,74], index: 4, kind: output, shape index: {0}]  }
   0x1   :  { %v225_v0 = vld [vmem:[%s2874_s3] sm:$0x7]  ;;  %v20_v5 = vld [vmem:[%s2875_s0 + $0x8] sm:$0xff]  ;;  %v21_v6 = vld [vmem:[%s2875_s0 + $0x10] sm:$0xff] }
   0x2   :  { %v19_v1 = vld [vmem:[%s2875_s0] sm:$0xff]  ;;  %1734 = vmatprep.subr.msk.mxu0 %vm419_vm0, %v225_v0  ;;  %1832 = vmatprep.subr.msk.mxu1 %vm419_vm0, %v225_v0  ;;  %v22_v9 = vld [vmem:[%s2875_s0 + $0x18] sm:$0xff]  ;;  %v24_v14 = vld [vmem:[%s2875_s0 + $0x28] sm:$0xff] }
   0x3   :  { %v1875_v2 = vld [vmem:[%s2876_s1] ss:$0 sm:$0xff]  ;;  %1735 = vmatpush3.msk.msra.mxu0 %vm419_vm0, %v225_v0  ;;  %1833 = vmatpush3.msk.msra.mxu1 %vm419_vm0, %v225_v0  ;;  %v25_v17 = vld [vmem:[%s2875_s0 + $0x30] sm:$0xff]  ;;  %v26_v22 = vld [vmem:[%s2875_s0 + $0x38] sm:$0xff] }
   0x4   :  { %v90_v3 = vmul.f32 %v1875_v2, %v19_v1  ;;  %v1882_v4 = vld [vmem:[%s2877_s2] ss:$0 sm:$0xff]  ;;  %v91_v7 = vmul.f32 %v1875_v2, %v20_v5  ;;  %v92_v8 = vmul.f32 %v1875_v2, %v21_v6  ;;  %v93_v12 = vmul.f32 %v1875_v2, %v22_v9  ;;  %v28_v28 = vld [vmem:[%s2875_s0 + $0x48] sm:$0xff]  ;;  %v29_v29 = vld [vmem:[%s2875_s0 + $0x50] sm:$0xff] }
   0x5   :  { %v23_v10 = vld [vmem:[%s2875_s0 + $0x20] sm:$0xff]  ;;  %v95_v19 = vmul.f32 %v1875_v2, %v24_v14  ;;  %v96_v21 = vmul.f32 %v1875_v2, %v25_v17  ;;  %v97_v25 = vmul.f32 %v1875_v2, %v26_v22  ;;  %v99_v31 = vmul.f32 %v1875_v2, %v28_v28  ;;  %v30_v32 = vld [vmem:[%s2875_s0 + $0x58] sm:$0xff]  ;;  %v52_v37 = vld [vmem:[%s2875_s0 + $0x108] sm:$0xff] }
   0x6   :  { %v161_v11 = vadd.f32 %v1882_v4, %v90_v3  ;;  %v94_v13 = vmul.f32 %v1875_v2, %v23_v10  ;;  %v162_v15 = vadd.f32 %v1882_v4, %v91_v7  ;;  %v163_v16 = vadd.f32 %v1882_v4, %v92_v8  ;;  %v27_v23 = vld [vmem:[%s2875_s0 + $0x40] sm:$0xff]  ;;  %v53_v38 = vld [vmem:[%s2875_s0 + $0x110] sm:$0xff]  ;;  %v54_v39 = vld [vmem:[%s2875_s0 + $0x118] sm:$0xff] }
   0x7   :  { %v164_v18 = vadd.f32 %v1882_v4, %v93_v12  ;;  %v166_v24 = vadd.f32 %v1882_v4, %v95_v19  ;;  %v167_v26 = vadd.f32 %v1882_v4, %v96_v21  ;;  %v98_v27 = vmul.f32 %v1875_v2, %v27_v23  ;;  %v51_v33 = vld [vmem:[%s2875_s0 + $0x100] sm:$0xff]  ;;  %v32_v45 = vld [vmem:[%s2875_s0 + $0x68] sm:$0xff]  ;;  %v33_v46 = vld [vmem:[%s2875_s0 + $0x70] sm:$0xff] }
   0x8   :  { %1736 = vmatprep.mubr.msk.f32.mxu0 %vm226_vm1, %v161_v11  ;;  %v165_v20 = vadd.f32 %v1882_v4, %v94_v13  ;;  %v168_v30 = vadd.f32 %v1882_v4, %v97_v25  ;;  %v100_v35 = vmul.f32 %v1875_v2, %v29_v29  ;;  %v31_v36 = vld [vmem:[%s2875_s0 + $0x60] sm:$0xff]  ;;  %v101_v41 = vmul.f32 %v1875_v2, %v30_v32  ;;  %v56_v53 = vld [vmem:[%s2875_s0 + $0x128] sm:$0xff]  ;;  %v57_v56 = vld [vmem:[%s2875_s0 + $0x130] sm:$0xff] }
   0x9   :  { %1737 = vmatmul.mubr.msk.f32.vlgmr.msra.gmra.mrb[0].mxu0 %vm226_vm1, %v162_v15  ;;  %v169_v34 = vadd.f32 %v1882_v4, %v98_v27  ;;  %v55_v40 = vld [vmem:[%s2875_s0 + $0x120] sm:$0xff]  ;;  %v122_v42 = vmul.f32 %v1875_v2, %v51_v33  ;;  %v170_v43 = vadd.f32 %v1882_v4, %v99_v31  ;;  %v102_v44 = vmul.f32 %v1875_v2, %v31_v36  ;;  %v34_v59 = vld [vmem:[%s2875_s0 + $0x78] sm:$0xff]  ;;  %v36_v62 = vld [vmem:[%s2875_s0 + $0x88] sm:$0xff] }
   0xa   :  { %1739 = vmatprep.mubr.msk.f32.mxu0 %vm226_vm1, %v163_v16  ;;  %v123_v47 = vmul.f32 %v1875_v2, %v52_v37  ;;  %v124_v48 = vmul.f32 %v1875_v2, %v53_v38  ;;  %v171_v49 = vadd.f32 %v1882_v4, %v100_v35  ;;  %v125_v51 = vmul.f32 %v1875_v2, %v54_v39  ;;  %v35_v61 = vld [vmem:[%s2875_s0 + $0x80] sm:$0xff]  ;;  %v37_v63 = vld [vmem:[%s2875_s0 + $0x90] sm:$0xff]  ;;  %v58_v7 = vld [vmem:[%s2875_s0 + $0x138] sm:$0xff] }
   0xb   :  { %v193_v50 = vadd.f32 %v1882_v4, %v122_v42  ;;  %v126_v52 = vmul.f32 %v1875_v2, %v55_v40  ;;  %v103_v57 = vmul.f32 %v1875_v2, %v32_v45  ;;  %v104_v58 = vmul.f32 %v1875_v2, %v33_v46  ;;  %v59_v8 = vld [vmem:[%s2875_s0 + $0x140] sm:$0xff]  ;;  %v60_v10 = vld [vmem:[%s2875_s0 + $0x148] sm:$0xff]  ;;  %v61_v15 = vld [vmem:[%s2875_s0 + $0x150] sm:$0xff] }
   0xc   :  { %v194_v54 = vadd.f32 %v1882_v4, %v123_v47  ;;  %v195_v55 = vadd.f32 %v1882_v4, %v124_v48  ;;  %v172_v60 = vadd.f32 %v1882_v4, %v101_v41  ;;  %v196_v0 = vadd.f32 %v1882_v4, %v125_v51  ;;  %v38_v16 = vld [vmem:[%s2875_s0 + $0x98] sm:$0xff]  ;;  %v39_v17 = vld [vmem:[%s2875_s0 + $0xa0] sm:$0xff]  ;;  %v76_v28 = vld [vmem:[%s2875_s0 + $0x1c8] sm:$0xff] }
   0xd   :  { %1740 = vmatmul.mubr.msk.f32.gmra.mrb[2].mxu0 %vm226_vm1, %v164_v18  ;;  %1784 = vmatprep.mubr.msk.f32.mxu1 %vm226_vm1, %v193_v50  ;;  %v127_v1 = vmul.f32 %v1875_v2, %v56_v53  ;;  %v173_v3 = vadd.f32 %v1882_v4, %v102_v44  ;;  %v197_v5 = vadd.f32 %v1882_v4, %v126_v52  ;;  %v63_v27 = vld [vmem:[%s2875_s0 + $0x160] sm:$0xff]  ;;  %v77_v33 = vld [vmem:[%s2875_s0 + $0x1d0] sm:$0xff]  ;;  %v80_v39 = vld [vmem:[%s2875_s0 + $0x1e8] sm:$0xff] }
   0xe   :  { %1742 = vmatprep.mubr.msk.f32.mxu0 %vm226_vm1, %v165_v20  ;;  %1785 = vmatmul.mubr.msk.f32.vlgmr.msra.gmra.mrb[0].mxu1 %vm226_vm1, %v194_v54  ;;  %v128_v6 = vmul.f32 %v1875_v2, %v57_v56  ;;  %v105_v9 = vmul.f32 %v1875_v2, %v34_v59  ;;  %v174_v11 = vadd.f32 %v1882_v4, %v103_v57  ;;  %v79_v35 = vld [vmem:[%s2875_s0 + $0x1e0] sm:$0xff]  ;;  %v81_v40 = vld [vmem:[%s2875_s0 + $0x1f0] sm:$0xff]  ;;  %v82_v41 = vld [vmem:[%s2875_s0 + $0x1f8] sm:$0xff] }
   0xf   :  { %1787 = vmatprep.mubr.msk.f32.mxu1 %vm226_vm1, %v195_v55  ;;  %v106_v12 = vmul.f32 %v1875_v2, %v35_v61  ;;  %v107_v13 = vmul.f32 %v1875_v2, %v36_v62  ;;  %v108_v14 = vmul.f32 %v1875_v2, %v37_v63  ;;  %v198_v18 = vadd.f32 %v1882_v4, %v127_v1  ;;  %v40_v53 = vld [vmem:[%s2875_s0 + $0xa8] sm:$0xff]  ;;  %v41_v54 = vld [vmem:[%s2875_s0 + $0xb0] sm:$0xff] }
  0x10   :  { %v129_v19 = vmul.f32 %v1875_v2, %v58_v7  ;;  %v130_v20 = vmul.f32 %v1875_v2, %v59_v8  ;;  %v175_v21 = vadd.f32 %v1882_v4, %v104_v58  ;;  %v199_v22 = vadd.f32 %v1882_v4, %v128_v6  ;;  %v64_v58 = vld [vmem:[%s2875_s0 + $0x168] sm:$0xff]  ;;  %v65_v62 = vld [vmem:[%s2875_s0 + $0x170] sm:$0xff] }
  0x11   :  { %1743 = vmatmul.mubr.msk.f32.gmra.mrb[4].mxu0 %vm226_vm1, %v166_v24  ;;  %v131_v23 = vmul.f32 %v1875_v2, %v60_v10  ;;  %v176_v24 = vadd.f32 %v1882_v4, %v105_v9  ;;  %v132_v25 = vmul.f32 %v1875_v2, %v61_v15  ;;  %v177_v29 = vadd.f32 %v1882_v4, %v106_v12  ;;  %v43_v9 = vld [vmem:[%s2875_s0 + $0xc0] sm:$0xff]  ;;  %v66_v12 = vld [vmem:[%s2875_s0 + $0x178] sm:$0xff] }
  0x12   :  { %1745 = vmatprep.mubr.msk.f32.mxu0 %vm226_vm1, %v167_v26  ;;  %1788 = vmatmul.mubr.msk.f32.gmra.mrb[2].mxu1 %vm226_vm1, %v196_v0  ;;  %v62_v26 = vld [vmem:[%s2875_s0 + $0x158] sm:$0xff]  ;;  %v109_v31 = vmul.f32 %v1875_v2, %v38_v16  ;;  %v110_v32 = vmul.f32 %v1875_v2, %v39_v17  ;;  %v179_v36 = vadd.f32 %v1882_v4, %v108_v14  ;;  %v44_v17 = vld [vmem:[%s2875_s0 + $0xc8] sm:$0xff] }
  0x13   :  { %1790 = vmatprep.mubr.msk.f32.mxu1 %vm226_vm1, %v197_v5  ;;  %v200_v37 = vadd.f32 %v1882_v4, %v129_v19  ;;  %v201_v38 = vadd.f32 %v1882_v4, %v130_v20  ;;  %v202_v42 = vadd.f32 %v1882_v4, %v131_v23  ;;  %v134_v44 = vmul.f32 %v1875_v2, %v63_v27  ;;  %v42_v5 = vld [vmem:[%s2875_s0 + $0xb8] sm:$0xff] }
  0x14   :  { %v203_v45 = vadd.f32 %v1882_v4, %v132_v25  ;;  %v147_v46 = vmul.f32 %v1875_v2, %v76_v28  ;;  %v148_v47 = vmul.f32 %v1875_v2, %v77_v33  ;;  %v151_v50 = vmul.f32 %v1875_v2, %v80_v39  ;;  %v69_v25 = vld [vmem:[%s2875_s0 + $0x190] sm:$0xff] }
  0x15   :  { %1746 = vmatmul.mubr.msk.f32.gmra.mrb[6].mxu0 %vm226_vm1, %v168_v30  ;;  %v178_v30 = vadd.f32 %v1882_v4, %v107_v13  ;;  %v152_v51 = vmul.f32 %v1875_v2, %v81_v40  ;;  %v153_v52 = vmul.f32 %v1875_v2, %v82_v41  ;;  %v111_v0 = vmul.f32 %v1875_v2, %v40_v53  ;;  %v67_v13 = vld [vmem:[%s2875_s0 + $0x180] sm:$0xff]  ;;  %v48_v41 = vld [vmem:[%s2875_s0 + $0xe8] sm:$0xff]  ;;  %v50_v53 = vld [vmem:[%s2875_s0 + $0xf8] sm:$0xff] }
  0x16   :  { %1748 = vmatprep.mubr.msk.f32.mxu0 %vm226_vm1, %v169_v34  ;;  %v78_v34 = vld [vmem:[%s2875_s0 + $0x1d8] sm:$0xff]  ;;  %1791 = vmatmul.mubr.msk.f32.gmra.mrb[4].mxu1 %vm226_vm1, %v198_v18  ;;  %v2108_v55 = vadd.f32 %v1882_v4, %v147_v46  ;;  %v2111_v56 = vadd.f32 %v1882_v4, %v148_v47  ;;  %v112_v1 = vmul.f32 %v1875_v2, %v41_v54 }
  0x17   :  { %1793 = vmatprep.mubr.msk.f32.mxu1 %vm226_vm1, %v199_v22  ;;  %v149_v48 = vmul.f32 %v1875_v2, %v78_v34  ;;  %v2128_v61 = vadd.f32 %v1882_v4, %v152_v51  ;;  %v2134_v63 = vadd.f32 %v1882_v4, %v153_v52  ;;  %v135_v7 = vmul.f32 %v1875_v2, %v64_v58 }
  0x18   :  { %v181_v8 = vadd.f32 %v1882_v4, %v110_v32  ;;  %v205_v10 = vadd.f32 %v1882_v4, %v134_v44  ;;  %v182_v14 = vadd.f32 %v1882_v4, %v111_v0  ;;  %v113_v15 = vmul.f32 %v1875_v2, %v42_v5  ;;  %v75_v5 = vld [vmem:[%s2875_s0 + $0x1c0] sm:$0xff] }
  0x19   :  { %1749 = vmatmul.mubr.msk.f32.gmra.mrb[8].mxu0 %vm226_vm1, %v170_v43  ;;  %v133_v43 = vmul.f32 %v1875_v2, %v62_v26  ;;  %v2114_v57 = vadd.f32 %v1882_v4, %v149_v48  ;;  %v114_v16 = vmul.f32 %v1875_v2, %v43_v9  ;;  %v206_v18 = vadd.f32 %v1882_v4, %v135_v7  ;;  %v72_v48 = vld [vmem:[%s2875_s0 + $0x1a8] sm:$0xff] }
  0x1a   :  { %1751 = vmatprep.mubr.msk.f32.mxu0 %vm226_vm1, %v171_v49  ;;  %v150_v49 = vmul.f32 %v1875_v2, %v79_v35  ;;  %1794 = vmatmul.mubr.msk.f32.gmra.mrb[6].mxu1 %vm226_vm1, %v200_v37  ;;  %v137_v19 = vmul.f32 %v1875_v2, %v66_v12  ;;  %v183_v20 = vadd.f32 %v1882_v4, %v112_v1  ;;  %v71_v37 = vld [vmem:[%s2875_s0 + $0x1a0] sm:$0xff] }
  0x1b   :  { %1796 = vmatprep.mubr.msk.f32.mxu1 %vm226_vm1, %v201_v38  ;;  %v204_v6 = vadd.f32 %v1882_v4, %v133_v43  ;;  %v138_v23 = vmul.f32 %v1875_v2, %v67_v13  ;;  %v184_v26 = vadd.f32 %v1882_v4, %v113_v15  ;;  %v115_v27 = vmul.f32 %v1875_v2, %v44_v17 }
  0x1c   :  { %v2122_v59 = vadd.f32 %v1882_v4, %v150_v49  ;;  %v185_v33 = vadd.f32 %v1882_v4, %v114_v16  ;;  %v140_v35 = vmul.f32 %v1875_v2, %v69_v25  ;;  %v142_v47 = vmul.f32 %v1875_v2, %v71_v37  ;;  %v73_v49 = vld [vmem:[%s2875_s0 + $0x1b0] sm:$0xff] }
  0x1d   :  { %1752 = vmatmul.mubr.msk.f32.gmra.mrb[10].mxu0 %vm226_vm1, %v172_v60  ;;  %v2125_v60 = vadd.f32 %v1882_v4, %v151_v50  ;;  %v209_v34 = vadd.f32 %v1882_v4, %v138_v23  ;;  %v186_v40 = vadd.f32 %v1882_v4, %v115_v27  ;;  %v119_v50 = vmul.f32 %v1875_v2, %v48_v41 }
  0x1e   :  { %1754 = vmatprep.mubr.msk.f32.mxu0 %vm226_vm1, %v173_v3  ;;  %v180_v3 = vadd.f32 %v1882_v4, %v109_v31  ;;  %1797 = vmatmul.mubr.msk.f32.gmra.mrb[8].mxu1 %vm226_vm1, %v202_v42  ;;  %v208_v31 = vadd.f32 %v1882_v4, %v137_v19  ;;  %v49_v42 = vld [vmem:[%s2875_s0 + $0xf0] sm:$0xff]  ;;  %v211_v46 = vadd.f32 %v1882_v4, %v140_v35 }
  0x1f   :  { %1799 = vmatprep.mubr.msk.f32.mxu1 %vm226_vm1, %v203_v45  ;;  %v120_v51 = vmul.f32 %v1875_v2, %v49_v42  ;;  %v143_v58 = vmul.f32 %v1875_v2, %v72_v48  ;;  %v213_v0 = vadd.f32 %v1882_v4, %v142_v47  ;;  %v144_v1 = vmul.f32 %v1875_v2, %v73_v49 }
  0x20   :  { %v190_v7 = vadd.f32 %v1882_v4, %v119_v50  ;;  %v146_v12 = vmul.f32 %v1875_v2, %v75_v5 }
  0x21   :  { %1755 = vmatmul.mubr.msk.f32.gmra.mrb[12].mxu0 %vm226_vm1, %v174_v11  ;;  %v136_v11 = vmul.f32 %v1875_v2, %v65_v62 }
  0x22   :  { %1757 = vmatprep.mubr.msk.f32.mxu0 %vm226_vm1, %v175_v21  ;;  %1800 = vmatmul.mubr.msk.f32.gmra.mrb[10].mxu1 %vm226_vm1, %v204_v6  ;;  %v45_v21 = vld [vmem:[%s2875_s0 + $0xd0] sm:$0xff]  ;;  %v121_v6 = vmul.f32 %v1875_v2, %v50_v53  ;;  %v217_v15 = vadd.f32 %v1882_v4, %v146_v12 }
  0x23   :  { %1802 = vmatprep.mubr.msk.f32.mxu1 %vm226_vm1, %v205_v10  ;;  %v207_v22 = vadd.f32 %v1882_v4, %v136_v11  ;;  %v116_v28 = vmul.f32 %v1875_v2, %v45_v21  ;;  %v191_v10 = vadd.f32 %v1882_v4, %v120_v51  ;;  %v215_v11 = vadd.f32 %v1882_v4, %v144_v1 }
  0x24   :  { %v192_v13 = vadd.f32 %v1882_v4, %v121_v6 }
  0x25   :  { %1758 = vmatmul.mubr.msk.f32.gmra.mrb[14].mxu0 %vm226_vm1, %v176_v24  ;;  %v68_v24 = vld [vmem:[%s2875_s0 + $0x188] sm:$0xff]  ;;  %v187_v45 = vadd.f32 %v1882_v4, %v116_v28 }
  0x26   :  { %1760 = vmatprep.mubr.msk.f32.mxu0 %vm226_vm1, %v177_v29  ;;  %v46_v29 = vld [vmem:[%s2875_s0 + $0xd8] sm:$0xff]  ;;  %1803 = vmatmul.mubr.msk.f32.gmra.mrb[12].mxu1 %vm226_vm1, %v206_v18  ;;  %v139_v32 = vmul.f32 %v1875_v2, %v68_v24 }
  0x27   :  { %1805 = vmatprep.mubr.msk.f32.mxu1 %vm226_vm1, %v207_v22  ;;  %v117_v38 = vmul.f32 %v1875_v2, %v46_v29 }
  0x28   :  { %v210_v43 = vadd.f32 %v1882_v4, %v139_v32 }
  0x29   :  { %1761 = vmatmul.mubr.msk.f32.gmra.mrb[16].mxu0 %vm226_vm1, %v178_v30  ;;  %v47_v30 = vld [vmem:[%s2875_s0 + $0xe0] sm:$0xff]  ;;  %v188_v52 = vadd.f32 %v1882_v4, %v117_v38 }
  0x2a   :  { %1763 = vmatprep.mubr.msk.f32.mxu0 %vm226_vm1, %v179_v36  ;;  %v70_v36 = vld [vmem:[%s2875_s0 + $0x198] sm:$0xff]  ;;  %v118_v39 = vmul.f32 %v1875_v2, %v47_v30  ;;  %1806 = vmatmul.mubr.msk.f32.gmra.mrb[14].mxu1 %vm226_vm1, %v208_v31 }
  0x2b   :  { %v141_v44 = vmul.f32 %v1875_v2, %v70_v36  ;;  %1808 = vmatprep.mubr.msk.f32.mxu1 %vm226_vm1, %v209_v34 }
  0x2c   :  { %v189_v62 = vadd.f32 %v1882_v4, %v118_v39 }
  0x2d   :  { %1764 = vmatmul.mubr.msk.f32.gmra.mrb[18].mxu0 %vm226_vm1, %v180_v3  ;;  %v212_v54 = vadd.f32 %v1882_v4, %v141_v44  ;;  %v74_v3 = vld [vmem:[%s2875_s0 + $0x1b8] sm:$0xff] }
  0x2e   :  { %1766 = vmatprep.mubr.msk.f32.mxu0 %vm226_vm1, %v181_v8  ;;  %1809 = vmatmul.mubr.msk.f32.gmra.mrb[16].mxu1 %vm226_vm1, %v210_v43  ;;  %v214_v8 = vadd.f32 %v1882_v4, %v143_v58  ;;  %v145_v9 = vmul.f32 %v1875_v2, %v74_v3  ;;  %v1835_v2 = vmov 0.0  }
  0x2f   :  { %1811 = vmatprep.mubr.msk.f32.mxu1 %vm226_vm1, %v211_v46  ;;  %1260 = vst.msk [vmem:[%s2878_s5] sm:$0xff] %vm808_vm2, %v1835_v2 }
  0x31   :  { %1767 = vmatmul.mubr.msk.f32.gmra.mrb[20].mxu0 %vm226_vm1, %v182_v14  ;;  %v216_v14 = vadd.f32 %v1882_v4, %v145_v9 }
  0x32   :  { %1769 = vmatprep.mubr.msk.f32.mxu0 %vm226_vm1, %v183_v20  ;;  %1812 = vmatmul.mubr.msk.f32.gmra.mrb[18].mxu1 %vm226_vm1, %v212_v54 }
  0x33   :  { %1814 = vmatprep.mubr.msk.f32.mxu1 %vm226_vm1, %v213_v0 }
  0x35   :  { %1770 = vmatmul.mubr.msk.f32.gmra.mrb[22].mxu0 %vm226_vm1, %v184_v26 }
  0x36   :  { %1772 = vmatprep.mubr.msk.f32.mxu0 %vm226_vm1, %v185_v33  ;;  %1815 = vmatmul.mubr.msk.f32.gmra.mrb[20].mxu1 %vm226_vm1, %v214_v8 }
  0x37   :  { %1817 = vmatprep.mubr.msk.f32.mxu1 %vm226_vm1, %v215_v11 }
  0x39   :  { %1773 = vmatmul.mubr.msk.f32.gmra.mrb[24].mxu0 %vm226_vm1, %v186_v40 }
  0x3a   :  { %1775 = vmatprep.mubr.msk.f32.mxu0 %vm226_vm1, %v187_v45  ;;  %1818 = vmatmul.mubr.msk.f32.gmra.mrb[22].mxu1 %vm226_vm1, %v216_v14 }
  0x3b   :  { %1820 = vmatprep.mubr.msk.f32.mxu1 %vm226_vm1, %v217_v15 }
  0x3d   :  { %1776 = vmatmul.mubr.msk.f32.gmra.mrb[26].mxu0 %vm226_vm1, %v188_v52 }
  0x3e   :  { %1778 = vmatprep.mubr.msk.f32.mxu0 %vm226_vm1, %v189_v62  ;;  %1821 = vmatmul.mubr.msk.f32.gmra.mrb[24].mxu1 %vm226_vm1, %v2108_v55 }
  0x3f   :  { %1823 = vmatprep.mubr.msk.f32.mxu1 %vm226_vm1, %v2111_v56 }
  0x41   :  { %1779 = vmatmul.mubr.msk.f32.gmra.mrb[28].mxu0 %vm226_vm1, %v190_v7 }
  0x42   :  { %1781 = vmatprep.mubr.msk.f32.mxu0 %vm226_vm1, %v191_v10  ;;  %1824 = vmatmul.mubr.msk.f32.gmra.mrb[26].mxu1 %vm226_vm1, %v2114_v57 }
  0x43   :  { %1826 = vmatprep.mubr.msk.f32.mxu1 %vm226_vm1, %v2122_v59 }
  0x45   :  { %1782 = vmatmul.mubr.msk.f32.gmra.mrb[30].mxu0 %vm226_vm1, %v192_v13 }
  0x46   :  { %1827 = vmatmul.mubr.msk.f32.gmra.mrb[28].mxu1 %vm226_vm1, %v2125_v60 }
  0x47   :  { %1829 = vmatprep.mubr.msk.f32.mxu1 %vm226_vm1, %v2128_v61 }
  0x4a   :  { %1830 = vmatmul.mubr.msk.f32.gmra.mrb[30].mxu1 %vm226_vm1, %v2134_v63 }
  0xdc   :  { %v1738_v4 = vpop.f32.mrb[0].mxu0 }
  0xdd   :  { %810 = vst.msk [vmem:[%s2879_s4 + $0x8] sm:$0xff] %vm808_vm2, %v1738_v4  ;;  %v1262_v55 = vsel %vm808_vm2, %v1738_v4, 0.0  ;;  %v1397_v56 = vmul.f32 %v1738_v4, %v1738_v4  ;;  %v489_v57 = vpop.f32.mrb[1].mxu0 }
  0xde   :  { %809 = vst.msk [vmem:[%s2879_s4] sm:$0xff] %vm808_vm2, %v489_v57  ;;  %v1261_v59 = vsel %vm808_vm2, %v489_v57, 0.0  ;;  %v1396_v60 = vmul.f32 %v489_v57, %v489_v57 }
  0xdf   :  { %v1461_v61 = vsel %vm808_vm2, %v1397_v56, 0.0  ;;  %v1263_v63 = vadd.f32 %v1262_v55, %v1261_v59 }
  0xe0   :  { %v1460_v16 = vsel %vm808_vm2, %v1396_v60, 0.0  ;;  %v1741_v17 = vpop.f32.mrb[2].mxu0 }
  0xe1   :  { %v1462_v18 = vadd.f32 %v1461_v61, %v1460_v16  ;;  %812 = vst.msk [vmem:[%s2879_s4 + $0x18] sm:$0xff] %vm808_vm2, %v1741_v17  ;;  %v499_v19 = vpop.f32.mrb[3].mxu0  ;;  %v1399_v20 = vmul.f32 %v1741_v17, %v1741_v17  ;;  %v1266_v24 = vsel %vm808_vm2, %v1741_v17, 0.0  ;;  %v2339_v51 = vpop.f32.mrb[0].mxu1 }
  0xe2   :  { %811 = vst.msk [vmem:[%s2879_s4 + $0x10] sm:$0xff] %vm808_vm2, %v499_v19  ;;  %v1264_v21 = vsel %vm808_vm2, %v499_v19, 0.0  ;;  %v1398_v22 = vmul.f32 %v499_v19, %v499_v19  ;;  %842 = vst.msk [vmem:[%s2879_s4 + $0x108] sm:$0xff] %vm808_vm2, %v2339_v51  ;;  %v2350_v58 = vpop.f32.mrb[1].mxu1 }
  0xe3   :  { %v1265_v23 = vadd.f32 %v1264_v21, %v1263_v63  ;;  %v1465_v30 = vsel %vm808_vm2, %v1399_v20, 0.0  ;;  %841 = vst.msk [vmem:[%s2879_s4 + $0x100] sm:$0xff] %vm808_vm2, %v2350_v58 }
  0xe4   :  { %v1463_v25 = vsel %vm808_vm2, %v1398_v22, 0.0  ;;  %v1744_v26 = vpop.f32.mrb[4].mxu0 }
  0xe5   :  { %v1464_v27 = vadd.f32 %v1463_v25, %v1462_v18  ;;  %814 = vst.msk [vmem:[%s2879_s4 + $0x28] sm:$0xff] %vm808_vm2, %v1744_v26  ;;  %v509_v28 = vpop.f32.mrb[5].mxu0  ;;  %v1267_v29 = vadd.f32 %v1266_v24, %v1265_v23  ;;  %v1401_v31 = vmul.f32 %v1744_v26, %v1744_v26  ;;  %v1270_v36 = vsel %vm808_vm2, %v1744_v26, 0.0  ;;  %v2365_v10 = vpop.f32.mrb[2].mxu1 }
  0xe6   :  { %813 = vst.msk [vmem:[%s2879_s4 + $0x20] sm:$0xff] %vm808_vm2, %v509_v28  ;;  %v1268_v32 = vsel %vm808_vm2, %v509_v28, 0.0  ;;  %v1400_v33 = vmul.f32 %v509_v28, %v509_v28  ;;  %844 = vst.msk [vmem:[%s2879_s4 + $0x118] sm:$0xff] %vm808_vm2, %v2365_v10  ;;  %v2376_v14 = vpop.f32.mrb[3].mxu1 }
  0xe7   :  { %v1269_v34 = vadd.f32 %v1268_v32, %v1267_v29  ;;  %v1466_v35 = vadd.f32 %v1465_v30, %v1464_v27  ;;  %v1469_v42 = vsel %vm808_vm2, %v1401_v31, 0.0  ;;  %843 = vst.msk [vmem:[%s2879_s4 + $0x110] sm:$0xff] %vm808_vm2, %v2376_v14 }
  0xe8   :  { %v1467_v37 = vsel %vm808_vm2, %v1400_v33, 0.0  ;;  %v1747_v38 = vpop.f32.mrb[6].mxu0 }
  0xe9   :  { %v1468_v39 = vadd.f32 %v1467_v37, %v1466_v35  ;;  %816 = vst.msk [vmem:[%s2879_s4 + $0x38] sm:$0xff] %vm808_vm2, %v1747_v38  ;;  %v519_v40 = vpop.f32.mrb[7].mxu0  ;;  %v1271_v41 = vadd.f32 %v1270_v36, %v1269_v34  ;;  %v1403_v43 = vmul.f32 %v1747_v38, %v1747_v38  ;;  %v1274_v48 = vsel %vm808_vm2, %v1747_v38, 0.0  ;;  %v2391_v63 = vpop.f32.mrb[4].mxu1 }
  0xea   :  { %815 = vst.msk [vmem:[%s2879_s4 + $0x30] sm:$0xff] %vm808_vm2, %v519_v40  ;;  %v1272_v44 = vsel %vm808_vm2, %v519_v40, 0.0  ;;  %v1402_v45 = vmul.f32 %v519_v40, %v519_v40  ;;  %846 = vst.msk [vmem:[%s2879_s4 + $0x128] sm:$0xff] %vm808_vm2, %v2391_v63  ;;  %v2402_v19 = vpop.f32.mrb[5].mxu1 }
  0xeb   :  { %v1273_v46 = vadd.f32 %v1272_v44, %v1271_v41  ;;  %v1470_v47 = vadd.f32 %v1469_v42, %v1468_v39  ;;  %v1473_v62 = vsel %vm808_vm2, %v1403_v43, 0.0  ;;  %845 = vst.msk [vmem:[%s2879_s4 + $0x120] sm:$0xff] %vm808_vm2, %v2402_v19 }
  0xec   :  { %v1471_v49 = vsel %vm808_vm2, %v1402_v45, 0.0  ;;  %v1750_v50 = vpop.f32.mrb[8].mxu0 }
  0xed   :  { %v1472_v52 = vadd.f32 %v1471_v49, %v1470_v47  ;;  %818 = vst.msk [vmem:[%s2879_s4 + $0x48] sm:$0xff] %vm808_vm2, %v1750_v50  ;;  %v529_v53 = vpop.f32.mrb[9].mxu0  ;;  %v1275_v54 = vadd.f32 %v1274_v48, %v1273_v46  ;;  %v1405_v0 = vmul.f32 %v1750_v50, %v1750_v50  ;;  %v1278_v7 = vsel %vm808_vm2, %v1750_v50, 0.0  ;;  %v2417_v29 = vpop.f32.mrb[6].mxu1 }
  0xee   :  { %817 = vst.msk [vmem:[%s2879_s4 + $0x40] sm:$0xff] %vm808_vm2, %v529_v53  ;;  %v1276_v1 = vsel %vm808_vm2, %v529_v53, 0.0  ;;  %v1404_v3 = vmul.f32 %v529_v53, %v529_v53  ;;  %848 = vst.msk [vmem:[%s2879_s4 + $0x138] sm:$0xff] %vm808_vm2, %v2417_v29  ;;  %v2428_v33 = vpop.f32.mrb[7].mxu1 }
  0xef   :  { %v1277_v5 = vadd.f32 %v1276_v1, %v1275_v54  ;;  %v1474_v6 = vadd.f32 %v1473_v62, %v1472_v52  ;;  %v1477_v15 = vsel %vm808_vm2, %v1405_v0, 0.0  ;;  %847 = vst.msk [vmem:[%s2879_s4 + $0x130] sm:$0xff] %vm808_vm2, %v2428_v33 }
  0xf0   :  { %v1475_v8 = vsel %vm808_vm2, %v1404_v3, 0.0  ;;  %v1753_v9 = vpop.f32.mrb[10].mxu0 }
  0xf1   :  { %v1476_v11 = vadd.f32 %v1475_v8, %v1474_v6  ;;  %820 = vst.msk [vmem:[%s2879_s4 + $0x58] sm:$0xff] %vm808_vm2, %v1753_v9  ;;  %v539_v12 = vpop.f32.mrb[11].mxu0  ;;  %v1279_v13 = vadd.f32 %v1278_v7, %v1277_v5  ;;  %v1407_v2 = vmul.f32 %v1753_v9, %v1753_v9  ;;  %v1282_v59 = vsel %vm808_vm2, %v1753_v9, 0.0  ;;  %v2443_v43 = vpop.f32.mrb[8].mxu1 }
  0xf2   :  { %819 = vst.msk [vmem:[%s2879_s4 + $0x50] sm:$0xff] %vm808_vm2, %v539_v12  ;;  %v1280_v4 = vsel %vm808_vm2, %v539_v12, 0.0  ;;  %v1406_v55 = vmul.f32 %v539_v12, %v539_v12  ;;  %850 = vst.msk [vmem:[%s2879_s4 + $0x148] sm:$0xff] %vm808_vm2, %v2443_v43  ;;  %v2454_v47 = vpop.f32.mrb[9].mxu1 }
  0xf3   :  { %v1281_v56 = vadd.f32 %v1280_v4, %v1279_v13  ;;  %v1478_v57 = vadd.f32 %v1477_v15, %v1476_v11  ;;  %v1481_v20 = vsel %vm808_vm2, %v1407_v2, 0.0  ;;  %849 = vst.msk [vmem:[%s2879_s4 + $0x140] sm:$0xff] %vm808_vm2, %v2454_v47 }
  0xf4   :  { %v1479_v60 = vsel %vm808_vm2, %v1406_v55, 0.0  ;;  %v1756_v61 = vpop.f32.mrb[12].mxu0 }
  0xf5   :  { %v1480_v16 = vadd.f32 %v1479_v60, %v1478_v57  ;;  %822 = vst.msk [vmem:[%s2879_s4 + $0x68] sm:$0xff] %vm808_vm2, %v1756_v61  ;;  %v549_v17 = vpop.f32.mrb[13].mxu0  ;;  %v1283_v18 = vadd.f32 %v1282_v59, %v1281_v56  ;;  %v1409_v21 = vmul.f32 %v1756_v61, %v1756_v61  ;;  %v1286_v26 = vsel %vm808_vm2, %v1756_v61, 0.0  ;;  %v2469_v3 = vpop.f32.mrb[10].mxu1 }
  0xf6   :  { %821 = vst.msk [vmem:[%s2879_s4 + $0x60] sm:$0xff] %vm808_vm2, %v549_v17  ;;  %v1284_v22 = vsel %vm808_vm2, %v549_v17, 0.0  ;;  %v1408_v23 = vmul.f32 %v549_v17, %v549_v17  ;;  %852 = vst.msk [vmem:[%s2879_s4 + $0x158] sm:$0xff] %vm808_vm2, %v2469_v3  ;;  %v2480_v8 = vpop.f32.mrb[11].mxu1 }
  0xf7   :  { %v1285_v24 = vadd.f32 %v1284_v22, %v1283_v18  ;;  %v1482_v25 = vadd.f32 %v1481_v20, %v1480_v16  ;;  %v1485_v34 = vsel %vm808_vm2, %v1409_v21, 0.0  ;;  %851 = vst.msk [vmem:[%s2879_s4 + $0x150] sm:$0xff] %vm808_vm2, %v2480_v8 }
  0xf8   :  { %v1483_v27 = vsel %vm808_vm2, %v1408_v23, 0.0  ;;  %v1759_v28 = vpop.f32.mrb[14].mxu0 }
  0xf9   :  { %v1484_v30 = vadd.f32 %v1483_v27, %v1482_v25  ;;  %824 = vst.msk [vmem:[%s2879_s4 + $0x78] sm:$0xff] %vm808_vm2, %v1759_v28  ;;  %v559_v31 = vpop.f32.mrb[15].mxu0  ;;  %v1287_v32 = vadd.f32 %v1286_v26, %v1285_v24  ;;  %v1411_v35 = vmul.f32 %v1759_v28, %v1759_v28  ;;  %v1290_v40 = vsel %vm808_vm2, %v1759_v28, 0.0  ;;  %v2495_v57 = vpop.f32.mrb[12].mxu1 }
  0xfa   :  { %823 = vst.msk [vmem:[%s2879_s4 + $0x70] sm:$0xff] %vm808_vm2, %v559_v31  ;;  %v1288_v36 = vsel %vm808_vm2, %v559_v31, 0.0  ;;  %v1410_v37 = vmul.f32 %v559_v31, %v559_v31  ;;  %854 = vst.msk [vmem:[%s2879_s4 + $0x168] sm:$0xff] %vm808_vm2, %v2495_v57  ;;  %v2506_v16 = vpop.f32.mrb[13].mxu1 }
  0xfb   :  { %v1289_v38 = vadd.f32 %v1288_v36, %v1287_v32  ;;  %v1486_v39 = vadd.f32 %v1485_v34, %v1484_v30  ;;  %v1489_v48 = vsel %vm808_vm2, %v1411_v35, 0.0  ;;  %853 = vst.msk [vmem:[%s2879_s4 + $0x160] sm:$0xff] %vm808_vm2, %v2506_v16 }
  0xfc   :  { %v1487_v41 = vsel %vm808_vm2, %v1410_v37, 0.0  ;;  %v1762_v42 = vpop.f32.mrb[16].mxu0 }
  0xfd   :  { %v1488_v44 = vadd.f32 %v1487_v41, %v1486_v39  ;;  %826 = vst.msk [vmem:[%s2879_s4 + $0x88] sm:$0xff] %vm808_vm2, %v1762_v42  ;;  %v569_v45 = vpop.f32.mrb[17].mxu0  ;;  %v1291_v46 = vadd.f32 %v1290_v40, %v1289_v38  ;;  %v1413_v49 = vmul.f32 %v1762_v42, %v1762_v42  ;;  %v1294_v62 = vsel %vm808_vm2, %v1762_v42, 0.0  ;;  %v2521_v27 = vpop.f32.mrb[14].mxu1 }
  0xfe   :  { %825 = vst.msk [vmem:[%s2879_s4 + $0x80] sm:$0xff] %vm808_vm2, %v569_v45  ;;  %v1292_v50 = vsel %vm808_vm2, %v569_v45, 0.0  ;;  %v1412_v52 = vmul.f32 %v569_v45, %v569_v45  ;;  %856 = vst.msk [vmem:[%s2879_s4 + $0x178] sm:$0xff] %vm808_vm2, %v2521_v27  ;;  %v2532_v32 = vpop.f32.mrb[15].mxu1 }
  0xff   :  { %v1293_v53 = vadd.f32 %v1292_v50, %v1291_v46  ;;  %v1490_v54 = vadd.f32 %v1489_v48, %v1488_v44  ;;  %v1493_v9 = vsel %vm808_vm2, %v1413_v49, 0.0  ;;  %855 = vst.msk [vmem:[%s2879_s4 + $0x170] sm:$0xff] %vm808_vm2, %v2532_v32 }
 0x100   :  { %v1491_v0 = vsel %vm808_vm2, %v1412_v52, 0.0  ;;  %v1765_v1 = vpop.f32.mrb[18].mxu0 }
 0x101   :  { %v1492_v5 = vadd.f32 %v1491_v0, %v1490_v54  ;;  %828 = vst.msk [vmem:[%s2879_s4 + $0x98] sm:$0xff] %vm808_vm2, %v1765_v1  ;;  %v579_v6 = vpop.f32.mrb[19].mxu0  ;;  %v1295_v7 = vadd.f32 %v1294_v62, %v1293_v53  ;;  %v1415_v11 = vmul.f32 %v1765_v1, %v1765_v1  ;;  %v1298_v4 = vsel %vm808_vm2, %v1765_v1, 0.0  ;;  %v2547_v44 = vpop.f32.mrb[16].mxu1 }
 0x102   :  { %827 = vst.msk [vmem:[%s2879_s4 + $0x90] sm:$0xff] %vm808_vm2, %v579_v6  ;;  %v1296_v12 = vsel %vm808_vm2, %v579_v6, 0.0  ;;  %v1414_v13 = vmul.f32 %v579_v6, %v579_v6  ;;  %858 = vst.msk [vmem:[%s2879_s4 + $0x188] sm:$0xff] %vm808_vm2, %v2547_v44  ;;  %v2558_v49 = vpop.f32.mrb[17].mxu1 }
 0x103   :  { %v1297_v15 = vadd.f32 %v1296_v12, %v1295_v7  ;;  %v1494_v2 = vadd.f32 %v1493_v9, %v1492_v5  ;;  %v1497_v17 = vsel %vm808_vm2, %v1415_v11, 0.0  ;;  %857 = vst.msk [vmem:[%s2879_s4 + $0x180] sm:$0xff] %vm808_vm2, %v2558_v49 }
 0x104   :  { %v1495_v55 = vsel %vm808_vm2, %v1414_v13, 0.0  ;;  %v1768_v56 = vpop.f32.mrb[20].mxu0 }
 0x105   :  { %v1496_v59 = vadd.f32 %v1495_v55, %v1494_v2  ;;  %830 = vst.msk [vmem:[%s2879_s4 + $0xa8] sm:$0xff] %vm808_vm2, %v1768_v56  ;;  %v589_v60 = vpop.f32.mrb[21].mxu0  ;;  %v1299_v61 = vadd.f32 %v1298_v4, %v1297_v15  ;;  %v1417_v18 = vmul.f32 %v1768_v56, %v1768_v56  ;;  %v1302_v24 = vsel %vm808_vm2, %v1768_v56, 0.0  ;;  %v2573_v7 = vpop.f32.mrb[18].mxu1 }
 0x106   :  { %829 = vst.msk [vmem:[%s2879_s4 + $0xa0] sm:$0xff] %vm808_vm2, %v589_v60  ;;  %v1300_v20 = vsel %vm808_vm2, %v589_v60, 0.0  ;;  %v1416_v21 = vmul.f32 %v589_v60, %v589_v60  ;;  %860 = vst.msk [vmem:[%s2879_s4 + $0x198] sm:$0xff] %vm808_vm2, %v2573_v7  ;;  %v2584_v13 = vpop.f32.mrb[19].mxu1 }
 0x107   :  { %v1301_v22 = vadd.f32 %v1300_v20, %v1299_v61  ;;  %v1498_v23 = vadd.f32 %v1497_v17, %v1496_v59  ;;  %v1501_v34 = vsel %vm808_vm2, %v1417_v18, 0.0  ;;  %859 = vst.msk [vmem:[%s2879_s4 + $0x190] sm:$0xff] %vm808_vm2, %v2584_v13 }
 0x108   :  { %v1499_v25 = vsel %vm808_vm2, %v1416_v21, 0.0  ;;  %v1771_v26 = vpop.f32.mrb[22].mxu0 }
 0x109   :  { %v1500_v28 = vadd.f32 %v1499_v25, %v1498_v23  ;;  %832 = vst.msk [vmem:[%s2879_s4 + $0xb8] sm:$0xff] %vm808_vm2, %v1771_v26  ;;  %v599_v30 = vpop.f32.mrb[23].mxu0  ;;  %v1303_v31 = vadd.f32 %v1302_v24, %v1301_v22  ;;  %v1419_v35 = vmul.f32 %v1771_v26, %v1771_v26  ;;  %v1306_v40 = vsel %vm808_vm2, %v1771_v26, 0.0  ;;  %v2599_v18 = vpop.f32.mrb[20].mxu1 }
 0x10a   :  { %831 = vst.msk [vmem:[%s2879_s4 + $0xb0] sm:$0xff] %vm808_vm2, %v599_v30  ;;  %v1304_v36 = vsel %vm808_vm2, %v599_v30, 0.0  ;;  %v1418_v37 = vmul.f32 %v599_v30, %v599_v30  ;;  %862 = vst.msk [vmem:[%s2879_s4 + $0x1a8] sm:$0xff] %vm808_vm2, %v2599_v18  ;;  %v2610_v23 = vpop.f32.mrb[21].mxu1 }
 0x10b   :  { %v1305_v38 = vadd.f32 %v1304_v36, %v1303_v31  ;;  %v1502_v39 = vadd.f32 %v1501_v34, %v1500_v28  ;;  %v1505_v50 = vsel %vm808_vm2, %v1419_v35, 0.0  ;;  %861 = vst.msk [vmem:[%s2879_s4 + $0x1a0] sm:$0xff] %vm808_vm2, %v2610_v23 }
 0x10c   :  { %v1503_v41 = vsel %vm808_vm2, %v1418_v37, 0.0  ;;  %v1774_v42 = vpop.f32.mrb[24].mxu0 }
 0x10d   :  { %v1504_v45 = vadd.f32 %v1503_v41, %v1502_v39  ;;  %834 = vst.msk [vmem:[%s2879_s4 + $0xc8] sm:$0xff] %vm808_vm2, %v1774_v42  ;;  %v609_v46 = vpop.f32.mrb[25].mxu0  ;;  %v1307_v48 = vadd.f32 %v1306_v40, %v1305_v38  ;;  %v1421_v52 = vmul.f32 %v1774_v42, %v1774_v42  ;;  %v1310_v1 = vsel %vm808_vm2, %v1774_v42, 0.0  ;;  %v2625_v37 = vpop.f32.mrb[22].mxu1 }
 0x10e   :  { %833 = vst.msk [vmem:[%s2879_s4 + $0xc0] sm:$0xff] %vm808_vm2, %v609_v46  ;;  %v1308_v53 = vsel %vm808_vm2, %v609_v46, 0.0  ;;  %v1420_v54 = vmul.f32 %v609_v46, %v609_v46  ;;  %v1428_v41 = vmul.f32 %v2350_v58, %v2350_v58  ;;  %864 = vst.msk [vmem:[%s2879_s4 + $0x1b8] sm:$0xff] %vm808_vm2, %v2625_v37  ;;  %v2638_v42 = vpop.f32.mrb[23].mxu1 }
 0x10f   :  { %v1309_v62 = vadd.f32 %v1308_v53, %v1307_v48  ;;  %v1506_v0 = vadd.f32 %v1505_v50, %v1504_v45  ;;  %v1509_v15 = vsel %vm808_vm2, %v1421_v52, 0.0  ;;  %863 = vst.msk [vmem:[%s2879_s4 + $0x1b0] sm:$0xff] %vm808_vm2, %v2638_v42 }
 0x110   :  { %v1507_v5 = vsel %vm808_vm2, %v1420_v54, 0.0  ;;  %v1777_v6 = vpop.f32.mrb[26].mxu0 }
 0x111   :  { %v1508_v9 = vadd.f32 %v1507_v5, %v1506_v0  ;;  %836 = vst.msk [vmem:[%s2879_s4 + $0xd8] sm:$0xff] %vm808_vm2, %v1777_v6  ;;  %v619_v11 = vpop.f32.mrb[27].mxu0  ;;  %v1311_v12 = vadd.f32 %v1310_v1, %v1309_v62  ;;  %v1423_v2 = vmul.f32 %v1777_v6, %v1777_v6  ;;  %v1314_v60 = vsel %vm808_vm2, %v1777_v6, 0.0  ;;  %v2655_v1 = vpop.f32.mrb[24].mxu1 }
 0x112   :  { %835 = vst.msk [vmem:[%s2879_s4 + $0xd0] sm:$0xff] %vm808_vm2, %v619_v11  ;;  %v1312_v4 = vsel %vm808_vm2, %v619_v11, 0.0  ;;  %v1422_v55 = vmul.f32 %v619_v11, %v619_v11  ;;  %v1324_v0 = vsel %vm808_vm2, %v2350_v58, 0.0  ;;  %866 = vst.msk [vmem:[%s2879_s4 + $0x1c8] sm:$0xff] %vm808_vm2, %v2655_v1  ;;  %v1430_v58 = vmul.f32 %v2376_v14, %v2376_v14 }
 0x113   :  { %v1313_v56 = vadd.f32 %v1312_v4, %v1311_v12  ;;  %v1510_v59 = vadd.f32 %v1509_v15, %v1508_v9  ;;  %v1513_v24 = vsel %vm808_vm2, %v1423_v2, 0.0  ;;  %v2662_v9 = vpop.f32.mrb[25].mxu1  ;;  %v1429_v12 = vmul.f32 %v2339_v51, %v2339_v51 }
 0x114   :  { %v1511_v61 = vsel %vm808_vm2, %v1422_v55, 0.0  ;;  %v1780_v17 = vpop.f32.mrb[28].mxu0  ;;  %v1523_v15 = vsel %vm808_vm2, %v1428_v41, 0.0  ;;  %865 = vst.msk [vmem:[%s2879_s4 + $0x1c0] sm:$0xff] %vm808_vm2, %v2662_v9  ;;  %v1326_v55 = vsel %vm808_vm2, %v2339_v51, 0.0  ;;  %v1431_v51 = vmul.f32 %v2365_v10, %v2365_v10 }
 0x115   :  { %v1512_v20 = vadd.f32 %v1511_v61, %v1510_v59  ;;  %838 = vst.msk [vmem:[%s2879_s4 + $0xe8] sm:$0xff] %vm808_vm2, %v1780_v17  ;;  %v629_v21 = vpop.f32.mrb[29].mxu0  ;;  %v1315_v22 = vadd.f32 %v1314_v60, %v1313_v56  ;;  %v1425_v25 = vmul.f32 %v1780_v17, %v1780_v17  ;;  %v1318_v34 = vsel %vm808_vm2, %v1780_v17, 0.0  ;;  %v2679_v59 = vpop.f32.mrb[26].mxu1 }
 0x116   :  { %837 = vst.msk [vmem:[%s2879_s4 + $0xe0] sm:$0xff] %vm808_vm2, %v629_v21  ;;  %v1316_v26 = vsel %vm808_vm2, %v629_v21, 0.0  ;;  %v1424_v28 = vmul.f32 %v629_v21, %v629_v21  ;;  %v1328_v56 = vsel %vm808_vm2, %v2376_v14, 0.0  ;;  %868 = vst.msk [vmem:[%s2879_s4 + $0x1d8] sm:$0xff] %vm808_vm2, %v2679_v59  ;;  %v2686_v17 = vpop.f32.mrb[27].mxu1  ;;  %v1527_v21 = vsel %vm808_vm2, %v1430_v58, 0.0 }
 0x117   :  { %v1317_v30 = vadd.f32 %v1316_v26, %v1315_v22  ;;  %v1514_v31 = vadd.f32 %v1513_v24, %v1512_v20  ;;  %v1517_v45 = vsel %vm808_vm2, %v1425_v25, 0.0  ;;  %v1525_v20 = vsel %vm808_vm2, %v1429_v12, 0.0  ;;  %867 = vst.msk [vmem:[%s2879_s4 + $0x1d0] sm:$0xff] %vm808_vm2, %v2686_v17 }
 0x118   :  { %v1515_v35 = vsel %vm808_vm2, %v1424_v28, 0.0  ;;  %v1783_v36 = vpop.f32.mrb[30].mxu0  ;;  %v1432_v14 = vmul.f32 %v2402_v19, %v2402_v19  ;;  %v1330_v25 = vsel %vm808_vm2, %v2365_v10, 0.0  ;;  %v1332_v26 = vsel %vm808_vm2, %v2402_v19, 0.0 }
 0x119   :  { %v1516_v38 = vadd.f32 %v1515_v35, %v1514_v31  ;;  %840 = vst.msk [vmem:[%s2879_s4 + $0xf8] sm:$0xff] %vm808_vm2, %v1783_v36  ;;  %v639_v39 = vpop.f32.mrb[31].mxu0  ;;  %v1319_v40 = vadd.f32 %v1318_v34, %v1317_v30  ;;  %v1427_v46 = vmul.f32 %v1783_v36, %v1783_v36  ;;  %v1322_v54 = vsel %vm808_vm2, %v1783_v36, 0.0  ;;  %v2703_v28 = vpop.f32.mrb[28].mxu1 }
 0x11a   :  { %839 = vst.msk [vmem:[%s2879_s4 + $0xf0] sm:$0xff] %vm808_vm2, %v639_v39  ;;  %v1320_v48 = vsel %vm808_vm2, %v639_v39, 0.0  ;;  %v1426_v50 = vmul.f32 %v639_v39, %v639_v39  ;;  %870 = vst.msk [vmem:[%s2879_s4 + $0x1e8] sm:$0xff] %vm808_vm2, %v2703_v28  ;;  %v2710_v34 = vpop.f32.mrb[29].mxu1  ;;  %v1529_v35 = vsel %vm808_vm2, %v1431_v51, 0.0  ;;  %v1433_v10 = vmul.f32 %v2391_v63, %v2391_v63 }
 0x11b   :  { %v1321_v52 = vadd.f32 %v1320_v48, %v1319_v40  ;;  %v1518_v53 = vadd.f32 %v1517_v45, %v1516_v38  ;;  %v1521_v11 = vsel %vm808_vm2, %v1427_v46, 0.0  ;;  %v1531_v36 = vsel %vm808_vm2, %v1432_v14, 0.0  ;;  %869 = vst.msk [vmem:[%s2879_s4 + $0x1e0] sm:$0xff] %vm808_vm2, %v2710_v34 }
 0x11c   :  { %v1519_v62 = vsel %vm808_vm2, %v1426_v50, 0.0  ;;  %v1434_v19 = vmul.f32 %v2428_v33, %v2428_v33  ;;  %v1334_v40 = vsel %vm808_vm2, %v2391_v63, 0.0  ;;  %v1336_v41 = vsel %vm808_vm2, %v2428_v33, 0.0 }
 0x11d   :  { %v1323_v5 = vadd.f32 %v1322_v54, %v1321_v52  ;;  %v1520_v6 = vadd.f32 %v1519_v62, %v1518_v53  ;;  %v2727_v45 = vpop.f32.mrb[30].mxu1  ;;  %v1533_v52 = vsel %vm808_vm2, %v1433_v10, 0.0  ;;  %v1435_v63 = vmul.f32 %v2417_v29, %v2417_v29 }
 0x11e   :  { %872 = vst.msk [vmem:[%s2879_s4 + $0x1f8] sm:$0xff] %vm808_vm2, %v2727_v45  ;;  %v2734_v50 = vpop.f32.mrb[31].mxu1  ;;  %v1535_v53 = vsel %vm808_vm2, %v1434_v19, 0.0  ;;  %v1436_v33 = vmul.f32 %v2454_v47, %v2454_v47 }
 0x11f   :  { %v1522_v2 = vadd.f32 %v1521_v11, %v1520_v6  ;;  %v1325_v4 = vadd.f32 %v1324_v0, %v1323_v5  ;;  %871 = vst.msk [vmem:[%s2879_s4 + $0x1f0] sm:$0xff] %vm808_vm2, %v2734_v50  ;;  %v1338_v0 = vsel %vm808_vm2, %v2417_v29, 0.0  ;;  %v1340_v5 = vsel %vm808_vm2, %v2454_v47, 0.0 }
 0x120   :  { %v1537_v12 = vsel %vm808_vm2, %v1435_v63, 0.0  ;;  %v1539_v58 = vsel %vm808_vm2, %v1436_v33, 0.0  ;;  %v1342_v29 = vsel %vm808_vm2, %v2443_v43, 0.0  ;;  %v1344_v47 = vsel %vm808_vm2, %v2480_v8, 0.0 }
 0x121   :  { %v1524_v60 = vadd.f32 %v1523_v15, %v1522_v2  ;;  %v1327_v61 = vadd.f32 %v1326_v55, %v1325_v4  ;;  %v1437_v15 = vmul.f32 %v2443_v43, %v2443_v43  ;;  %v1438_v2 = vmul.f32 %v2480_v8, %v2480_v8 }
 0x122   :  { %v1346_v43 = vsel %vm808_vm2, %v2469_v3, 0.0  ;;  %v1348_v8 = vsel %vm808_vm2, %v2506_v16, 0.0 }
 0x123   :  { %v1329_v22 = vadd.f32 %v1328_v56, %v1327_v61  ;;  %v1526_v24 = vadd.f32 %v1525_v20, %v1524_v60  ;;  %v1541_v61 = vsel %vm808_vm2, %v1437_v15, 0.0  ;;  %v1439_v20 = vmul.f32 %v2469_v3, %v2469_v3 }
 0x124   :  { %v1543_v51 = vsel %vm808_vm2, %v1438_v2, 0.0  ;;  %v1350_v3 = vsel %vm808_vm2, %v2495_v57, 0.0 }
 0x125   :  { %v1528_v30 = vadd.f32 %v1527_v21, %v1526_v24  ;;  %v1331_v31 = vadd.f32 %v1330_v25, %v1329_v22  ;;  %v1440_v21 = vmul.f32 %v2506_v16, %v2506_v16  ;;  %v1352_v16 = vsel %vm808_vm2, %v2532_v32, 0.0 }
 0x127   :  { %v1333_v38 = vadd.f32 %v1332_v26, %v1331_v31  ;;  %v1530_v39 = vadd.f32 %v1529_v35, %v1528_v30  ;;  %v1545_v26 = vsel %vm808_vm2, %v1439_v20, 0.0  ;;  %v1441_v30 = vmul.f32 %v2495_v57, %v2495_v57 }
 0x128   :  { %v1547_v31 = vsel %vm808_vm2, %v1440_v21, 0.0  ;;  %v1442_v35 = vmul.f32 %v2532_v32, %v2532_v32  ;;  %v1354_v57 = vsel %vm808_vm2, %v2521_v27, 0.0  ;;  %v1356_v32 = vsel %vm808_vm2, %v2558_v49, 0.0 }
 0x129   :  { %v1532_v46 = vadd.f32 %v1531_v36, %v1530_v39  ;;  %v1335_v48 = vadd.f32 %v1334_v40, %v1333_v38  ;;  %v1549_v39 = vsel %vm808_vm2, %v1441_v30, 0.0  ;;  %v1443_v40 = vmul.f32 %v2521_v27, %v2521_v27 }
 0x12a   :  { %v1358_v27 = vsel %vm808_vm2, %v2547_v44, 0.0 }
 0x12b   :  { %v1337_v54 = vadd.f32 %v1336_v41, %v1335_v48  ;;  %v1534_v62 = vadd.f32 %v1533_v52, %v1532_v46  ;;  %v1551_v41 = vsel %vm808_vm2, %v1442_v35, 0.0  ;;  %v1444_v46 = vmul.f32 %v2558_v49, %v2558_v49 }
 0x12c   :  { %v1553_v33 = vsel %vm808_vm2, %v1443_v40, 0.0  ;;  %v1360_v49 = vsel %vm808_vm2, %v2584_v13, 0.0 }
 0x12d   :  { %v1536_v6 = vadd.f32 %v1535_v53, %v1534_v62  ;;  %v1339_v11 = vadd.f32 %v1338_v0, %v1337_v54  ;;  %v1445_v54 = vmul.f32 %v2547_v44, %v2547_v44  ;;  %v1555_v62 = vsel %vm808_vm2, %v1444_v46, 0.0 }
 0x12e   :  { %v1446_v0 = vmul.f32 %v2584_v13, %v2584_v13  ;;  %v1362_v44 = vsel %vm808_vm2, %v2573_v7, 0.0  ;;  %v1364_v13 = vsel %vm808_vm2, %v2610_v23, 0.0 }
 0x12f   :  { %v1341_v4 = vadd.f32 %v1340_v5, %v1339_v11  ;;  %v1538_v55 = vadd.f32 %v1537_v12, %v1536_v6  ;;  %v1557_v15 = vsel %vm808_vm2, %v1445_v54, 0.0 }
 0x130   :  { %v1559_v2 = vsel %vm808_vm2, %v1446_v0, 0.0 }
 0x131   :  { %v1540_v56 = vadd.f32 %v1539_v58, %v1538_v55  ;;  %v1343_v60 = vadd.f32 %v1342_v29, %v1341_v4  ;;  %v1447_v58 = vmul.f32 %v2573_v7, %v2573_v7  ;;  %v1448_v4 = vmul.f32 %v2610_v23, %v2610_v23 }
 0x132   :  { %v1366_v7 = vsel %vm808_vm2, %v2599_v18, 0.0  ;;  %v1368_v23 = vsel %vm808_vm2, %v2638_v42, 0.0 }
 0x133   :  { %v1345_v14 = vadd.f32 %v1344_v47, %v1343_v60  ;;  %v1542_v22 = vadd.f32 %v1541_v61, %v1540_v56  ;;  %v1561_v60 = vsel %vm808_vm2, %v1447_v58, 0.0  ;;  %v1449_v61 = vmul.f32 %v2599_v18, %v2599_v18 }
 0x134   :  { %v1563_v20 = vsel %vm808_vm2, %v1448_v4, 0.0  ;;  %v1370_v18 = vsel %vm808_vm2, %v2625_v37, 0.0 }
 0x135   :  { %v1544_v24 = vadd.f32 %v1543_v51, %v1542_v22  ;;  %v1347_v25 = vadd.f32 %v1346_v43, %v1345_v14  ;;  %v1450_v51 = vmul.f32 %v2638_v42, %v2638_v42  ;;  %v1372_v42 = vsel %vm808_vm2, %v2662_v9, 0.0 }
 0x137   :  { %v1349_v10 = vadd.f32 %v1348_v8, %v1347_v25  ;;  %v1546_v36 = vadd.f32 %v1545_v26, %v1544_v24  ;;  %v1565_v8 = vsel %vm808_vm2, %v1449_v61, 0.0  ;;  %v1451_v24 = vmul.f32 %v2625_v37, %v2625_v37 }
 0x138   :  { %v1567_v25 = vsel %vm808_vm2, %v1450_v51, 0.0  ;;  %v1452_v26 = vmul.f32 %v2662_v9, %v2662_v9  ;;  %v1374_v37 = vsel %vm808_vm2, %v2655_v1, 0.0  ;;  %v1376_v9 = vsel %vm808_vm2, %v2686_v17, 0.0 }
 0x139   :  { %v1548_v19 = vadd.f32 %v1547_v31, %v1546_v36  ;;  %v1351_v38 = vadd.f32 %v1350_v3, %v1349_v10  ;;  %v1569_v36 = vsel %vm808_vm2, %v1451_v24, 0.0  ;;  %v1453_v3 = vmul.f32 %v2655_v1, %v2655_v1 }
 0x13a   :  { %v1378_v1 = vsel %vm808_vm2, %v2679_v59, 0.0 }
 0x13b   :  { %v1353_v48 = vadd.f32 %v1352_v16, %v1351_v38  ;;  %v1550_v52 = vadd.f32 %v1549_v39, %v1548_v19  ;;  %v1571_v16 = vsel %vm808_vm2, %v1452_v26, 0.0  ;;  %v1454_v19 = vmul.f32 %v2686_v17, %v2686_v17 }
 0x13c   :  { %v1573_v46 = vsel %vm808_vm2, %v1453_v3, 0.0  ;;  %v1380_v17 = vsel %vm808_vm2, %v2710_v34, 0.0 }
 0x13d   :  { %v1552_v63 = vadd.f32 %v1551_v41, %v1550_v52  ;;  %v1355_v53 = vadd.f32 %v1354_v57, %v1353_v48  ;;  %v1455_v48 = vmul.f32 %v2679_v59, %v2679_v59  ;;  %v1575_v52 = vsel %vm808_vm2, %v1454_v19, 0.0 }
 0x13e   :  { %v1456_v57 = vmul.f32 %v2710_v34, %v2710_v34  ;;  %v1382_v59 = vsel %vm808_vm2, %v2703_v28, 0.0  ;;  %v1384_v34 = vsel %vm808_vm2, %v2734_v50, 0.0 }
 0x13f   :  { %v1357_v5 = vadd.f32 %v1356_v32, %v1355_v53  ;;  %v1554_v6 = vadd.f32 %v1553_v33, %v1552_v63  ;;  %v1577_v54 = vsel %vm808_vm2, %v1455_v48, 0.0 }
 0x140   :  { %v1579_v0 = vsel %vm808_vm2, %v1456_v57, 0.0 }
 0x141   :  { %v1556_v11 = vadd.f32 %v1555_v62, %v1554_v6  ;;  %v1359_v12 = vadd.f32 %v1358_v27, %v1357_v5  ;;  %v1457_v62 = vmul.f32 %v2703_v28, %v2703_v28  ;;  %v1458_v5 = vmul.f32 %v2734_v50, %v2734_v50 }
 0x143   :  { %v1361_v55 = vadd.f32 %v1360_v49, %v1359_v12  ;;  %v1558_v29 = vadd.f32 %v1557_v15, %v1556_v11  ;;  %v1581_v12 = vsel %vm808_vm2, %v1457_v62, 0.0  ;;  %v1459_v15 = vmul.f32 %v2727_v45, %v2727_v45 }
 0x144   :  { %v1583_v58 = vsel %vm808_vm2, %v1458_v5, 0.0 }
 0x145   :  { %v1560_v47 = vadd.f32 %v1559_v2, %v1558_v29  ;;  %v1363_v56 = vadd.f32 %v1362_v44, %v1361_v55  ;;  %v1386_v55 = vsel %vm808_vm2, %v2727_v45, 0.0  ;;  %v1585_v28 = vsel %vm808_vm2, %v1459_v15, 0.0 }
 0x147   :  { %v1365_v21 = vadd.f32 %v1364_v13, %v1363_v56  ;;  %v1562_v14 = vadd.f32 %v1561_v60, %v1560_v47 }
 0x149   :  { %v1564_v22 = vadd.f32 %v1563_v20, %v1562_v14  ;;  %v1367_v43 = vadd.f32 %v1366_v7, %v1365_v21 }
 0x14b   :  { %v1369_v30 = vadd.f32 %v1368_v23, %v1367_v43  ;;  %v1566_v31 = vadd.f32 %v1565_v8, %v1564_v22 }
 0x14d   :  { %v1568_v35 = vadd.f32 %v1567_v25, %v1566_v31  ;;  %v1371_v10 = vadd.f32 %v1370_v18, %v1369_v30 }
 0x14f   :  { %v1373_v38 = vadd.f32 %v1372_v42, %v1371_v10  ;;  %v1570_v39 = vadd.f32 %v1569_v36, %v1568_v35 }
 0x151   :  { %v1572_v40 = vadd.f32 %v1571_v16, %v1570_v39  ;;  %v1375_v41 = vadd.f32 %v1374_v37, %v1373_v38 }
 0x153   :  { %v1377_v32 = vadd.f32 %v1376_v9, %v1375_v41  ;;  %v1574_v63 = vadd.f32 %v1573_v46, %v1572_v40 }
 0x155   :  { %v1576_v53 = vadd.f32 %v1575_v52, %v1574_v63  ;;  %v1379_v33 = vadd.f32 %v1378_v1, %v1377_v32 }
 0x157   :  { %v1381_v6 = vadd.f32 %v1380_v17, %v1379_v33  ;;  %v1578_v27 = vadd.f32 %v1577_v54, %v1576_v53 }
 0x159   :  { %v1580_v49 = vadd.f32 %v1579_v0, %v1578_v27  ;;  %v1383_v11 = vadd.f32 %v1382_v59, %v1381_v6 }
 0x15b   :  { %v1385_v2 = vadd.f32 %v1384_v34, %v1383_v11  ;;  %v1582_v4 = vadd.f32 %v1581_v12, %v1580_v49 }
 0x15d   :  { %v1387_v29 = vadd.f32 %v1386_v55, %v1385_v2  ;;  %v1584_v44 = vadd.f32 %v1583_v58, %v1582_v4 }
 0x15f   :  { %v1388_v13 = vrot.slane %v1387_v29, 4  ;;  %v1586_v50 = vadd.f32 %v1585_v28, %v1584_v44 }
 0x161   :  { %v1389_v47 = vadd.f32 %v1388_v13, %v1387_v29  ;;  %v1587_v56 = vrot.slane %v1586_v50, 4 }
 0x163   :  { %v1390_v60 = vrot.slane %v1389_v47, 2  ;;  %v1588_v61 = vadd.f32 %v1587_v56, %v1586_v50 }
 0x165   :  { %v1391_v20 = vadd.f32 %v1390_v60, %v1389_v47  ;;  %v1589_v51 = vrot.slane %v1588_v61, 2 }
 0x167   :  { %v1392_v21 = vrot.slane %v1391_v20, 1  ;;  %v1590_v14 = vadd.f32 %v1589_v51, %v1588_v61 }
 0x169   :  { %v1393_v7 = vadd.f32 %v1392_v21, %v1391_v20  ;;  %v1591_v23 = vrot.slane %v1590_v14, 1 }
 0x16b   :  { %1395 = vst.msk [vmem:[%s2878_s5] sm:$0x1] %vm1394_vm3, %v1393_v7  ;;  %v1592_v45 = vadd.f32 %v1591_v23, %v1590_v14 }
 0x16d   :  { %1593 = vst.msk [vmem:[%s2878_s5 + $0x1] sm:$0x1] %vm1394_vm3, %v1592_v45 }

// kernel: model_forward.7
= control target key start
LH: loop header
LB: loop body
LE: loop exit
PB: predicated region body
PF: predicated region fallthrough
CT: control target
= control target key end

     0   :  { %11 = vsyncpa [#allocation4], 0  ;;  %s4889_s0 = inlined_call_operand.vmem [shape: f32[2,16,16,74], index: 0, kind: input, shape index: {}, may-alias: {0,1,2}]   ;;  %s4890_s1 = inlined_call_operand.vmem [shape: f32[2,16,16,74], index: 1, kind: input, shape index: {}, may-alias: {0,1,2}]   ;;  %s4891_s2 = inlined_call_operand.vmem [shape: f32[2,16,16,74], index: 2, kind: input, shape index: {}, may-alias: {0,1,2}]   ;;  %s4892_s3 = inlined_call_operand.vmem [shape: f32[1,1,74], index: 3, kind: input, shape index: {}]   ;;  %s4893_s4 = inlined_call_operand.vmem [shape: f32[1,1,74], index: 4, kind: input, shape index: {}]   ;;  %s4894_s5 = inlined_call_operand.vmem [shape: f32[3,3,74], index: 5, kind: input, shape index: {}]   ;;  %s4895_s6 = inlined_call_operand.hbm [shape: f32[2,16,16], index: 6, kind: output, shape index: {}]  }
   0x1   :  { %13 = vsyncpa [#allocation4 + $0x1], 0  ;;  %s2959_s21 = smov 0   ;;  %s2961_s22 = smov 0  }
   0x2   :  { %s2963_s23 = smov 0   ;;  %s2965_s24 = smov 0  }
   0x3   :  { %s2967_s25 = smov 0   ;;  %s2969_s26 = smov 0  }
   0x4 LB: > { %s2740_s27 = sadd.s32 4294967295, %s2918_s26   ;;  %s2741_s28 = sadd.s32 4294967294, %s2918_s26   ;;  %s2918_s26 = sphi %s2969_s26, %s19_s26   ;;  %s2914_s25 = sphi %s2967_s25, %s4965_s25   ;;  %s2910_s24 = sphi %s2965_s24, %s4964_s24   ;;  %s2906_s23 = sphi %s2963_s23, %s4963_s23   ;;  %s2902_s22 = sphi %s2961_s22, %s4962_s22   ;;  %s2898_s21 = sphi %s2959_s21, %s4961_s21  }
   0x5   : > { %s31_s29 = sadd.s32 1, %s2914_s25  ;;  %s203_s30 = sadd.s32 1, %s2906_s23 }
   0x6   : > { %p33_p0 = scmp.ge.s32.totalorder %s31_s29, 2  ;;  %p213_p1 = scmp.ne.s32.totalorder %s2906_s23, %s2902_s22 }
   0x7   : > { %p214_p2 = scmp.eq.s32.totalorder %s2740_s27, 1  ;;  %p219_p3 = scmp.ne.s32.totalorder %s2902_s22, %s2898_s21 }
   0x8   : > { %s4967_s29 = smov (%p33_p0, %s31_s29), 0  ;;  %p220_p5 = scmp.eq.s32.totalorder %s2741_s28, 1 }
   0x9   : > { %p2999_p4 = por %p214_p2, %p213_p1  ;;  %s198_s8 = ssub.s32 %s2914_s25, %s4967_s29 }
   0xa   : > { %p2744_p6 = scmp.ge.s32.totalorder %s2918_s26, 1  ;;  %p201_p7 = scmp.eq.s32.totalorder %s198_s8, 0 }
   0xb   : > { %p3006_p8 = por %p220_p5, %p219_p3  ;;  %p301_p9 = scmp.lt.s32.totalorder %s2918_s26, 3 }
   0xc   : > { %s3012_s10 = scalar_select %p201_p7, %s2906_s23, %s203_s30  }
   0xd   : > { %p302_p10 = pnand %p2744_p6, %p301_p9 }
   0xf   : > { %305 = sbr.rel (%p302_p10) target bundleno = 787 (0x313), region = 44 }
  0x16   : > { %p363_p11 = scmp.lt.s32.totalorder %s2910_s24, 1  ;;  %vm410_vm0 = vcmask 598016   ;;  %v2920_v0 = vmov 0.0   ;;  %v3060_v1 = vld [vmem:[%s4892_s3] ss:$0 sm:$0xff]  ;;  %vm556_vm1 = vcmask 605184  }
  0x17   : > { %413 = vst.msk [vmem:[#allocation2 + $0x30] sm:$0x1] %vm410_vm0, %v2920_v0  ;;  %411 = vst.msk [vmem:[#allocation2] sm:$0x1] %vm410_vm0, %v2920_v0  ;;  %v3071_v2 = vld [vmem:[%s4893_s4] ss:$0 sm:$0xff] }
  0x18   : > { %s3016_s11 = scalar_select %p363_p11, %s2910_s24, 1  ;;  %412 = vst.msk [vmem:[#allocation2 + $0x18] sm:$0x1] %vm410_vm0, %v2920_v0  ;;  %414 = vst.msk [vmem:[#allocation2 + $0x48] sm:$0x1] %vm410_vm0, %v2920_v0  ;;  %vm2437_vm2 = vcmask 130112  }
  0x19   : > { %415 = vst.msk [vmem:[#allocation2 + $0x60] sm:$0x1] %vm410_vm0, %v2920_v0  ;;  %416 = vst.msk [vmem:[#allocation2 + $0x78] sm:$0x1] %vm410_vm0, %v2920_v0  ;;  %v3144_v60 = vld [vmem:[%s4894_s5] ss:$0 sm:$0xff] }
  0x1a   : > { %417 = vst.msk [vmem:[#allocation2 + $0x90] sm:$0x1] %vm410_vm0, %v2920_v0  ;;  %418 = vst.msk [vmem:[#allocation2 + $0xa8] sm:$0x1] %vm410_vm0, %v2920_v0  ;;  %s3055_s12 = sshll.u32 %s3016_s11, 8  ;;  %vm2574_vm3 = vcmask 1041409  }
  0x1b   : > { %419 = vst.msk [vmem:[#allocation2 + $0xc0] sm:$0x1] %vm410_vm0, %v2920_v0  ;;  %420 = vst.msk [vmem:[#allocation2 + $0xd8] sm:$0x1] %vm410_vm0, %v2920_v0  ;;  %s3066_s17 = scalar_lea.vmem %s4889_s0, %s3055_s12  ;;  %s385_s28 = scalar_lea.vmem %s4890_s1, %s3055_s12  ;;  %vm2576_vm4 = vcmask 1042434   ;;  %vm2578_vm5 = vcmask 1043459  }
  0x1c   : > { %421 = vst.msk [vmem:[#allocation2 + $0xf0] sm:$0x1] %vm410_vm0, %v2920_v0  ;;  %422 = vst.msk [vmem:[#allocation2 + $0x108] sm:$0x1] %vm410_vm0, %v2920_v0  ;;  %v449_v3 = vld [vmem:[%s3066_s17 + $0x10] sm:$0xff]  ;;  %v447_v4 = vld [vmem:[%s3066_s17] sm:$0xff] }
  0x1d   : > { %423 = vst.msk [vmem:[#allocation2 + $0x120] sm:$0x1] %vm410_vm0, %v2920_v0  ;;  %424 = vst.msk [vmem:[#allocation2 + $0x138] sm:$0x1] %vm410_vm0, %v2920_v0  ;;  %v451_v5 = vld [vmem:[%s3066_s17 + $0x20] sm:$0xff]  ;;  %v487_v6 = vmul.f32 %v3060_v1, %v449_v3  ;;  %v485_v7 = vmul.f32 %v3060_v1, %v447_v4  ;;  %v448_v9 = vld [vmem:[%s3066_s17 + $0x8] sm:$0xff] }
  0x1e   : > { %425 = vst.msk [vmem:[#allocation2 + $0x150] sm:$0x1] %vm410_vm0, %v2920_v0  ;;  %426 = vst.msk [vmem:[#allocation2 + $0x168] sm:$0x1] %vm410_vm0, %v2920_v0  ;;  %v489_v8 = vmul.f32 %v3060_v1, %v451_v5  ;;  %v453_v10 = vld [vmem:[%s3066_s17 + $0x30] sm:$0xff]  ;;  %v450_v11 = vld [vmem:[%s3066_s17 + $0x18] sm:$0xff]  ;;  %v486_v12 = vmul.f32 %v3060_v1, %v448_v9 }
  0x1f   : > { %427 = vst.msk [vmem:[#allocation2 + $0x180] sm:$0x1] %vm410_vm0, %v2920_v0  ;;  %428 = vst.msk [vmem:[#allocation2 + $0x198] sm:$0x1] %vm410_vm0, %v2920_v0  ;;  %v491_v13 = vmul.f32 %v3060_v1, %v453_v10  ;;  %v488_v14 = vmul.f32 %v3060_v1, %v450_v11  ;;  %v455_v15 = vld [vmem:[%s3066_s17 + $0x40] sm:$0xff]  ;;  %v452_v16 = vld [vmem:[%s3066_s17 + $0x28] sm:$0xff]  ;;  %v525_v18 = vadd.f32 %v3071_v2, %v487_v6 }
  0x20   : > { %429 = vst.msk [vmem:[#allocation2 + $0x11] sm:$0x1] %vm410_vm0, %v2920_v0  ;;  %430 = vst.msk [vmem:[#allocation2 + $0x29] sm:$0x1] %vm410_vm0, %v2920_v0  ;;  %v457_v17 = vld [vmem:[%s3066_s17 + $0x50] sm:$0xff]  ;;  %v523_v19 = vadd.f32 %v3071_v2, %v485_v7  ;;  %v527_v20 = vadd.f32 %v3071_v2, %v489_v8  ;;  %v493_v21 = vmul.f32 %v3060_v1, %v455_v15  ;;  %v454_v22 = vld [vmem:[%s3066_s17 + $0x38] sm:$0xff] }
  0x21   : > { %431 = vst.msk [vmem:[#allocation2 + $0x41] sm:$0x1] %vm410_vm0, %v2920_v0  ;;  %432 = vst.msk [vmem:[#allocation2 + $0x59] sm:$0x1] %vm410_vm0, %v2920_v0  ;;  %v595_v23 = vld [vmem:[%s385_s28] sm:$0xff]  ;;  %v456_v24 = vld [vmem:[%s3066_s17 + $0x48] sm:$0xff]  ;;  %v524_v25 = vadd.f32 %v3071_v2, %v486_v12  ;;  %v529_v26 = vadd.f32 %v3071_v2, %v491_v13  ;;  %v526_v27 = vadd.f32 %v3071_v2, %v488_v14 }
  0x22   : > { %433 = vst.msk [vmem:[#allocation2 + $0x71] sm:$0x1] %vm410_vm0, %v2920_v0  ;;  %434 = vst.msk [vmem:[#allocation2 + $0x89] sm:$0x1] %vm410_vm0, %v2920_v0  ;;  %v490_v28 = vmul.f32 %v3060_v1, %v452_v16  ;;  %v596_v29 = vld [vmem:[%s385_s28 + $0x8] sm:$0xff]  ;;  %v458_v30 = vld [vmem:[%s3066_s17 + $0x58] sm:$0xff]  ;;  %v531_v32 = vadd.f32 %v3071_v2, %v493_v21  ;;  %v495_v33 = vmul.f32 %v3060_v1, %v457_v17 }
  0x23   : > { %435 = vst.msk [vmem:[#allocation2 + $0xa1] sm:$0x1] %vm410_vm0, %v2920_v0  ;;  %436 = vst.msk [vmem:[#allocation2 + $0xb9] sm:$0x1] %vm410_vm0, %v2920_v0  ;;  %v459_v31 = vld [vmem:[%s3066_s17 + $0x60] sm:$0xff]  ;;  %v492_v34 = vmul.f32 %v3060_v1, %v454_v22  ;;  %v597_v35 = vmul.f32 %v3060_v1, %v595_v23  ;;  %v460_v36 = vld [vmem:[%s3066_s17 + $0x68] sm:$0xff]  ;;  %v494_v38 = vmul.f32 %v3060_v1, %v456_v24 }
  0x24   : > { %437 = vst.msk [vmem:[#allocation2 + $0xd1] sm:$0x1] %vm410_vm0, %v2920_v0  ;;  %438 = vst.msk [vmem:[#allocation2 + $0xe9] sm:$0x1] %vm410_vm0, %v2920_v0  ;;  %v528_v37 = vadd.f32 %v3071_v2, %v490_v28  ;;  %v598_v39 = vmul.f32 %v3060_v1, %v596_v29  ;;  %v496_v40 = vmul.f32 %v3060_v1, %v458_v30  ;;  %v461_v41 = vld [vmem:[%s3066_s17 + $0x70] sm:$0xff]  ;;  %v462_v42 = vld [vmem:[%s3066_s17 + $0x78] sm:$0xff] }
  0x25   : > { %439 = vst.msk [vmem:[#allocation2 + $0x101] sm:$0x1] %vm410_vm0, %v2920_v0  ;;  %440 = vst.msk [vmem:[#allocation2 + $0x119] sm:$0x1] %vm410_vm0, %v2920_v0  ;;  %v533_v43 = vadd.f32 %v3071_v2, %v495_v33  ;;  %v530_v44 = vadd.f32 %v3071_v2, %v492_v34  ;;  %v599_v45 = vadd.f32 %v3071_v2, %v597_v35  ;;  %v463_v47 = vld [vmem:[%s3066_s17 + $0x80] sm:$0xff]  ;;  %v464_v48 = vld [vmem:[%s3066_s17 + $0x88] sm:$0xff] }
  0x26   : > { %441 = vst.msk [vmem:[#allocation2 + $0x131] sm:$0x1] %vm410_vm0, %v2920_v0  ;;  %442 = vst.msk [vmem:[#allocation2 + $0x149] sm:$0x1] %vm410_vm0, %v2920_v0  ;;  %v497_v46 = vmul.f32 %v3060_v1, %v459_v31  ;;  %v532_v49 = vadd.f32 %v3071_v2, %v494_v38  ;;  %v600_v50 = vadd.f32 %v3071_v2, %v598_v39  ;;  %v465_v53 = vld [vmem:[%s3066_s17 + $0x90] sm:$0xff]  ;;  %v466_v54 = vld [vmem:[%s3066_s17 + $0x98] sm:$0xff] }
  0x27   : > { %443 = vst.msk [vmem:[#allocation2 + $0x161] sm:$0x1] %vm410_vm0, %v2920_v0  ;;  %444 = vst.msk [vmem:[#allocation2 + $0x179] sm:$0x1] %vm410_vm0, %v2920_v0  ;;  %v534_v51 = vadd.f32 %v3071_v2, %v496_v40  ;;  %v498_v52 = vmul.f32 %v3060_v1, %v460_v36  ;;  %v602_v55 = vmul.f32 0.0, %v599_v45  ;;  %v499_v57 = vmul.f32 %v3060_v1, %v461_v41  ;;  %v467_v59 = vld [vmem:[%s3066_s17 + $0xa0] sm:$0xff] }
  0x28   : > { %445 = vst.msk [vmem:[#allocation2 + $0x191] sm:$0x1] %vm410_vm0, %v2920_v0  ;;  %446 = vst.msk [vmem:[#allocation2 + $0x1a9] sm:$0x1] %vm410_vm0, %v2920_v0  ;;  %v535_v56 = vadd.f32 %v3071_v2, %v497_v46  ;;  %v500_v58 = vmul.f32 %v3060_v1, %v462_v42  ;;  %v603_v61 = vmul.f32 0.0, %v600_v50  ;;  %v501_v63 = vmul.f32 %v3060_v1, %v463_v47  ;;  %v468_v7 = vld [vmem:[%s3066_s17 + $0xa8] sm:$0xff] }
  0x29   : > { %559 = vst.msk [vmem:[#allocation2 + $0x31] sm:$0xff] %vm556_vm1, %v525_v18  ;;  %557 = vst.msk [vmem:[#allocation2 + $0x19] sm:$0xff] %vm556_vm1, %v523_v19  ;;  %v536_v62 = vadd.f32 %v3071_v2, %v498_v52  ;;  %v502_v0 = vmul.f32 %v3060_v1, %v464_v48  ;;  %v537_v3 = vadd.f32 %v3071_v2, %v499_v57  ;;  %v469_v35 = vld [vmem:[%s3066_s17 + $0xb0] sm:$0xff]  ;;  %v470_v41 = vld [vmem:[%s3066_s17 + $0xb8] sm:$0xff]  ;;  %s2777_s20 = sadd.s32 240, %s3055_s12  ;;  %vm2580_vm6 = vcmask 1044484  }
  0x2a   : > { %561 = vst.msk [vmem:[#allocation2 + $0x49] sm:$0xff] %vm556_vm1, %v527_v20  ;;  %558 = vst.msk [vmem:[#allocation2 + $0x21] sm:$0xff] %vm556_vm1, %v524_v25  ;;  %v538_v4 = vadd.f32 %v3071_v2, %v500_v58  ;;  %v503_v5 = vmul.f32 %v3060_v1, %v465_v53  ;;  %v504_v6 = vmul.f32 %v3060_v1, %v466_v54  ;;  %v471_v42 = vld [vmem:[%s3066_s17 + $0xc0] sm:$0xff]  ;;  %v473_v45 = vld [vmem:[%s3066_s17 + $0xd0] sm:$0xff]  ;;  %s402_s30 = scalar_lea.vmem %s4891_s2, %s2777_s20  ;;  %vm2582_vm7 = vcmask 1045509   ;;  %s359_s28 = sand.u32 1, %s2902_s22  }
  0x2b   : > { %563 = vst.msk [vmem:[#allocation2 + $0x61] sm:$0xff] %vm556_vm1, %v529_v26  ;;  %560 = vst.msk [vmem:[#allocation2 + $0x39] sm:$0xff] %vm556_vm1, %v526_v27  ;;  %v539_v11 = vadd.f32 %v3071_v2, %v501_v63  ;;  %v540_v12 = vadd.f32 %v3071_v2, %v502_v0  ;;  %v505_v13 = vmul.f32 %v3060_v1, %v467_v59  ;;  %v474_v46 = vld [vmem:[%s3066_s17 + $0xd8] sm:$0xff]  ;;  %vm2584_vm8 = vcmask 1046534   ;;  %s2778_s12 = sshll.u32 %s2910_s24, 8  ;;  %s4843_s24 = scalar_lea.sflag [#allocation4], %s359_s28 }
  0x2c   : > { %565 = vst.msk [vmem:[#allocation2 + $0x79] sm:$0xff] %vm556_vm1, %v531_v32  ;;  %562 = vst.msk [vmem:[#allocation2 + $0x51] sm:$0xff] %vm556_vm1, %v528_v37  ;;  %v541_v19 = vadd.f32 %v3071_v2, %v503_v5  ;;  %v542_v22 = vadd.f32 %v3071_v2, %v504_v6  ;;  %v506_v23 = vmul.f32 %v3060_v1, %v468_v7  ;;  %vm2586_vm9 = vcmask 1047559   ;;  %s4834_s15 = scalar_lea.hbm %s4895_s6, %s2778_s12 }
  0x2d   : > { %567 = vst.msk [vmem:[#allocation2 + $0x91] sm:$0xff] %vm556_vm1, %v533_v43  ;;  %564 = vst.msk [vmem:[#allocation2 + $0x69] sm:$0xff] %vm556_vm1, %v530_v44  ;;  %v543_v31 = vadd.f32 %v3071_v2, %v505_v13  ;;  %v472_v43 = vld [vmem:[%s3066_s17 + $0xc8] sm:$0xff]  ;;  %v507_v44 = vmul.f32 %v3060_v1, %v469_v35  ;;  %v508_v50 = vmul.f32 %v3060_v1, %v470_v41  ;;  %vm2597_vm10 = vcmask 130048  }
  0x2e   : > { %566 = vst.msk [vmem:[#allocation2 + $0x81] sm:$0xff] %vm556_vm1, %v532_v49  ;;  %568 = vst.msk [vmem:[#allocation2 + $0x99] sm:$0xff] %vm556_vm1, %v534_v51  ;;  %v544_v33 = vadd.f32 %v3071_v2, %v506_v23  ;;  %v475_v51 = vld [vmem:[%s3066_s17 + $0xe0] sm:$0xff]  ;;  %v511_v59 = vmul.f32 %v3060_v1, %v473_v45 }
  0x2f   : > { %604 = vst.msk [vmem:[#allocation2 + $0x1] sm:$0xff] %vm556_vm1, %v602_v55  ;;  %569 = vst.msk [vmem:[#allocation2 + $0xa9] sm:$0xff] %vm556_vm1, %v535_v56  ;;  %v545_v54 = vadd.f32 %v3071_v2, %v507_v44  ;;  %v509_v55 = vmul.f32 %v3060_v1, %v471_v42  ;;  %v510_v56 = vmul.f32 %v3060_v1, %v472_v43 }
  0x30   : > { %v622_v8 = vld [vmem:[#allocation2 + $0x30] sm:$0xff]  ;;  %v620_v9 = vld [vmem:[#allocation2 + $0x18] sm:$0xff]  ;;  %605 = vst.msk [vmem:[#allocation2 + $0x9] sm:$0xff] %vm556_vm1, %v603_v61  ;;  %570 = vst.msk [vmem:[#allocation2 + $0xb1] sm:$0xff] %vm556_vm1, %v536_v62  ;;  %v546_v58 = vadd.f32 %v3071_v2, %v508_v50  ;;  %v512_v61 = vmul.f32 %v3060_v1, %v474_v46  ;;  %v549_v6 = vadd.f32 %v3071_v2, %v511_v59 }
  0x31   : > { %v624_v10 = vld [vmem:[#allocation2 + $0x48] sm:$0xff]  ;;  %v659_v14 = vmul.f32 %v3144_v60, %v622_v8  ;;  %v657_v15 = vmul.f32 %v3144_v60, %v620_v9  ;;  %v621_v17 = vld [vmem:[#allocation2 + $0x20] sm:$0xff]  ;;  %571 = vst.msk [vmem:[#allocation2 + $0xc1] sm:$0xff] %vm556_vm1, %v537_v3  ;;  %572 = vst.msk [vmem:[#allocation2 + $0xc9] sm:$0xff] %vm556_vm1, %v538_v4  ;;  %v547_v63 = vadd.f32 %v3071_v2, %v509_v55 }
  0x32   : > { %v661_v16 = vmul.f32 %v3144_v60, %v624_v10  ;;  %v626_v18 = vld [vmem:[#allocation2 + $0x60] sm:$0xff]  ;;  %v658_v20 = vmul.f32 %v3144_v60, %v621_v17  ;;  %v623_v21 = vld [vmem:[#allocation2 + $0x38] sm:$0xff]  ;;  %573 = vst.msk [vmem:[#allocation2 + $0xd9] sm:$0xff] %vm556_vm1, %v539_v11  ;;  %574 = vst.msk [vmem:[#allocation2 + $0xe1] sm:$0xff] %vm556_vm1, %v540_v12  ;;  %v548_v0 = vadd.f32 %v3071_v2, %v510_v56 }
  0x33   : > { %v699_v24 = vsel %vm556_vm1, %v659_v14, 0.0  ;;  %v693_v25 = vsel %vm556_vm1, %v657_v15, 0.0  ;;  %575 = vst.msk [vmem:[#allocation2 + $0xf1] sm:$0xff] %vm556_vm1, %v541_v19  ;;  %v663_v26 = vmul.f32 %v3144_v60, %v626_v18  ;;  %576 = vst.msk [vmem:[#allocation2 + $0xf9] sm:$0xff] %vm556_vm1, %v542_v22  ;;  %v660_v29 = vmul.f32 %v3144_v60, %v623_v21  ;;  %v628_v30 = vld [vmem:[#allocation2 + $0x78] sm:$0xff]  ;;  %v3183_v32 = vld [vmem:[#allocation2 + $0x50] sm:$0xff] }
  0x34   : > { %700 = vadd.xlane.f32.xlu0 %v699_v24  ;;  %694 = vadd.xlane.f32.xlu1 %v693_v25  ;;  %v705_v27 = vsel %vm556_vm1, %v661_v16, 0.0  ;;  %v696_v28 = vsel %vm556_vm1, %v658_v20, 0.0  ;;  %577 = vst.msk [vmem:[#allocation2 + $0x109] sm:$0xff] %vm556_vm1, %v543_v31  ;;  %v665_v34 = vmul.f32 %v3144_v60, %v628_v30  ;;  %578 = vst.msk [vmem:[#allocation2 + $0x111] sm:$0xff] %vm556_vm1, %v544_v33  ;;  %v630_v39 = vld [vmem:[#allocation2 + $0x90] sm:$0xff]  ;;  %v3194_v40 = vld [vmem:[#allocation2 + $0x68] sm:$0xff] }
  0x35   : > { %v711_v36 = vsel %vm556_vm1, %v663_v26, 0.0  ;;  %v702_v37 = vsel %vm556_vm1, %v660_v29, 0.0  ;;  %v662_v38 = vmul.f32 %v3144_v60, %v3183_v32  ;;  %v667_v48 = vmul.f32 %v3144_v60, %v630_v39  ;;  %v3209_v53 = vld [vmem:[#allocation2 + $0x80] sm:$0xff]  ;;  %v476_v62 = vld [vmem:[%s3066_s17 + $0xe8] sm:$0xff]  ;;  %579 = vst.msk [vmem:[#allocation2 + $0x121] sm:$0xff] %vm556_vm1, %v545_v54  ;;  %580 = vst.msk [vmem:[#allocation2 + $0x129] sm:$0xff] %vm556_vm1, %v546_v58 }
  0x36   : > { %v717_v47 = vsel %vm556_vm1, %v665_v34, 0.0  ;;  %v664_v49 = vmul.f32 %v3144_v60, %v3194_v40  ;;  %v618_v57 = vld [vmem:[#allocation2] sm:$0xff]  ;;  %v513_v3 = vmul.f32 %v3060_v1, %v475_v51  ;;  %v666_v5 = vmul.f32 %v3144_v60, %v3209_v53  ;;  %581 = vst.msk [vmem:[#allocation2 + $0x139] sm:$0xff] %vm556_vm1, %v547_v63  ;;  %582 = vst.msk [vmem:[#allocation2 + $0x141] sm:$0xff] %vm556_vm1, %v548_v0  ;;  %v3234_v13 = vld [vmem:[#allocation2 + $0x98] sm:$0xff] }
  0x37   : > { %v708_v52 = vsel %vm556_vm1, %v662_v38, 0.0  ;;  %v723_v4 = vsel %vm556_vm1, %v667_v48, 0.0  ;;  %v550_v7 = vadd.f32 %v3071_v2, %v512_v61  ;;  %v655_v9 = vmul.f32 %v3144_v60, %v618_v57  ;;  %v619_v12 = vld [vmem:[#allocation2 + $0x8] sm:$0xff]  ;;  %583 = vst.msk [vmem:[#allocation2 + $0x151] sm:$0xff] %vm556_vm1, %v549_v6  ;;  %v3248_v20 = vld [vmem:[#allocation2 + $0xb0] sm:$0xff] }
  0x38   : > { %706 = vadd.xlane.f32.xlu0 %v705_v27  ;;  %697 = vadd.xlane.f32.xlu1 %v696_v28  ;;  %v714_v8 = vsel %vm556_vm1, %v664_v49, 0.0  ;;  %v551_v10 = vadd.f32 %v3071_v2, %v513_v3  ;;  %v514_v11 = vmul.f32 %v3060_v1, %v476_v62  ;;  %v720_v16 = vsel %vm556_vm1, %v666_v5, 0.0  ;;  %v3246_v19 = vld [vmem:[#allocation2 + $0xa8] sm:$0xff]  ;;  %v3256_v25 = vld [vmem:[#allocation2 + $0xc0] sm:$0xff] }
  0x39   : > { %584 = vst.msk [vmem:[#allocation2 + $0x159] sm:$0xff] %vm556_vm1, %v550_v7  ;;  %v687_v15 = vsel %vm556_vm1, %v655_v9, 0.0  ;;  %v656_v17 = vmul.f32 %v3144_v60, %v619_v12  ;;  %v668_v18 = vmul.f32 %v3144_v60, %v3234_v13  ;;  %v669_v23 = vmul.f32 %v3144_v60, %v3246_v19  ;;  %v3258_v26 = vld [vmem:[#allocation2 + $0xc8] sm:$0xff]  ;;  %v3266_v31 = vld [vmem:[#allocation2 + $0xd8] sm:$0xff]  ;;  %v3268_v33 = vld [vmem:[#allocation2 + $0xe0] sm:$0xff] }
  0x3a   : > { %585 = vst.msk [vmem:[#allocation2 + $0x169] sm:$0xff] %vm556_vm1, %v551_v10  ;;  %v552_v14 = vadd.f32 %v3071_v2, %v514_v11  ;;  %v670_v24 = vmul.f32 %v3144_v60, %v3248_v20  ;;  %v671_v29 = vmul.f32 %v3144_v60, %v3256_v25  ;;  %v672_v30 = vmul.f32 %v3144_v60, %v3258_v26  ;;  %v3276_v38 = vld [vmem:[#allocation2 + $0xf0] sm:$0xff]  ;;  %v3278_v39 = vld [vmem:[#allocation2 + $0xf8] sm:$0xff] }
  0x3b   : > { %v690_v21 = vsel %vm556_vm1, %v656_v17, 0.0  ;;  %v726_v22 = vsel %vm556_vm1, %v668_v18, 0.0  ;;  %v729_v27 = vsel %vm556_vm1, %v669_v23, 0.0  ;;  %v675_v43 = vmul.f32 %v3144_v60, %v3276_v38  ;;  %v3286_v45 = vld [vmem:[#allocation2 + $0x108] sm:$0xff]  ;;  %v3288_v46 = vld [vmem:[#allocation2 + $0x110] sm:$0xff] }
  0x3c   : > { %712 = vadd.xlane.f32.xlu0 %v711_v36  ;;  %703 = vadd.xlane.f32.xlu1 %v702_v37  ;;  %586 = vst.msk [vmem:[#allocation2 + $0x171] sm:$0xff] %vm556_vm1, %v552_v14  ;;  %v732_v28 = vsel %vm556_vm1, %v670_v24, 0.0  ;;  %v735_v34 = vsel %vm556_vm1, %v671_v29, 0.0  ;;  %v738_v35 = vsel %vm556_vm1, %v672_v30, 0.0  ;;  %v673_v36 = vmul.f32 %v3144_v60, %v3266_v31  ;;  %v3296_v51 = vld [vmem:[#allocation2 + $0x120] sm:$0xff]  ;;  %v816_v18 = vld [vmem:[#allocation2 + $0x9] sm:$0xff] }
  0x3d   : > { %v674_v37 = vmul.f32 %v3144_v60, %v3268_v33  ;;  %v676_v44 = vmul.f32 %v3144_v60, %v3278_v39  ;;  %v677_v49 = vmul.f32 %v3144_v60, %v3286_v45  ;;  %v678_v50 = vmul.f32 %v3144_v60, %v3288_v46  ;;  %v3306_v58 = vld [vmem:[#allocation2 + $0x138] sm:$0xff]  ;;  %v3308_v59 = vld [vmem:[#allocation2 + $0x140] sm:$0xff] }
  0x3e   : > { %v741_v41 = vsel %vm556_vm1, %v673_v36, 0.0  ;;  %v679_v56 = vmul.f32 %v3144_v60, %v3296_v51  ;;  %v681_v63 = vmul.f32 %v3144_v60, %v3306_v58  ;;  %v682_v0 = vmul.f32 %v3144_v60, %v3308_v59  ;;  %v3316_v3 = vld [vmem:[#allocation2 + $0x150] sm:$0xff]  ;;  %v3339_v17 = vld [vmem:[%s4894_s5 + $0x1] ss:$0 sm:$0xff]  ;;  %v3357_v36 = vld [vmem:[#allocation2 + $0x39] sm:$0xff] }
  0x3f   : > { %v744_v42 = vsel %vm556_vm1, %v674_v37, 0.0  ;;  %v750_v48 = vsel %vm556_vm1, %v676_v44, 0.0  ;;  %v753_v54 = vsel %vm556_vm1, %v677_v49, 0.0  ;;  %v756_v55 = vsel %vm556_vm1, %v678_v50, 0.0  ;;  %v3365_v44 = vld [vmem:[#allocation2 + $0x49] sm:$0xff] }
  0x40   : > { %718 = vadd.xlane.f32.xlu0 %v717_v47  ;;  %709 = vadd.xlane.f32.xlu1 %v708_v52  ;;  %v747_v47 = vsel %vm556_vm1, %v675_v43, 0.0  ;;  %v3298_v52 = vld [vmem:[#allocation2 + $0x128] sm:$0xff]  ;;  %v759_v61 = vsel %vm556_vm1, %v679_v56, 0.0  ;;  %v765_v5 = vsel %vm556_vm1, %v681_v63, 0.0  ;;  %v768_v6 = vsel %vm556_vm1, %v682_v0, 0.0  ;;  %v3385_v0 = vld [vmem:[#allocation2 + $0x79] sm:$0xff] }
  0x41   : > { %v680_v57 = vmul.f32 %v3144_v60, %v3298_v52  ;;  %v683_v7 = vmul.f32 %v3144_v60, %v3316_v3  ;;  %v3326_v9 = vld [vmem:[#allocation2 + $0x168] sm:$0xff]  ;;  %v853_v24 = vmul.f32 %v3339_v17, %v816_v18  ;;  %v857_v43 = vmul.f32 %v3339_v17, %v3357_v36  ;;  %4914 = vst [vmem:[#allocation7_spill] sm:$0xff] %v3385_v0 }
  0x42   : > { %v685_v14 = vmul.f32 %v3144_v60, %v3326_v9  ;;  %v858_v50 = vmul.f32 %v3339_v17, %v3365_v44  ;;  %v3377_v56 = vld [vmem:[#allocation2 + $0x69] sm:$0xff] }
  0x43   : > { %v762_v62 = vsel %vm556_vm1, %v680_v57, 0.0  ;;  %v3328_v10 = vld [vmem:[#allocation2 + $0x170] sm:$0xff]  ;;  %v771_v11 = vsel %vm556_vm1, %v683_v7, 0.0  ;;  %v887_v29 = vsel %vm556_vm1, %v853_v24, 0.0  ;;  %v899_v49 = vsel %vm556_vm1, %v857_v43, 0.0  ;;  %4913 = vst [vmem:[#allocation6_spill] sm:$0xff] %v3377_v56 }
  0x44   : > { %724 = vadd.xlane.f32.xlu0 %v723_v4  ;;  %715 = vadd.xlane.f32.xlu1 %v714_v8  ;;  %v3318_v4 = vld [vmem:[#allocation2 + $0x158] sm:$0xff]  ;;  %v902_v57 = vsel %vm556_vm1, %v858_v50, 0.0  ;;  %v861_v63 = vmul.f32 %v3339_v17, %v3377_v56  ;;  %v3427_v50 = vld [vmem:[#allocation2 + $0xe1] sm:$0xff] }
  0x45   : > { %v684_v8 = vmul.f32 %v3144_v60, %v3318_v4  ;;  %4923 = vst [vmem:[#allocation16_spill] sm:$0xff] %v3427_v50 }
  0x46   : > { %v911_v7 = vsel %vm556_vm1, %v861_v63, 0.0  ;;  %v3435_v63 = vld [vmem:[#allocation2 + $0xf1] sm:$0xff] }
  0x47   : > { %v774_v12 = vsel %vm556_vm1, %v684_v8, 0.0  ;;  %v862_v8 = vmul.f32 %v3339_v17, %v3385_v0  ;;  %4924 = vst [vmem:[#allocation17_spill] sm:$0xff] %v3435_v63  ;;  %v1213_v0 = vld [vmem:[#allocation2 + $0x48] sm:$0xff] }
  0x48   : > { %688 = vadd.xlane.f32.xlu0 %v687_v15  ;;  %721 = vadd.xlane.f32.xlu1 %v720_v16  ;;  %v686_v15 = vmul.f32 %v3144_v60, %v3328_v10  ;;  %v815_v16 = vld [vmem:[#allocation2 + $0x1] sm:$0xff] }
  0x49   : > { %v852_v23 = vmul.f32 %v3339_v17, %v815_v16  ;;  %v3347_v60 = vld [vmem:[#allocation2 + $0x21] sm:$0xff] }
  0x4c   : > { %691 = vadd.xlane.f32.xlu0 %v690_v21  ;;  %727 = vadd.xlane.f32.xlu1 %v726_v22  ;;  %v777_v21 = vsel %vm556_vm1, %v685_v14, 0.0  ;;  %v780_v22 = vsel %vm556_vm1, %v686_v15, 0.0  ;;  %v3397_v14 = vld [vmem:[#allocation2 + $0x99] sm:$0xff]  ;;  %v914_v15 = vsel %vm556_vm1, %v862_v8, 0.0 }
  0x4d   : > { %4917 = vst [vmem:[#allocation10_spill] sm:$0xff] %v3397_v14 }
  0x50   : > { %730 = vadd.xlane.f32.xlu0 %v729_v27  ;;  %733 = vadd.xlane.f32.xlu1 %v732_v28  ;;  %v3345_v27 = vld [vmem:[#allocation2 + $0x19] sm:$0xff]  ;;  %v884_v28 = vsel %vm556_vm1, %v852_v23, 0.0  ;;  %v3407_v23 = vld [vmem:[#allocation2 + $0xb1] sm:$0xff] }
  0x51   : > { %v854_v30 = vmul.f32 %v3339_v17, %v3345_v27  ;;  %4919 = vst [vmem:[#allocation12_spill] sm:$0xff] %v3407_v23 }
  0x53   : > { %v890_v37 = vsel %vm556_vm1, %v854_v30, 0.0  ;;  %v867_v30 = vmul.f32 %v3339_v17, %v3407_v23  ;;  %v1042_v23 = vld [vmem:[#allocation2 + $0x16a] sm:$0xff] }
  0x54   : > { %736 = vadd.xlane.f32.xlu0 %v735_v34  ;;  %739 = vadd.xlane.f32.xlu1 %v738_v35  ;;  %v855_v34 = vmul.f32 %v3339_v17, %v3347_v60  ;;  %v3355_v35 = vld [vmem:[#allocation2 + $0x31] sm:$0xff] }
  0x58   : > { %742 = vadd.xlane.f32.xlu0 %v741_v41  ;;  %745 = vadd.xlane.f32.xlu1 %v744_v42  ;;  %v893_v41 = vsel %vm556_vm1, %v855_v34, 0.0  ;;  %v856_v42 = vmul.f32 %v3339_v17, %v3355_v35  ;;  %v3415_v34 = vld [vmem:[#allocation2 + $0xc1] sm:$0xff] }
  0x59   : > { %4920 = vst [vmem:[#allocation13_spill] sm:$0xff] %v3415_v34  ;;  %v868_v43 = vmul.f32 %v3339_v17, %v3415_v34  ;;  %v1040_v34 = vld [vmem:[#allocation2 + $0x152] sm:$0xff] }
  0x5c   : > { %748 = vadd.xlane.f32.xlu0 %v747_v47  ;;  %751 = vadd.xlane.f32.xlu1 %v750_v48  ;;  %v3367_v47 = vld [vmem:[#allocation2 + $0x51] sm:$0xff]  ;;  %v896_v48 = vsel %vm556_vm1, %v856_v42, 0.0  ;;  %v929_v42 = vsel %vm556_vm1, %v867_v30, 0.0  ;;  %v839_v30 = vld [vmem:[#allocation2 + $0x121] sm:$0xff] }
  0x60   : > { %754 = vadd.xlane.f32.xlu0 %v753_v54  ;;  %757 = vadd.xlane.f32.xlu1 %v756_v55  ;;  %v859_v54 = vmul.f32 %v3339_v17, %v3367_v47  ;;  %v3375_v55 = vld [vmem:[#allocation2 + $0x61] sm:$0xff] }
  0x64   : > { %760 = vadd.xlane.f32.xlu0 %v759_v61  ;;  %763 = vadd.xlane.f32.xlu1 %v762_v62  ;;  %v905_v61 = vsel %vm556_vm1, %v859_v54, 0.0  ;;  %v860_v62 = vmul.f32 %v3339_v17, %v3375_v55  ;;  %v932_v54 = vsel %vm556_vm1, %v868_v43, 0.0 }
  0x68   : > { %766 = vadd.xlane.f32.xlu0 %v765_v5  ;;  %769 = vadd.xlane.f32.xlu1 %v768_v6  ;;  %v3387_v5 = vld [vmem:[#allocation2 + $0x81] sm:$0xff]  ;;  %v908_v6 = vsel %vm556_vm1, %v860_v62, 0.0  ;;  %v871_v62 = vmul.f32 %v3339_v17, %v3427_v50 }
  0x69   : > { %4915 = vst [vmem:[#allocation8_spill] sm:$0xff] %v3387_v5  ;;  %v1036_v50 = vld [vmem:[#allocation2 + $0x122] sm:$0xff] }
  0x6a   : > { %v941_v8 = vsel %vm556_vm1, %v871_v62, 0.0 }
  0x6c   : > { %772 = vadd.xlane.f32.xlu0 %v771_v11  ;;  %775 = vadd.xlane.f32.xlu1 %v774_v12  ;;  %v863_v11 = vmul.f32 %v3339_v17, %v3387_v5  ;;  %v3395_v12 = vld [vmem:[#allocation2 + $0x91] sm:$0xff] }
  0x6d   : > { %4916 = vst [vmem:[#allocation9_spill] sm:$0xff] %v3395_v12  ;;  %v864_v18 = vmul.f32 %v3339_v17, %v3395_v12 }
  0x6e   : > { %v917_v16 = vsel %vm556_vm1, %v863_v11, 0.0  ;;  %v872_v11 = vmul.f32 %v3339_v17, %v3435_v63  ;;  %v1034_v63 = vld [vmem:[#allocation2 + $0x10a] sm:$0xff] }
  0x6f   : > { %v920_v24 = vsel %vm556_vm1, %v864_v18, 0.0  ;;  %v3447_v18 = vld [vmem:[#allocation2 + $0x111] sm:$0xff] }
  0x70   : > { %778 = vadd.xlane.f32.xlu0 %v777_v21  ;;  %781 = vadd.xlane.f32.xlu1 %v780_v22  ;;  %v865_v21 = vmul.f32 %v3339_v17, %v3397_v14  ;;  %v3405_v22 = vld [vmem:[#allocation2 + $0xa9] sm:$0xff]  ;;  %4927 = vst [vmem:[#allocation20_spill] sm:$0xff] %v3447_v18  ;;  %v1212_v14 = vld [vmem:[#allocation2 + $0x38] sm:$0xff] }
  0x71   : > { %4918 = vst [vmem:[#allocation11_spill] sm:$0xff] %v3405_v22 }
  0x74   : > { %885 = vadd.xlane.f32.xlu0 %v884_v28  ;;  %888 = vadd.xlane.f32.xlu1 %v887_v29  ;;  %v923_v28 = vsel %vm556_vm1, %v865_v21, 0.0  ;;  %v866_v29 = vmul.f32 %v3339_v17, %v3405_v22  ;;  %v944_v21 = vsel %vm556_vm1, %v872_v11, 0.0  ;;  %v478_v11 = vld [vmem:[%s3066_s17 + $0xf8] sm:$0xff] }
  0x78   : > { %891 = vadd.xlane.f32.xlu0 %v890_v37  ;;  %894 = vadd.xlane.f32.xlu1 %v893_v41  ;;  %v3417_v37 = vld [vmem:[#allocation2 + $0xc9] sm:$0xff]  ;;  %v926_v41 = vsel %vm556_vm1, %v866_v29, 0.0  ;;  %v875_v29 = vmul.f32 %v3339_v17, %v3447_v18 }
  0x79   : > { %4921 = vst [vmem:[#allocation14_spill] sm:$0xff] %v3417_v37 }
  0x7a   : > { %v953_v43 = vsel %vm556_vm1, %v875_v29, 0.0  ;;  %v843_v29 = vld [vmem:[#allocation2 + $0x151] sm:$0xff] }
  0x7c   : > { %897 = vadd.xlane.f32.xlu0 %v896_v48  ;;  %900 = vadd.xlane.f32.xlu1 %v899_v49  ;;  %v869_v48 = vmul.f32 %v3339_v17, %v3417_v37  ;;  %v3425_v49 = vld [vmem:[#allocation2 + $0xd9] sm:$0xff] }
  0x7d   : > { %4922 = vst [vmem:[#allocation15_spill] sm:$0xff] %v3425_v49 }
  0x80   : > { %903 = vadd.xlane.f32.xlu0 %v902_v57  ;;  %906 = vadd.xlane.f32.xlu1 %v905_v61  ;;  %v935_v57 = vsel %vm556_vm1, %v869_v48, 0.0  ;;  %v870_v61 = vmul.f32 %v3339_v17, %v3425_v49  ;;  %v876_v48 = vmul.f32 %v3339_v17, %v839_v30  ;;  %v844_v30 = vld [vmem:[#allocation2 + $0x159] sm:$0xff] }
  0x84   : > { %909 = vadd.xlane.f32.xlu0 %v908_v6  ;;  %912 = vadd.xlane.f32.xlu1 %v911_v7  ;;  %v3437_v6 = vld [vmem:[#allocation2 + $0xf9] sm:$0xff]  ;;  %v938_v7 = vsel %vm556_vm1, %v870_v61, 0.0  ;;  %v842_v61 = vld [vmem:[#allocation2 + $0x141] sm:$0xff] }
  0x85   : > { %4925 = vst [vmem:[#allocation18_spill] sm:$0xff] %v3437_v6 }
  0x88   : > { %915 = vadd.xlane.f32.xlu0 %v914_v15  ;;  %918 = vadd.xlane.f32.xlu1 %v917_v16  ;;  %v873_v15 = vmul.f32 %v3339_v17, %v3437_v6  ;;  %v3445_v16 = vld [vmem:[#allocation2 + $0x109] sm:$0xff]  ;;  %v1032_v6 = vld [vmem:[#allocation2 + $0xf2] sm:$0xff] }
  0x89   : > { %4926 = vst [vmem:[#allocation19_spill] sm:$0xff] %v3445_v16 }
  0x8c   : > { %921 = vadd.xlane.f32.xlu0 %v920_v24  ;;  %924 = vadd.xlane.f32.xlu1 %v923_v28  ;;  %v947_v24 = vsel %vm556_vm1, %v873_v15, 0.0  ;;  %v874_v28 = vmul.f32 %v3339_v17, %v3445_v16  ;;  %v956_v15 = vsel %vm556_vm1, %v876_v48, 0.0  ;;  %v880_v48 = vmul.f32 %v3339_v17, %v843_v29  ;;  %v1030_v16 = vld [vmem:[#allocation2 + $0xda] sm:$0xff] }
  0x90   : > { %927 = vadd.xlane.f32.xlu0 %v926_v41  ;;  %930 = vadd.xlane.f32.xlu1 %v929_v42  ;;  %v840_v41 = vld [vmem:[#allocation2 + $0x129] sm:$0xff]  ;;  %v950_v42 = vsel %vm556_vm1, %v874_v28, 0.0  ;;  %v516_v28 = vmul.f32 %v3060_v1, %v478_v11 }
  0x91   : > { %v1012_v11 = vld [vmem:[#allocation2 + $0x2] sm:$0xff] }
  0x94   : > { %933 = vadd.xlane.f32.xlu0 %v932_v54  ;;  %936 = vadd.xlane.f32.xlu1 %v935_v57  ;;  %v877_v54 = vmul.f32 %v3339_v17, %v840_v41  ;;  %v841_v57 = vld [vmem:[#allocation2 + $0x139] sm:$0xff] }
  0x95   : > { %v878_v62 = vmul.f32 %v3339_v17, %v841_v57 }
  0x98   : > { %939 = vadd.xlane.f32.xlu0 %v938_v7  ;;  %942 = vadd.xlane.f32.xlu1 %v941_v8  ;;  %v879_v7 = vmul.f32 %v3339_v17, %v842_v61  ;;  %v477_v8 = vld [vmem:[%s3066_s17 + $0xf0] sm:$0xff]  ;;  %s2921_s17 = smov [#allocation3]  }
  0x99   : > { %v846_v61 = vld [vmem:[#allocation2 + $0x171] sm:$0xff]  ;;  %s2844_s18 = sshll.u32 %s2921_s17, 4  ;;  %s2845_s18 = int_to_ptr.vmem [resolvable:$false] %s2844_s18 }
  0x9a   : > { %v965_v57 = vsel %vm556_vm1, %v879_v7, 0.0  ;;  %v883_v7 = vmul.f32 %v3339_v17, %v846_v61  ;;  %s2846_s19 = scalar_lea.vmem %s2845_s18, 512 }
  0x9c   : > { %945 = vadd.xlane.f32.xlu0 %v944_v21  ;;  %948 = vadd.xlane.f32.xlu1 %v947_v24  ;;  %v959_v21 = vsel %vm556_vm1, %v877_v54, 0.0  ;;  %v515_v24 = vmul.f32 %v3060_v1, %v477_v8  ;;  %v881_v54 = vmul.f32 %v3339_v17, %v844_v30  ;;  %v845_v1 = vld [vmem:[#allocation2 + $0x169] sm:$0xff] }
  0x9e   : > { %v553_v41 = vadd.f32 %v3071_v2, %v515_v24  ;;  %v971_v8 = vsel %vm556_vm1, %v881_v54, 0.0  ;;  %v1016_v54 = vld [vmem:[#allocation2 + $0x32] sm:$0xff] }
  0xa0   : > { %951 = vadd.xlane.f32.xlu0 %v950_v42  ;;  %954 = vadd.xlane.f32.xlu1 %v953_v43  ;;  %v554_v42 = vadd.f32 %v3071_v2, %v516_v28  ;;  %v962_v43 = vsel %vm556_vm1, %v878_v62, 0.0  ;;  %587 = vst.msk [vmem:[#allocation2 + $0x181] sm:$0xff] %vm556_vm1, %v553_v41  ;;  %v968_v2 = vsel %vm556_vm1, %v880_v48, 0.0  ;;  %v882_v62 = vmul.f32 %v3339_v17, %v845_v1  ;;  %v1014_v41 = vld [vmem:[#allocation2 + $0x1a] sm:$0xff] }
  0xa1   : > { %v977_v28 = vsel %vm556_vm1, %v883_v7, 0.0  ;;  %v1017_v1 = vld [vmem:[#allocation2 + $0x3a] sm:$0xff]  ;;  %v1018_v7 = vld [vmem:[#allocation2 + $0x4a] sm:$0xff] }
  0xa2   : > { %588 = vst.msk [vmem:[#allocation2 + $0x189] sm:$0xff] %vm556_vm1, %v554_v42  ;;  %v974_v24 = vsel %vm556_vm1, %v882_v62, 0.0  ;;  %v1015_v42 = vld [vmem:[#allocation2 + $0x22] sm:$0xff] }
  0xa4   : > { %957 = vadd.xlane.f32.xlu0 %v956_v15  ;;  %960 = vadd.xlane.f32.xlu1 %v959_v21  ;;  %v3482_v15 = vld [vmem:[%s4894_s5 + $0x2] ss:$0 sm:$0xff]  ;;  %v1013_v21 = vld [vmem:[#allocation2 + $0xa] sm:$0xff] }
  0xa5   : > { %v1049_v29 = vmul.f32 %v3482_v15, %v1012_v11  ;;  %v1050_v30 = vmul.f32 %v3482_v15, %v1013_v21  ;;  %v1052_v48 = vmul.f32 %v3482_v15, %v1015_v42  ;;  %v1054_v62 = vmul.f32 %v3482_v15, %v1017_v1  ;;  %v1019_v11 = vld [vmem:[#allocation2 + $0x52] sm:$0xff] }
  0xa7   : > { %v1081_v17 = vsel %vm556_vm1, %v1049_v29, 0.0  ;;  %v1056_v29 = vmul.f32 %v3482_v15, %v1019_v11  ;;  %v1024_v11 = vld [vmem:[#allocation2 + $0x92] sm:$0xff] }
  0xa8   : > { %963 = vadd.xlane.f32.xlu0 %v962_v43  ;;  %966 = vadd.xlane.f32.xlu1 %v965_v57  ;;  %v1084_v43 = vsel %vm556_vm1, %v1050_v30, 0.0  ;;  %v1051_v57 = vmul.f32 %v3482_v15, %v1014_v41  ;;  %v1020_v30 = vld [vmem:[#allocation2 + $0x62] sm:$0xff]  ;;  %v1021_v41 = vld [vmem:[#allocation2 + $0x6a] sm:$0xff] }
  0xaa   : > { %v1087_v61 = vsel %vm556_vm1, %v1051_v57, 0.0  ;;  %v1058_v57 = vmul.f32 %v3482_v15, %v1021_v41  ;;  %v1061_v41 = vmul.f32 %v3482_v15, %v1024_v11  ;;  %v1029_v11 = vld [vmem:[#allocation2 + $0xca] sm:$0xff] }
  0xac   : > { %969 = vadd.xlane.f32.xlu0 %v968_v2  ;;  %972 = vadd.xlane.f32.xlu1 %v971_v8  ;;  %v1090_v2 = vsel %vm556_vm1, %v1052_v48, 0.0  ;;  %v1053_v8 = vmul.f32 %v3482_v15, %v1016_v54  ;;  %v1022_v48 = vld [vmem:[#allocation2 + $0x7a] sm:$0xff]  ;;  %v1023_v54 = vld [vmem:[#allocation2 + $0x82] sm:$0xff] }
  0xae   : > { %v1093_v21 = vsel %vm556_vm1, %v1053_v8, 0.0  ;;  %v1108_v8 = vsel %vm556_vm1, %v1058_v57, 0.0 }
  0xb0   : > { %975 = vadd.xlane.f32.xlu0 %v974_v24  ;;  %978 = vadd.xlane.f32.xlu1 %v977_v28  ;;  %v1096_v24 = vsel %vm556_vm1, %v1054_v62, 0.0  ;;  %v1055_v28 = vmul.f32 %v3482_v15, %v1018_v7  ;;  %v1059_v62 = vmul.f32 %v3482_v15, %v1022_v48  ;;  %v1060_v7 = vmul.f32 %v3482_v15, %v1023_v54 }
  0xb1   : > { %v1117_v54 = vsel %vm556_vm1, %v1061_v41, 0.0 }
  0xb2   : > { %v1099_v42 = vsel %vm556_vm1, %v1055_v28, 0.0 }
  0xb4   : > { %1082 = vadd.xlane.f32.xlu0 %v1081_v17  ;;  %1085 = vadd.xlane.f32.xlu1 %v1084_v43  ;;  %v1102_v17 = vsel %vm556_vm1, %v1056_v29, 0.0  ;;  %v1057_v43 = vmul.f32 %v3482_v15, %v1020_v30  ;;  %v1111_v29 = vsel %vm556_vm1, %v1059_v62, 0.0  ;;  %v1114_v30 = vsel %vm556_vm1, %v1060_v7, 0.0  ;;  %v1028_v7 = vld [vmem:[#allocation2 + $0xc2] sm:$0xff] }
  0xb5   : > { %v1065_v41 = vmul.f32 %v3482_v15, %v1028_v7  ;;  %v1033_v7 = vld [vmem:[#allocation2 + $0xfa] sm:$0xff] }
  0xb8   : > { %1088 = vadd.xlane.f32.xlu0 %v1087_v61  ;;  %1091 = vadd.xlane.f32.xlu1 %v1090_v2  ;;  %v1105_v2 = vsel %vm556_vm1, %v1057_v43, 0.0  ;;  %v1027_v43 = vld [vmem:[#allocation2 + $0xb2] sm:$0xff] }
  0xb9   : > { %v1064_v62 = vmul.f32 %v3482_v15, %v1027_v43 }
  0xbb   : > { %v1126_v18 = vsel %vm556_vm1, %v1064_v62, 0.0 }
  0xbc   : > { %1094 = vadd.xlane.f32.xlu0 %v1093_v21  ;;  %1097 = vadd.xlane.f32.xlu1 %v1096_v24  ;;  %v1025_v21 = vld [vmem:[#allocation2 + $0x9a] sm:$0xff] }
  0xc0   : > { %1100 = vadd.xlane.f32.xlu0 %v1099_v42  ;;  %1103 = vadd.xlane.f32.xlu1 %v1102_v17  ;;  %v1062_v42 = vmul.f32 %v3482_v15, %v1025_v21  ;;  %v1026_v17 = vld [vmem:[#allocation2 + $0xaa] sm:$0xff] }
  0xc1   : > { %v3504_v1 = vpop.xlane.xlu0 %700  ;;  %v3506_v61 = vpop.xlane.xlu1 %694 }
  0xc2   : > { %4928 = vst [vmem:[#allocation21_spill] sm:$0xff] %v3504_v1  ;;  %4929 = vst [vmem:[#allocation22_spill] sm:$0xff] %v3506_v61  ;;  %v1209_v61 = vld [vmem:[#allocation2 + $0x18] sm:$0xff] }
  0xc4   : > { %1106 = vadd.xlane.f32.xlu0 %v1105_v2  ;;  %1109 = vadd.xlane.f32.xlu1 %v1108_v8  ;;  %v1120_v2 = vsel %vm556_vm1, %v1062_v42, 0.0  ;;  %v1063_v8 = vmul.f32 %v3482_v15, %v1026_v17  ;;  %v1066_v42 = vmul.f32 %v3482_v15, %v1029_v11  ;;  %v1031_v17 = vld [vmem:[#allocation2 + $0xe2] sm:$0xff] }
  0xc5   : > { %v3512_v24 = vpop.xlane.xlu0 %706  ;;  %v3514_v28 = vpop.xlane.xlu1 %697  ;;  %v1068_v62 = vmul.f32 %v3482_v15, %v1031_v17 }
  0xc6   : > { %4930 = vst [vmem:[#allocation23_spill] sm:$0xff] %v3512_v24  ;;  %v1038_v24 = vld [vmem:[#allocation2 + $0x13a] sm:$0xff] }
  0xc8   : > { %1112 = vadd.xlane.f32.xlu0 %v1111_v29  ;;  %1115 = vadd.xlane.f32.xlu1 %v1114_v30  ;;  %v1123_v30 = vsel %vm556_vm1, %v1063_v8, 0.0  ;;  %v1067_v8 = vmul.f32 %v3482_v15, %v1030_v16  ;;  %v1035_v16 = vld [vmem:[#allocation2 + $0x112] sm:$0xff] }
  0xc9   : > { %v3520_v57 = vpop.xlane.xlu0 %712  ;;  %v3522_v48 = vpop.xlane.xlu1 %703 }
  0xca   : > { %4931 = vst [vmem:[#allocation24_spill] sm:$0xff] %v3520_v57 }
  0xcc   : > { %1118 = vadd.xlane.f32.xlu0 %v1117_v54  ;;  %1121 = vadd.xlane.f32.xlu1 %v1120_v2  ;;  %v1129_v2 = vsel %vm556_vm1, %v1065_v41, 0.0  ;;  %v1069_v41 = vmul.f32 %v3482_v15, %v1032_v6  ;;  %v1037_v6 = vld [vmem:[#allocation2 + $0x12a] sm:$0xff] }
  0xcd   : > { %v3528_v21 = vpop.xlane.xlu0 %718  ;;  %v3530_v29 = vpop.xlane.xlu1 %709 }
  0xce   : > { %4932 = vst [vmem:[#allocation25_spill] sm:$0xff] %v3528_v21  ;;  %v1132_v21 = vsel %vm556_vm1, %v1066_v42, 0.0  ;;  %v1070_v42 = vmul.f32 %v3482_v15, %v1033_v7 }
  0xd0   : > { %1124 = vadd.xlane.f32.xlu0 %v1123_v30  ;;  %1127 = vadd.xlane.f32.xlu1 %v1126_v18  ;;  %v1135_v18 = vsel %vm556_vm1, %v1067_v8, 0.0  ;;  %v1144_v57 = vsel %vm556_vm1, %v1070_v42, 0.0  ;;  %v1071_v8 = vmul.f32 %v3482_v15, %v1034_v63  ;;  %v1074_v42 = vmul.f32 %v3482_v15, %v1037_v6  ;;  %v1039_v63 = vld [vmem:[#allocation2 + $0x142] sm:$0xff] }
  0xd1   : > { %v3536_v43 = vpop.xlane.xlu0 %724  ;;  %v3538_v54 = vpop.xlane.xlu1 %715 }
  0xd2   : > { %4933 = vst [vmem:[#allocation26_spill] sm:$0xff] %v3536_v43  ;;  %v1138_v43 = vsel %vm556_vm1, %v1068_v62, 0.0  ;;  %v1072_v62 = vmul.f32 %v3482_v15, %v1035_v16  ;;  %v1156_v37 = vsel %vm556_vm1, %v1074_v42, 0.0 }
  0xd4   : > { %1130 = vadd.xlane.f32.xlu0 %v1129_v2  ;;  %1133 = vadd.xlane.f32.xlu1 %v1132_v21  ;;  %v1141_v21 = vsel %vm556_vm1, %v1069_v41, 0.0  ;;  %v1150_v49 = vsel %vm556_vm1, %v1072_v62, 0.0  ;;  %v1073_v41 = vmul.f32 %v3482_v15, %v1036_v50  ;;  %v1076_v62 = vmul.f32 %v3482_v15, %v1039_v63  ;;  %v1041_v50 = vld [vmem:[#allocation2 + $0x15a] sm:$0xff] }
  0xd5   : > { %v3544_v11 = vpop.xlane.xlu0 %688  ;;  %v3546_v30 = vpop.xlane.xlu1 %721  ;;  %v1078_v42 = vmul.f32 %v3482_v15, %v1041_v50  ;;  %v1210_v50 = vld [vmem:[#allocation2 + $0x20] sm:$0xff] }
  0xd6   : > { %v1162_v1 = vsel %vm556_vm1, %v1076_v62, 0.0 }
  0xd7   : > { %v1168_v22 = vsel %vm556_vm1, %v1078_v42, 0.0 }
  0xd8   : > { %1136 = vadd.xlane.f32.xlu0 %v1135_v18  ;;  %1139 = vadd.xlane.f32.xlu1 %v1138_v43  ;;  %v1147_v43 = vsel %vm556_vm1, %v1071_v8, 0.0  ;;  %v1075_v8 = vmul.f32 %v3482_v15, %v1038_v24  ;;  %v1043_v24 = vld [vmem:[#allocation2 + $0x172] sm:$0xff] }
  0xd9   : > { %v3552_v17 = vpop.xlane.xlu0 %691  ;;  %v3554_v2 = vpop.xlane.xlu1 %727  ;;  %v1080_v62 = vmul.f32 %v3482_v15, %v1043_v24  ;;  %v1211_v24 = vld [vmem:[#allocation2 + $0x30] sm:$0xff] }
  0xdb   : > { %v1174_v42 = vsel %vm556_vm1, %v1080_v62, 0.0 }
  0xdc   : > { %1142 = vadd.xlane.f32.xlu0 %v1141_v21  ;;  %1145 = vadd.xlane.f32.xlu1 %v1144_v57  ;;  %v1153_v57 = vsel %vm556_vm1, %v1073_v41, 0.0  ;;  %v1077_v41 = vmul.f32 %v3482_v15, %v1040_v34  ;;  %v3595_v34 = vld [vmem:[%s4894_s5 + $0x4] ss:$0 sm:$0xff] }
  0xdd   : > { %v3560_v7 = vpop.xlane.xlu0 %730  ;;  %v3562_v18 = vpop.xlane.xlu1 %733  ;;  %v1250_v62 = vmul.f32 %v3595_v34, %v1212_v14  ;;  %v1251_v56 = vmul.f32 %v3595_v34, %v1213_v0  ;;  %v1217_v0 = vld [vmem:[#allocation2 + $0x78] sm:$0xff] }
  0xe0   : > { %1148 = vadd.xlane.f32.xlu0 %v1147_v43  ;;  %1151 = vadd.xlane.f32.xlu1 %v1150_v49  ;;  %v1159_v49 = vsel %vm556_vm1, %v1075_v8, 0.0  ;;  %v1079_v8 = vmul.f32 %v3482_v15, %v1042_v23  ;;  %v1247_v23 = vmul.f32 %v3595_v34, %v1209_v61  ;;  %v1248_v15 = vmul.f32 %v3595_v34, %v1210_v50 }
  0xe1   : > { %v3568_v16 = vpop.xlane.xlu0 %736  ;;  %v3570_v21 = vpop.xlane.xlu1 %739 }
  0xe2   : > { %v1282_v5 = vsel %vm556_vm1, %v1248_v15, 0.0  ;;  %v1215_v15 = vld [vmem:[#allocation2 + $0x60] sm:$0xff] }
  0xe4   : > { %1154 = vadd.xlane.f32.xlu0 %v1153_v57  ;;  %1157 = vadd.xlane.f32.xlu1 %v1156_v37  ;;  %v1165_v37 = vsel %vm556_vm1, %v1077_v41, 0.0  ;;  %v1171_v41 = vsel %vm556_vm1, %v1079_v8, 0.0  ;;  %v1249_v8 = vmul.f32 %v3595_v34, %v1211_v24 }
  0xe5   : > { %v3576_v6 = vpop.xlane.xlu0 %742  ;;  %v3578_v43 = vpop.xlane.xlu1 %745 }
  0xe8   : > { %1160 = vadd.xlane.f32.xlu0 %v1159_v49  ;;  %1163 = vadd.xlane.f32.xlu1 %v1162_v1 }
  0xe9   : > { %v3584_v63 = vpop.xlane.xlu0 %748  ;;  %v3586_v57 = vpop.xlane.xlu1 %751 }
  0xec   : > { %1166 = vadd.xlane.f32.xlu0 %v1165_v37  ;;  %1169 = vadd.xlane.f32.xlu1 %v1168_v22  ;;  %v1279_v22 = vsel %vm556_vm1, %v1247_v23, 0.0  ;;  %v1252_v23 = vmul.f32 %v3595_v34, %v3183_v32 }
  0xed   : > { %v3597_v1 = vpop.xlane.xlu0 %754  ;;  %v3599_v49 = vpop.xlane.xlu1 %757 }
  0xf0   : > { %1172 = vadd.xlane.f32.xlu0 %v1171_v41  ;;  %1175 = vadd.xlane.f32.xlu1 %v1174_v42  ;;  %v1285_v41 = vsel %vm556_vm1, %v1249_v8, 0.0  ;;  %v1288_v42 = vsel %vm556_vm1, %v1250_v62, 0.0  ;;  %v1253_v8 = vmul.f32 %v3595_v34, %v1215_v15  ;;  %v1254_v62 = vmul.f32 %v3595_v34, %v3194_v40  ;;  %v1219_v15 = vld [vmem:[#allocation2 + $0x90] sm:$0xff] }
  0xf1   : > { %v3605_v12 = vpop.xlane.xlu0 %760  ;;  %v3607_v37 = vpop.xlane.xlu1 %763 }
  0xf4   : > { %1280 = vadd.xlane.f32.xlu0 %v1279_v22  ;;  %1283 = vadd.xlane.f32.xlu1 %v1282_v5  ;;  %v1291_v5 = vsel %vm556_vm1, %v1251_v56, 0.0  ;;  %v1294_v22 = vsel %vm556_vm1, %v1252_v23, 0.0  ;;  %v1255_v56 = vmul.f32 %v3595_v34, %v1217_v0  ;;  %v1256_v23 = vmul.f32 %v3595_v34, %v3209_v53 }
  0xf5   : > { %v3613_v61 = vpop.xlane.xlu0 %766  ;;  %v3615_v50 = vpop.xlane.xlu1 %769 }
  0xf8   : > { %1286 = vadd.xlane.f32.xlu0 %v1285_v41  ;;  %1289 = vadd.xlane.f32.xlu1 %v1288_v42  ;;  %v1297_v42 = vsel %vm556_vm1, %v1253_v8, 0.0  ;;  %v1258_v8 = vmul.f32 %v3595_v34, %v3234_v13  ;;  %v1260_v13 = vmul.f32 %v3595_v34, %v3248_v20 }
  0xf9   : > { %v3622_v14 = vpop.xlane.xlu0 %772  ;;  %v3624_v24 = vpop.xlane.xlu1 %775 }
  0xfa   : > { %4934 = vst [vmem:[#allocation27_spill] sm:$0xff] %v3622_v14  ;;  %4935 = vst [vmem:[#allocation28_spill] sm:$0xff] %v3624_v24  ;;  %v1300_v24 = vsel %vm556_vm1, %v1254_v62, 0.0 }
  0xfc   : > { %1292 = vadd.xlane.f32.xlu0 %v1291_v5  ;;  %1295 = vadd.xlane.f32.xlu1 %v1294_v22  ;;  %v1303_v5 = vsel %vm556_vm1, %v1255_v56, 0.0  ;;  %v1306_v22 = vsel %vm556_vm1, %v1256_v23, 0.0  ;;  %v1312_v56 = vsel %vm556_vm1, %v1258_v8, 0.0  ;;  %v1259_v23 = vmul.f32 %v3595_v34, %v3246_v19 }
  0xfd   : > { %v3631_v32 = vpop.xlane.xlu0 %778  ;;  %v3633_v41 = vpop.xlane.xlu1 %781  ;;  %v1262_v19 = vmul.f32 %v3595_v34, %v3258_v26 }
  0xfe   : > { %4936 = vst [vmem:[#allocation29_spill] sm:$0xff] %v3633_v41  ;;  %v1257_v41 = vmul.f32 %v3595_v34, %v1219_v15  ;;  %v1315_v15 = vsel %vm556_vm1, %v1259_v23, 0.0 }
  0xff   : > { %v1324_v8 = vsel %vm556_vm1, %v1262_v19, 0.0 }
 0x100   : > { %1298 = vadd.xlane.f32.xlu0 %v1297_v42  ;;  %1301 = vadd.xlane.f32.xlu1 %v1300_v24  ;;  %v1309_v42 = vsel %vm556_vm1, %v1257_v41, 0.0  ;;  %v1318_v41 = vsel %vm556_vm1, %v1260_v13, 0.0  ;;  %v1265_v13 = vmul.f32 %v3595_v34, %v3276_v38  ;;  %v1268_v38 = vmul.f32 %v3595_v34, %v3288_v46 }
 0x101   : > { %v886_v40 = vpop.xlane.xlu0 %885  ;;  %v889_v14 = vpop.xlane.xlu1 %888 }
 0x102   : > { %v3646_v62 = vadd.f32 %v886_v40, %v3544_v11  ;;  %v3649_v0 = vadd.f32 %v889_v14, %v3552_v17  ;;  %v1261_v40 = vmul.f32 %v3595_v34, %v3256_v25  ;;  %v1264_v25 = vmul.f32 %v3595_v34, %v3268_v33 }
 0x104   : > { %1304 = vadd.xlane.f32.xlu0 %v1303_v5  ;;  %1307 = vadd.xlane.f32.xlu1 %v1306_v22  ;;  %v1321_v22 = vsel %vm556_vm1, %v1261_v40, 0.0  ;;  %v1330_v23 = vsel %vm556_vm1, %v1264_v25, 0.0  ;;  %v1267_v40 = vmul.f32 %v3595_v34, %v3286_v45  ;;  %v1270_v45 = vmul.f32 %v3595_v34, %v3298_v52 }
 0x105   : > { %v3651_v53 = vpop.xlane.xlu0 %891  ;;  %v895_v24 = vpop.xlane.xlu1 %894 }
 0x106   : > { %v3660_v11 = vadd.f32 %v895_v24, %v3514_v28  ;;  %v1263_v24 = vmul.f32 %v3595_v34, %v3266_v31  ;;  %v1266_v31 = vmul.f32 %v3595_v34, %v3278_v39 }
 0x108   : > { %1310 = vadd.xlane.f32.xlu0 %v1309_v42  ;;  %1313 = vadd.xlane.f32.xlu1 %v1312_v56  ;;  %v1327_v56 = vsel %vm556_vm1, %v1263_v24, 0.0 }
 0x109   : > { %v3662_v17 = vpop.xlane.xlu0 %897  ;;  %v901_v14 = vpop.xlane.xlu1 %900 }
 0x10a   : > { %v3671_v20 = vadd.f32 %v901_v14, %v3522_v48 }
 0x10c   : > { %1316 = vadd.xlane.f32.xlu0 %v1315_v15  ;;  %1319 = vadd.xlane.f32.xlu1 %v1318_v41  ;;  %v1333_v15 = vsel %vm556_vm1, %v1265_v13, 0.0  ;;  %v1336_v41 = vsel %vm556_vm1, %v1266_v31, 0.0 }
 0x10d   : > { %v3673_v28 = vpop.xlane.xlu0 %903  ;;  %v907_v5 = vpop.xlane.xlu1 %906 }
 0x10e   : > { %v3682_v26 = vadd.f32 %v907_v5, %v3530_v29  ;;  %v1339_v5 = vsel %vm556_vm1, %v1267_v40, 0.0 }
 0x110   : > { %1322 = vadd.xlane.f32.xlu0 %v1321_v22  ;;  %1325 = vadd.xlane.f32.xlu1 %v1324_v8  ;;  %v1342_v22 = vsel %vm556_vm1, %v1268_v38, 0.0  ;;  %v1269_v8 = vmul.f32 %v3595_v34, %v3296_v51  ;;  %v1272_v51 = vmul.f32 %v3595_v34, %v3308_v59  ;;  %v1274_v59 = vmul.f32 %v3595_v34, %v3318_v4 }
 0x111   : > { %v3684_v48 = vpop.xlane.xlu0 %909  ;;  %v913_v42 = vpop.xlane.xlu1 %912  ;;  %v1276_v4 = vmul.f32 %v3595_v34, %v3328_v10 }
 0x112   : > { %v3693_v33 = vadd.f32 %v913_v42, %v3538_v54  ;;  %v1345_v25 = vsel %vm556_vm1, %v1269_v8, 0.0  ;;  %v1348_v42 = vsel %vm556_vm1, %v1270_v45, 0.0  ;;  %v1360_v38 = vsel %vm556_vm1, %v1274_v59, 0.0 }
 0x114   : > { %1328 = vadd.xlane.f32.xlu0 %v1327_v56  ;;  %1331 = vadd.xlane.f32.xlu1 %v1330_v23  ;;  %v1271_v56 = vmul.f32 %v3595_v34, %v3306_v58  ;;  %v1273_v58 = vmul.f32 %v3595_v34, %v3316_v3  ;;  %v1275_v3 = vmul.f32 %v3595_v34, %v3326_v9 }
 0x115   : > { %v3695_v29 = vpop.xlane.xlu0 %915  ;;  %v919_v14 = vpop.xlane.xlu1 %918 }
 0x116   : > { %v3704_v39 = vadd.f32 %v919_v14, %v3546_v30  ;;  %v1351_v31 = vsel %vm556_vm1, %v1271_v56, 0.0  ;;  %v1354_v14 = vsel %vm556_vm1, %v1272_v51, 0.0  ;;  %v1357_v40 = vsel %vm556_vm1, %v1273_v58, 0.0 }
 0x117   : > { %v1363_v45 = vsel %vm556_vm1, %v1275_v3, 0.0 }
 0x118   : > { %1334 = vadd.xlane.f32.xlu0 %v1333_v15  ;;  %1337 = vadd.xlane.f32.xlu1 %v1336_v41 }
 0x119   : > { %v3706_v54 = vpop.xlane.xlu0 %921  ;;  %v925_v19 = vpop.xlane.xlu1 %924 }
 0x11a   : > { %v3715_v46 = vadd.f32 %v925_v19, %v3554_v2  ;;  %v1239_v19 = vld [vmem:[#allocation2 + $0x180] sm:$0xff] }
 0x11b   : > { %v1277_v9 = vmul.f32 %v3595_v34, %v1239_v19 }
 0x11c   : > { %1340 = vadd.xlane.f32.xlu0 %v1339_v5  ;;  %1343 = vadd.xlane.f32.xlu1 %v1342_v22  ;;  %v1240_v5 = vld [vmem:[#allocation2 + $0x188] sm:$0xff] }
 0x11d   : > { %v928_v30 = vpop.xlane.xlu0 %927  ;;  %v931_v24 = vpop.xlane.xlu1 %930  ;;  %v1278_v10 = vmul.f32 %v3595_v34, %v1240_v5  ;;  %v1369_v56 = vsel %vm556_vm1, %v1277_v9, 0.0  ;;  %v4937_v5 = vld [vmem:[#allocation6_spill] sm:$0xff] }
 0x11e   : > { %v3724_v23 = vadd.f32 %v928_v30, %v3560_v7  ;;  %v3727_v52 = vadd.f32 %v931_v24, %v3562_v18  ;;  %v1366_v30 = vsel %vm556_vm1, %v1276_v4, 0.0  ;;  %v3766_v24 = vld [vmem:[%s4894_s5 + $0x5] ss:$0 sm:$0xff] }
 0x11f   : > { %v1372_v51 = vsel %vm556_vm1, %v1278_v10, 0.0 }
 0x120   : > { %1346 = vadd.xlane.f32.xlu0 %v1345_v25  ;;  %1349 = vadd.xlane.f32.xlu1 %v1348_v42 }
 0x121   : > { %v934_v2 = vpop.xlane.xlu0 %933  ;;  %v937_v13 = vpop.xlane.xlu1 %936 }
 0x122   : > { %v3736_v7 = vadd.f32 %v934_v2, %v3568_v16  ;;  %v3739_v18 = vadd.f32 %v937_v13, %v3570_v21 }
 0x124   : > { %1352 = vadd.xlane.f32.xlu0 %v1351_v31  ;;  %1355 = vadd.xlane.f32.xlu1 %v1354_v14 }
 0x125   : > { %v940_v15 = vpop.xlane.xlu0 %939  ;;  %v943_v41 = vpop.xlane.xlu1 %942 }
 0x126   : > { %v3748_v16 = vadd.f32 %v940_v15, %v3576_v6  ;;  %v3751_v21 = vadd.f32 %v943_v41, %v3578_v43 }
 0x128   : > { %1358 = vadd.xlane.f32.xlu0 %v1357_v40  ;;  %1361 = vadd.xlane.f32.xlu1 %v1360_v38 }
 0x129   : > { %v946_v22 = vpop.xlane.xlu0 %945  ;;  %v949_v8 = vpop.xlane.xlu1 %948 }
 0x12a   : > { %v3758_v6 = vadd.f32 %v946_v22, %v3584_v63  ;;  %v3761_v43 = vadd.f32 %v949_v8, %v3586_v57  ;;  %v1444_v63 = vmul.f32 %v3766_v24, %v3345_v27  ;;  %v1445_v57 = vmul.f32 %v3766_v24, %v3347_v60  ;;  %v4938_v22 = vld [vmem:[#allocation27_spill] sm:$0xff]  ;;  %v4939_v8 = vld [vmem:[#allocation28_spill] sm:$0xff] }
 0x12b   : > { %v1446_v27 = vmul.f32 %v3766_v24, %v3355_v35  ;;  %v1447_v60 = vmul.f32 %v3766_v24, %v3357_v36  ;;  %v1448_v35 = vmul.f32 %v3766_v24, %v3365_v44  ;;  %v1449_v36 = vmul.f32 %v3766_v24, %v3367_v47 }
 0x12c   : > { %1364 = vadd.xlane.f32.xlu0 %v1363_v45  ;;  %1367 = vadd.xlane.f32.xlu1 %v1366_v30  ;;  %v1476_v14 = vsel %vm556_vm1, %v1444_v63, 0.0  ;;  %v1479_v58 = vsel %vm556_vm1, %v1445_v57, 0.0  ;;  %v1450_v44 = vmul.f32 %v3766_v24, %v3375_v55  ;;  %v1451_v47 = vmul.f32 %v3766_v24, %v4937_v5  ;;  %v4942_v63 = vld [vmem:[#allocation29_spill] sm:$0xff]  ;;  %v4947_v5 = vld [vmem:[#allocation12_spill] sm:$0xff] }
 0x12d   : > { %v952_v25 = vpop.xlane.xlu0 %951  ;;  %v955_v42 = vpop.xlane.xlu1 %954  ;;  %v1482_v41 = vsel %vm556_vm1, %v1446_v27, 0.0  ;;  %v1485_v40 = vsel %vm556_vm1, %v1447_v60, 0.0  ;;  %v1488_v4 = vsel %vm556_vm1, %v1448_v35, 0.0  ;;  %v1491_v19 = vsel %vm556_vm1, %v1449_v36, 0.0  ;;  %v4943_v27 = vld [vmem:[#allocation9_spill] sm:$0xff] }
 0x12e   : > { %v3775_v34 = vadd.f32 %v952_v25, %v3597_v1  ;;  %v3778_v2 = vadd.f32 %v955_v42, %v3599_v49  ;;  %v1494_v9 = vsel %vm556_vm1, %v1450_v44, 0.0  ;;  %v1497_v10 = vsel %vm556_vm1, %v1451_v47, 0.0  ;;  %v4940_v25 = vld [vmem:[#allocation7_spill] sm:$0xff]  ;;  %v4941_v42 = vld [vmem:[#allocation8_spill] sm:$0xff] }
 0x12f   : > { %v1452_v55 = vmul.f32 %v3766_v24, %v4940_v25  ;;  %v1454_v60 = vmul.f32 %v3766_v24, %v4943_v27  ;;  %v4952_v27 = vld [vmem:[#allocation15_spill] sm:$0xff] }
 0x130   : > { %1370 = vadd.xlane.f32.xlu0 %v1369_v56  ;;  %1373 = vadd.xlane.f32.xlu1 %v1372_v51  ;;  %v1453_v56 = vmul.f32 %v3766_v24, %v4941_v42 }
 0x131   : > { %v958_v13 = vpop.xlane.xlu0 %957  ;;  %v961_v31 = vpop.xlane.xlu1 %960 }
 0x132   : > { %v3787_v1 = vadd.f32 %v958_v13, %v3605_v12  ;;  %v3790_v49 = vadd.f32 %v961_v31, %v3607_v37 }
 0x134   : > { %1477 = vadd.xlane.f32.xlu0 %v1476_v14  ;;  %1480 = vadd.xlane.f32.xlu1 %v1479_v58  ;;  %v1500_v14 = vsel %vm556_vm1, %v1452_v55, 0.0  ;;  %v1503_v58 = vsel %vm556_vm1, %v1453_v56, 0.0  ;;  %v4950_v55 = vld [vmem:[#allocation14_spill] sm:$0xff] }
 0x135   : > { %v964_v59 = vpop.xlane.xlu0 %963  ;;  %v967_v15 = vpop.xlane.xlu1 %966  ;;  %v1459_v42 = vmul.f32 %v3766_v24, %v4950_v55  ;;  %v4959_v55 = vld [vmem:[#allocation20_spill] sm:$0xff] }
 0x136   : > { %v3799_v12 = vadd.f32 %v964_v59, %v3613_v61  ;;  %v3802_v37 = vadd.f32 %v967_v15, %v3615_v50  ;;  %v4944_v59 = vld [vmem:[#allocation10_spill] sm:$0xff] }
 0x137   : > { %v1455_v15 = vmul.f32 %v3766_v24, %v4944_v59  ;;  %v4953_v59 = vld [vmem:[#allocation16_spill] sm:$0xff] }
 0x138   : > { %1483 = vadd.xlane.f32.xlu0 %v1482_v41  ;;  %1486 = vadd.xlane.f32.xlu1 %v1485_v40  ;;  %v4945_v40 = vld [vmem:[#allocation22_spill] sm:$0xff] }
 0x139   : > { %v970_v38 = vpop.xlane.xlu0 %969  ;;  %v973_v3 = vpop.xlane.xlu1 %972  ;;  %v982_v35 = vadd.f32 %v3651_v53, %v4945_v40  ;;  %v4948_v53 = vld [vmem:[#allocation21_spill] sm:$0xff] }
 0x13a   : > { %v3811_v61 = vadd.f32 %v970_v38, %v4938_v22  ;;  %v3814_v50 = vadd.f32 %v973_v3, %v4939_v8  ;;  %v1506_v3 = vsel %vm556_vm1, %v1454_v60, 0.0  ;;  %v984_v22 = vadd.f32 %v3662_v17, %v4948_v53  ;;  %v4951_v17 = vld [vmem:[#allocation23_spill] sm:$0xff] }
 0x13b   : > { %v1460_v60 = vmul.f32 %v3766_v24, %v4952_v27 }
 0x13c   : > { %1489 = vadd.xlane.f32.xlu0 %v1488_v4  ;;  %1492 = vadd.xlane.f32.xlu1 %v1491_v19  ;;  %v1509_v4 = vsel %vm556_vm1, %v1455_v15, 0.0  ;;  %v4946_v19 = vld [vmem:[#allocation11_spill] sm:$0xff]  ;;  %v1461_v15 = vmul.f32 %v3766_v24, %v4953_v59 }
 0x13d   : > { %v976_v45 = vpop.xlane.xlu0 %975  ;;  %v979_v30 = vpop.xlane.xlu1 %978  ;;  %v1456_v44 = vmul.f32 %v3766_v24, %v4946_v19  ;;  %v4955_v19 = vld [vmem:[#allocation17_spill] sm:$0xff] }
 0x13e   : > { %v3823_v51 = vadd.f32 %v976_v45, %v3631_v32  ;;  %v3826_v57 = vadd.f32 %v979_v30, %v4942_v63  ;;  %v986_v63 = vadd.f32 %v3673_v28, %v4951_v17  ;;  %v4954_v28 = vld [vmem:[#allocation24_spill] sm:$0xff] }
 0x13f   : > { %v1512_v30 = vsel %vm556_vm1, %v1456_v44, 0.0  ;;  %v1462_v44 = vmul.f32 %v3766_v24, %v4955_v19 }
 0x140   : > { %1495 = vadd.xlane.f32.xlu0 %v1494_v9  ;;  %1498 = vadd.xlane.f32.xlu1 %v1497_v10  ;;  %v4949_v10 = vld [vmem:[#allocation13_spill] sm:$0xff] }
 0x141   : > { %v1083_v13 = vpop.xlane.xlu0 %1082  ;;  %v1086_v31 = vpop.xlane.xlu1 %1085  ;;  %v1458_v25 = vmul.f32 %v3766_v24, %v4949_v10  ;;  %v4958_v10 = vld [vmem:[#allocation19_spill] sm:$0xff] }
 0x142   : > { %v3835_v32 = vadd.f32 %v1083_v13, %v3646_v62  ;;  %v3838_v41 = vadd.f32 %v1086_v31, %v3649_v0  ;;  %v1457_v62 = vmul.f32 %v3766_v24, %v4947_v5  ;;  %v4956_v5 = vld [vmem:[#allocation18_spill] sm:$0xff] }
 0x144   : > { %1501 = vadd.xlane.f32.xlu0 %v1500_v14  ;;  %1504 = vadd.xlane.f32.xlu1 %v1503_v58  ;;  %v1515_v9 = vsel %vm556_vm1, %v1457_v62, 0.0  ;;  %v1518_v14 = vsel %vm556_vm1, %v1458_v25, 0.0  ;;  %v1521_v58 = vsel %vm556_vm1, %v1459_v42, 0.0  ;;  %v1463_v62 = vmul.f32 %v3766_v24, %v4956_v5  ;;  %v1433_v5 = vld [vmem:[#allocation2 + $0x151] sm:$0xff] }
 0x145   : > { %v1089_v36 = vpop.xlane.xlu0 %1088  ;;  %v1092_v38 = vpop.xlane.xlu1 %1091  ;;  %v1464_v25 = vmul.f32 %v3766_v24, %v4958_v10  ;;  %v1465_v42 = vmul.f32 %v3766_v24, %v4959_v55 }
 0x146   : > { %v3848_v47 = vadd.f32 %v1089_v36, %v982_v35  ;;  %v3851_v0 = vadd.f32 %v1092_v38, %v3660_v11  ;;  %v988_v35 = vadd.f32 %v3684_v48, %v4954_v28  ;;  %v4957_v48 = vld [vmem:[#allocation25_spill] sm:$0xff] }
 0x147   : > { %v1536_v27 = vsel %vm556_vm1, %v1464_v25, 0.0  ;;  %v1432_v28 = vld [vmem:[#allocation2 + $0x141] sm:$0xff] }
 0x148   : > { %1507 = vadd.xlane.f32.xlu0 %v1506_v3  ;;  %1510 = vadd.xlane.f32.xlu1 %v1509_v4  ;;  %v1524_v3 = vsel %vm556_vm1, %v1460_v60, 0.0  ;;  %v1527_v4 = vsel %vm556_vm1, %v1461_v15, 0.0  ;;  %v1539_v60 = vsel %vm556_vm1, %v1465_v42, 0.0 }
 0x149   : > { %v1095_v8 = vpop.xlane.xlu0 %1094  ;;  %v1098_v45 = vpop.xlane.xlu1 %1097 }
 0x14a   : > { %v3861_v56 = vadd.f32 %v1095_v8, %v984_v22  ;;  %v3864_v11 = vadd.f32 %v1098_v45, %v3671_v20  ;;  %v990_v22 = vadd.f32 %v3695_v29, %v4957_v48  ;;  %v1429_v29 = vld [vmem:[#allocation2 + $0x121] sm:$0xff]  ;;  %v1434_v48 = vld [vmem:[#allocation2 + $0x159] sm:$0xff] }
 0x14b   : > { %v1466_v59 = vmul.f32 %v3766_v24, %v1429_v29  ;;  %v1471_v42 = vmul.f32 %v3766_v24, %v1434_v48  ;;  %v2839_v29 = vld [vmem:[%s4893_s4] ss:$0 sm:$0xff] }
 0x14c   : > { %1513 = vadd.xlane.f32.xlu0 %v1512_v30  ;;  %1516 = vadd.xlane.f32.xlu1 %v1515_v9  ;;  %v1530_v30 = vsel %vm556_vm1, %v1462_v44, 0.0  ;;  %v1533_v9 = vsel %vm556_vm1, %v1463_v62, 0.0 }
 0x14d   : > { %v1101_v13 = vpop.xlane.xlu0 %1100  ;;  %v1104_v31 = vpop.xlane.xlu1 %1103  ;;  %v1542_v19 = vsel %vm556_vm1, %v1466_v59, 0.0 }
 0x14e   : > { %v3874_v40 = vadd.f32 %v1101_v13, %v986_v63  ;;  %v3877_v20 = vadd.f32 %v1104_v31, %v3682_v26  ;;  %v1430_v63 = vld [vmem:[#allocation2 + $0x129] sm:$0xff] }
 0x14f   : > { %v4960_v13 = vld [vmem:[#allocation26_spill] sm:$0xff]  ;;  %v1467_v15 = vmul.f32 %v3766_v24, %v1430_v63 }
 0x150   : > { %1519 = vadd.xlane.f32.xlu0 %v1518_v14  ;;  %1522 = vadd.xlane.f32.xlu1 %v1521_v58  ;;  %v992_v31 = vadd.f32 %v3706_v54, %v4960_v13 }
 0x151   : > { %v1107_v36 = vpop.xlane.xlu0 %1106  ;;  %v1110_v38 = vpop.xlane.xlu1 %1109  ;;  %v1545_v44 = vsel %vm556_vm1, %v1467_v15, 0.0 }
 0x152   : > { %v3887_v53 = vadd.f32 %v1107_v36, %v988_v35  ;;  %v3890_v26 = vadd.f32 %v1110_v38, %v3693_v33  ;;  %v1469_v38 = vmul.f32 %v3766_v24, %v1432_v28 }
 0x154   : > { %1525 = vadd.xlane.f32.xlu0 %v1524_v3  ;;  %1528 = vadd.xlane.f32.xlu1 %v1527_v4  ;;  %v1551_v25 = vsel %vm556_vm1, %v1469_v38, 0.0 }
 0x155   : > { %v1113_v8 = vpop.xlane.xlu0 %1112  ;;  %v1116_v45 = vpop.xlane.xlu1 %1115 }
 0x156   : > { %v3900_v17 = vadd.f32 %v1113_v8, %v990_v22  ;;  %v3903_v33 = vadd.f32 %v1116_v45, %v3704_v39  ;;  %v1431_v39 = vld [vmem:[#allocation2 + $0x139] sm:$0xff]  ;;  %v607_v8 = vld [vmem:[%s402_s30 + $0x8] sm:$0xff] }
 0x157   : > { %v1468_v54 = vmul.f32 %v3766_v24, %v1431_v39  ;;  %v606_v22 = vld [vmem:[%s402_s30] sm:$0xff]  ;;  %s2745_s30 = sshll.u32 %s359_s28, 4 }
 0x158   : > { %1531 = vadd.xlane.f32.xlu0 %v1530_v30  ;;  %1534 = vadd.xlane.f32.xlu1 %v1533_v9  ;;  %v2838_v45 = vld [vmem:[%s4892_s3] ss:$0 sm:$0xff]  ;;  %s361_s8 = scalar_lea.vmem [#allocation3], %s2745_s30 }
 0x159   : > { %v1119_v14 = vpop.xlane.xlu0 %1118  ;;  %v1122_v58 = vpop.xlane.xlu1 %1121  ;;  %v608_v30 = vmul.f32 %v2838_v45, %v606_v22  ;;  %v609_v9 = vmul.f32 %v2838_v45, %v607_v8  ;;  %v1548_v10 = vsel %vm556_vm1, %v1468_v54, 0.0  ;;  %v1557_v54 = vsel %vm556_vm1, %v1471_v42, 0.0  ;;  %s2616_s11 = sshll.u32 %s361_s8, 4  ;;  %s4836_s11 = int_to_ptr.vmem [resolvable:$true] %s2616_s11 }
 0x15a   : > { %v3911_v35 = vadd.f32 %v1119_v14, %v992_v31  ;;  %v3914_v36 = vadd.f32 %v1122_v58, %v3715_v46  ;;  %v1435_v58 = vld [vmem:[#allocation2 + $0x169] sm:$0xff]  ;;  %s2840_s16 = scalar_lea.vmem %s4836_s11, 256  ;;  %p2847_p1 = scmp.lt.s32.totalorder %s4836_s11, %s2845_s18 }
 0x15b   : > { %v610_v63 = vadd.f32 %v2839_v29, %v608_v30  ;;  %v611_v13 = vadd.f32 %v2839_v29, %v609_v9  ;;  %v1472_v38 = vmul.f32 %v3766_v24, %v1435_v58  ;;  %v1604_v30 = vld [vmem:[#allocation2 + $0x1a] sm:$0xff]  ;;  %v3971_v9 = vld [vmem:[%s4894_s5 + $0x6] ss:$0 sm:$0xff]  ;;  %v1606_v29 = vld [vmem:[#allocation2 + $0x32] sm:$0xff]  ;;  %p2841_p12 = scmp.ne.s32.totalorder %s4836_s11, %s2840_s16  ;;  %p2848_p2 = scmp.lt.s32.totalorder %s2846_s19, %s2840_s16 }
 0x15c   : > { %1537 = vadd.xlane.f32.xlu0 %v1536_v27  ;;  %1540 = vadd.xlane.f32.xlu1 %v1539_v60  ;;  %v1436_v27 = vld [vmem:[#allocation2 + $0x171] sm:$0xff] }
 0x15d   : > { %v1125_v3 = vpop.xlane.xlu0 %1124  ;;  %v1128_v4 = vpop.xlane.xlu1 %1127  ;;  %v613_v60 = vmul.f32 0.0, %v610_v63  ;;  %v614_v59 = vmul.f32 0.0, %v611_v13  ;;  %v1560_v48 = vsel %vm556_vm1, %v1472_v38, 0.0  ;;  %v1607_v63 = vld [vmem:[#allocation2 + $0x3a] sm:$0xff]  ;;  %p2842_p13 = pnand %p2841_p12, %p2999_p4  ;;  %p2849_p3 = por %p2848_p2, %p2847_p1 }
 0x15e   : > { %v3925_v46 = vadd.f32 %v1125_v3, %v3724_v23  ;;  %v3928_v62 = vadd.f32 %v1128_v4, %v3727_v52  ;;  %v1470_v52 = vmul.f32 %v3766_v24, %v1433_v5  ;;  %v1437_v4 = vld [vmem:[#allocation2 + $0x181] sm:$0xff] }
 0x15f   : > { %616 = vst.msk [vmem:[#allocation2 + $0x199] sm:$0xff] %vm556_vm1, %v613_v60  ;;  %617 = vst.msk [vmem:[#allocation2 + $0x1a1] sm:$0xff] %vm556_vm1, %v614_v59  ;;  %v1474_v8 = vmul.f32 %v3766_v24, %v1437_v4  ;;  %v1643_v59 = vmul.f32 %v3971_v9, %v1606_v29  ;;  %p2843_p0 = pneg %p2842_p13 }
 0x160   : > { %1543 = vadd.xlane.f32.xlu0 %v1542_v19  ;;  %1546 = vadd.xlane.f32.xlu1 %v1545_v44  ;;  %v1554_v28 = vsel %vm556_vm1, %v1470_v52, 0.0  ;;  %v1438_v19 = vld [vmem:[#allocation2 + $0x189] sm:$0xff] }
 0x161   : > { %v1131_v23 = vpop.xlane.xlu0 %1130  ;;  %v1134_v55 = vpop.xlane.xlu1 %1133  ;;  %v1475_v45 = vmul.f32 %v3766_v24, %v1438_v19  ;;  %p2850_p5 = pnand %p2849_p3, %p2843_p0 }
 0x162   : > { %v3941_v31 = vadd.f32 %v1131_v23, %v3736_v7  ;;  %v3944_v14 = vadd.f32 %v1134_v55, %v3739_v18  ;;  %v1473_v7 = vmul.f32 %v3766_v24, %v1436_v27  ;;  %v1566_v55 = vsel %vm556_vm1, %v1474_v8, 0.0 }
 0x163   : > { %v1569_v24 = vsel %vm556_vm1, %v1475_v45, 0.0 }
 0x164   : > { %1549 = vadd.xlane.f32.xlu0 %v1548_v10  ;;  %1552 = vadd.xlane.f32.xlu1 %v1551_v25  ;;  %v1563_v22 = vsel %vm556_vm1, %v1473_v7, 0.0  ;;  %v1605_v10 = vld [vmem:[#allocation2 + $0x22] sm:$0xff]  ;;  %v1679_v7 = vsel %vm556_vm1, %v1643_v59, 0.0 }
 0x165   : > { %v1137_v15 = vpop.xlane.xlu0 %1136  ;;  %v1140_v39 = vpop.xlane.xlu1 %1139 }
 0x166   : > { %v3953_v18 = vadd.f32 %v1137_v15, %v3748_v16  ;;  %v3956_v3 = vadd.f32 %v1140_v39, %v3751_v21  ;;  %v1644_v15 = vmul.f32 %v3971_v9, %v1607_v63  ;;  %v1608_v39 = vld [vmem:[#allocation2 + $0x4a] sm:$0xff] }
 0x167   : > { %v1645_v19 = vmul.f32 %v3971_v9, %v1608_v39 }
 0x168   : > { %1555 = vadd.xlane.f32.xlu0 %v1554_v28  ;;  %1558 = vadd.xlane.f32.xlu1 %v1557_v54  ;;  %v1609_v28 = vld [vmem:[#allocation2 + $0x52] sm:$0xff]  ;;  %v1682_v4 = vsel %vm556_vm1, %v1644_v15, 0.0 }
 0x169   : > { %v1143_v44 = vpop.xlane.xlu0 %1142  ;;  %v1146_v5 = vpop.xlane.xlu1 %1145  ;;  %v1685_v45 = vsel %vm556_vm1, %v1645_v19, 0.0 }
 0x16a   : > { %v3963_v16 = vadd.f32 %v1143_v44, %v3758_v6  ;;  %v3966_v21 = vadd.f32 %v1146_v5, %v3761_v43  ;;  %v1641_v6 = vmul.f32 %v3971_v9, %v1604_v30  ;;  %v1642_v43 = vmul.f32 %v3971_v9, %v1605_v10  ;;  %v1610_v5 = vld [vmem:[#allocation2 + $0x62] sm:$0xff] }
 0x16b   : > { %v1646_v44 = vmul.f32 %v3971_v9, %v1609_v28  ;;  %v1647_v10 = vmul.f32 %v3971_v9, %v1610_v5 }
 0x16c   : > { %1561 = vadd.xlane.f32.xlu0 %v1560_v48  ;;  %1564 = vadd.xlane.f32.xlu1 %v1563_v22  ;;  %v1673_v27 = vsel %vm556_vm1, %v1641_v6, 0.0  ;;  %v1676_v60 = vsel %vm556_vm1, %v1642_v43, 0.0  ;;  %v1611_v48 = vld [vmem:[#allocation2 + $0x6a] sm:$0xff] }
 0x16d   : > { %v1149_v25 = vpop.xlane.xlu0 %1148  ;;  %v1152_v23 = vpop.xlane.xlu1 %1151  ;;  %v1688_v30 = vsel %vm556_vm1, %v1646_v44, 0.0  ;;  %v1691_v43 = vsel %vm556_vm1, %v1647_v10, 0.0 }
 0x16e   : > { %v3978_v52 = vadd.f32 %v1149_v25, %v3775_v34  ;;  %v3981_v42 = vadd.f32 %v1152_v23, %v3778_v2  ;;  %v1648_v25 = vmul.f32 %v3971_v9, %v1611_v48  ;;  %v1612_v23 = vld [vmem:[#allocation2 + $0x7a] sm:$0xff] }
 0x16f   : > { %v1649_v63 = vmul.f32 %v3971_v9, %v1612_v23 }
 0x170   : > { %1567 = vadd.xlane.f32.xlu0 %v1566_v55  ;;  %1570 = vadd.xlane.f32.xlu1 %v1569_v24  ;;  %v1613_v55 = vld [vmem:[#allocation2 + $0x82] sm:$0xff]  ;;  %v1694_v29 = vsel %vm556_vm1, %v1648_v25, 0.0 }
 0x171   : > { %v1155_v13 = vpop.xlane.xlu0 %1154  ;;  %v1158_v58 = vpop.xlane.xlu1 %1157  ;;  %v1697_v15 = vsel %vm556_vm1, %v1649_v63, 0.0 }
 0x172   : > { %v3988_v34 = vadd.f32 %v1155_v13, %v3787_v1  ;;  %v3991_v2 = vadd.f32 %v1158_v58, %v3790_v49  ;;  %v1650_v13 = vmul.f32 %v3971_v9, %v1613_v55  ;;  %v1614_v58 = vld [vmem:[#allocation2 + $0x92] sm:$0xff] }
 0x173   : > { %v1651_v28 = vmul.f32 %v3971_v9, %v1614_v58 }
 0x174   : > { %1674 = vadd.xlane.f32.xlu0 %v1673_v27  ;;  %1677 = vadd.xlane.f32.xlu1 %v1676_v60  ;;  %v1615_v27 = vld [vmem:[#allocation2 + $0x9a] sm:$0xff]  ;;  %v1700_v39 = vsel %vm556_vm1, %v1650_v13, 0.0 }
 0x175   : > { %v1161_v54 = vpop.xlane.xlu0 %1160  ;;  %v1164_v38 = vpop.xlane.xlu1 %1163  ;;  %v1703_v44 = vsel %vm556_vm1, %v1651_v28, 0.0 }
 0x176   : > { %v3998_v1 = vadd.f32 %v1161_v54, %v3799_v12  ;;  %v4001_v49 = vadd.f32 %v1164_v38, %v3802_v37  ;;  %v1652_v54 = vmul.f32 %v3971_v9, %v1615_v27  ;;  %v1616_v38 = vld [vmem:[#allocation2 + $0xaa] sm:$0xff] }
 0x177   : > { %v1653_v48 = vmul.f32 %v3971_v9, %v1616_v38 }
 0x178   : > { %1680 = vadd.xlane.f32.xlu0 %v1679_v7  ;;  %1683 = vadd.xlane.f32.xlu1 %v1682_v4  ;;  %v1617_v7 = vld [vmem:[#allocation2 + $0xb2] sm:$0xff]  ;;  %v1706_v5 = vsel %vm556_vm1, %v1652_v54, 0.0 }
 0x179   : > { %v1167_v22 = vpop.xlane.xlu0 %1166  ;;  %v1170_v8 = vpop.xlane.xlu1 %1169  ;;  %v1709_v25 = vsel %vm556_vm1, %v1653_v48, 0.0 }
 0x17a   : > { %v4008_v12 = vadd.f32 %v1167_v22, %v3811_v61  ;;  %v4011_v37 = vadd.f32 %v1170_v8, %v3814_v50  ;;  %v1654_v22 = vmul.f32 %v3971_v9, %v1617_v7  ;;  %v1618_v8 = vld [vmem:[#allocation2 + $0xc2] sm:$0xff] }
 0x17b   : > { %v1655_v55 = vmul.f32 %v3971_v9, %v1618_v8 }
 0x17c   : > { %1686 = vadd.xlane.f32.xlu0 %v1685_v45  ;;  %1689 = vadd.xlane.f32.xlu1 %v1688_v30  ;;  %v1619_v45 = vld [vmem:[#allocation2 + $0xca] sm:$0xff]  ;;  %v1712_v23 = vsel %vm556_vm1, %v1654_v22, 0.0 }
 0x17d   : > { %v1173_v24 = vpop.xlane.xlu0 %1172  ;;  %v1176_v6 = vpop.xlane.xlu1 %1175  ;;  %v1715_v13 = vsel %vm556_vm1, %v1655_v55, 0.0 }
 0x17e   : > { %v4018_v61 = vadd.f32 %v1173_v24, %v3823_v51  ;;  %v4021_v50 = vadd.f32 %v1176_v6, %v3826_v57  ;;  %v1656_v24 = vmul.f32 %v3971_v9, %v1619_v45  ;;  %v1620_v6 = vld [vmem:[#allocation2 + $0xda] sm:$0xff] }
 0x17f   : > { %v1657_v27 = vmul.f32 %v3971_v9, %v1620_v6 }
 0x180   : > { %1692 = vadd.xlane.f32.xlu0 %v1691_v43  ;;  %1695 = vadd.xlane.f32.xlu1 %v1694_v29  ;;  %v1621_v43 = vld [vmem:[#allocation2 + $0xe2] sm:$0xff]  ;;  %v1718_v58 = vsel %vm556_vm1, %v1656_v24, 0.0 }
 0x181   : > { %v1281_v60 = vpop.xlane.xlu0 %1280  ;;  %v1284_v59 = vpop.xlane.xlu1 %1283  ;;  %v1721_v54 = vsel %vm556_vm1, %v1657_v27, 0.0 }
 0x182   : > { %v4028_v51 = vadd.f32 %v1281_v60, %v3835_v32  ;;  %v4031_v57 = vadd.f32 %v1284_v59, %v3838_v41  ;;  %v1658_v60 = vmul.f32 %v3971_v9, %v1621_v43  ;;  %v4063_v59 = vld [vmem:[#allocation2 + $0xf2] sm:$0xff] }
 0x183   : > { %v1659_v7 = vmul.f32 %v3971_v9, %v4063_v59 }
 0x184   : > { %1698 = vadd.xlane.f32.xlu0 %v1697_v15  ;;  %1701 = vadd.xlane.f32.xlu1 %v1700_v39  ;;  %v4065_v15 = vld [vmem:[#allocation2 + $0xfa] sm:$0xff]  ;;  %v1724_v38 = vsel %vm556_vm1, %v1658_v60, 0.0 }
 0x185   : > { %v1287_v4 = vpop.xlane.xlu0 %1286  ;;  %v1290_v19 = vpop.xlane.xlu1 %1289  ;;  %v1727_v22 = vsel %vm556_vm1, %v1659_v7, 0.0  ;;  %v1631_v7 = vld [vmem:[#allocation2 + $0x15a] sm:$0xff] }
 0x186   : > { %v4038_v32 = vadd.f32 %v1287_v4, %v3848_v47  ;;  %v4041_v41 = vadd.f32 %v1290_v19, %v3851_v0  ;;  %v4079_v19 = vld [vmem:[#allocation2 + $0x10a] sm:$0xff] }
 0x187   : > { %v1661_v45 = vmul.f32 %v3971_v9, %v4079_v19 }
 0x188   : > { %1704 = vadd.xlane.f32.xlu0 %v1703_v44  ;;  %1707 = vadd.xlane.f32.xlu1 %v1706_v5  ;;  %v4081_v44 = vld [vmem:[#allocation2 + $0x112] sm:$0xff] }
 0x189   : > { %v1293_v30 = vpop.xlane.xlu0 %1292  ;;  %v1296_v10 = vpop.xlane.xlu1 %1295  ;;  %v1733_v24 = vsel %vm556_vm1, %v1661_v45, 0.0  ;;  %v1668_v45 = vmul.f32 %v3971_v9, %v1631_v7 }
 0x18a   : > { %v4048_v47 = vadd.f32 %v1293_v30, %v3861_v56  ;;  %v4051_v0 = vadd.f32 %v1296_v10, %v3864_v11  ;;  %v4095_v10 = vld [vmem:[#allocation2 + $0x122] sm:$0xff] }
 0x18b   : > { %v1663_v43 = vmul.f32 %v3971_v9, %v4095_v10 }
 0x18c   : > { %1710 = vadd.xlane.f32.xlu0 %v1709_v25  ;;  %1713 = vadd.xlane.f32.xlu1 %v1712_v23  ;;  %v4097_v25 = vld [vmem:[#allocation2 + $0x12a] sm:$0xff] }
 0x18d   : > { %v1299_v29 = vpop.xlane.xlu0 %1298  ;;  %v1302_v63 = vpop.xlane.xlu1 %1301  ;;  %v1739_v60 = vsel %vm556_vm1, %v1663_v43, 0.0  ;;  %v1754_v43 = vsel %vm556_vm1, %v1668_v45, 0.0 }
 0x18e   : > { %v4058_v56 = vadd.f32 %v1299_v29, %v3874_v40  ;;  %v4061_v11 = vadd.f32 %v1302_v63, %v3877_v20  ;;  %v1660_v40 = vmul.f32 %v3971_v9, %v4065_v15  ;;  %v4111_v63 = vld [vmem:[#allocation2 + $0x13a] sm:$0xff] }
 0x190   : > { %1716 = vadd.xlane.f32.xlu0 %v1715_v13  ;;  %1719 = vadd.xlane.f32.xlu1 %v1718_v58  ;;  %v1730_v8 = vsel %vm556_vm1, %v1660_v40, 0.0  ;;  %v4113_v13 = vld [vmem:[#allocation2 + $0x142] sm:$0xff] }
 0x191   : > { %v1305_v39 = vpop.xlane.xlu0 %1304  ;;  %v1308_v28 = vpop.xlane.xlu1 %1307 }
 0x192   : > { %v4074_v20 = vadd.f32 %v1305_v39, %v3887_v53  ;;  %v4077_v4 = vadd.f32 %v1308_v28, %v3890_v26  ;;  %v1662_v53 = vmul.f32 %v3971_v9, %v4081_v44  ;;  %v1665_v28 = vmul.f32 %v3971_v9, %v4111_v63 }
 0x194   : > { %1722 = vadd.xlane.f32.xlu0 %v1721_v54  ;;  %1725 = vadd.xlane.f32.xlu1 %v1724_v38  ;;  %v1736_v6 = vsel %vm556_vm1, %v1662_v53, 0.0  ;;  %v1630_v38 = vld [vmem:[#allocation2 + $0x152] sm:$0xff]  ;;  %v1632_v53 = vld [vmem:[#allocation2 + $0x16a] sm:$0xff] }
 0x195   : > { %v1311_v5 = vpop.xlane.xlu0 %1310  ;;  %v1314_v48 = vpop.xlane.xlu1 %1313 }
 0x196   : > { %v4090_v26 = vadd.f32 %v1311_v5, %v3900_v17  ;;  %v4093_v30 = vadd.f32 %v1314_v48, %v3903_v33  ;;  %v1664_v17 = vmul.f32 %v3971_v9, %v4097_v25  ;;  %v1745_v48 = vsel %vm556_vm1, %v1665_v28, 0.0 }
 0x198   : > { %1728 = vadd.xlane.f32.xlu0 %v1727_v22  ;;  %1731 = vadd.xlane.f32.xlu1 %v1730_v8  ;;  %v1742_v39 = vsel %vm556_vm1, %v1664_v17, 0.0  ;;  %v1667_v8 = vmul.f32 %v3971_v9, %v1630_v38  ;;  %v1669_v17 = vmul.f32 %v3971_v9, %v1632_v53 }
 0x199   : > { %v1317_v23 = vpop.xlane.xlu0 %1316  ;;  %v1320_v55 = vpop.xlane.xlu1 %1319 }
 0x19a   : > { %v4106_v33 = vadd.f32 %v1317_v23, %v3911_v35  ;;  %v4109_v29 = vadd.f32 %v1320_v55, %v3914_v36  ;;  %v1666_v35 = vmul.f32 %v3971_v9, %v4113_v13  ;;  %v1633_v23 = vld [vmem:[#allocation2 + $0x172] sm:$0xff] }
 0x19c   : > { %1734 = vadd.xlane.f32.xlu0 %v1733_v24  ;;  %1737 = vadd.xlane.f32.xlu1 %v1736_v6  ;;  %v1748_v22 = vsel %vm556_vm1, %v1666_v35, 0.0  ;;  %v1751_v6 = vsel %vm556_vm1, %v1667_v8, 0.0  ;;  %v1757_v35 = vsel %vm556_vm1, %v1669_v17, 0.0 }
 0x19d   : > { %v1323_v58 = vpop.xlane.xlu0 %1322  ;;  %v1326_v27 = vpop.xlane.xlu1 %1325 }
 0x19e   : > { %v4122_v36 = vadd.f32 %v1323_v58, %v3925_v46  ;;  %v4125_v54 = vadd.f32 %v1326_v27, %v3928_v62  ;;  %v1670_v58 = vmul.f32 %v3971_v9, %v1633_v23  ;;  %v1634_v27 = vld [vmem:[#allocation2 + $0x182] sm:$0xff] }
 0x19f   : > { %v1671_v7 = vmul.f32 %v3971_v9, %v1634_v27 }
 0x1a0   : > { %1740 = vadd.xlane.f32.xlu0 %v1739_v60  ;;  %1743 = vadd.xlane.f32.xlu1 %v1742_v39  ;;  %v1635_v60 = vld [vmem:[#allocation2 + $0x18a] sm:$0xff]  ;;  %v1760_v38 = vsel %vm556_vm1, %v1670_v58, 0.0 }
 0x1a1   : > { %v1329_v40 = vpop.xlane.xlu0 %1328  ;;  %v1332_v5 = vpop.xlane.xlu1 %1331  ;;  %v1763_v53 = vsel %vm556_vm1, %v1671_v7, 0.0 }
 0x1a2   : > { %v4132_v46 = vadd.f32 %v1329_v40, %v3941_v31  ;;  %v4135_v62 = vadd.f32 %v1332_v5, %v3944_v14  ;;  %v1672_v40 = vmul.f32 %v3971_v9, %v1635_v60  ;;  %v1802_v5 = vld [vmem:[#allocation2 + $0x30] sm:$0xff] }
 0x1a4   : > { %1746 = vadd.xlane.f32.xlu0 %v1745_v48  ;;  %1749 = vadd.xlane.f32.xlu1 %v1748_v22  ;;  %v4160_v48 = vld [vmem:[%s4894_s5 + $0x8] ss:$0 sm:$0xff]  ;;  %v1803_v22 = vld [vmem:[#allocation2 + $0x38] sm:$0xff]  ;;  %v1766_v9 = vsel %vm556_vm1, %v1672_v40, 0.0 }
 0x1a5   : > { %v1335_v55 = vpop.xlane.xlu0 %1334  ;;  %v1338_v24 = vpop.xlane.xlu1 %1337 }
 0x1a6   : > { %v4142_v31 = vadd.f32 %v1335_v55, %v3953_v18  ;;  %v4145_v14 = vadd.f32 %v1338_v24, %v3956_v3  ;;  %v1804_v24 = vld [vmem:[#allocation2 + $0x48] sm:$0xff] }
 0x1a7   : > { %v1842_v60 = vmul.f32 %v4160_v48, %v1804_v24 }
 0x1a8   : > { %1752 = vadd.xlane.f32.xlu0 %v1751_v6  ;;  %1755 = vadd.xlane.f32.xlu1 %v1754_v43  ;;  %v1805_v6 = vld [vmem:[#allocation2 + $0x50] sm:$0xff] }
 0x1a9   : > { %v1341_v39 = vpop.xlane.xlu0 %1340  ;;  %v1344_v28 = vpop.xlane.xlu1 %1343  ;;  %v1878_v40 = vsel %vm556_vm1, %v1842_v60, 0.0 }
 0x1aa   : > { %v4152_v18 = vadd.f32 %v1341_v39, %v3963_v16  ;;  %v4155_v3 = vadd.f32 %v1344_v28, %v3966_v21  ;;  %v1840_v16 = vmul.f32 %v4160_v48, %v1802_v5  ;;  %v1841_v21 = vmul.f32 %v4160_v48, %v1803_v22  ;;  %v1806_v28 = vld [vmem:[#allocation2 + $0x60] sm:$0xff] }
 0x1ab   : > { %v1843_v39 = vmul.f32 %v4160_v48, %v1805_v6  ;;  %v1844_v22 = vmul.f32 %v4160_v48, %v1806_v28 }
 0x1ac   : > { %1758 = vadd.xlane.f32.xlu0 %v1757_v35  ;;  %1761 = vadd.xlane.f32.xlu1 %v1760_v38  ;;  %v1872_v58 = vsel %vm556_vm1, %v1840_v16, 0.0  ;;  %v1875_v27 = vsel %vm556_vm1, %v1841_v21, 0.0  ;;  %v1807_v35 = vld [vmem:[#allocation2 + $0x68] sm:$0xff] }
 0x1ad   : > { %v1347_v8 = vpop.xlane.xlu0 %1346  ;;  %v1350_v45 = vpop.xlane.xlu1 %1349  ;;  %v1881_v5 = vsel %vm556_vm1, %v1843_v39, 0.0  ;;  %v1884_v21 = vsel %vm556_vm1, %v1844_v22, 0.0 }
 0x1ae   : > { %v4167_v23 = vadd.f32 %v1347_v8, %v3978_v52  ;;  %v4170_v55 = vadd.f32 %v1350_v45, %v3981_v42  ;;  %v1845_v8 = vmul.f32 %v4160_v48, %v1807_v35  ;;  %v1808_v45 = vld [vmem:[#allocation2 + $0x78] sm:$0xff] }
 0x1af   : > { %v1846_v6 = vmul.f32 %v4160_v48, %v1808_v45 }
 0x1b0   : > { %1764 = vadd.xlane.f32.xlu0 %v1763_v53  ;;  %1767 = vadd.xlane.f32.xlu1 %v1766_v9  ;;  %v1809_v53 = vld [vmem:[#allocation2 + $0x80] sm:$0xff]  ;;  %v1887_v24 = vsel %vm556_vm1, %v1845_v8, 0.0 }
 0x1b1   : > { %v1353_v43 = vpop.xlane.xlu0 %1352  ;;  %v1356_v17 = vpop.xlane.xlu1 %1355  ;;  %v1890_v39 = vsel %vm556_vm1, %v1846_v6, 0.0 }
 0x1b2   : > { %v4177_v52 = vadd.f32 %v1353_v43, %v3988_v34  ;;  %v4180_v42 = vadd.f32 %v1356_v17, %v3991_v2  ;;  %v1847_v43 = vmul.f32 %v4160_v48, %v1809_v53  ;;  %v1810_v17 = vld [vmem:[#allocation2 + $0x90] sm:$0xff] }
 0x1b3   : > { %v1848_v35 = vmul.f32 %v4160_v48, %v1810_v17 }
 0x1b4   : > { %1873 = vadd.xlane.f32.xlu0 %v1872_v58  ;;  %1876 = vadd.xlane.f32.xlu1 %v1875_v27  ;;  %v1811_v58 = vld [vmem:[#allocation2 + $0x98] sm:$0xff]  ;;  %v1893_v28 = vsel %vm556_vm1, %v1847_v43, 0.0 }
 0x1b5   : > { %v1359_v38 = vpop.xlane.xlu0 %1358  ;;  %v1362_v7 = vpop.xlane.xlu1 %1361  ;;  %v1896_v8 = vsel %vm556_vm1, %v1848_v35, 0.0 }
 0x1b6   : > { %v4187_v34 = vadd.f32 %v1359_v38, %v3998_v1  ;;  %v4190_v2 = vadd.f32 %v1362_v7, %v4001_v49  ;;  %v1849_v38 = vmul.f32 %v4160_v48, %v1811_v58  ;;  %v1812_v7 = vld [vmem:[#allocation2 + $0xa8] sm:$0xff] }
 0x1b7   : > { %v1850_v53 = vmul.f32 %v4160_v48, %v1812_v7 }
 0x1b8   : > { %1879 = vadd.xlane.f32.xlu0 %v1878_v40  ;;  %1882 = vadd.xlane.f32.xlu1 %v1881_v5  ;;  %v1813_v40 = vld [vmem:[#allocation2 + $0xb0] sm:$0xff]  ;;  %v1899_v45 = vsel %vm556_vm1, %v1849_v38, 0.0 }
 0x1b9   : > { %v1365_v9 = vpop.xlane.xlu0 %1364  ;;  %v1368_v16 = vpop.xlane.xlu1 %1367  ;;  %v1902_v43 = vsel %vm556_vm1, %v1850_v53, 0.0 }
 0x1ba   : > { %v4197_v1 = vadd.f32 %v1365_v9, %v4008_v12  ;;  %v4200_v49 = vadd.f32 %v1368_v16, %v4011_v37  ;;  %v1851_v9 = vmul.f32 %v4160_v48, %v1813_v40  ;;  %v1814_v16 = vld [vmem:[#allocation2 + $0xc0] sm:$0xff] }
 0x1bb   : > { %v1852_v58 = vmul.f32 %v4160_v48, %v1814_v16 }
 0x1bc   : > { %1885 = vadd.xlane.f32.xlu0 %v1884_v21  ;;  %1888 = vadd.xlane.f32.xlu1 %v1887_v24  ;;  %v1815_v21 = vld [vmem:[#allocation2 + $0xc8] sm:$0xff]  ;;  %v1905_v17 = vsel %vm556_vm1, %v1851_v9, 0.0 }
 0x1bd   : > { %v1371_v27 = vpop.xlane.xlu0 %1370  ;;  %v1374_v60 = vpop.xlane.xlu1 %1373  ;;  %v1908_v38 = vsel %vm556_vm1, %v1852_v58, 0.0 }
 0x1be   : > { %v4207_v12 = vadd.f32 %v1371_v27, %v4018_v61  ;;  %v4210_v37 = vadd.f32 %v1374_v60, %v4021_v50  ;;  %v1853_v27 = vmul.f32 %v4160_v48, %v1815_v21  ;;  %v1816_v60 = vld [vmem:[#allocation2 + $0xd8] sm:$0xff] }
 0x1bf   : > { %v1854_v40 = vmul.f32 %v4160_v48, %v1816_v60 }
 0x1c0   : > { %1891 = vadd.xlane.f32.xlu0 %v1890_v39  ;;  %1894 = vadd.xlane.f32.xlu1 %v1893_v28  ;;  %v1817_v39 = vld [vmem:[#allocation2 + $0xe0] sm:$0xff]  ;;  %v1911_v7 = vsel %vm556_vm1, %v1853_v27, 0.0 }
 0x1c1   : > { %v1478_v5 = vpop.xlane.xlu0 %1477  ;;  %v1481_v22 = vpop.xlane.xlu1 %1480  ;;  %v1914_v9 = vsel %vm556_vm1, %v1854_v40, 0.0 }
 0x1c2   : > { %v4217_v61 = vadd.f32 %v1478_v5, %v4028_v51  ;;  %v4220_v50 = vadd.f32 %v1481_v22, %v4031_v57  ;;  %v1855_v5 = vmul.f32 %v4160_v48, %v1817_v39  ;;  %v1818_v22 = vld [vmem:[#allocation2 + $0xf0] sm:$0xff] }
 0x1c3   : > { %v1856_v21 = vmul.f32 %v4160_v48, %v1818_v22 }
 0x1c4   : > { %1897 = vadd.xlane.f32.xlu0 %v1896_v8  ;;  %1900 = vadd.xlane.f32.xlu1 %v1899_v45  ;;  %v1819_v8 = vld [vmem:[#allocation2 + $0xf8] sm:$0xff]  ;;  %v1917_v16 = vsel %vm556_vm1, %v1855_v5, 0.0 }
 0x1c5   : > { %v1484_v24 = vpop.xlane.xlu0 %1483  ;;  %v1487_v6 = vpop.xlane.xlu1 %1486  ;;  %v1920_v27 = vsel %vm556_vm1, %v1856_v21, 0.0 }
 0x1c6   : > { %v4227_v51 = vadd.f32 %v1484_v24, %v4038_v32  ;;  %v4230_v57 = vadd.f32 %v1487_v6, %v4041_v41  ;;  %v1857_v24 = vmul.f32 %v4160_v48, %v1819_v8  ;;  %v1820_v6 = vld [vmem:[#allocation2 + $0x108] sm:$0xff] }
 0x1c7   : > { %v1858_v39 = vmul.f32 %v4160_v48, %v1820_v6 }
 0x1c8   : > { %1903 = vadd.xlane.f32.xlu0 %v1902_v43  ;;  %1906 = vadd.xlane.f32.xlu1 %v1905_v17  ;;  %v1821_v43 = vld [vmem:[#allocation2 + $0x110] sm:$0xff]  ;;  %v1923_v60 = vsel %vm556_vm1, %v1857_v24, 0.0 }
 0x1c9   : > { %v1490_v28 = vpop.xlane.xlu0 %1489  ;;  %v1493_v35 = vpop.xlane.xlu1 %1492  ;;  %v1926_v5 = vsel %vm556_vm1, %v1858_v39, 0.0 }
 0x1ca   : > { %v4237_v32 = vadd.f32 %v1490_v28, %v4048_v47  ;;  %v4240_v41 = vadd.f32 %v1493_v35, %v4051_v0  ;;  %v1859_v28 = vmul.f32 %v4160_v48, %v1821_v43  ;;  %v1822_v35 = vld [vmem:[#allocation2 + $0x120] sm:$0xff] }
 0x1cb   : > { %v1860_v8 = vmul.f32 %v4160_v48, %v1822_v35 }
 0x1cc   : > { %1909 = vadd.xlane.f32.xlu0 %v1908_v38  ;;  %1912 = vadd.xlane.f32.xlu1 %v1911_v7  ;;  %v1823_v38 = vld [vmem:[#allocation2 + $0x128] sm:$0xff]  ;;  %v1929_v22 = vsel %vm556_vm1, %v1859_v28, 0.0 }
 0x1cd   : > { %v1496_v45 = vpop.xlane.xlu0 %1495  ;;  %v1499_v53 = vpop.xlane.xlu1 %1498  ;;  %v1932_v24 = vsel %vm556_vm1, %v1860_v8, 0.0 }
 0x1ce   : > { %v4247_v47 = vadd.f32 %v1496_v45, %v4058_v56  ;;  %v4250_v0 = vadd.f32 %v1499_v53, %v4061_v11  ;;  %v1861_v45 = vmul.f32 %v4160_v48, %v1823_v38  ;;  %v1824_v53 = vld [vmem:[#allocation2 + $0x138] sm:$0xff] }
 0x1cf   : > { %v1862_v43 = vmul.f32 %v4160_v48, %v1824_v53 }
 0x1d0   : > { %1915 = vadd.xlane.f32.xlu0 %v1914_v9  ;;  %1918 = vadd.xlane.f32.xlu1 %v1917_v16  ;;  %v1825_v9 = vld [vmem:[#allocation2 + $0x140] sm:$0xff]  ;;  %v1935_v6 = vsel %vm556_vm1, %v1861_v45, 0.0 }
 0x1d1   : > { %v1502_v17 = vpop.xlane.xlu0 %1501  ;;  %v1505_v58 = vpop.xlane.xlu1 %1504  ;;  %v1938_v28 = vsel %vm556_vm1, %v1862_v43, 0.0 }
 0x1d2   : > { %v4257_v56 = vadd.f32 %v1502_v17, %v4074_v20  ;;  %v4260_v11 = vadd.f32 %v1505_v58, %v4077_v4  ;;  %v1863_v17 = vmul.f32 %v4160_v48, %v1825_v9  ;;  %v1826_v58 = vld [vmem:[#allocation2 + $0x150] sm:$0xff] }
 0x1d3   : > { %v1864_v38 = vmul.f32 %v4160_v48, %v1826_v58 }
 0x1d4   : > { %1921 = vadd.xlane.f32.xlu0 %v1920_v27  ;;  %1924 = vadd.xlane.f32.xlu1 %v1923_v60  ;;  %v1827_v27 = vld [vmem:[#allocation2 + $0x158] sm:$0xff]  ;;  %v1941_v35 = vsel %vm556_vm1, %v1863_v17, 0.0 }
 0x1d5   : > { %v1508_v7 = vpop.xlane.xlu0 %1507  ;;  %v1511_v40 = vpop.xlane.xlu1 %1510  ;;  %v1944_v45 = vsel %vm556_vm1, %v1864_v38, 0.0 }
 0x1d6   : > { %v4267_v20 = vadd.f32 %v1508_v7, %v4090_v26  ;;  %v4270_v4 = vadd.f32 %v1511_v40, %v4093_v30  ;;  %v1865_v7 = vmul.f32 %v4160_v48, %v1827_v27  ;;  %v1828_v40 = vld [vmem:[#allocation2 + $0x168] sm:$0xff] }
 0x1d7   : > { %v1866_v9 = vmul.f32 %v4160_v48, %v1828_v40 }
 0x1d8   : > { %1927 = vadd.xlane.f32.xlu0 %v1926_v5  ;;  %1930 = vadd.xlane.f32.xlu1 %v1929_v22  ;;  %v1829_v5 = vld [vmem:[#allocation2 + $0x170] sm:$0xff]  ;;  %v1947_v53 = vsel %vm556_vm1, %v1865_v7, 0.0 }
 0x1d9   : > { %v1514_v16 = vpop.xlane.xlu0 %1513  ;;  %v1517_v21 = vpop.xlane.xlu1 %1516  ;;  %v1950_v17 = vsel %vm556_vm1, %v1866_v9, 0.0 }
 0x1da   : > { %v4277_v26 = vadd.f32 %v1514_v16, %v4106_v33  ;;  %v4280_v30 = vadd.f32 %v1517_v21, %v4109_v29  ;;  %v1867_v16 = vmul.f32 %v4160_v48, %v1829_v5  ;;  %v1830_v21 = vld [vmem:[#allocation2 + $0x180] sm:$0xff] }
 0x1db   : > { %v1868_v27 = vmul.f32 %v4160_v48, %v1830_v21 }
 0x1dc   : > { %1933 = vadd.xlane.f32.xlu0 %v1932_v24  ;;  %1936 = vadd.xlane.f32.xlu1 %v1935_v6  ;;  %v1831_v24 = vld [vmem:[#allocation2 + $0x188] sm:$0xff]  ;;  %v1953_v58 = vsel %vm556_vm1, %v1867_v16, 0.0 }
 0x1dd   : > { %v1520_v60 = vpop.xlane.xlu0 %1519  ;;  %v1523_v39 = vpop.xlane.xlu1 %1522  ;;  %v1956_v7 = vsel %vm556_vm1, %v1868_v27, 0.0 }
 0x1de   : > { %v4287_v33 = vadd.f32 %v1520_v60, %v4122_v36  ;;  %v4290_v29 = vadd.f32 %v1523_v39, %v4125_v54  ;;  %v1869_v60 = vmul.f32 %v4160_v48, %v1831_v24  ;;  %v1832_v39 = vld [vmem:[#allocation2 + $0x198] sm:$0xff] }
 0x1df   : > { %v1870_v5 = vmul.f32 %v4160_v48, %v1832_v39 }
 0x1e0   : > { %1939 = vadd.xlane.f32.xlu0 %v1938_v28  ;;  %1942 = vadd.xlane.f32.xlu1 %v1941_v35  ;;  %v1833_v28 = vld [vmem:[#allocation2 + $0x1a0] sm:$0xff]  ;;  %v1959_v40 = vsel %vm556_vm1, %v1869_v60, 0.0 }
 0x1e1   : > { %v1526_v22 = vpop.xlane.xlu0 %1525  ;;  %v1529_v8 = vpop.xlane.xlu1 %1528  ;;  %v1962_v21 = vsel %vm556_vm1, %v1870_v5, 0.0 }
 0x1e2   : > { %v4297_v36 = vadd.f32 %v1526_v22, %v4132_v46  ;;  %v4300_v54 = vadd.f32 %v1529_v8, %v4135_v62  ;;  %v1871_v22 = vmul.f32 %v4160_v48, %v1833_v28  ;;  %v2000_v8 = vld [vmem:[#allocation2 + $0x31] sm:$0xff] }
 0x1e4   : > { %1945 = vadd.xlane.f32.xlu0 %v1944_v45  ;;  %1948 = vadd.xlane.f32.xlu1 %v1947_v53  ;;  %v4325_v45 = vld [vmem:[%s4894_s5 + $0x9] ss:$0 sm:$0xff]  ;;  %v2001_v53 = vld [vmem:[#allocation2 + $0x39] sm:$0xff]  ;;  %v1965_v48 = vsel %vm556_vm1, %v1871_v22, 0.0 }
 0x1e5   : > { %v1532_v6 = vpop.xlane.xlu0 %1531  ;;  %v1535_v43 = vpop.xlane.xlu1 %1534 }
 0x1e6   : > { %v4307_v46 = vadd.f32 %v1532_v6, %v4142_v31  ;;  %v4310_v62 = vadd.f32 %v1535_v43, %v4145_v14  ;;  %v2002_v43 = vld [vmem:[#allocation2 + $0x49] sm:$0xff] }
 0x1e7   : > { %v2039_v28 = vmul.f32 %v4325_v45, %v2002_v43 }
 0x1e8   : > { %1951 = vadd.xlane.f32.xlu0 %v1950_v17  ;;  %1954 = vadd.xlane.f32.xlu1 %v1953_v58  ;;  %v2003_v17 = vld [vmem:[#allocation2 + $0x51] sm:$0xff] }
 0x1e9   : > { %v1538_v35 = vpop.xlane.xlu0 %1537  ;;  %v1541_v38 = vpop.xlane.xlu1 %1540  ;;  %v2075_v22 = vsel %vm556_vm1, %v2039_v28, 0.0 }
 0x1ea   : > { %v4317_v31 = vadd.f32 %v1538_v35, %v4152_v18  ;;  %v4320_v14 = vadd.f32 %v1541_v38, %v4155_v3  ;;  %v2037_v18 = vmul.f32 %v4325_v45, %v2000_v8  ;;  %v2038_v3 = vmul.f32 %v4325_v45, %v2001_v53  ;;  %v2004_v38 = vld [vmem:[#allocation2 + $0x61] sm:$0xff] }
 0x1eb   : > { %v2040_v35 = vmul.f32 %v4325_v45, %v2003_v17  ;;  %v2041_v53 = vmul.f32 %v4325_v45, %v2004_v38 }
 0x1ec   : > { %1957 = vadd.xlane.f32.xlu0 %v1956_v7  ;;  %1960 = vadd.xlane.f32.xlu1 %v1959_v40  ;;  %v2069_v60 = vsel %vm556_vm1, %v2037_v18, 0.0  ;;  %v2072_v39 = vsel %vm556_vm1, %v2038_v3, 0.0  ;;  %v2005_v7 = vld [vmem:[#allocation2 + $0x69] sm:$0xff] }
 0x1ed   : > { %v1544_v9 = vpop.xlane.xlu0 %1543  ;;  %v1547_v16 = vpop.xlane.xlu1 %1546  ;;  %v2078_v8 = vsel %vm556_vm1, %v2040_v35, 0.0  ;;  %v2081_v3 = vsel %vm556_vm1, %v2041_v53, 0.0 }
 0x1ee   : > { %v4332_v24 = vadd.f32 %v1544_v9, %v4167_v23  ;;  %v4335_v6 = vadd.f32 %v1547_v16, %v4170_v55  ;;  %v2042_v9 = vmul.f32 %v4325_v45, %v2005_v7  ;;  %v2006_v16 = vld [vmem:[#allocation2 + $0x79] sm:$0xff] }
 0x1ef   : > { %v2043_v17 = vmul.f32 %v4325_v45, %v2006_v16 }
 0x1f0   : > { %1963 = vadd.xlane.f32.xlu0 %v1962_v21  ;;  %1966 = vadd.xlane.f32.xlu1 %v1965_v48  ;;  %v2007_v21 = vld [vmem:[#allocation2 + $0x81] sm:$0xff]  ;;  %v2084_v43 = vsel %vm556_vm1, %v2042_v9, 0.0 }
 0x1f1   : > { %v1550_v58 = vpop.xlane.xlu0 %1549  ;;  %v1553_v27 = vpop.xlane.xlu1 %1552  ;;  %v2087_v35 = vsel %vm556_vm1, %v2043_v17, 0.0 }
 0x1f2   : > { %v4342_v23 = vadd.f32 %v1550_v58, %v4177_v52  ;;  %v4345_v55 = vadd.f32 %v1553_v27, %v4180_v42  ;;  %v2044_v58 = vmul.f32 %v4325_v45, %v2007_v21  ;;  %v2008_v27 = vld [vmem:[#allocation2 + $0x91] sm:$0xff] }
 0x1f3   : > { %v2045_v7 = vmul.f32 %v4325_v45, %v2008_v27 }
 0x1f4   : > { %2070 = vadd.xlane.f32.xlu0 %v2069_v60  ;;  %2073 = vadd.xlane.f32.xlu1 %v2072_v39  ;;  %v2009_v60 = vld [vmem:[#allocation2 + $0x99] sm:$0xff]  ;;  %v2090_v38 = vsel %vm556_vm1, %v2044_v58, 0.0 }
 0x1f5   : > { %v1556_v40 = vpop.xlane.xlu0 %1555  ;;  %v1559_v5 = vpop.xlane.xlu1 %1558  ;;  %v2093_v9 = vsel %vm556_vm1, %v2045_v7, 0.0 }
 0x1f6   : > { %v4352_v52 = vadd.f32 %v1556_v40, %v4187_v34  ;;  %v4355_v42 = vadd.f32 %v1559_v5, %v4190_v2  ;;  %v2046_v40 = vmul.f32 %v4325_v45, %v2009_v60  ;;  %v2010_v5 = vld [vmem:[#allocation2 + $0xa9] sm:$0xff] }
 0x1f7   : > { %v2047_v21 = vmul.f32 %v4325_v45, %v2010_v5 }
 0x1f8   : > { %2076 = vadd.xlane.f32.xlu0 %v2075_v22  ;;  %2079 = vadd.xlane.f32.xlu1 %v2078_v8  ;;  %v2011_v22 = vld [vmem:[#allocation2 + $0xb1] sm:$0xff]  ;;  %v2096_v16 = vsel %vm556_vm1, %v2046_v40, 0.0 }
 0x1f9   : > { %v1562_v48 = vpop.xlane.xlu0 %1561  ;;  %v1565_v18 = vpop.xlane.xlu1 %1564  ;;  %v2099_v58 = vsel %vm556_vm1, %v2047_v21, 0.0 }
 0x1fa   : > { %v4362_v34 = vadd.f32 %v1562_v48, %v4197_v1  ;;  %v4365_v2 = vadd.f32 %v1565_v18, %v4200_v49  ;;  %v2048_v48 = vmul.f32 %v4325_v45, %v2011_v22  ;;  %v2012_v18 = vld [vmem:[#allocation2 + $0xc1] sm:$0xff] }
 0x1fb   : > { %v2049_v60 = vmul.f32 %v4325_v45, %v2012_v18 }
 0x1fc   : > { %2082 = vadd.xlane.f32.xlu0 %v2081_v3  ;;  %2085 = vadd.xlane.f32.xlu1 %v2084_v43  ;;  %v2013_v3 = vld [vmem:[#allocation2 + $0xc9] sm:$0xff]  ;;  %v2102_v27 = vsel %vm556_vm1, %v2048_v48, 0.0 }
 0x1fd   : > { %v1568_v39 = vpop.xlane.xlu0 %1567  ;;  %v1571_v28 = vpop.xlane.xlu1 %1570  ;;  %v2105_v40 = vsel %vm556_vm1, %v2049_v60, 0.0 }
 0x1fe   : > { %v4372_v1 = vadd.f32 %v1568_v39, %v4207_v12  ;;  %v4375_v49 = vadd.f32 %v1571_v28, %v4210_v37  ;;  %v2050_v39 = vmul.f32 %v4325_v45, %v2013_v3  ;;  %v2014_v28 = vld [vmem:[#allocation2 + $0xd9] sm:$0xff] }
 0x1ff   : > { %v2051_v22 = vmul.f32 %v4325_v45, %v2014_v28 }
 0x200   : > { %2088 = vadd.xlane.f32.xlu0 %v2087_v35  ;;  %2091 = vadd.xlane.f32.xlu1 %v2090_v38  ;;  %v2015_v35 = vld [vmem:[#allocation2 + $0xe1] sm:$0xff]  ;;  %v2108_v5 = vsel %vm556_vm1, %v2050_v39, 0.0 }
 0x201   : > { %v1675_v8 = vpop.xlane.xlu0 %1674  ;;  %v1678_v53 = vpop.xlane.xlu1 %1677  ;;  %v2111_v48 = vsel %vm556_vm1, %v2051_v22, 0.0 }
 0x202   : > { %v4382_v12 = vadd.f32 %v1675_v8, %v4217_v61  ;;  %v4385_v37 = vadd.f32 %v1678_v53, %v4220_v50  ;;  %v2052_v8 = vmul.f32 %v4325_v45, %v2015_v35  ;;  %v2016_v53 = vld [vmem:[#allocation2 + $0xf1] sm:$0xff] }
 0x203   : > { %v2053_v3 = vmul.f32 %v4325_v45, %v2016_v53 }
 0x204   : > { %2094 = vadd.xlane.f32.xlu0 %v2093_v9  ;;  %2097 = vadd.xlane.f32.xlu1 %v2096_v16  ;;  %v2017_v9 = vld [vmem:[#allocation2 + $0xf9] sm:$0xff]  ;;  %v2114_v18 = vsel %vm556_vm1, %v2052_v8, 0.0 }
 0x205   : > { %v1681_v43 = vpop.xlane.xlu0 %1680  ;;  %v1684_v17 = vpop.xlane.xlu1 %1683  ;;  %v2117_v39 = vsel %vm556_vm1, %v2053_v3, 0.0 }
 0x206   : > { %v4392_v61 = vadd.f32 %v1681_v43, %v4227_v51  ;;  %v4395_v50 = vadd.f32 %v1684_v17, %v4230_v57  ;;  %v2054_v43 = vmul.f32 %v4325_v45, %v2017_v9  ;;  %v2018_v17 = vld [vmem:[#allocation2 + $0x109] sm:$0xff] }
 0x207   : > { %v2055_v35 = vmul.f32 %v4325_v45, %v2018_v17 }
 0x208   : > { %2100 = vadd.xlane.f32.xlu0 %v2099_v58  ;;  %2103 = vadd.xlane.f32.xlu1 %v2102_v27  ;;  %v2019_v58 = vld [vmem:[#allocation2 + $0x111] sm:$0xff]  ;;  %v2120_v28 = vsel %vm556_vm1, %v2054_v43, 0.0 }
 0x209   : > { %v1687_v38 = vpop.xlane.xlu0 %1686  ;;  %v1690_v7 = vpop.xlane.xlu1 %1689  ;;  %v2123_v8 = vsel %vm556_vm1, %v2055_v35, 0.0 }
 0x20a   : > { %v4402_v51 = vadd.f32 %v1687_v38, %v4237_v32  ;;  %v4405_v57 = vadd.f32 %v1690_v7, %v4240_v41  ;;  %v2056_v38 = vmul.f32 %v4325_v45, %v2019_v58  ;;  %v2020_v7 = vld [vmem:[#allocation2 + $0x121] sm:$0xff] }
 0x20b   : > { %v2057_v9 = vmul.f32 %v4325_v45, %v2020_v7 }
 0x20c   : > { %2106 = vadd.xlane.f32.xlu0 %v2105_v40  ;;  %2109 = vadd.xlane.f32.xlu1 %v2108_v5  ;;  %v2021_v40 = vld [vmem:[#allocation2 + $0x129] sm:$0xff]  ;;  %v2126_v53 = vsel %vm556_vm1, %v2056_v38, 0.0 }
 0x20d   : > { %v1693_v16 = vpop.xlane.xlu0 %1692  ;;  %v1696_v21 = vpop.xlane.xlu1 %1695  ;;  %v2129_v43 = vsel %vm556_vm1, %v2057_v9, 0.0 }
 0x20e   : > { %v4412_v32 = vadd.f32 %v1693_v16, %v4247_v47  ;;  %v4415_v41 = vadd.f32 %v1696_v21, %v4250_v0  ;;  %v2058_v16 = vmul.f32 %v4325_v45, %v2021_v40  ;;  %v2022_v21 = vld [vmem:[#allocation2 + $0x139] sm:$0xff] }
 0x20f   : > { %v2059_v58 = vmul.f32 %v4325_v45, %v2022_v21 }
 0x210   : > { %2112 = vadd.xlane.f32.xlu0 %v2111_v48  ;;  %2115 = vadd.xlane.f32.xlu1 %v2114_v18  ;;  %v2023_v48 = vld [vmem:[#allocation2 + $0x141] sm:$0xff]  ;;  %v2132_v17 = vsel %vm556_vm1, %v2058_v16, 0.0 }
 0x211   : > { %v1699_v27 = vpop.xlane.xlu0 %1698  ;;  %v1702_v60 = vpop.xlane.xlu1 %1701  ;;  %v2135_v7 = vsel %vm556_vm1, %v2059_v58, 0.0 }
 0x212   : > { %v4422_v47 = vadd.f32 %v1699_v27, %v4257_v56  ;;  %v4425_v0 = vadd.f32 %v1702_v60, %v4260_v11  ;;  %v2060_v27 = vmul.f32 %v4325_v45, %v2023_v48  ;;  %v2197_v60 = vld [vmem:[#allocation2 + $0x32] sm:$0xff] }
 0x214   : > { %2118 = vadd.xlane.f32.xlu0 %v2117_v39  ;;  %2121 = vadd.xlane.f32.xlu1 %v2120_v28  ;;  %v4450_v39 = vld [vmem:[%s4894_s5 + $0xa] ss:$0 sm:$0xff]  ;;  %v2198_v28 = vld [vmem:[#allocation2 + $0x3a] sm:$0xff]  ;;  %v2138_v40 = vsel %vm556_vm1, %v2060_v27, 0.0 }
 0x215   : > { %v1705_v5 = vpop.xlane.xlu0 %1704  ;;  %v1708_v22 = vpop.xlane.xlu1 %1707 }
 0x216   : > { %v4432_v56 = vadd.f32 %v1705_v5, %v4267_v20  ;;  %v4435_v11 = vadd.f32 %v1708_v22, %v4270_v4 }
 0x218   : > { %2124 = vadd.xlane.f32.xlu0 %v2123_v8  ;;  %2127 = vadd.xlane.f32.xlu1 %v2126_v53  ;;  %v2199_v8 = vld [vmem:[#allocation2 + $0x4a] sm:$0xff]  ;;  %v2200_v53 = vld [vmem:[#allocation2 + $0x52] sm:$0xff] }
 0x219   : > { %v1711_v18 = vpop.xlane.xlu0 %1710  ;;  %v1714_v3 = vpop.xlane.xlu1 %1713 }
 0x21a   : > { %v4442_v20 = vadd.f32 %v1711_v18, %v4277_v26  ;;  %v4445_v4 = vadd.f32 %v1714_v3, %v4280_v30  ;;  %v2234_v26 = vmul.f32 %v4450_v39, %v2197_v60  ;;  %v2235_v30 = vmul.f32 %v4450_v39, %v2198_v28 }
 0x21b   : > { %v2236_v18 = vmul.f32 %v4450_v39, %v2199_v8  ;;  %v2237_v3 = vmul.f32 %v4450_v39, %v2200_v53  ;;  %v2250_v60 = vmul.f32 %v4450_v39, %v4063_v59  ;;  %v2251_v28 = vmul.f32 %v4450_v39, %v4065_v15 }
 0x21c   : > { %2130 = vadd.xlane.f32.xlu0 %v2129_v43  ;;  %2133 = vadd.xlane.f32.xlu1 %v2132_v17  ;;  %v2266_v21 = vsel %vm556_vm1, %v2234_v26, 0.0  ;;  %v2269_v48 = vsel %vm556_vm1, %v2235_v30, 0.0  ;;  %v2252_v59 = vmul.f32 %v4450_v39, %v4079_v19  ;;  %v2253_v15 = vmul.f32 %v4450_v39, %v4081_v44  ;;  %v2024_v26 = vld [vmem:[#allocation2 + $0x151] sm:$0xff]  ;;  %v2025_v30 = vld [vmem:[#allocation2 + $0x159] sm:$0xff] }
 0x21d   : > { %v1717_v35 = vpop.xlane.xlu0 %1716  ;;  %v1720_v38 = vpop.xlane.xlu1 %1719  ;;  %v2272_v58 = vsel %vm556_vm1, %v2236_v18, 0.0  ;;  %v2275_v27 = vsel %vm556_vm1, %v2237_v3, 0.0  ;;  %v2061_v19 = vmul.f32 %v4325_v45, %v2024_v26  ;;  %v2062_v44 = vmul.f32 %v4325_v45, %v2025_v30 }
 0x21e   : > { %v4457_v5 = vadd.f32 %v1717_v35, %v4287_v33  ;;  %v4460_v22 = vadd.f32 %v1720_v38, %v4290_v29 }
 0x220   : > { %2136 = vadd.xlane.f32.xlu0 %v2135_v7  ;;  %2139 = vadd.xlane.f32.xlu1 %v2138_v40  ;;  %v2314_v7 = vsel %vm556_vm1, %v2250_v60, 0.0  ;;  %v2317_v40 = vsel %vm556_vm1, %v2251_v28, 0.0 }
 0x221   : > { %v1723_v9 = vpop.xlane.xlu0 %1722  ;;  %v1726_v16 = vpop.xlane.xlu1 %1725 }
 0x222   : > { %v4467_v33 = vadd.f32 %v1723_v9, %v4297_v36  ;;  %v4470_v29 = vadd.f32 %v1726_v16, %v4300_v54  ;;  %v2320_v9 = vsel %vm556_vm1, %v2252_v59, 0.0  ;;  %v2323_v16 = vsel %vm556_vm1, %v2253_v15, 0.0  ;;  %v2026_v59 = vld [vmem:[#allocation2 + $0x169] sm:$0xff]  ;;  %v2027_v15 = vld [vmem:[#allocation2 + $0x171] sm:$0xff] }
 0x224   : > { %2267 = vadd.xlane.f32.xlu0 %v2266_v21  ;;  %2270 = vadd.xlane.f32.xlu1 %v2269_v48  ;;  %v2201_v21 = vld [vmem:[#allocation2 + $0x62] sm:$0xff]  ;;  %v2202_v48 = vld [vmem:[#allocation2 + $0x6a] sm:$0xff] }
 0x225   : > { %v1729_v43 = vpop.xlane.xlu0 %1728  ;;  %v1732_v17 = vpop.xlane.xlu1 %1731 }
 0x226   : > { %v4479_v36 = vadd.f32 %v1729_v43, %v4307_v46  ;;  %v4482_v54 = vadd.f32 %v1732_v17, %v4310_v62  ;;  %v2141_v43 = vsel %vm556_vm1, %v2061_v19, 0.0  ;;  %v2144_v17 = vsel %vm556_vm1, %v2062_v44, 0.0 }
 0x228   : > { %2273 = vadd.xlane.f32.xlu0 %v2272_v58  ;;  %2276 = vadd.xlane.f32.xlu1 %v2275_v27  ;;  %v2238_v58 = vmul.f32 %v4450_v39, %v2201_v21  ;;  %v2239_v27 = vmul.f32 %v4450_v39, %v2202_v48 }
 0x229   : > { %v1735_v35 = vpop.xlane.xlu0 %1734  ;;  %v1738_v38 = vpop.xlane.xlu1 %1737 }
 0x22a   : > { %v4491_v46 = vadd.f32 %v1735_v35, %v4317_v31  ;;  %v4494_v62 = vadd.f32 %v1738_v38, %v4320_v14  ;;  %v2278_v35 = vsel %vm556_vm1, %v2238_v58, 0.0  ;;  %v2281_v38 = vsel %vm556_vm1, %v2239_v27, 0.0 }
 0x22c   : > { %2315 = vadd.xlane.f32.xlu0 %v2314_v7  ;;  %2318 = vadd.xlane.f32.xlu1 %v2317_v40  ;;  %v2254_v7 = vmul.f32 %v4450_v39, %v4095_v10  ;;  %v2255_v40 = vmul.f32 %v4450_v39, %v4097_v25  ;;  %v2063_v10 = vmul.f32 %v4325_v45, %v2026_v59 }
 0x22d   : > { %v1741_v8 = vpop.xlane.xlu0 %1740  ;;  %v1744_v53 = vpop.xlane.xlu1 %1743  ;;  %v2064_v25 = vmul.f32 %v4325_v45, %v2027_v15 }
 0x22e   : > { %v4501_v31 = vadd.f32 %v1741_v8, %v4332_v24  ;;  %v4504_v14 = vadd.f32 %v1744_v53, %v4335_v6  ;;  %v2326_v8 = vsel %vm556_vm1, %v2254_v7, 0.0  ;;  %v2329_v53 = vsel %vm556_vm1, %v2255_v40, 0.0 }
 0x22f   : > { %v2147_v21 = vsel %vm556_vm1, %v2063_v10, 0.0  ;;  %v2150_v48 = vsel %vm556_vm1, %v2064_v25, 0.0 }
 0x230   : > { %2321 = vadd.xlane.f32.xlu0 %v2320_v9  ;;  %2324 = vadd.xlane.f32.xlu1 %v2323_v16  ;;  %v2203_v9 = vld [vmem:[#allocation2 + $0x7a] sm:$0xff]  ;;  %v2204_v16 = vld [vmem:[#allocation2 + $0x82] sm:$0xff] }
 0x231   : > { %v1747_v18 = vpop.xlane.xlu0 %1746  ;;  %v1750_v3 = vpop.xlane.xlu1 %1749 }
 0x232   : > { %v4511_v24 = vadd.f32 %v1747_v18, %v4342_v23  ;;  %v4514_v6 = vadd.f32 %v1750_v3, %v4345_v55  ;;  %v2240_v18 = vmul.f32 %v4450_v39, %v2203_v9  ;;  %v2241_v3 = vmul.f32 %v4450_v39, %v2204_v16 }
 0x234   : > { %2142 = vadd.xlane.f32.xlu0 %v2141_v43  ;;  %2145 = vadd.xlane.f32.xlu1 %v2144_v17  ;;  %v2284_v58 = vsel %vm556_vm1, %v2240_v18, 0.0  ;;  %v2287_v27 = vsel %vm556_vm1, %v2241_v3, 0.0 }
 0x235   : > { %v1753_v60 = vpop.xlane.xlu0 %1752  ;;  %v1756_v28 = vpop.xlane.xlu1 %1755 }
 0x236   : > { %v4523_v23 = vadd.f32 %v1753_v60, %v4352_v52  ;;  %v4526_v55 = vadd.f32 %v1756_v28, %v4355_v42  ;;  %v2256_v60 = vmul.f32 %v4450_v39, %v4111_v63  ;;  %v2257_v28 = vmul.f32 %v4450_v39, %v4113_v13 }
 0x238   : > { %2279 = vadd.xlane.f32.xlu0 %v2278_v35  ;;  %2282 = vadd.xlane.f32.xlu1 %v2281_v38  ;;  %v2028_v35 = vld [vmem:[#allocation2 + $0x181] sm:$0xff]  ;;  %v2029_v38 = vld [vmem:[#allocation2 + $0x189] sm:$0xff]  ;;  %v2332_v59 = vsel %vm556_vm1, %v2256_v60, 0.0  ;;  %v2335_v15 = vsel %vm556_vm1, %v2257_v28, 0.0 }
 0x239   : > { %v1759_v26 = vpop.xlane.xlu0 %1758  ;;  %v1762_v30 = vpop.xlane.xlu1 %1761  ;;  %v2065_v63 = vmul.f32 %v4325_v45, %v2028_v35  ;;  %v2066_v13 = vmul.f32 %v4325_v45, %v2029_v38 }
 0x23a   : > { %v4533_v52 = vadd.f32 %v1759_v26, %v4362_v34  ;;  %v4536_v42 = vadd.f32 %v1762_v30, %v4365_v2  ;;  %v2205_v26 = vld [vmem:[#allocation2 + $0x92] sm:$0xff]  ;;  %v2206_v30 = vld [vmem:[#allocation2 + $0x9a] sm:$0xff] }
 0x23b   : > { %v2153_v10 = vsel %vm556_vm1, %v2065_v63, 0.0  ;;  %v2156_v25 = vsel %vm556_vm1, %v2066_v13, 0.0  ;;  %v2242_v9 = vmul.f32 %v4450_v39, %v2205_v26  ;;  %v2243_v16 = vmul.f32 %v4450_v39, %v2206_v30 }
 0x23c   : > { %2327 = vadd.xlane.f32.xlu0 %v2326_v8  ;;  %2330 = vadd.xlane.f32.xlu1 %v2329_v53 }
 0x23d   : > { %v1765_v19 = vpop.xlane.xlu0 %1764  ;;  %v1768_v44 = vpop.xlane.xlu1 %1767  ;;  %v2290_v18 = vsel %vm556_vm1, %v2242_v9, 0.0  ;;  %v2293_v3 = vsel %vm556_vm1, %v2243_v16, 0.0 }
 0x23e   : > { %v4543_v34 = vadd.f32 %v1765_v19, %v4372_v1  ;;  %v4546_v2 = vadd.f32 %v1768_v44, %v4375_v49  ;;  %v2221_v19 = vld [vmem:[#allocation2 + $0x152] sm:$0xff]  ;;  %v2222_v44 = vld [vmem:[#allocation2 + $0x15a] sm:$0xff] }
 0x240   : > { %2148 = vadd.xlane.f32.xlu0 %v2147_v21  ;;  %2151 = vadd.xlane.f32.xlu1 %v2150_v48 }
 0x241   : > { %v1874_v43 = vpop.xlane.xlu0 %1873  ;;  %v1877_v17 = vpop.xlane.xlu1 %1876 }
 0x242   : > { %v4555_v1 = vadd.f32 %v1874_v43, %v4382_v12  ;;  %v4558_v49 = vadd.f32 %v1877_v17, %v4385_v37  ;;  %v2258_v43 = vmul.f32 %v4450_v39, %v2221_v19  ;;  %v2259_v17 = vmul.f32 %v4450_v39, %v2222_v44 }
 0x244   : > { %2285 = vadd.xlane.f32.xlu0 %v2284_v58  ;;  %2288 = vadd.xlane.f32.xlu1 %v2287_v27  ;;  %v2030_v58 = vld [vmem:[#allocation2 + $0x199] sm:$0xff]  ;;  %v2031_v27 = vld [vmem:[#allocation2 + $0x1a1] sm:$0xff]  ;;  %v2338_v35 = vsel %vm556_vm1, %v2258_v43, 0.0  ;;  %v2341_v38 = vsel %vm556_vm1, %v2259_v17, 0.0 }
 0x245   : > { %v1880_v7 = vpop.xlane.xlu0 %1879  ;;  %v1883_v40 = vpop.xlane.xlu1 %1882 }
 0x246   : > { %v4565_v12 = vadd.f32 %v1880_v7, %v4392_v61  ;;  %v4568_v37 = vadd.f32 %v1883_v40, %v4395_v50  ;;  %v2067_v7 = vmul.f32 %v4325_v45, %v2030_v58  ;;  %v2068_v40 = vmul.f32 %v4325_v45, %v2031_v27 }
 0x248   : > { %2333 = vadd.xlane.f32.xlu0 %v2332_v59  ;;  %2336 = vadd.xlane.f32.xlu1 %v2335_v15  ;;  %v2207_v59 = vld [vmem:[#allocation2 + $0xaa] sm:$0xff]  ;;  %v2208_v15 = vld [vmem:[#allocation2 + $0xb2] sm:$0xff]  ;;  %v2159_v26 = vsel %vm556_vm1, %v2067_v7, 0.0  ;;  %v2162_v30 = vsel %vm556_vm1, %v2068_v40, 0.0 }
 0x249   : > { %v1886_v8 = vpop.xlane.xlu0 %1885  ;;  %v1889_v53 = vpop.xlane.xlu1 %1888  ;;  %v2245_v45 = vmul.f32 %v4450_v39, %v2208_v15 }
 0x24a   : > { %v4575_v61 = vadd.f32 %v1886_v8, %v4402_v51  ;;  %v4578_v50 = vadd.f32 %v1889_v53, %v4405_v57  ;;  %v2244_v8 = vmul.f32 %v4450_v39, %v2207_v59  ;;  %v2223_v53 = vld [vmem:[#allocation2 + $0x16a] sm:$0xff] }
 0x24b   : > { %v2299_v19 = vsel %vm556_vm1, %v2245_v45, 0.0  ;;  %v2260_v44 = vmul.f32 %v4450_v39, %v2223_v53 }
 0x24c   : > { %2154 = vadd.xlane.f32.xlu0 %v2153_v10  ;;  %2157 = vadd.xlane.f32.xlu1 %v2156_v25  ;;  %v2224_v10 = vld [vmem:[#allocation2 + $0x172] sm:$0xff]  ;;  %v2296_v16 = vsel %vm556_vm1, %v2244_v8, 0.0 }
 0x24d   : > { %v1892_v21 = vpop.xlane.xlu0 %1891  ;;  %v1895_v48 = vpop.xlane.xlu1 %1894  ;;  %v2344_v17 = vsel %vm556_vm1, %v2260_v44, 0.0 }
 0x24e   : > { %v4585_v51 = vadd.f32 %v1892_v21, %v4412_v32  ;;  %v4588_v57 = vadd.f32 %v1895_v48, %v4415_v41  ;;  %v2261_v21 = vmul.f32 %v4450_v39, %v2224_v10  ;;  %v2209_v48 = vld [vmem:[#allocation2 + $0xc2] sm:$0xff] }
 0x24f   : > { %v2246_v27 = vmul.f32 %v4450_v39, %v2209_v48 }
 0x250   : > { %2291 = vadd.xlane.f32.xlu0 %v2290_v18  ;;  %2294 = vadd.xlane.f32.xlu1 %v2293_v3  ;;  %v2210_v18 = vld [vmem:[#allocation2 + $0xca] sm:$0xff]  ;;  %v2347_v58 = vsel %vm556_vm1, %v2261_v21, 0.0 }
 0x251   : > { %v1898_v60 = vpop.xlane.xlu0 %1897  ;;  %v1901_v28 = vpop.xlane.xlu1 %1900  ;;  %v2302_v40 = vsel %vm556_vm1, %v2246_v27, 0.0 }
 0x252   : > { %v4595_v32 = vadd.f32 %v1898_v60, %v4422_v47  ;;  %v4598_v41 = vadd.f32 %v1901_v28, %v4425_v0  ;;  %v2247_v60 = vmul.f32 %v4450_v39, %v2210_v18  ;;  %v2225_v28 = vld [vmem:[#allocation2 + $0x182] sm:$0xff] }
 0x253   : > { %v2262_v15 = vmul.f32 %v4450_v39, %v2225_v28 }
 0x254   : > { %2339 = vadd.xlane.f32.xlu0 %v2338_v35  ;;  %2342 = vadd.xlane.f32.xlu1 %v2341_v38  ;;  %v2226_v35 = vld [vmem:[#allocation2 + $0x18a] sm:$0xff]  ;;  %v2305_v59 = vsel %vm556_vm1, %v2247_v60, 0.0 }
 0x255   : > { %v1904_v63 = vpop.xlane.xlu0 %1903  ;;  %v1907_v13 = vpop.xlane.xlu1 %1906  ;;  %v2350_v45 = vsel %vm556_vm1, %v2262_v15, 0.0 }
 0x256   : > { %v4605_v47 = vadd.f32 %v1904_v63, %v4432_v56  ;;  %v4608_v0 = vadd.f32 %v1907_v13, %v4435_v11  ;;  %v2263_v63 = vmul.f32 %v4450_v39, %v2226_v35  ;;  %v2211_v13 = vld [vmem:[#allocation2 + $0xda] sm:$0xff] }
 0x257   : > { %v2248_v10 = vmul.f32 %v4450_v39, %v2211_v13 }
 0x258   : > { %2160 = vadd.xlane.f32.xlu0 %v2159_v26  ;;  %2163 = vadd.xlane.f32.xlu1 %v2162_v30  ;;  %v2212_v26 = vld [vmem:[#allocation2 + $0xe2] sm:$0xff]  ;;  %v2353_v53 = vsel %vm556_vm1, %v2263_v63, 0.0 }
 0x259   : > { %v1910_v25 = vpop.xlane.xlu0 %1909  ;;  %v1913_v9 = vpop.xlane.xlu1 %1912  ;;  %v2308_v21 = vsel %vm556_vm1, %v2248_v10, 0.0 }
 0x25a   : > { %v4615_v56 = vadd.f32 %v1910_v25, %v4442_v20  ;;  %v4618_v11 = vadd.f32 %v1913_v9, %v4445_v4  ;;  %v2249_v25 = vmul.f32 %v4450_v39, %v2212_v26  ;;  %v2227_v9 = vld [vmem:[#allocation2 + $0x19a] sm:$0xff] }
 0x25b   : > { %v2264_v18 = vmul.f32 %v4450_v39, %v2227_v9 }
 0x25c   : > { %2297 = vadd.xlane.f32.xlu0 %v2296_v16  ;;  %2300 = vadd.xlane.f32.xlu1 %v2299_v19  ;;  %v2228_v16 = vld [vmem:[#allocation2 + $0x1a2] sm:$0xff]  ;;  %v2311_v48 = vsel %vm556_vm1, %v2249_v25, 0.0 }
 0x25d   : > { %v1916_v3 = vpop.xlane.xlu0 %1915  ;;  %v1919_v43 = vpop.xlane.xlu1 %1918 }
 0x25e   : > { %v4625_v20 = vadd.f32 %v1916_v3, %v4457_v5  ;;  %v4628_v4 = vadd.f32 %v1919_v43, %v4460_v22  ;;  %v2265_v3 = vmul.f32 %v4450_v39, %v2228_v16 }
 0x260   : > { %2345 = vadd.xlane.f32.xlu0 %v2344_v17  ;;  %2348 = vadd.xlane.f32.xlu1 %v2347_v58  ;;  %v2356_v58 = vsel %vm556_vm1, %v2264_v18, 0.0  ;;  %v2359_v27 = vsel %vm556_vm1, %v2265_v3, 0.0 }
 0x261   : > { %v1922_v38 = vpop.xlane.xlu0 %1921  ;;  %v1925_v7 = vpop.xlane.xlu1 %1924 }
 0x262   : > { %v4635_v5 = vadd.f32 %v1922_v38, %v4467_v33  ;;  %v4638_v22 = vadd.f32 %v1925_v7, %v4470_v29 }
 0x264   : > { %2303 = vadd.xlane.f32.xlu0 %v2302_v40  ;;  %2306 = vadd.xlane.f32.xlu1 %v2305_v59 }
 0x265   : > { %v1928_v30 = vpop.xlane.xlu0 %1927  ;;  %v1931_v8 = vpop.xlane.xlu1 %1930 }
 0x266   : > { %v4645_v33 = vadd.f32 %v1928_v30, %v4479_v36  ;;  %v4648_v29 = vadd.f32 %v1931_v8, %v4482_v54 }
 0x268   : > { %2351 = vadd.xlane.f32.xlu0 %v2350_v45  ;;  %2354 = vadd.xlane.f32.xlu1 %v2353_v53 }
 0x269   : > { %v1934_v19 = vpop.xlane.xlu0 %1933  ;;  %v1937_v44 = vpop.xlane.xlu1 %1936 }
 0x26a   : > { %v4655_v36 = vadd.f32 %v1934_v19, %v4491_v46  ;;  %v4658_v54 = vadd.f32 %v1937_v44, %v4494_v62 }
 0x26c   : > { %2309 = vadd.xlane.f32.xlu0 %v2308_v21  ;;  %2312 = vadd.xlane.f32.xlu1 %v2311_v48 }
 0x26d   : > { %v1940_v43 = vpop.xlane.xlu0 %1939  ;;  %v1943_v17 = vpop.xlane.xlu1 %1942 }
 0x26e   : > { %v4663_v60 = vadd.f32 %v1940_v43, %v4501_v31  ;;  %v4666_v28 = vadd.f32 %v1943_v17, %v4504_v14 }
 0x270   : > { %2357 = vadd.xlane.f32.xlu0 %v2356_v58  ;;  %2360 = vadd.xlane.f32.xlu1 %v2359_v27 }
 0x271   : > { %v1946_v39 = vpop.xlane.xlu0 %1945  ;;  %v1949_v46 = vpop.xlane.xlu1 %1948 }
 0x272   : > { %v4669_v62 = vadd.f32 %v1946_v39, %v4511_v24  ;;  %v4672_v35 = vadd.f32 %v1949_v46, %v4514_v6  ;;  %v2426_v39 = vlaneseq }
 0x275   : > { %v1952_v38 = vpop.xlane.xlu0 %1951  ;;  %v1955_v7 = vpop.xlane.xlu1 %1954 }
 0x276   : > { %v4675_v40 = vadd.f32 %v1952_v38, %v4523_v23  ;;  %v4678_v31 = vadd.f32 %v1955_v7, %v4526_v55  ;;  %v2427_v7 = vand.u32 127, %v2426_v39 }
 0x279   : > { %v1958_v14 = vpop.xlane.xlu0 %1957  ;;  %v1961_v59 = vpop.xlane.xlu1 %1960 }
 0x27a   : > { %v4681_v15 = vadd.f32 %v1958_v14, %v4533_v52  ;;  %v4684_v63 = vadd.f32 %v1961_v59, %v4536_v42 }
 0x27d   : > { %v1964_v24 = vpop.xlane.xlu0 %1963  ;;  %v1967_v13 = vpop.xlane.xlu1 %1966 }
 0x27e   : > { %v4687_v6 = vadd.f32 %v1964_v24, %v4543_v34  ;;  %v4690_v26 = vadd.f32 %v1967_v13, %v4546_v2  ;;  %v2429_v24 = vshrl.u32 %v2426_v39, 7  ;;  %v2432_v13 = vadd.s32 4294967288, %v2427_v7 }
 0x281   : > { %v2071_v23 = vpop.xlane.xlu0 %2070  ;;  %v2074_v30 = vpop.xlane.xlu1 %2073 }
 0x282   : > { %v2165_v55 = vadd.f32 %v2071_v23, %v4555_v1  ;;  %v2166_v8 = vadd.f32 %v2074_v30, %v4558_v49 }
 0x285   : > { %v2077_v45 = vpop.xlane.xlu0 %2076  ;;  %v2080_v52 = vpop.xlane.xlu1 %2079 }
 0x286   : > { %v2167_v53 = vadd.f32 %v2077_v45, %v4565_v12  ;;  %v2168_v42 = vadd.f32 %v2080_v52, %v4568_v37 }
 0x289   : > { %v2083_v10 = vpop.xlane.xlu0 %2082  ;;  %v2086_v25 = vpop.xlane.xlu1 %2085 }
 0x28a   : > { %v4697_v34 = vadd.f32 %v2083_v10, %v4575_v61  ;;  %v4700_v2 = vadd.f32 %v2086_v25, %v4578_v50 }
 0x28d   : > { %v2089_v9 = vpop.xlane.xlu0 %2088  ;;  %v2092_v16 = vpop.xlane.xlu1 %2091 }
 0x28e   : > { %v4703_v1 = vadd.f32 %v2089_v9, %v4585_v51  ;;  %v4706_v49 = vadd.f32 %v2092_v16, %v4588_v57 }
 0x291   : > { %v2095_v19 = vpop.xlane.xlu0 %2094  ;;  %v2098_v12 = vpop.xlane.xlu1 %2097 }
 0x292   : > { %v4709_v37 = vadd.f32 %v2095_v19, %v4595_v32  ;;  %v4712_v44 = vadd.f32 %v2098_v12, %v4598_v41 }
 0x295   : > { %v2101_v61 = vpop.xlane.xlu0 %2100  ;;  %v2104_v21 = vpop.xlane.xlu1 %2103 }
 0x296   : > { %v4715_v50 = vadd.f32 %v2101_v61, %v4605_v47  ;;  %v4718_v48 = vadd.f32 %v2104_v21, %v4608_v0 }
 0x299   : > { %v2107_v51 = vpop.xlane.xlu0 %2106  ;;  %v2110_v18 = vpop.xlane.xlu1 %2109 }
 0x29a   : > { %v4721_v57 = vadd.f32 %v2107_v51, %v4615_v56  ;;  %v4724_v3 = vadd.f32 %v2110_v18, %v4618_v11 }
 0x29d   : > { %v2113_v32 = vpop.xlane.xlu0 %2112  ;;  %v2116_v43 = vpop.xlane.xlu1 %2115 }
 0x29e   : > { %v4727_v41 = vadd.f32 %v2113_v32, %v4625_v20  ;;  %v4730_v17 = vadd.f32 %v2116_v43, %v4628_v4 }
 0x2a1   : > { %v2119_v47 = vpop.xlane.xlu0 %2118  ;;  %v2122_v58 = vpop.xlane.xlu1 %2121 }
 0x2a2   : > { %v2181_v0 = vadd.f32 %v2119_v47, %v4635_v5  ;;  %v2182_v27 = vadd.f32 %v2122_v58, %v4638_v22 }
 0x2a5   : > { %v2125_v56 = vpop.xlane.xlu0 %2124  ;;  %v2128_v46 = vpop.xlane.xlu1 %2127 }
 0x2a6   : > { %v2183_v11 = vadd.f32 %v2125_v56, %v4645_v33  ;;  %v2184_v38 = vadd.f32 %v2128_v46, %v4648_v29  ;;  %v4744_v33 = vsub.s32 %v2427_v7, %v2429_v24  ;;  %v4746_v29 = vsub.s32 %v2432_v13, %v2429_v24 }
 0x2a9   : > { %v2131_v14 = vpop.xlane.xlu0 %2130  ;;  %v2134_v20 = vpop.xlane.xlu1 %2133 }
 0x2aa   : > { %v2185_v59 = vadd.f32 %v2131_v14, %v4655_v36  ;;  %v2186_v4 = vadd.f32 %v2134_v20, %v4658_v54 }
 0x2ad   : > { %v2137_v23 = vpop.xlane.xlu0 %2136  ;;  %v2140_v5 = vpop.xlane.xlu1 %2139 }
 0x2ae   : > { %v4739_v22 = vadd.f32 %v2137_v23, %v4663_v60  ;;  %v4742_v30 = vadd.f32 %v2140_v5, %v4666_v28 }
 0x2b1   : > { %v2268_v45 = vpop.xlane.xlu0 %2267  ;;  %v2271_v52 = vpop.xlane.xlu1 %2270 }
 0x2b2   : > { %v2362_v10 = vadd.f32 %v2268_v45, %v2165_v55  ;;  %v2363_v36 = vadd.f32 %v2271_v52, %v2166_v8 }
 0x2b4   : > { %v2431_v54 = vrot.slane %v2362_v10, %v4744_v33  ;;  %v2436_v25 = vrot.slane %v2363_v36, %v4746_v29 }
 0x2b5   : > { %v2274_v9 = vpop.xlane.xlu0 %2273  ;;  %v2277_v16 = vpop.xlane.xlu1 %2276 }
 0x2b6   : > { %v2438_v60 = vsel %vm2437_vm2, %v2436_v25, %v2431_v54  ;;  %v2364_v19 = vadd.f32 %v2274_v9, %v2167_v53  ;;  %v2365_v28 = vadd.f32 %v2277_v16, %v2168_v42 }
 0x2b8   : > { %v2442_v12 = vrot.slane %v2364_v19, %v4744_v33  ;;  %v2446_v61 = vrot.slane %v2365_v28, %v4746_v29 }
 0x2b9   : > { %v2316_v21 = vpop.xlane.xlu0 %2315  ;;  %v2319_v51 = vpop.xlane.xlu1 %2318 }
 0x2ba   : > { %v2447_v55 = vsel %vm2437_vm2, %v2446_v61, %v2442_v12  ;;  %v2378_v8 = vadd.f32 %v2316_v21, %v2181_v0  ;;  %v2379_v18 = vadd.f32 %v2319_v51, %v2182_v27 }
 0x2bb   : > { %v2575_v32 = vsel %vm2574_vm3, %v2447_v55, %v2438_v60 }
 0x2bc   : > { %v2505_v43 = vrot.slane %v2378_v8, %v4744_v33  ;;  %v2509_v47 = vrot.slane %v2379_v18, %v4746_v29 }
 0x2bd   : > { %v2322_v58 = vpop.xlane.xlu0 %2321  ;;  %v2325_v53 = vpop.xlane.xlu1 %2324 }
 0x2be   : > { %v2510_v42 = vsel %vm2437_vm2, %v2509_v47, %v2505_v43  ;;  %v2380_v39 = vadd.f32 %v2322_v58, %v2183_v11  ;;  %v2381_v56 = vadd.f32 %v2325_v53, %v2184_v38 }
 0x2c0   : > { %v2514_v46 = vrot.slane %v2380_v39, %v4744_v33  ;;  %v2518_v7 = vrot.slane %v2381_v56, %v4746_v29 }
 0x2c1   : > { %v2143_v14 = vpop.xlane.xlu0 %2142  ;;  %v2146_v20 = vpop.xlane.xlu1 %2145 }
 0x2c2   : > { %v2519_v0 = vsel %vm2437_vm2, %v2518_v7, %v2514_v46 }
 0x2c3   : > { %v2588_v27 = vsel %vm2574_vm3, %v2519_v0, %v2510_v42 }
 0x2c5   : > { %v2280_v24 = vpop.xlane.xlu0 %2279  ;;  %v2283_v13 = vpop.xlane.xlu1 %2282 }
 0x2c6   : > { %v2366_v23 = vadd.f32 %v2280_v24, %v4697_v34  ;;  %v2367_v5 = vadd.f32 %v2283_v13, %v4700_v2 }
 0x2c8   : > { %v2451_v45 = vrot.slane %v2366_v23, %v4744_v33  ;;  %v2455_v11 = vrot.slane %v2367_v5, %v4746_v29 }
 0x2c9   : > { %v2328_v38 = vpop.xlane.xlu0 %2327  ;;  %v2331_v52 = vpop.xlane.xlu1 %2330 }
 0x2ca   : > { %v2456_v10 = vsel %vm2437_vm2, %v2455_v11, %v2451_v45  ;;  %v2382_v36 = vadd.f32 %v2328_v38, %v2185_v59  ;;  %v2383_v54 = vadd.f32 %v2331_v52, %v2186_v4 }
 0x2cb   : > { %v2577_v25 = vsel %vm2576_vm4, %v2456_v10, %v2575_v32 }
 0x2cc   : > { %v2523_v9 = vrot.slane %v2382_v36, %v4744_v33  ;;  %v2527_v16 = vrot.slane %v2383_v54, %v4746_v29 }
 0x2cd   : > { %v2149_v60 = vpop.xlane.xlu0 %2148  ;;  %v2152_v34 = vpop.xlane.xlu1 %2151 }
 0x2ce   : > { %v2528_v2 = vsel %vm2437_vm2, %v2527_v16, %v2523_v9  ;;  %v2191_v54 = vadd.f32 %v2149_v60, %v4675_v40 }
 0x2cf   : > { %v2589_v19 = vsel %vm2576_vm4, %v2528_v2, %v2588_v27 }
 0x2d1   : > { %v2286_v28 = vpop.xlane.xlu0 %2285  ;;  %v2289_v12 = vpop.xlane.xlu1 %2288 }
 0x2d2   : > { %v2368_v61 = vadd.f32 %v2286_v28, %v4703_v1  ;;  %v2369_v21 = vadd.f32 %v2289_v12, %v4706_v49 }
 0x2d4   : > { %v2460_v51 = vrot.slane %v2368_v61, %v4744_v33  ;;  %v2464_v59 = vrot.slane %v2369_v21, %v4746_v29 }
 0x2d5   : > { %v2334_v4 = vpop.xlane.xlu0 %2333  ;;  %v2337_v55 = vpop.xlane.xlu1 %2336 }
 0x2d6   : > { %v2465_v8 = vsel %vm2437_vm2, %v2464_v59, %v2460_v51  ;;  %v2384_v18 = vadd.f32 %v2334_v4, %v4739_v22  ;;  %v2385_v32 = vadd.f32 %v2337_v55, %v4742_v30  ;;  %v2189_v22 = vadd.f32 %v2143_v14, %v4669_v62 }
 0x2d7   : > { %v2579_v43 = vsel %vm2578_vm5, %v2465_v8, %v2577_v25  ;;  %v2190_v30 = vadd.f32 %v2146_v20, %v4672_v35  ;;  %v2192_v25 = vadd.f32 %v2152_v34, %v4678_v31 }
 0x2d8   : > { %v2532_v47 = vrot.slane %v2384_v18, %v4744_v33  ;;  %v2536_v1 = vrot.slane %v2385_v32, %v4746_v29 }
 0x2d9   : > { %v2155_v58 = vpop.xlane.xlu0 %2154  ;;  %v2158_v49 = vpop.xlane.xlu1 %2157 }
 0x2da   : > { %v2537_v53 = vsel %vm2437_vm2, %v2536_v1, %v2532_v47  ;;  %v2193_v4 = vadd.f32 %v2155_v58, %v4681_v15  ;;  %v2194_v55 = vadd.f32 %v2158_v49, %v4684_v63 }
 0x2db   : > { %v2590_v42 = vsel %vm2578_vm5, %v2537_v53, %v2589_v19 }
 0x2dd   : > { %v2292_v39 = vpop.xlane.xlu0 %2291  ;;  %v2295_v56 = vpop.xlane.xlu1 %2294 }
 0x2de   : > { %v2370_v46 = vadd.f32 %v2292_v39, %v4709_v37  ;;  %v2371_v7 = vadd.f32 %v2295_v56, %v4712_v44 }
 0x2e0   : > { %v2469_v0 = vrot.slane %v2370_v46, %v4744_v33  ;;  %v2473_v27 = vrot.slane %v2371_v7, %v4746_v29 }
 0x2e1   : > { %v2340_v24 = vpop.xlane.xlu0 %2339  ;;  %v2343_v13 = vpop.xlane.xlu1 %2342 }
 0x2e2   : > { %v2474_v23 = vsel %vm2437_vm2, %v2473_v27, %v2469_v0  ;;  %v2386_v5 = vadd.f32 %v2340_v24, %v2189_v22  ;;  %v2387_v45 = vadd.f32 %v2343_v13, %v2190_v30 }
 0x2e3   : > { %v2581_v11 = vsel %vm2580_vm6, %v2474_v23, %v2579_v43 }
 0x2e4   : > { %v2541_v37 = vrot.slane %v2386_v5, %v4744_v33  ;;  %v2545_v44 = vrot.slane %v2387_v45, %v4746_v29 }
 0x2e5   : > { %v2161_v38 = vpop.xlane.xlu0 %2160  ;;  %v2164_v62 = vpop.xlane.xlu1 %2163 }
 0x2e6   : > { %v2546_v35 = vsel %vm2437_vm2, %v2545_v44, %v2541_v37  ;;  %v2195_v46 = vadd.f32 %v2161_v38, %v4687_v6  ;;  %v2196_v7 = vadd.f32 %v2164_v62, %v4690_v26 }
 0x2e7   : > { %v2591_v14 = vsel %vm2580_vm6, %v2546_v35, %v2590_v42 }
 0x2e9   : > { %v2298_v20 = vpop.xlane.xlu0 %2297  ;;  %v2301_v52 = vpop.xlane.xlu1 %2300 }
 0x2ea   : > { %v2372_v10 = vadd.f32 %v2298_v20, %v4715_v50  ;;  %v2373_v36 = vadd.f32 %v2301_v52, %v4718_v48 }
 0x2ec   : > { %v2478_v9 = vrot.slane %v2372_v10, %v4744_v33  ;;  %v2482_v16 = vrot.slane %v2373_v36, %v4746_v29 }
 0x2ed   : > { %v2346_v2 = vpop.xlane.xlu0 %2345  ;;  %v2349_v19 = vpop.xlane.xlu1 %2348 }
 0x2ee   : > { %v2483_v28 = vsel %vm2437_vm2, %v2482_v16, %v2478_v9  ;;  %v2388_v12 = vadd.f32 %v2346_v2, %v2191_v54  ;;  %v2389_v61 = vadd.f32 %v2349_v19, %v2192_v25 }
 0x2ef   : > { %v2583_v21 = vsel %vm2582_vm7, %v2483_v28, %v2581_v11 }
 0x2f0   : > { %v2550_v50 = vrot.slane %v2388_v12, %v4744_v33  ;;  %v2554_v48 = vrot.slane %v2389_v61, %v4746_v29 }
 0x2f1   : > { %v2304_v51 = vpop.xlane.xlu0 %2303  ;;  %v2307_v40 = vpop.xlane.xlu1 %2306 }
 0x2f2   : > { %v2555_v31 = vsel %vm2437_vm2, %v2554_v48, %v2550_v50  ;;  %v2374_v60 = vadd.f32 %v2304_v51, %v4721_v57  ;;  %v2375_v34 = vadd.f32 %v2307_v40, %v4724_v3 }
 0x2f3   : > { %v2592_v59 = vsel %vm2582_vm7, %v2555_v31, %v2591_v14 }
 0x2f4   : > { %v2487_v8 = vrot.slane %v2374_v60, %v4744_v33  ;;  %v2491_v18 = vrot.slane %v2375_v34, %v4746_v29 }
 0x2f5   : > { %v2352_v32 = vpop.xlane.xlu0 %2351  ;;  %v2355_v43 = vpop.xlane.xlu1 %2354 }
 0x2f6   : > { %v2492_v47 = vsel %vm2437_vm2, %v2491_v18, %v2487_v8  ;;  %v2390_v1 = vadd.f32 %v2352_v32, %v2193_v4  ;;  %v2391_v57 = vadd.f32 %v2355_v43, %v2194_v55 }
 0x2f7   : > { %v2585_v3 = vsel %vm2584_vm8, %v2492_v47, %v2583_v21 }
 0x2f8   : > { %v2559_v53 = vrot.slane %v2390_v1, %v4744_v33  ;;  %v2563_v15 = vrot.slane %v2391_v57, %v4746_v29 }
 0x2f9   : > { %v2310_v58 = vpop.xlane.xlu0 %2309  ;;  %v2313_v63 = vpop.xlane.xlu1 %2312 }
 0x2fa   : > { %v2564_v49 = vsel %vm2437_vm2, %v2563_v15, %v2559_v53  ;;  %v2376_v42 = vadd.f32 %v2310_v58, %v4727_v41  ;;  %v2377_v39 = vadd.f32 %v2313_v63, %v4730_v17 }
 0x2fb   : > { %v2593_v56 = vsel %vm2584_vm8, %v2564_v49, %v2592_v59 }
 0x2fc   : > { %v2496_v22 = vrot.slane %v2376_v42, %v4744_v33  ;;  %v2500_v30 = vrot.slane %v2377_v39, %v4746_v29 }
 0x2fd   : > { %v2358_v0 = vpop.xlane.xlu0 %2357  ;;  %v2361_v27 = vpop.xlane.xlu1 %2360 }
 0x2fe   : > { %v2501_v41 = vsel %vm2437_vm2, %v2500_v30, %v2496_v22  ;;  %v2392_v24 = vadd.f32 %v2358_v0, %v2195_v46  ;;  %v2393_v13 = vadd.f32 %v2361_v27, %v2196_v7 }
 0x2ff   : > { %v2587_v6 = vsel %vm2586_vm9, %v2501_v41, %v2585_v3 }
 0x300   : > { %2598 = vst.msk [vmem:[%s361_s8] sm:$0xff] %vm2597_vm10, %v2587_v6  ;;  %v2568_v26 = vrot.slane %v2392_v24, %v4744_v33  ;;  %v2572_v17 = vrot.slane %v2393_v13, %v4746_v29 }
 0x302   : > { %v2573_v23 = vsel %vm2437_vm2, %v2572_v17, %v2568_v26 }
 0x303   : > { %v2594_v5 = vsel %vm2586_vm9, %v2573_v23, %v2593_v56 }
 0x304   : > { %2599 = vst.msk [vmem:[%s361_s8 + $0x8] sm:$0xff] %vm2597_vm10, %v2594_v5 }
 0x305   : > { %2853 = shalt.err (!%p2850_p5)
}
 0x306   : > { %s2854_s20 = scalar_lea.hbm %s4834_s15, 256  ;;  %s2858_s30 = scalar_lea.hbm %s4895_s6, 512 }
 0x307   : > { %p2855_p6 = scmp.ne.s32.totalorder %s4834_s15, %s2854_s20  ;;  %p2859_p10 = scmp.lt.u32.totalorder %s4834_s15, %s4895_s6 }
 0x308   : > { %p2860_p11 = scmp.lt.u32.totalorder %s2858_s30, %s2854_s20  ;;  %p2862_p13 = scmp.lt.u32.totalorder %s2854_s20, %s4834_s15 }
 0x309   : > { %p2856_p7 = pnand %p2855_p6, %p2999_p4 }
 0x30a   : > { %p2861_p12 = por %p2860_p11, %p2859_p10 }
 0x30b   : > { %p2857_p9 = pneg %p2856_p7 }
 0x30c   : > { %p2863_p0 = por %p2862_p13, %p2861_p12 }
 0x30e   : > { %p2864_p1 = pnand %p2863_p0, %p2857_p9 }
 0x310   : > { %2867 = shalt.err (!%p2864_p1)
}
 0x311   : > { %s2922_s13 = smov 128   ;;  %s2923_s14 = smov 8  }
 0x312   : > { %2780 = dma.vmem_to_hbm [thread:$0]  (%p2999_p4), %s4836_s11, 256, %s4834_s15, %s4843_s24, %s2922_s13, %s2922_s13, %s2923_s14  }
 0x313 PF: > { %p2786_p2 = scmp.ge.s32.totalorder %s2918_s26, 2  ;;  %s2631_s16 = sand.u32 1, %s2898_s21  }
 0x314   : > { %s2632_s17 = scalar_lea.sflag [#allocation4], %s2631_s16 }
 0x315   : > { %p2783_p3 = pnand %p2786_p2, %p3006_p8 }
 0x317   : > { %2893 = dma.done.wait (!%p2783_p3), %s2632_s17, 256  }
 0x318   : > { %2895 = vsyncadd (!%p2783_p3), %s2632_s17, 4294967040  ;;  %s19_s26 = sadd.s32 1, %s2918_s26   ;;  %s4961_s21 = smov %s2902_s22 }
 0x319   : > { %p16_p5 = scmp.ge.s32.totalorder %s19_s26, 4   ;;  %s4962_s22 = smov %s2906_s23 }
 0x31a   : > { %s4963_s23 = smov %s3012_s10  ;;  %s4964_s24 = smov %s2914_s25 }
 0x31b   : > { %s4965_s25 = smov %s4967_s29  ;;  %18 = sbr.rel (!%p16_p5) target bundleno = 4 (0x4), region = 90 }
 0x322   :  { %2637 = vsyncpa [#allocation4], 1 }
 0x323   :  { %2639 = vsyncpa [#allocation4 + $0x1], 1 }

// kernel: model_forward.5
= control target key start
LH: loop header
LB: loop body
LE: loop exit
PB: predicated region body
PF: predicated region fallthrough
CT: control target
= control target key end

     0   :  { %s6887_s24 = smov 0   ;;  %s6889_s25 = smov 0   ;;  %s8655_s0 = inlined_call_operand.vmem [shape: f32[2,16,16,74], index: 0, kind: input, shape index: {}, may-alias: {0,1,2}]   ;;  %s8656_s1 = inlined_call_operand.vmem [shape: f32[2,16,16,74], index: 1, kind: input, shape index: {}, may-alias: {0,1,2}]   ;;  %s8657_s2 = inlined_call_operand.vmem [shape: f32[2,16,16,74], index: 2, kind: input, shape index: {}, may-alias: {0,1,2}]   ;;  %s8658_s3 = inlined_call_operand.vmem [shape: f32[1,1,74], index: 3, kind: input, shape index: {}]   ;;  %s8659_s4 = inlined_call_operand.vmem [shape: f32[1,1,74], index: 4, kind: input, shape index: {}]   ;;  %s8660_s5 = inlined_call_operand.vmem [shape: f32[3,3,74,74], index: 5, kind: input, shape index: {}]   ;;  %s8661_s6 = inlined_call_operand.vmem [shape: f32[2,16,16,74], index: 6, kind: output, shape index: {0}]   ;;  %s8662_s7 = inlined_call_operand.vmem [shape: f32[2,1,8,74], index: 7, kind: output, shape index: {1}]  }
   0x1   :  { %s6891_s26 = smov 0  }
   0x2 LB: > { %s30_s27 = sadd.s32 1, %s6839_s25  ;;  %p5200_p0 = scmp.ge.s32.totalorder %s6843_s26, 1  ;;  %s6843_s26 = sphi %s6891_s26, %s18_s26   ;;  %s6839_s25 = sphi %s6889_s25, %s8773_s25   ;;  %s6835_s24 = sphi %s6887_s24, %s8772_s24  }
   0x3   : > { %p32_p1 = scmp.ge.s32.totalorder %s30_s27, 2  ;;  %p328_p2 = scmp.lt.s32.totalorder %s6843_s26, 3 }
   0x5   : > { %s8775_s27 = smov (%p32_p1, %s30_s27), 0  ;;  %p329_p3 = pnand %p5200_p0, %p328_p2 }
   0x7   : > { %332 = sbr.rel (%p329_p3) target bundleno = 581 (0x245), region = 44 }
   0xe   : > { %v708_v0 = vld [vmem:[%s8660_s5] sm:$0xff]  ;;  %v709_v1 = vld [vmem:[%s8660_s5 + $0x8] sm:$0xff]  ;;  %v710_v2 = vld [vmem:[%s8660_s5 + $0x10] sm:$0xff]  ;;  %p404_p4 = scmp.lt.s32.totalorder %s6835_s24, 1  ;;  %vm468_vm0 = vcmask 598016   ;;  %v8663_v8 = vmov 0.0  }
   0xf   : > { %v6587_v3 = vpack.c.bf16 %v709_v1, %v708_v0  ;;  %v711_v4 = vld [vmem:[%s8660_s5 + $0x18] sm:$0xff]  ;;  %v712_v6 = vld [vmem:[%s8660_s5 + $0x20] sm:$0xff]  ;;  %v713_v7 = vld [vmem:[%s8660_s5 + $0x28] sm:$0xff]  ;;  %477 = vst.msk [vmem:[#allocation2 + $0xc0] sm:$0x1] %vm468_vm0, %v8663_v8  ;;  %vm814_vm1 = vcmask 1041408  }
  0x10   : > { %v6917_v5 = vpack.c.bf16 %v711_v4, %v710_v2  ;;  %s8777_s24 = smov (!%p404_p4, %s6835_s24), 1  ;;  %469 = vst.msk [vmem:[#allocation2] sm:$0x1] %vm468_vm0, %v8663_v8  ;;  %470 = vst.msk [vmem:[#allocation2 + $0x18] sm:$0x1] %vm468_vm0, %v8663_v8  ;;  %v714_v9 = vld [vmem:[%s8660_s5 + $0x30] sm:$0xff]  ;;  %v6595_v12 = vpack.c.bf16 %v713_v7, %v712_v6 }
  0x11   : > { %471 = vst.msk [vmem:[#allocation2 + $0x30] sm:$0x1] %vm468_vm0, %v8663_v8  ;;  %472 = vst.msk [vmem:[#allocation2 + $0x48] sm:$0x1] %vm468_vm0, %v8663_v8  ;;  %6785 = vmatprep.subr.bf16.mxu1 %v6587_v3  ;;  %6588 = vmatprep.subr.bf16.mxu0 %v6587_v3  ;;  %v715_v10 = vld [vmem:[%s8660_s5 + $0x38] sm:$0xff]  ;;  %s7006_s21 = sshll.u32 %s8777_s24, 8 }
  0x12   : > { %473 = vst.msk [vmem:[#allocation2 + $0x60] sm:$0x1] %vm468_vm0, %v8663_v8  ;;  %474 = vst.msk [vmem:[#allocation2 + $0x78] sm:$0x1] %vm468_vm0, %v8663_v8  ;;  %6790 = vmatpush3.bf16.msra.mxu1 %v6587_v3  ;;  %6590 = vmatpush3.bf16.msra.mxu0 %v6587_v3  ;;  %v7011_v11 = vld [vmem:[%s8658_s3] ss:$0 sm:$0xff]  ;;  %s7019_s30 = scalar_lea.vmem %s8655_s0, %s7006_s21  ;;  %s426_s12 = scalar_lea.vmem %s8656_s1, %s7006_s21  ;;  %v7039_v19 = vpack.c.bf16 %v715_v10, %v714_v9 }
  0x13   : > { %475 = vst.msk [vmem:[#allocation2 + $0x90] sm:$0x1] %vm468_vm0, %v8663_v8  ;;  %476 = vst.msk [vmem:[#allocation2 + $0xa8] sm:$0x1] %vm468_vm0, %v8663_v8  ;;  %6786 = vmatprep.subr.bf16.mxu1 %v6917_v5  ;;  %6592 = vmatprep.subr.bf16.mxu0 %v6917_v5  ;;  %v7024_v13 = vld [vmem:[%s8659_s4] ss:$0 sm:$0xff]  ;;  %s8438_s11 = scalar_lea.vmem %s8661_s6, %s7006_s21 }
  0x14   : > { %478 = vst.msk [vmem:[#allocation2 + $0xd8] sm:$0x1] %vm468_vm0, %v8663_v8  ;;  %479 = vst.msk [vmem:[#allocation2 + $0xf0] sm:$0x1] %vm468_vm0, %v8663_v8  ;;  %v716_v14 = vld [vmem:[%s8660_s5 + $0x40] sm:$0xff]  ;;  %v519_v16 = vld [vmem:[%s7019_s30 + $0x70] sm:$0xff] }
  0x15   : > { %480 = vst.msk [vmem:[#allocation2 + $0x108] sm:$0x1] %vm468_vm0, %v8663_v8  ;;  %481 = vst.msk [vmem:[#allocation2 + $0x120] sm:$0x1] %vm468_vm0, %v8663_v8  ;;  %v717_v15 = vld [vmem:[%s8660_s5 + $0x48] sm:$0x3]  ;;  %v557_v20 = vmul.f32 %v7011_v11, %v519_v16 }
  0x16   : > { %482 = vst.msk [vmem:[#allocation2 + $0x138] sm:$0x1] %vm468_vm0, %v8663_v8  ;;  %483 = vst.msk [vmem:[#allocation2 + $0x150] sm:$0x1] %vm468_vm0, %v8663_v8  ;;  %v520_v17 = vld [vmem:[%s7019_s30 + $0x78] sm:$0xff]  ;;  %v521_v18 = vld [vmem:[%s7019_s30 + $0x80] sm:$0xff]  ;;  %6791 = vmatpush3.bf16.msra.mxu1 %v6917_v5  ;;  %6594 = vmatpush3.bf16.msra.mxu0 %v6917_v5  ;;  %v7068_v43 = vpack.c.bf16 %v717_v15, %v716_v14 }
  0x17   : > { %484 = vst.msk [vmem:[#allocation2 + $0x168] sm:$0x1] %vm468_vm0, %v8663_v8  ;;  %485 = vst.msk [vmem:[#allocation2 + $0x180] sm:$0x1] %vm468_vm0, %v8663_v8  ;;  %v558_v21 = vmul.f32 %v7011_v11, %v520_v17  ;;  %v5245_v22 = vld [vmem:[%s8660_s5 + $0x50] sm:$0xff]  ;;  %v559_v23 = vmul.f32 %v7011_v11, %v521_v18  ;;  %v522_v24 = vld [vmem:[%s7019_s30 + $0x88] sm:$0xff]  ;;  %6787 = vmatprep.subr.bf16.mxu1 %v6595_v12  ;;  %6596 = vmatprep.subr.bf16.mxu0 %v6595_v12 }
  0x18   : > { %486 = vst.msk [vmem:[#allocation2 + $0x198] sm:$0x1] %vm468_vm0, %v8663_v8  ;;  %487 = vst.msk [vmem:[#allocation2 + $0x11] sm:$0x1] %vm468_vm0, %v8663_v8  ;;  %v523_v25 = vld [vmem:[%s7019_s30 + $0x90] sm:$0xff]  ;;  %v524_v26 = vld [vmem:[%s7019_s30 + $0x98] sm:$0xff]  ;;  %v560_v28 = vmul.f32 %v7011_v11, %v522_v24  ;;  %v595_v33 = vadd.f32 %v7024_v13, %v557_v20 }
  0x19   : > { %488 = vst.msk [vmem:[#allocation2 + $0x29] sm:$0x1] %vm468_vm0, %v8663_v8  ;;  %489 = vst.msk [vmem:[#allocation2 + $0x41] sm:$0x1] %vm468_vm0, %v8663_v8  ;;  %vm614_vm2 = vcmask 605184   ;;  %v5246_v27 = vld [vmem:[%s8660_s5 + $0x58] sm:$0xff]  ;;  %v561_v29 = vmul.f32 %v7011_v11, %v523_v25  ;;  %v562_v30 = vmul.f32 %v7011_v11, %v524_v26  ;;  %v596_v34 = vadd.f32 %v7024_v13, %v558_v21 }
  0x1a   : > { %490 = vst.msk [vmem:[#allocation2 + $0x59] sm:$0x1] %vm468_vm0, %v8663_v8  ;;  %491 = vst.msk [vmem:[#allocation2 + $0x71] sm:$0x1] %vm468_vm0, %v8663_v8  ;;  %v653_v31 = vld [vmem:[%s426_s12] sm:$0xff]  ;;  %v654_v32 = vld [vmem:[%s426_s12 + $0x8] sm:$0xff]  ;;  %v597_v35 = vadd.f32 %v7024_v13, %v559_v23  ;;  %v598_v39 = vadd.f32 %v7024_v13, %v560_v28  ;;  %6792 = vmatpush3.bf16.msra.mxu1 %v6595_v12  ;;  %6598 = vmatpush3.bf16.msra.mxu0 %v6595_v12 }
  0x1b   : > { %492 = vst.msk [vmem:[#allocation2 + $0x89] sm:$0x1] %vm468_vm0, %v8663_v8  ;;  %493 = vst.msk [vmem:[#allocation2 + $0xa1] sm:$0x1] %vm468_vm0, %v8663_v8  ;;  %v525_v36 = vld [vmem:[%s7019_s30 + $0xa0] sm:$0xff]  ;;  %v526_v37 = vld [vmem:[%s7019_s30 + $0xa8] sm:$0xff]  ;;  %v599_v40 = vadd.f32 %v7024_v13, %v561_v29  ;;  %v600_v41 = vadd.f32 %v7024_v13, %v562_v30  ;;  %v655_v42 = vmul.f32 %v7011_v11, %v653_v31  ;;  %6788 = vmatprep.subr.bf16.mxu1 %v7039_v19 }
  0x1c   : > { %494 = vst.msk [vmem:[#allocation2 + $0xb9] sm:$0x1] %vm468_vm0, %v8663_v8  ;;  %495 = vst.msk [vmem:[#allocation2 + $0xd1] sm:$0x1] %vm468_vm0, %v8663_v8  ;;  %v505_v38 = vld [vmem:[%s7019_s30] sm:$0xff]  ;;  %v656_v44 = vmul.f32 %v7011_v11, %v654_v32  ;;  %v563_v46 = vmul.f32 %v7011_v11, %v525_v36  ;;  %v564_v47 = vmul.f32 %v7011_v11, %v526_v37  ;;  %v506_v48 = vld [vmem:[%s7019_s30 + $0x8] sm:$0xff]  ;;  %6600 = vmatprep.subr.bf16.mxu0 %v7039_v19 }
  0x1d   : > { %496 = vst.msk [vmem:[#allocation2 + $0xe9] sm:$0x1] %vm468_vm0, %v8663_v8  ;;  %497 = vst.msk [vmem:[#allocation2 + $0x101] sm:$0x1] %vm468_vm0, %v8663_v8  ;;  %v5288_v45 = vld [vmem:[%s8660_s5 + $0xa0] sm:$0xff]  ;;  %v527_v49 = vld [vmem:[%s7019_s30 + $0xb0] sm:$0xff]  ;;  %v7081_v50 = vpack.c.bf16 %v5246_v27, %v5245_v22  ;;  %v657_v51 = vadd.f32 %v7024_v13, %v655_v42  ;;  %v543_v53 = vmul.f32 %v7011_v11, %v505_v38 }
  0x1e   : > { %498 = vst.msk [vmem:[#allocation2 + $0x119] sm:$0x1] %vm468_vm0, %v8663_v8  ;;  %499 = vst.msk [vmem:[#allocation2 + $0x131] sm:$0x1] %vm468_vm0, %v8663_v8  ;;  %v5289_v52 = vld [vmem:[%s8660_s5 + $0xa8] sm:$0xff]  ;;  %v528_v54 = vld [vmem:[%s7019_s30 + $0xb8] sm:$0xff]  ;;  %v658_v56 = vadd.f32 %v7024_v13, %v656_v44  ;;  %v601_v57 = vadd.f32 %v7024_v13, %v563_v46  ;;  %v602_v58 = vadd.f32 %v7024_v13, %v564_v47  ;;  %6793 = vmatpush3.bf16.msra.mxu1 %v7039_v19 }
  0x1f   : > { %500 = vst.msk [vmem:[#allocation2 + $0x149] sm:$0x1] %vm468_vm0, %v8663_v8  ;;  %501 = vst.msk [vmem:[#allocation2 + $0x161] sm:$0x1] %vm468_vm0, %v8663_v8  ;;  %v507_v55 = vld [vmem:[%s7019_s30 + $0x10] sm:$0xff]  ;;  %v508_v59 = vld [vmem:[%s7019_s30 + $0x18] sm:$0xff]  ;;  %v581_v62 = vadd.f32 %v7024_v13, %v543_v53  ;;  %v544_v63 = vmul.f32 %v7011_v11, %v506_v48  ;;  %v565_v0 = vmul.f32 %v7011_v11, %v527_v49  ;;  %6602 = vmatpush3.bf16.msra.mxu0 %v7039_v19 }
  0x20   : > { %502 = vst.msk [vmem:[#allocation2 + $0x179] sm:$0x1] %vm468_vm0, %v8663_v8  ;;  %503 = vst.msk [vmem:[#allocation2 + $0x191] sm:$0x1] %vm468_vm0, %v8663_v8  ;;  %vm6846_vm3 = vmmov 1   ;;  %v660_v61 = vmul.f32 0.0, %v657_v51  ;;  %v7111_v4 = vpack.c.bf16 %v5289_v52, %v5288_v45  ;;  %v566_v5 = vmul.f32 %v7011_v11, %v528_v54 }
  0x21   : > { %504 = vst.msk [vmem:[#allocation2 + $0x1a9] sm:$0x1] %vm468_vm0, %v8663_v8  ;;  %vm7100_vm4 = vmpackc.low %vm814_vm1, %vm6846_vm3  ;;  %v529_v1 = vld [vmem:[%s7019_s30 + $0xc0] sm:$0xff]  ;;  %v661_v3 = vmul.f32 0.0, %v658_v56  ;;  %v545_v6 = vmul.f32 %v7011_v11, %v507_v55  ;;  %v530_v7 = vld [vmem:[%s7019_s30 + $0xc8] sm:$0xff]  ;;  %v582_v12 = vadd.f32 %v7024_v13, %v544_v63  ;;  %v603_v14 = vadd.f32 %v7024_v13, %v565_v0  ;;  %s5594_s19 = sadd.s32 240, %s7006_s21 }
  0x22   : > { %629 = vst.msk [vmem:[#allocation2 + $0xc1] sm:$0xff] %vm614_vm2, %v595_v33  ;;  %630 = vst.msk [vmem:[#allocation2 + $0xc9] sm:$0xff] %vm614_vm2, %v596_v34  ;;  %v5247_v2 = vld [vmem:[%s8660_s5 + $0x60] sm:$0xff]  ;;  %v5248_v10 = vld [vmem:[%s8660_s5 + $0x68] sm:$0xff]  ;;  %v546_v15 = vmul.f32 %v7011_v11, %v508_v59  ;;  %6789 = vmatprep.subr.msk.bf16.mxu1 %vm7100_vm4, %v7068_v43  ;;  %6605 = vmatprep.subr.msk.bf16.mxu0 %vm7100_vm4, %v7068_v43  ;;  %v604_v18 = vadd.f32 %v7024_v13, %v566_v5  ;;  %s443_s23 = scalar_lea.vmem %s8657_s2, %s5594_s19  ;;  %s5209_s28 = sshll.u32 %s8777_s24, 3 }
  0x23   : > { %631 = vst.msk [vmem:[#allocation2 + $0xd9] sm:$0xff] %vm614_vm2, %v597_v35  ;;  %632 = vst.msk [vmem:[#allocation2 + $0xe1] sm:$0xff] %vm614_vm2, %v598_v39  ;;  %v509_v9 = vld [vmem:[%s7019_s30 + $0x20] sm:$0xff]  ;;  %v510_v16 = vld [vmem:[%s7019_s30 + $0x28] sm:$0xff]  ;;  %v583_v19 = vadd.f32 %v7024_v13, %v545_v6  ;;  %v567_v20 = vmul.f32 %v7011_v11, %v529_v1  ;;  %v568_v24 = vmul.f32 %v7011_v11, %v530_v7  ;;  %6794 = vmatpush3.bf16.msk.msra.mxu1 %vm7100_vm4, %v7068_v43  ;;  %s8369_s9 = scalar_lea.vmem %s8662_s7, %s5209_s28 }
  0x24   : > { %633 = vst.msk [vmem:[#allocation2 + $0xf1] sm:$0xff] %vm614_vm2, %v599_v40  ;;  %634 = vst.msk [vmem:[#allocation2 + $0xf9] sm:$0xff] %vm614_vm2, %v600_v41  ;;  %v531_v17 = vld [vmem:[%s7019_s30 + $0xd0] sm:$0xff]  ;;  %v532_v21 = vld [vmem:[%s7019_s30 + $0xd8] sm:$0xff]  ;;  %v584_v23 = vadd.f32 %v7024_v13, %v546_v15  ;;  %v547_v25 = vmul.f32 %v7011_v11, %v509_v9  ;;  %v7151_v28 = vpack.c.bf16 %v5248_v10, %v5247_v2  ;;  %6608 = vmatpush3.bf16.msk.msra.mxu0 %vm7100_vm4, %v7068_v43 }
  0x25   : > { %635 = vst.msk [vmem:[#allocation2 + $0x109] sm:$0xff] %vm614_vm2, %v601_v57  ;;  %636 = vst.msk [vmem:[#allocation2 + $0x111] sm:$0xff] %vm614_vm2, %v602_v58  ;;  %v511_v26 = vld [vmem:[%s7019_s30 + $0x30] sm:$0xff]  ;;  %v605_v29 = vadd.f32 %v7024_v13, %v567_v20  ;;  %v548_v30 = vmul.f32 %v7011_v11, %v510_v16  ;;  %v569_v31 = vmul.f32 %v7011_v11, %v531_v17  ;;  %v512_v32 = vld [vmem:[%s7019_s30 + $0x38] sm:$0xff]  ;;  %6610 = vmatprep.subr.bf16.mxu1 %v7081_v50 }
  0x26   : > { %662 = vst.msk [vmem:[#allocation2 + $0x1] sm:$0xff] %vm614_vm2, %v660_v61  ;;  %615 = vst.msk [vmem:[#allocation2 + $0x19] sm:$0xff] %vm614_vm2, %v581_v62  ;;  %v533_v33 = vld [vmem:[%s7019_s30 + $0xe0] sm:$0xff]  ;;  %v606_v34 = vadd.f32 %v7024_v13, %v568_v24  ;;  %v585_v35 = vadd.f32 %v7024_v13, %v547_v25  ;;  %v570_v36 = vmul.f32 %v7011_v11, %v532_v21  ;;  %v534_v37 = vld [vmem:[%s7019_s30 + $0xe8] sm:$0xff]  ;;  %6632 = vmatprep.subr.bf16.mxu0 %v7111_v4 }
  0x27   : > { %663 = vst.msk [vmem:[#allocation2 + $0x9] sm:$0xff] %vm614_vm2, %v661_v3  ;;  %616 = vst.msk [vmem:[#allocation2 + $0x21] sm:$0xff] %vm614_vm2, %v582_v12  ;;  %v513_v38 = vld [vmem:[%s7019_s30 + $0x40] sm:$0xff]  ;;  %v514_v39 = vld [vmem:[%s7019_s30 + $0x48] sm:$0xff]  ;;  %v586_v43 = vadd.f32 %v7024_v13, %v548_v30  ;;  %v607_v44 = vadd.f32 %v7024_v13, %v569_v31  ;;  %v549_v45 = vmul.f32 %v7011_v11, %v511_v26 }
  0x28   : > { %637 = vst.msk [vmem:[#allocation2 + $0x121] sm:$0xff] %vm614_vm2, %v603_v14  ;;  %638 = vst.msk [vmem:[#allocation2 + $0x129] sm:$0xff] %vm614_vm2, %v604_v18  ;;  %v5249_v41 = vld [vmem:[%s8660_s5 + $0x70] sm:$0xff]  ;;  %v5250_v42 = vld [vmem:[%s8660_s5 + $0x78] sm:$0xff]  ;;  %v608_v46 = vadd.f32 %v7024_v13, %v570_v36  ;;  %v550_v47 = vmul.f32 %v7011_v11, %v512_v32  ;;  %v571_v48 = vmul.f32 %v7011_v11, %v533_v33 }
  0x29   : > { %v692_v22 = vld [vmem:[#allocation2 + $0xc0] sm:$0xff]  ;;  %v7149_v27 = vld [vmem:[#allocation2 + $0xc8] sm:$0xff]  ;;  %617 = vst.msk [vmem:[#allocation2 + $0x31] sm:$0xff] %vm614_vm2, %v583_v19  ;;  %618 = vst.msk [vmem:[#allocation2 + $0x39] sm:$0xff] %vm614_vm2, %v584_v23  ;;  %v587_v53 = vadd.f32 %v7024_v13, %v549_v45  ;;  %v572_v54 = vmul.f32 %v7011_v11, %v534_v37  ;;  %v551_v55 = vmul.f32 %v7011_v11, %v513_v38 }
  0x2a   : > { %6019 = vmatprep.mubr.msk.f32.mxu1 %vm614_vm2, %v692_v22  ;;  %v7174_v40 = vld [vmem:[#allocation2 + $0xd8] sm:$0xff]  ;;  %639 = vst.msk [vmem:[#allocation2 + $0x139] sm:$0xff] %vm614_vm2, %v605_v29  ;;  %640 = vst.msk [vmem:[#allocation2 + $0x141] sm:$0xff] %vm614_vm2, %v606_v34  ;;  %v5290_v51 = vld [vmem:[%s8660_s5 + $0xb0] sm:$0xff]  ;;  %v552_v56 = vmul.f32 %v7011_v11, %v514_v39  ;;  %v6617_v59 = vpack.c.bf16 %v5250_v42, %v5249_v41  ;;  %v588_v61 = vadd.f32 %v7024_v13, %v550_v47 }
  0x2b   : > { %619 = vst.msk [vmem:[#allocation2 + $0x49] sm:$0xff] %vm614_vm2, %v585_v35  ;;  %6020 = vmatmul.mubr.msk.f32.vlgmr.msra.gmra.mrb[0].mxu1 %vm614_vm2, %v7149_v27  ;;  %v5291_v52 = vld [vmem:[%s8660_s5 + $0xb8] sm:$0xff]  ;;  %620 = vst.msk [vmem:[#allocation2 + $0x51] sm:$0xff] %vm614_vm2, %v586_v43  ;;  %v7209_v57 = vld [vmem:[#allocation2 + $0xe0] sm:$0xff]  ;;  %v609_v62 = vadd.f32 %v7024_v13, %v571_v48  ;;  %v589_v1 = vadd.f32 %v7024_v13, %v551_v55 }
  0x2c   : > { %641 = vst.msk [vmem:[#allocation2 + $0x151] sm:$0xff] %vm614_vm2, %v607_v44  ;;  %6612 = vmatpush3.bf16.msra.mxu1 %v7081_v50  ;;  %6022 = vmatprep.mubr.msk.f32.mxu1 %vm614_vm2, %v7174_v40  ;;  %642 = vst.msk [vmem:[#allocation2 + $0x159] sm:$0xff] %vm614_vm2, %v608_v46  ;;  %v515_v63 = vld [vmem:[%s7019_s30 + $0x50] sm:$0xff]  ;;  %v610_v50 = vadd.f32 %v7024_v13, %v572_v54  ;;  %v590_v2 = vadd.f32 %v7024_v13, %v552_v56  ;;  %v516_v3 = vld [vmem:[%s7019_s30 + $0x58] sm:$0xff] }
  0x2d   : > { %v676_v49 = vld [vmem:[#allocation2] sm:$0xff]  ;;  %v7215_v0 = vld [vmem:[#allocation2 + $0xf0] sm:$0xff]  ;;  %6614 = vmatprep.subr.bf16.mxu1 %v7151_v28  ;;  %621 = vst.msk [vmem:[#allocation2 + $0x61] sm:$0xff] %vm614_vm2, %v587_v53  ;;  %v7225_v5 = vld [vmem:[#allocation2 + $0x18] sm:$0xff]  ;;  %v6635_v6 = vpack.c.bf16 %v5291_v52, %v5290_v51  ;;  %v553_v10 = vmul.f32 %v7011_v11, %v515_v63  ;;  %v554_v12 = vmul.f32 %v7011_v11, %v516_v3 }
  0x2e   : > { %v677_v58 = vld [vmem:[#allocation2 + $0x8] sm:$0xff]  ;;  %5995 = vmatprep.mubr.msk.f32.mxu0 %vm614_vm2, %v676_v49  ;;  %v5251_v7 = vld [vmem:[%s8660_s5 + $0x80] sm:$0xff]  ;;  %622 = vst.msk [vmem:[#allocation2 + $0x69] sm:$0xff] %vm614_vm2, %v588_v61  ;;  %643 = vst.msk [vmem:[#allocation2 + $0x169] sm:$0xff] %vm614_vm2, %v609_v62 }
  0x2f   : > { %5996 = vmatmul.mubr.msk.f32.vlgmr.msra.gmra.mrb[0].mxu0 %vm614_vm2, %v677_v58  ;;  %v5252_v9 = vld [vmem:[%s8660_s5 + $0x88] sm:$0xff]  ;;  %6023 = vmatmul.mubr.msk.f32.gmra.mrb[2].mxu1 %vm614_vm2, %v7209_v57  ;;  %v7240_v14 = vld [vmem:[#allocation2 + $0x20] sm:$0xff]  ;;  %644 = vst.msk [vmem:[#allocation2 + $0x171] sm:$0xff] %vm614_vm2, %v610_v50  ;;  %623 = vst.msk [vmem:[#allocation2 + $0x79] sm:$0xff] %vm614_vm2, %v589_v1  ;;  %v591_v18 = vadd.f32 %v7024_v13, %v553_v10  ;;  %v592_v19 = vadd.f32 %v7024_v13, %v554_v12 }
  0x30   : > { %6634 = vmatpush3.bf16.msra.mxu0 %v7111_v4  ;;  %v5292_v15 = vld [vmem:[%s8660_s5 + $0xc0] sm:$0xff]  ;;  %v5293_v16 = vld [vmem:[%s8660_s5 + $0xc8] sm:$0xff]  ;;  %624 = vst.msk [vmem:[#allocation2 + $0x81] sm:$0xff] %vm614_vm2, %v590_v2  ;;  %6025 = vmatprep.mubr.msk.f32.mxu1 %vm614_vm2, %v7215_v0  ;;  %v7253_v4 = vld [vmem:[#allocation2 + $0xf8] sm:$0xff]  ;;  %v6621_v22 = vpack.c.bf16 %v5252_v9, %v5251_v7 }
  0x31   : > { %6616 = vmatpush3.bf16.msra.mxu1 %v7151_v28  ;;  %v7256_v17 = vld [vmem:[#allocation2 + $0x30] sm:$0xff]  ;;  %v517_v20 = vld [vmem:[%s7019_s30 + $0x60] sm:$0xff]  ;;  %v7261_v21 = vld [vmem:[#allocation2 + $0x108] sm:$0xff]  ;;  %5998 = vmatprep.mubr.msk.f32.mxu0 %vm614_vm2, %v7225_v5  ;;  %v6639_v25 = vpack.c.bf16 %v5293_v16, %v5292_v15  ;;  %625 = vst.msk [vmem:[#allocation2 + $0x91] sm:$0xff] %vm614_vm2, %v591_v18 }
  0x32   : > { %6618 = vmatprep.subr.bf16.mxu1 %v6617_v59  ;;  %v555_v23 = vmul.f32 %v7011_v11, %v517_v20  ;;  %v518_v24 = vld [vmem:[%s7019_s30 + $0x68] sm:$0xff]  ;;  %6636 = vmatprep.subr.bf16.mxu0 %v6635_v6  ;;  %v5253_v26 = vld [vmem:[%s8660_s5 + $0x90] sm:$0xff]  ;;  %v5254_v28 = vld [vmem:[%s8660_s5 + $0x98] sm:$0x3]  ;;  %626 = vst.msk [vmem:[#allocation2 + $0x99] sm:$0xff] %vm614_vm2, %v592_v19 }
  0x33   : > { %5999 = vmatmul.mubr.msk.f32.gmra.mrb[2].mxu0 %vm614_vm2, %v7240_v14  ;;  %v556_v29 = vmul.f32 %v7011_v11, %v518_v24  ;;  %6026 = vmatmul.mubr.msk.f32.gmra.mrb[4].mxu1 %vm614_vm2, %v7253_v4  ;;  %v7282_v30 = vld [vmem:[#allocation2 + $0x38] sm:$0xff]  ;;  %v5294_v31 = vld [vmem:[%s8660_s5 + $0xd0] sm:$0xff]  ;;  %v7295_v35 = vld [vmem:[#allocation2 + $0x48] sm:$0xff]  ;;  %v6625_v38 = vpack.c.bf16 %v5254_v28, %v5253_v26 }
  0x34   : > { %6001 = vmatprep.mubr.msk.f32.mxu0 %vm614_vm2, %v7256_v17  ;;  %v5295_v32 = vld [vmem:[%s8660_s5 + $0xd8] sm:$0xff]  ;;  %v593_v33 = vadd.f32 %v7024_v13, %v555_v23  ;;  %6028 = vmatprep.mubr.msk.f32.mxu1 %vm614_vm2, %v7261_v21  ;;  %v7293_v34 = vld [vmem:[#allocation2 + $0x110] sm:$0xff]  ;;  %v7298_v37 = vld [vmem:[#allocation2 + $0x120] sm:$0xff] }
  0x35   : > { %6620 = vmatpush3.bf16.msra.mxu1 %v6617_v59  ;;  %v594_v36 = vadd.f32 %v7024_v13, %v556_v29  ;;  %6638 = vmatpush3.bf16.msra.mxu0 %v6635_v6  ;;  %v6643_v39 = vpack.c.bf16 %v5295_v32, %v5294_v31  ;;  %v5331_v41 = vld [vmem:[%s8660_s5 + $0xf0] sm:$0xff]  ;;  %v5332_v42 = vld [vmem:[%s8660_s5 + $0xf8] sm:$0xff]  ;;  %v5296_v44 = vld [vmem:[%s8660_s5 + $0xe0] sm:$0xff] }
  0x36   : > { %6622 = vmatprep.subr.bf16.mxu1 %v6621_v22  ;;  %627 = vst.msk [vmem:[#allocation2 + $0xa9] sm:$0xff] %vm614_vm2, %v593_v33  ;;  %6640 = vmatprep.subr.bf16.mxu0 %v6639_v25  ;;  %v7314_v43 = vld [vmem:[#allocation2 + $0x50] sm:$0xff]  ;;  %v5297_v45 = vld [vmem:[%s8660_s5 + $0xe8] sm:$0x3]  ;;  %v7326_v47 = vld [vmem:[#allocation2 + $0x60] sm:$0xff]  ;;  %v6653_v49 = vpack.c.bf16 %v5332_v42, %v5331_v41 }
  0x37   : > { %6002 = vmatmul.mubr.msk.f32.gmra.mrb[4].mxu0 %vm614_vm2, %v7282_v30  ;;  %628 = vst.msk [vmem:[#allocation2 + $0xb1] sm:$0xff] %vm614_vm2, %v594_v36  ;;  %6029 = vmatmul.mubr.msk.f32.gmra.mrb[6].mxu1 %vm614_vm2, %v7293_v34  ;;  %v7324_v46 = vld [vmem:[#allocation2 + $0x128] sm:$0xff]  ;;  %v7328_v48 = vld [vmem:[#allocation2 + $0x138] sm:$0xff]  ;;  %v6647_v51 = vpack.c.bf16 %v5297_v45, %v5296_v44  ;;  %v5374_v53 = vld [vmem:[%s8660_s5 + $0x140] sm:$0xff] }
  0x38   : > { %6004 = vmatprep.mubr.msk.f32.mxu0 %vm614_vm2, %v7295_v35  ;;  %6031 = vmatprep.mubr.msk.f32.mxu1 %vm614_vm2, %v7298_v37  ;;  %v7338_v52 = vld [vmem:[#allocation2 + $0x68] sm:$0xff]  ;;  %v7348_v55 = vld [vmem:[#allocation2 + $0x140] sm:$0xff]  ;;  %v7352_v56 = vld [vmem:[#allocation2 + $0x78] sm:$0xff] }
  0x39   : > { %6624 = vmatpush3.bf16.msra.mxu1 %v6621_v22  ;;  %6642 = vmatpush3.bf16.msra.mxu0 %v6639_v25  ;;  %v5375_v54 = vld [vmem:[%s8660_s5 + $0x148] sm:$0xff]  ;;  %8701 = vst [vmem:[#allocation4_spill] sm:$0xff] %v7348_v55  ;;  %v7354_v58 = vld [vmem:[#allocation2 + $0x150] sm:$0xff]  ;;  %v7364_v61 = vld [vmem:[#allocation2 + $0x80] sm:$0xff] }
  0x3a   : > { %6627 = vmatprep.subr.msk.bf16.mxu1 %vm7100_vm4, %v6625_v38  ;;  %6644 = vmatprep.subr.bf16.mxu0 %v6643_v39  ;;  %8702 = vst [vmem:[#allocation5_spill] sm:$0xff] %v7354_v58  ;;  %v6675_v59 = vpack.c.bf16 %v5375_v54, %v5374_v53  ;;  %v7368_v62 = vld [vmem:[#allocation2 + $0x158] sm:$0xff]  ;;  %v7370_v63 = vld [vmem:[#allocation2 + $0x90] sm:$0xff]  ;;  %v7372_v50 = vld [vmem:[#allocation2 + $0x168] sm:$0xff] }
  0x3b   : > { %6005 = vmatmul.mubr.msk.f32.gmra.mrb[6].mxu0 %vm614_vm2, %v7314_v43  ;;  %6032 = vmatmul.mubr.msk.f32.gmra.mrb[8].mxu1 %vm614_vm2, %v7324_v46  ;;  %8703 = vst [vmem:[#allocation6_spill] sm:$0xff] %v7368_v62  ;;  %8704 = vst [vmem:[#allocation7_spill] sm:$0xff] %v7372_v50  ;;  %v7382_v1 = vld [vmem:[#allocation2 + $0x98] sm:$0xff]  ;;  %v7386_v2 = vld [vmem:[#allocation2 + $0x170] sm:$0xff] }
  0x3c   : > { %6007 = vmatprep.mubr.msk.f32.mxu0 %vm614_vm2, %v7326_v47  ;;  %6034 = vmatprep.mubr.msk.f32.mxu1 %vm614_vm2, %v7328_v48  ;;  %8705 = vst [vmem:[#allocation8_spill] sm:$0xff] %v7386_v2  ;;  %v1075_v6 = vld [vmem:[#allocation2 + $0x1] sm:$0xff]  ;;  %v1076_v12 = vld [vmem:[#allocation2 + $0x9] sm:$0xff]  ;;  %v7405_v16 = vld [vmem:[#allocation2 + $0x19] sm:$0xff] }
  0x3d   : > { %6630 = vmatpush3.bf16.msk.msra.mxu1 %vm7100_vm4, %v6625_v38  ;;  %6646 = vmatpush3.bf16.msra.mxu0 %v6643_v39  ;;  %v7388_v3 = vld [vmem:[#allocation2 + $0xa8] sm:$0xff]  ;;  %v5333_v7 = vld [vmem:[%s8660_s5 + $0x100] sm:$0xff]  ;;  %v5376_v19 = vld [vmem:[%s8660_s5 + $0x150] sm:$0xff] }
  0x3e   : > { %6654 = vmatprep.subr.bf16.mxu1 %v6653_v49  ;;  %6649 = vmatprep.subr.msk.bf16.mxu0 %vm7100_vm4, %v6647_v51  ;;  %v5334_v9 = vld [vmem:[%s8660_s5 + $0x108] sm:$0xff]  ;;  %v7402_v10 = vld [vmem:[#allocation2 + $0xb0] sm:$0xff]  ;;  %v5377_v20 = vld [vmem:[%s8660_s5 + $0x158] sm:$0xff] }
  0x3f   : > { %6008 = vmatmul.mubr.msk.f32.gmra.mrb[8].mxu0 %vm614_vm2, %v7338_v52  ;;  %6035 = vmatmul.mubr.msk.f32.gmra.mrb[10].mxu1 %vm614_vm2, %v7348_v55  ;;  %v1538_v15 = vld [vmem:[#allocation2 + $0x2] sm:$0xff]  ;;  %v6657_v18 = vpack.c.bf16 %v5334_v9, %v5333_v7  ;;  %v1539_v22 = vld [vmem:[#allocation2 + $0xa] sm:$0xff]  ;;  %v5336_v24 = vld [vmem:[%s8660_s5 + $0x118] sm:$0xff]  ;;  %v6679_v29 = vpack.c.bf16 %v5377_v20, %v5376_v19 }
  0x40   : > { %6010 = vmatprep.mubr.msk.f32.mxu0 %vm614_vm2, %v7352_v56  ;;  %6037 = vmatprep.mubr.msk.f32.mxu1 %vm614_vm2, %v7354_v58  ;;  %v5335_v23 = vld [vmem:[%s8660_s5 + $0x110] sm:$0xff]  ;;  %v7425_v25 = vld [vmem:[#allocation2 + $0x21] sm:$0xff]  ;;  %v7450_v41 = vld [vmem:[#allocation2 + $0x39] sm:$0xff] }
  0x41   : > { %6652 = vmatpush3.bf16.msk.msra.mxu0 %vm7100_vm4, %v6647_v51  ;;  %v7427_v26 = vld [vmem:[#allocation2 + $0x31] sm:$0xff]  ;;  %v7429_v28 = vld [vmem:[#allocation2 + $0x1a] sm:$0xff]  ;;  %v6661_v31 = vpack.c.bf16 %v5336_v24, %v5335_v23  ;;  %v5379_v33 = vld [vmem:[%s8660_s5 + $0x168] sm:$0xff] }
  0x42   : > { %6676 = vmatprep.subr.bf16.mxu0 %v6675_v59  ;;  %8706 = vst [vmem:[#allocation9_spill] sm:$0xff] %v7429_v28  ;;  %v5378_v32 = vld [vmem:[%s8660_s5 + $0x160] sm:$0xff]  ;;  %v5338_v39 = vld [vmem:[%s8660_s5 + $0x128] sm:$0xff]  ;;  %v7454_v42 = vld [vmem:[#allocation2 + $0x32] sm:$0xff] }
  0x43   : > { %6011 = vmatmul.mubr.msk.f32.gmra.mrb[10].mxu0 %vm614_vm2, %v7364_v61  ;;  %6038 = vmatmul.mubr.msk.f32.gmra.mrb[12].mxu1 %vm614_vm2, %v7368_v62  ;;  %v7440_v36 = vld [vmem:[#allocation2 + $0x22] sm:$0xff]  ;;  %8708 = vst [vmem:[#allocation11_spill] sm:$0xff] %v7454_v42  ;;  %v6683_v45 = vpack.c.bf16 %v5379_v33, %v5378_v32  ;;  %v5380_v51 = vld [vmem:[%s8660_s5 + $0x170] sm:$0xff]  ;;  %v5381_v53 = vld [vmem:[%s8660_s5 + $0x178] sm:$0xff] }
  0x44   : > { %6013 = vmatprep.mubr.msk.f32.mxu0 %vm614_vm2, %v7370_v63  ;;  %6040 = vmatprep.mubr.msk.f32.mxu1 %vm614_vm2, %v7372_v50  ;;  %8707 = vst [vmem:[#allocation10_spill] sm:$0xff] %v7440_v36  ;;  %v5337_v38 = vld [vmem:[%s8660_s5 + $0x120] sm:$0xff]  ;;  %v7456_v44 = vld [vmem:[#allocation2 + $0x49] sm:$0xff]  ;;  %v7480_v7 = vld [vmem:[#allocation2 + $0x51] sm:$0xff] }
  0x45   : > { %v7470_v54 = vld [vmem:[#allocation2 + $0x3a] sm:$0xff]  ;;  %v7482_v9 = vld [vmem:[#allocation2 + $0x4a] sm:$0xff]  ;;  %v7702_v50 = vld [vmem:[#allocation2 + $0x152] sm:$0xff] }
  0x46   : > { %8709 = vst [vmem:[#allocation12_spill] sm:$0xff] %v7470_v54  ;;  %8710 = vst [vmem:[#allocation13_spill] sm:$0xff] %v7482_v9  ;;  %v5382_v20 = vld [vmem:[%s8660_s5 + $0x180] sm:$0xff]  ;;  %v535_v23 = vld [vmem:[%s7019_s30 + $0xf0] sm:$0xff] }
  0x47   : > { %6014 = vmatmul.mubr.msk.f32.gmra.mrb[12].mxu0 %vm614_vm2, %v7382_v1  ;;  %6041 = vmatmul.mubr.msk.f32.gmra.mrb[14].mxu1 %vm614_vm2, %v7386_v2  ;;  %v5417_v24 = vld [vmem:[%s8660_s5 + $0x190] sm:$0xff]  ;;  %v536_v32 = vld [vmem:[%s7019_s30 + $0xf8] sm:$0xff]  ;;  %8735 = vst [vmem:[#allocation38_spill] sm:$0xff] %v7702_v50  ;;  %v665_v58 = vld [vmem:[%s443_s23 + $0x8] sm:$0xff] }
  0x48   : > { %6016 = vmatprep.mubr.msk.f32.mxu0 %vm614_vm2, %v7388_v3  ;;  %6063 = vmatprep.mubr.msk.f32.mxu1 %vm614_vm2, %v1075_v6  ;;  %v5340_v6 = vld [vmem:[%s8660_s5 + $0x138] sm:$0x3]  ;;  %v7511_v33 = vld [vmem:[#allocation2 + $0x69] sm:$0xff]  ;;  %v3406_v60 = vld [vmem:[#allocation2 + $0xe0] sm:$0xff] }
  0x49   : > { %v7600_v8 = vld [vmem:[#allocation2 + $0xc9] sm:$0xff]  ;;  %v7684_v2 = vld [vmem:[#allocation2 + $0x151] sm:$0xff] }
  0x4a   : > { %8733 = vst [vmem:[#allocation36_spill] sm:$0xff] %v7684_v2  ;;  %v7704_v62 = vld [vmem:[#allocation2 + $0x169] sm:$0xff] }
  0x4b   : > { %6017 = vmatmul.mubr.msk.f32.gmra.mrb[14].mxu0 %vm614_vm2, %v7402_v10  ;;  %6064 = vmatmul.mubr.msk.f32.vlgmr.msra.gmra.mrb[16].mxu1 %vm614_vm2, %v1076_v12  ;;  %v7484_v12 = vld [vmem:[#allocation2 + $0x61] sm:$0xff]  ;;  %v7721_v55 = vld [vmem:[#allocation2 + $0x16a] sm:$0xff] }
  0x4c   : > { %6131 = vmatprep.mubr.msk.f32.mxu0 %vm614_vm2, %v1538_v15  ;;  %6656 = vmatpush3.bf16.msra.mxu1 %v6653_v49  ;;  %v6665_v49 = vpack.c.bf16 %v5338_v39, %v5337_v38  ;;  %v7486_v15 = vld [vmem:[#allocation2 + $0x52] sm:$0xff]  ;;  %v7513_v38 = vld [vmem:[#allocation2 + $0x62] sm:$0xff]  ;;  %v574_v39 = vmul.f32 %v7011_v11, %v536_v32 }
  0x4d   : > { %6066 = vmatprep.mubr.msk.f32.mxu1 %vm614_vm2, %v7405_v16  ;;  %6658 = vmatprep.subr.bf16.mxu1 %v6657_v18  ;;  %8711 = vst [vmem:[#allocation14_spill] sm:$0xff] %v7486_v15  ;;  %8712 = vst [vmem:[#allocation15_spill] sm:$0xff] %v7513_v38  ;;  %v7567_v32 = vld [vmem:[#allocation2 + $0x92] sm:$0xff] }
  0x4e   : > { %8716 = vst [vmem:[#allocation19_spill] sm:$0xff] %v7567_v32 }
  0x4f   : > { %6132 = vmatmul.mubr.msk.f32.vlgmr.msra.gmra.mrb[16].mxu0 %vm614_vm2, %v1539_v22  ;;  %6067 = vmatmul.mubr.msk.f32.gmra.mrb[18].mxu1 %vm614_vm2, %v7425_v25  ;;  %v5383_v22 = vld [vmem:[%s8660_s5 + $0x188] sm:$0x3] }
  0x50   : > { %6678 = vmatpush3.bf16.msra.mxu0 %v6675_v59  ;;  %6069 = vmatprep.mubr.msk.f32.mxu1 %vm614_vm2, %v7427_v26  ;;  %v5339_v59 = vld [vmem:[%s8660_s5 + $0x130] sm:$0xff] }
  0x51   : > { %6134 = vmatprep.mubr.msk.f32.mxu0 %vm614_vm2, %v7429_v28  ;;  %6660 = vmatpush3.bf16.msra.mxu1 %v6657_v18  ;;  %v6687_v18 = vpack.c.bf16 %v5381_v53, %v5380_v51  ;;  %v6669_v19 = vpack.c.bf16 %v5340_v6, %v5339_v59  ;;  %v7516_v51 = vld [vmem:[#allocation2 + $0x79] sm:$0xff]  ;;  %v6691_v53 = vpack.c.bf16 %v5383_v22, %v5382_v20  ;;  %v7536_v22 = vld [vmem:[#allocation2 + $0x6a] sm:$0xff] }
  0x52   : > { %6680 = vmatprep.subr.bf16.mxu0 %v6679_v29  ;;  %6662 = vmatprep.subr.bf16.mxu1 %v6661_v31  ;;  %v612_v20 = vadd.f32 %v7024_v13, %v574_v39  ;;  %8713 = vst [vmem:[#allocation16_spill] sm:$0xff] %v7536_v22  ;;  %v7571_v39 = vld [vmem:[#allocation2 + $0xa9] sm:$0xff]  ;;  %v7682_v28 = vld [vmem:[#allocation2 + $0x13a] sm:$0xff] }
  0x53   : > { %6135 = vmatmul.mubr.msk.f32.gmra.mrb[18].mxu0 %vm614_vm2, %v7440_v36  ;;  %6070 = vmatmul.mubr.msk.f32.gmra.mrb[20].mxu1 %vm614_vm2, %v7450_v41  ;;  %v7668_v36 = vld [vmem:[#allocation2 + $0x139] sm:$0xff]  ;;  %8732 = vst [vmem:[#allocation35_spill] sm:$0xff] %v7682_v28 }
  0x54   : > { %6137 = vmatprep.mubr.msk.f32.mxu0 %vm614_vm2, %v7454_v42  ;;  %6072 = vmatprep.mubr.msk.f32.mxu1 %vm614_vm2, %v7456_v44  ;;  %646 = vst.msk [vmem:[#allocation2 + $0x189] sm:$0xff] %vm614_vm2, %v612_v20  ;;  %v7596_v20 = vld [vmem:[#allocation2 + $0xb2] sm:$0xff]  ;;  %v7666_v42 = vld [vmem:[#allocation2 + $0x122] sm:$0xff]  ;;  %8729 = vst [vmem:[#allocation32_spill] sm:$0xff] %v7668_v36 }
  0x55   : > { %6682 = vmatpush3.bf16.msra.mxu0 %v6679_v29  ;;  %6664 = vmatpush3.bf16.msra.mxu1 %v6661_v31  ;;  %v5418_v29 = vld [vmem:[%s8660_s5 + $0x198] sm:$0xff]  ;;  %v573_v31 = vmul.f32 %v7011_v11, %v535_v23  ;;  %v7541_v23 = vld [vmem:[#allocation2 + $0x81] sm:$0xff]  ;;  %8719 = vst [vmem:[#allocation22_spill] sm:$0xff] %v7596_v20  ;;  %8728 = vst [vmem:[#allocation31_spill] sm:$0xff] %v7666_v42 }
  0x56   : > { %6684 = vmatprep.subr.bf16.mxu0 %v6683_v45  ;;  %6666 = vmatprep.subr.bf16.mxu1 %v6665_v49  ;;  %v7523_v6 = vpack.c.bf16 %v5418_v29, %v5417_v24  ;;  %v7543_v24 = vld [vmem:[#allocation2 + $0x7a] sm:$0xff]  ;;  %v7546_v29 = vld [vmem:[#allocation2 + $0x91] sm:$0xff] }
  0x57   : > { %6138 = vmatmul.mubr.msk.f32.gmra.mrb[20].mxu0 %vm614_vm2, %v7470_v54  ;;  %6073 = vmatmul.mubr.msk.f32.gmra.mrb[22].mxu1 %vm614_vm2, %v7480_v7  ;;  %v611_v59 = vadd.f32 %v7024_v13, %v573_v31  ;;  %8714 = vst [vmem:[#allocation17_spill] sm:$0xff] %v7543_v24  ;;  %v7652_v54 = vld [vmem:[#allocation2 + $0x121] sm:$0xff] }
  0x58   : > { %6140 = vmatprep.mubr.msk.f32.mxu0 %vm614_vm2, %v7482_v9  ;;  %6075 = vmatprep.mubr.msk.f32.mxu1 %vm614_vm2, %v7484_v12  ;;  %v7650_v9 = vld [vmem:[#allocation2 + $0x10a] sm:$0xff] }
  0x59   : > { %6686 = vmatpush3.bf16.msra.mxu0 %v6683_v45  ;;  %6668 = vmatpush3.bf16.msra.mxu1 %v6665_v49  ;;  %v5460_v45 = vld [vmem:[%s8660_s5 + $0x1e0] sm:$0xff]  ;;  %v5461_v49 = vld [vmem:[%s8660_s5 + $0x1e8] sm:$0xff]  ;;  %645 = vst.msk [vmem:[#allocation2 + $0x181] sm:$0xff] %vm614_vm2, %v611_v59  ;;  %8726 = vst [vmem:[#allocation29_spill] sm:$0xff] %v7650_v9 }
  0x5a   : > { %6688 = vmatprep.subr.bf16.mxu0 %v6687_v18  ;;  %6671 = vmatprep.subr.msk.bf16.mxu1 %vm7100_vm4, %v6669_v19  ;;  %v7552_v31 = vpack.c.bf16 %v5461_v49, %v5460_v45  ;;  %v7580_v59 = vld [vmem:[#allocation2 + $0x9a] sm:$0xff]  ;;  %v7584_v45 = vld [vmem:[#allocation2 + $0xb1] sm:$0xff] }
  0x5b   : > { %6141 = vmatmul.mubr.msk.f32.gmra.mrb[22].mxu0 %vm614_vm2, %v7486_v15  ;;  %6076 = vmatmul.mubr.msk.f32.gmra.mrb[24].mxu1 %vm614_vm2, %v7511_v33  ;;  %8717 = vst [vmem:[#allocation20_spill] sm:$0xff] %v7580_v59  ;;  %v7588_v49 = vld [vmem:[#allocation2 + $0xc1] sm:$0xff]  ;;  %v7636_v15 = vld [vmem:[#allocation2 + $0x109] sm:$0xff] }
  0x5c   : > { %6143 = vmatprep.mubr.msk.f32.mxu0 %vm614_vm2, %v7513_v38  ;;  %6078 = vmatprep.mubr.msk.f32.mxu1 %vm614_vm2, %v7516_v51  ;;  %v7634_v38 = vld [vmem:[#allocation2 + $0xf2] sm:$0xff] }
  0x5d   : > { %6690 = vmatpush3.bf16.msra.mxu0 %v6687_v18  ;;  %6674 = vmatpush3.bf16.msk.msra.mxu1 %vm7100_vm4, %v6669_v19  ;;  %v7561_v18 = vld [vmem:[#allocation2 + $0x82] sm:$0xff]  ;;  %v7565_v19 = vld [vmem:[#allocation2 + $0x99] sm:$0xff]  ;;  %8724 = vst [vmem:[#allocation27_spill] sm:$0xff] %v7634_v38 }
  0x5e   : > { %6693 = vmatprep.subr.msk.bf16.mxu0 %vm7100_vm4, %v6691_v53  ;;  %6698 = vmatprep.subr.bf16.mxu1 %v7523_v6  ;;  %8715 = vst [vmem:[#allocation18_spill] sm:$0xff] %v7561_v18 }
  0x5f   : > { %6144 = vmatmul.mubr.msk.f32.gmra.mrb[24].mxu0 %vm614_vm2, %v7536_v22  ;;  %6079 = vmatmul.mubr.msk.f32.gmra.mrb[26].mxu1 %vm614_vm2, %v7541_v23  ;;  %v7620_v22 = vld [vmem:[#allocation2 + $0xf1] sm:$0xff] }
  0x60   : > { %6146 = vmatprep.mubr.msk.f32.mxu0 %vm614_vm2, %v7543_v24  ;;  %6081 = vmatprep.mubr.msk.f32.mxu1 %vm614_vm2, %v7546_v29  ;;  %v7618_v24 = vld [vmem:[#allocation2 + $0xda] sm:$0xff] }
  0x61   : > { %6696 = vmatpush3.bf16.msk.msra.mxu0 %vm7100_vm4, %v6691_v53  ;;  %v7586_v53 = vld [vmem:[#allocation2 + $0xaa] sm:$0xff]  ;;  %8722 = vst [vmem:[#allocation25_spill] sm:$0xff] %v7618_v24 }
  0x62   : > { %6720 = vmatprep.subr.bf16.mxu0 %v7552_v31  ;;  %8718 = vst [vmem:[#allocation21_spill] sm:$0xff] %v7586_v53 }
  0x63   : > { %6147 = vmatmul.mubr.msk.f32.gmra.mrb[26].mxu0 %vm614_vm2, %v7561_v18  ;;  %6082 = vmatmul.mubr.msk.f32.gmra.mrb[28].mxu1 %vm614_vm2, %v7565_v19  ;;  %v7604_v18 = vld [vmem:[#allocation2 + $0xd9] sm:$0xff] }
  0x64   : > { %6149 = vmatprep.mubr.msk.f32.mxu0 %vm614_vm2, %v7567_v32  ;;  %6084 = vmatprep.mubr.msk.f32.mxu1 %vm614_vm2, %v7571_v39  ;;  %v7602_v32 = vld [vmem:[#allocation2 + $0xc2] sm:$0xff] }
  0x65   : > { %8720 = vst [vmem:[#allocation23_spill] sm:$0xff] %v7602_v32 }
  0x67   : > { %6150 = vmatmul.mubr.msk.f32.gmra.mrb[28].mxu0 %vm614_vm2, %v7580_v59  ;;  %6085 = vmatmul.mubr.msk.f32.gmra.mrb[30].mxu1 %vm614_vm2, %v7584_v45  ;;  %v7616_v59 = vld [vmem:[#allocation2 + $0xe1] sm:$0xff] }
  0x68   : > { %6152 = vmatprep.mubr.msk.f32.mxu0 %vm614_vm2, %v7586_v53  ;;  %6087 = vmatprep.mubr.msk.f32.mxu1 %vm614_vm2, %v7588_v49  ;;  %v7612_v53 = vld [vmem:[#allocation2 + $0xca] sm:$0xff] }
  0x69   : > { %8721 = vst [vmem:[#allocation24_spill] sm:$0xff] %v7612_v53 }
  0x6b   : > { %6153 = vmatmul.mubr.msk.f32.gmra.mrb[30].mxu0 %vm614_vm2, %v7596_v20  ;;  %6088 = vmatmul.mubr.msk.f32.gmra.mrb[32].mxu1 %vm614_vm2, %v7600_v8  ;;  %v7632_v20 = vld [vmem:[#allocation2 + $0xf9] sm:$0xff] }
  0x6c   : > { %6155 = vmatprep.mubr.msk.f32.mxu0 %vm614_vm2, %v7602_v32  ;;  %6090 = vmatprep.mubr.msk.f32.mxu1 %vm614_vm2, %v7604_v18  ;;  %v7628_v32 = vld [vmem:[#allocation2 + $0xe2] sm:$0xff] }
  0x6d   : > { %8723 = vst [vmem:[#allocation26_spill] sm:$0xff] %v7628_v32 }
  0x6f   : > { %6156 = vmatmul.mubr.msk.f32.gmra.mrb[32].mxu0 %vm614_vm2, %v7612_v53  ;;  %6091 = vmatmul.mubr.msk.f32.gmra.mrb[34].mxu1 %vm614_vm2, %v7616_v59  ;;  %v7648_v53 = vld [vmem:[#allocation2 + $0x111] sm:$0xff] }
  0x70   : > { %6158 = vmatprep.mubr.msk.f32.mxu0 %vm614_vm2, %v7618_v24  ;;  %6093 = vmatprep.mubr.msk.f32.mxu1 %vm614_vm2, %v7620_v22  ;;  %v7644_v24 = vld [vmem:[#allocation2 + $0xfa] sm:$0xff] }
  0x71   : > { %8725 = vst [vmem:[#allocation28_spill] sm:$0xff] %v7644_v24 }
  0x73   : > { %6159 = vmatmul.mubr.msk.f32.gmra.mrb[34].mxu0 %vm614_vm2, %v7628_v32  ;;  %6094 = vmatmul.mubr.msk.f32.gmra.mrb[36].mxu1 %vm614_vm2, %v7632_v20  ;;  %v7664_v32 = vld [vmem:[#allocation2 + $0x129] sm:$0xff] }
  0x74   : > { %6161 = vmatprep.mubr.msk.f32.mxu0 %vm614_vm2, %v7634_v38  ;;  %6096 = vmatprep.mubr.msk.f32.mxu1 %vm614_vm2, %v7636_v15  ;;  %v7660_v38 = vld [vmem:[#allocation2 + $0x112] sm:$0xff] }
  0x75   : > { %8727 = vst [vmem:[#allocation30_spill] sm:$0xff] %v7660_v38 }
  0x77   : > { %6162 = vmatmul.mubr.msk.f32.gmra.mrb[36].mxu0 %vm614_vm2, %v7644_v24  ;;  %6097 = vmatmul.mubr.msk.f32.gmra.mrb[38].mxu1 %vm614_vm2, %v7648_v53  ;;  %v7680_v24 = vld [vmem:[#allocation2 + $0x141] sm:$0xff] }
  0x78   : > { %6164 = vmatprep.mubr.msk.f32.mxu0 %vm614_vm2, %v7650_v9  ;;  %6099 = vmatprep.mubr.msk.f32.mxu1 %vm614_vm2, %v7652_v54  ;;  %v7676_v9 = vld [vmem:[#allocation2 + $0x12a] sm:$0xff]  ;;  %8731 = vst [vmem:[#allocation34_spill] sm:$0xff] %v7680_v24 }
  0x79   : > { %8730 = vst [vmem:[#allocation33_spill] sm:$0xff] %v7676_v9 }
  0x7b   : > { %6165 = vmatmul.mubr.msk.f32.gmra.mrb[38].mxu0 %vm614_vm2, %v7660_v38  ;;  %6100 = vmatmul.mubr.msk.f32.gmra.mrb[40].mxu1 %vm614_vm2, %v7664_v32  ;;  %v7700_v38 = vld [vmem:[#allocation2 + $0x159] sm:$0xff] }
  0x7c   : > { %6167 = vmatprep.mubr.msk.f32.mxu0 %vm614_vm2, %v7666_v42  ;;  %6102 = vmatprep.mubr.msk.f32.mxu1 %vm614_vm2, %v7668_v36  ;;  %v7693_v42 = vld [vmem:[#allocation2 + $0x142] sm:$0xff] }
  0x7d   : > { %8734 = vst [vmem:[#allocation37_spill] sm:$0xff] %v7693_v42 }
  0x7f   : > { %6168 = vmatmul.mubr.msk.f32.gmra.mrb[40].mxu0 %vm614_vm2, %v7676_v9  ;;  %6103 = vmatmul.mubr.msk.f32.gmra.mrb[42].mxu1 %vm614_vm2, %v7680_v24  ;;  %v664_v9 = vld [vmem:[%s443_s23] sm:$0xff] }
  0x80   : > { %6170 = vmatprep.mubr.msk.f32.mxu0 %vm614_vm2, %v7682_v28  ;;  %6105 = vmatprep.mubr.msk.f32.mxu1 %vm614_vm2, %v7684_v2  ;;  %v666_v24 = vmul.f32 %v7011_v11, %v664_v9  ;;  %v667_v28 = vmul.f32 %v7011_v11, %v665_v58  ;;  %v7714_v2 = vld [vmem:[#allocation2 + $0x15a] sm:$0xff]  ;;  %v7719_v9 = vld [vmem:[#allocation2 + $0x171] sm:$0xff] }
  0x81   : > { %v5419_v58 = vld [vmem:[%s8660_s5 + $0x1a0] sm:$0xff] }
  0x82   : > { %v668_v36 = vadd.f32 %v7024_v13, %v666_v24  ;;  %v5420_v24 = vld [vmem:[%s8660_s5 + $0x1a8] sm:$0xff] }
  0x83   : > { %6171 = vmatmul.mubr.msk.f32.gmra.mrb[42].mxu0 %vm614_vm2, %v7693_v42  ;;  %6106 = vmatmul.mubr.msk.f32.gmra.mrb[44].mxu1 %vm614_vm2, %v7700_v38  ;;  %v669_v42 = vadd.f32 %v7024_v13, %v667_v28  ;;  %v7736_v13 = vld [vmem:[#allocation2 + $0x172] sm:$0xff]  ;;  %v6701_v28 = vpack.c.bf16 %v5420_v24, %v5419_v58  ;;  %v5465_v58 = vld [vmem:[%s8660_s5 + $0x208] sm:$0xff] }
  0x84   : > { %6173 = vmatprep.mubr.msk.f32.mxu0 %vm614_vm2, %v7702_v50  ;;  %6108 = vmatprep.mubr.msk.f32.mxu1 %vm614_vm2, %v7704_v62  ;;  %v671_v11 = vmul.f32 0.0, %v668_v36  ;;  %v5462_v36 = vld [vmem:[%s8660_s5 + $0x1f0] sm:$0xff] }
  0x85   : > { %v672_v50 = vmul.f32 0.0, %v669_v42  ;;  %v5463_v42 = vld [vmem:[%s8660_s5 + $0x1f8] sm:$0xff]  ;;  %v5466_v24 = vld [vmem:[%s8660_s5 + $0x210] sm:$0xff] }
  0x86   : > { %674 = vst.msk [vmem:[#allocation2 + $0x199] sm:$0xff] %vm614_vm2, %v671_v11  ;;  %v6723_v11 = vpack.c.bf16 %v5463_v42, %v5462_v36  ;;  %v5467_v36 = vld [vmem:[%s8660_s5 + $0x218] sm:$0xff]  ;;  %v5468_v42 = vld [vmem:[%s8660_s5 + $0x220] sm:$0xff] }
  0x87   : > { %6174 = vmatmul.mubr.msk.f32.gmra.mrb[44].mxu0 %vm614_vm2, %v7714_v2  ;;  %6109 = vmatmul.mubr.msk.f32.gmra.mrb[46].mxu1 %vm614_vm2, %v7719_v9  ;;  %675 = vst.msk [vmem:[#allocation2 + $0x1a1] sm:$0xff] %vm614_vm2, %v672_v50  ;;  %v5422_v50 = vld [vmem:[%s8660_s5 + $0x1b8] sm:$0xff] }
  0x88   : > { %6176 = vmatprep.mubr.msk.f32.mxu0 %vm614_vm2, %v7721_v55  ;;  %6199 = vmatprep.mubr.msk.f32.mxu1 %vm614_vm2, %v7225_v5  ;;  %v5421_v5 = vld [vmem:[%s8660_s5 + $0x1b0] sm:$0xff] }
  0x8b   : > { %6177 = vmatmul.mubr.msk.f32.gmra.mrb[46].mxu0 %vm614_vm2, %v7736_v13  ;;  %6200 = vmatmul.mubr.msk.f32.vlgmr.msra.gmra.mrb[48].mxu1 %vm614_vm2, %v7240_v14  ;;  %v6705_v14 = vpack.c.bf16 %v5422_v50, %v5421_v5  ;;  %v5469_v5 = vld [vmem:[%s8660_s5 + $0x228] sm:$0x3]  ;;  %v5504_v50 = vld [vmem:[%s8660_s5 + $0x238] sm:$0xff] }
  0x8c   : > { %6267 = vmatprep.mubr.msk.f32.mxu0 %vm614_vm2, %v7405_v16  ;;  %6700 = vmatpush3.bf16.msra.mxu1 %v7523_v6  ;;  %v5464_v16 = vld [vmem:[%s8660_s5 + $0x200] sm:$0xff] }
  0x8d   : > { %6202 = vmatprep.mubr.msk.f32.mxu1 %vm614_vm2, %v7256_v17  ;;  %6702 = vmatprep.subr.bf16.mxu1 %v6701_v28  ;;  %v5423_v17 = vld [vmem:[%s8660_s5 + $0x1c0] sm:$0xff]  ;;  %v6727_v6 = vpack.c.bf16 %v5465_v58, %v5464_v16  ;;  %v5547_v16 = vld [vmem:[%s8660_s5 + $0x288] sm:$0xff] }
  0x8e   : > { %v5509_v58 = vld [vmem:[%s8660_s5 + $0x260] sm:$0xff] }
  0x8f   : > { %6268 = vmatmul.mubr.msk.f32.vlgmr.msra.gmra.mrb[48].mxu0 %vm614_vm2, %v7425_v25  ;;  %6203 = vmatmul.mubr.msk.f32.gmra.mrb[50].mxu1 %vm614_vm2, %v7282_v30  ;;  %v5424_v25 = vld [vmem:[%s8660_s5 + $0x1c8] sm:$0xff] }
  0x90   : > { %6722 = vmatpush3.bf16.msra.mxu0 %v7552_v31  ;;  %6205 = vmatprep.mubr.msk.f32.mxu1 %vm614_vm2, %v7295_v35  ;;  %v6709_v31 = vpack.c.bf16 %v5424_v25, %v5423_v17  ;;  %v8748_v17 = vld [vmem:[#allocation13_spill] sm:$0xff] }
  0x91   : > { %6270 = vmatprep.mubr.msk.f32.mxu0 %vm614_vm2, %v7427_v26  ;;  %6704 = vmatpush3.bf16.msra.mxu1 %v6701_v28  ;;  %v5425_v26 = vld [vmem:[%s8660_s5 + $0x1d0] sm:$0xff]  ;;  %v6731_v28 = vpack.c.bf16 %v5467_v36, %v5466_v24  ;;  %v5553_v24 = vld [vmem:[%s8660_s5 + $0x2b8] sm:$0xff]  ;;  %v8749_v36 = vld [vmem:[#allocation14_spill] sm:$0xff] }
  0x92   : > { %6724 = vmatprep.subr.bf16.mxu0 %v6723_v11  ;;  %6706 = vmatprep.subr.bf16.mxu1 %v6705_v14 }
  0x93   : > { %6271 = vmatmul.mubr.msk.f32.gmra.mrb[50].mxu0 %vm614_vm2, %v7450_v41  ;;  %6206 = vmatmul.mubr.msk.f32.gmra.mrb[52].mxu1 %vm614_vm2, %v7314_v43  ;;  %v5426_v41 = vld [vmem:[%s8660_s5 + $0x1d8] sm:$0x3] }
  0x94   : > { %6273 = vmatprep.mubr.msk.f32.mxu0 %vm614_vm2, %v7456_v44  ;;  %6208 = vmatprep.mubr.msk.f32.mxu1 %vm614_vm2, %v7326_v47  ;;  %v6713_v44 = vpack.c.bf16 %v5426_v41, %v5425_v26  ;;  %v8750_v26 = vld [vmem:[#allocation15_spill] sm:$0xff] }
  0x95   : > { %6726 = vmatpush3.bf16.msra.mxu0 %v6723_v11  ;;  %6708 = vmatpush3.bf16.msra.mxu1 %v6705_v14  ;;  %v6735_v11 = vpack.c.bf16 %v5469_v5, %v5468_v42  ;;  %v5546_v14 = vld [vmem:[%s8660_s5 + $0x280] sm:$0xff]  ;;  %v8751_v42 = vld [vmem:[#allocation16_spill] sm:$0xff]  ;;  %v8752_v5 = vld [vmem:[#allocation17_spill] sm:$0xff] }
  0x96   : > { %6728 = vmatprep.subr.bf16.mxu0 %v6727_v6  ;;  %6710 = vmatprep.subr.bf16.mxu1 %v6709_v31 }
  0x97   : > { %6274 = vmatmul.mubr.msk.f32.gmra.mrb[52].mxu0 %vm614_vm2, %v7480_v7  ;;  %6209 = vmatmul.mubr.msk.f32.gmra.mrb[54].mxu1 %vm614_vm2, %v7338_v52  ;;  %v5503_v7 = vld [vmem:[%s8660_s5 + $0x230] sm:$0xff] }
  0x98   : > { %6276 = vmatprep.mubr.msk.f32.mxu0 %vm614_vm2, %v7484_v12  ;;  %6211 = vmatprep.mubr.msk.f32.mxu1 %vm614_vm2, %v7352_v56  ;;  %v7828_v12 = vpack.c.bf16 %v5504_v50, %v5503_v7  ;;  %v8753_v7 = vld [vmem:[#allocation18_spill] sm:$0xff] }
  0x99   : > { %6730 = vmatpush3.bf16.msra.mxu0 %v6727_v6  ;;  %6712 = vmatpush3.bf16.msra.mxu1 %v6709_v31  ;;  %v5552_v31 = vld [vmem:[%s8660_s5 + $0x2b0] sm:$0xff]  ;;  %v8757_v50 = vld [vmem:[#allocation22_spill] sm:$0xff] }
  0x9a   : > { %6732 = vmatprep.subr.bf16.mxu0 %v6731_v28  ;;  %6715 = vmatprep.subr.msk.bf16.mxu1 %vm7100_vm4, %v6713_v44  ;;  %v6775_v41 = vpack.c.bf16 %v5553_v24, %v5552_v31  ;;  %v3855_v31 = vld [vmem:[#allocation2 + $0x39] sm:$0xff] }
  0x9b   : > { %6277 = vmatmul.mubr.msk.f32.gmra.mrb[54].mxu0 %vm614_vm2, %v7511_v33  ;;  %6212 = vmatmul.mubr.msk.f32.gmra.mrb[56].mxu1 %vm614_vm2, %v7364_v61  ;;  %v7846_v33 = vpack.c.bf16 %v5547_v16, %v5546_v14  ;;  %v3407_v14 = vld [vmem:[#allocation2 + $0xf0] sm:$0xff]  ;;  %v8761_v16 = vld [vmem:[#allocation26_spill] sm:$0xff] }
  0x9c   : > { %6279 = vmatprep.mubr.msk.f32.mxu0 %vm614_vm2, %v7516_v51  ;;  %6214 = vmatprep.mubr.msk.f32.mxu1 %vm614_vm2, %v7370_v63  ;;  %v7859_v51 = vld [vmem:[#allocation2 + $0xc0] sm:$0xff]  ;;  %v4317_v24 = vld [vmem:[#allocation2 + $0x32] sm:$0xff] }
  0x9d   : > { %6734 = vmatpush3.bf16.msra.mxu0 %v6731_v28  ;;  %6718 = vmatpush3.bf16.msk.msra.mxu1 %vm7100_vm4, %v6713_v44  ;;  %v5554_v28 = vld [vmem:[%s8660_s5 + $0x2c0] sm:$0xff]  ;;  %v5555_v44 = vld [vmem:[%s8660_s5 + $0x2c8] sm:$0x3] }
  0x9e   : > { %6737 = vmatprep.subr.msk.bf16.mxu0 %vm7100_vm4, %v6735_v11  ;;  %6742 = vmatprep.subr.bf16.mxu1 %v7828_v12 }
  0x9f   : > { %6280 = vmatmul.mubr.msk.f32.gmra.mrb[56].mxu0 %vm614_vm2, %v7541_v23  ;;  %6215 = vmatmul.mubr.msk.f32.gmra.mrb[58].mxu1 %vm614_vm2, %v7382_v1 }
  0xa0   : > { %6282 = vmatprep.mubr.msk.f32.mxu0 %vm614_vm2, %v7546_v29  ;;  %6217 = vmatprep.mubr.msk.f32.mxu1 %vm614_vm2, %v7388_v3  ;;  %v5548_v29 = vld [vmem:[%s8660_s5 + $0x290] sm:$0xff] }
  0xa1   : > { %6740 = vmatpush3.bf16.msk.msra.mxu0 %vm7100_vm4, %v6735_v11  ;;  %v8758_v11 = vld [vmem:[#allocation23_spill] sm:$0xff] }
  0xa2   : > { %6764 = vmatprep.subr.bf16.mxu0 %v7846_v33 }
  0xa3   : > { %6283 = vmatmul.mubr.msk.f32.gmra.mrb[58].mxu0 %vm614_vm2, %v7565_v19  ;;  %6218 = vmatmul.mubr.msk.f32.gmra.mrb[60].mxu1 %vm614_vm2, %v7402_v10  ;;  %v8745_v19 = vld [vmem:[#allocation10_spill] sm:$0xff] }
  0xa4   : > { %6285 = vmatprep.mubr.msk.f32.mxu0 %vm614_vm2, %v7571_v39  ;;  %6220 = vmatprep.mubr.msk.f32.mxu1 %vm614_vm2, %v7859_v51  ;;  %v5508_v39 = vld [vmem:[%s8660_s5 + $0x258] sm:$0xff] }
  0xa7   : > { %6286 = vmatmul.mubr.msk.f32.gmra.mrb[60].mxu0 %vm614_vm2, %v7584_v45  ;;  %6221 = vmatmul.mubr.msk.f32.gmra.mrb[62].mxu1 %vm614_vm2, %v7149_v27  ;;  %v8737_v27 = vld [vmem:[#allocation32_spill] sm:$0xff] }
  0xa8   : > { %6288 = vmatprep.mubr.msk.f32.mxu0 %vm614_vm2, %v7588_v49  ;;  %6223 = vmatprep.mubr.msk.f32.mxu1 %vm614_vm2, %v7174_v40  ;;  %v8738_v40 = vld [vmem:[#allocation5_spill] sm:$0xff]  ;;  %v5550_v49 = vld [vmem:[%s8660_s5 + $0x2a0] sm:$0xff] }
  0xab   : > { %6289 = vmatmul.mubr.msk.f32.gmra.mrb[62].mxu0 %vm614_vm2, %v7600_v8  ;;  %6224 = vmatmul.mubr.msk.f32.gmra.mrb[64].mxu1 %vm614_vm2, %v7209_v57  ;;  %v8736_v8 = vld [vmem:[#allocation4_spill] sm:$0xff]  ;;  %v8739_v57 = vld [vmem:[#allocation34_spill] sm:$0xff] }
  0xac   : > { %6291 = vmatprep.mubr.msk.f32.mxu0 %vm614_vm2, %v7604_v18  ;;  %6226 = vmatprep.mubr.msk.f32.mxu1 %vm614_vm2, %v7215_v0  ;;  %v8740_v0 = vld [vmem:[#allocation6_spill] sm:$0xff]  ;;  %v5549_v18 = vld [vmem:[%s8660_s5 + $0x298] sm:$0xff] }
  0xad   : > { %v6767_v45 = vpack.c.bf16 %v5549_v18, %v5548_v29  ;;  %v8769_v29 = vld [vmem:[#allocation37_spill] sm:$0xff] }
  0xae   : > { %v3416_v18 = vld [vmem:[#allocation2 + $0x158] sm:$0xff] }
  0xaf   : > { %6292 = vmatmul.mubr.msk.f32.gmra.mrb[64].mxu0 %vm614_vm2, %v7616_v59  ;;  %6227 = vmatmul.mubr.msk.f32.gmra.mrb[66].mxu1 %vm614_vm2, %v7253_v4  ;;  %v8741_v4 = vld [vmem:[#allocation36_spill] sm:$0xff]  ;;  %v8746_v59 = vld [vmem:[#allocation11_spill] sm:$0xff] }
  0xb0   : > { %6294 = vmatprep.mubr.msk.f32.mxu0 %vm614_vm2, %v7620_v22  ;;  %6229 = vmatprep.mubr.msk.f32.mxu1 %vm614_vm2, %v7261_v21  ;;  %v8742_v21 = vld [vmem:[#allocation7_spill] sm:$0xff]  ;;  %v3391_v22 = vld [vmem:[#allocation2 + $0x30] sm:$0xff] }
  0xb3   : > { %6295 = vmatmul.mubr.msk.f32.gmra.mrb[66].mxu0 %vm614_vm2, %v7632_v20  ;;  %6230 = vmatmul.mubr.msk.f32.gmra.mrb[68].mxu1 %vm614_vm2, %v7293_v34  ;;  %v7926_v34 = vld [vmem:[#allocation2 + $0x180] sm:$0xff]  ;;  %v5551_v20 = vld [vmem:[%s8660_s5 + $0x2a8] sm:$0xff] }
  0xb4   : > { %6297 = vmatprep.mubr.msk.f32.mxu0 %vm614_vm2, %v7636_v15  ;;  %6232 = vmatprep.mubr.msk.f32.mxu1 %vm614_vm2, %v7298_v37  ;;  %v8743_v37 = vld [vmem:[#allocation8_spill] sm:$0xff]  ;;  %v5506_v15 = vld [vmem:[%s8660_s5 + $0x248] sm:$0xff]  ;;  %v6771_v25 = vpack.c.bf16 %v5551_v20, %v5550_v49 }
  0xb7   : > { %6298 = vmatmul.mubr.msk.f32.gmra.mrb[68].mxu0 %vm614_vm2, %v7648_v53  ;;  %6233 = vmatmul.mubr.msk.f32.gmra.mrb[70].mxu1 %vm614_vm2, %v7324_v46  ;;  %v7936_v46 = vld [vmem:[#allocation2 + $0x188] sm:$0xff] }
  0xb8   : > { %6300 = vmatprep.mubr.msk.f32.mxu0 %vm614_vm2, %v7652_v54  ;;  %6235 = vmatprep.mubr.msk.f32.mxu1 %vm614_vm2, %v7328_v48  ;;  %v7938_v48 = vld [vmem:[#allocation2 + $0x181] sm:$0xff] }
  0xb9   : > { %v5505_v54 = vld [vmem:[%s8660_s5 + $0x240] sm:$0xff] }
  0xba   : > { %v6745_v23 = vpack.c.bf16 %v5506_v15, %v5505_v54  ;;  %v3413_v54 = vld [vmem:[#allocation2 + $0x138] sm:$0xff] }
  0xbb   : > { %6301 = vmatmul.mubr.msk.f32.gmra.mrb[70].mxu0 %vm614_vm2, %v7664_v32  ;;  %6236 = vmatmul.mubr.msk.f32.gmra.mrb[72].mxu1 %vm614_vm2, %v8736_v8  ;;  %v5507_v32 = vld [vmem:[%s8660_s5 + $0x250] sm:$0xff]  ;;  %v3409_v8 = vld [vmem:[#allocation2 + $0x108] sm:$0xff]  ;;  %v8767_v15 = vld [vmem:[#allocation33_spill] sm:$0xff] }
  0xbc   : > { %6303 = vmatprep.mubr.msk.f32.mxu0 %vm614_vm2, %v8737_v27  ;;  %6238 = vmatprep.mubr.msk.f32.mxu1 %vm614_vm2, %v8738_v40  ;;  %v6749_v53 = vpack.c.bf16 %v5508_v39, %v5507_v32  ;;  %v8763_v27 = vld [vmem:[#allocation28_spill] sm:$0xff]  ;;  %v3417_v32 = vld [vmem:[#allocation2 + $0x168] sm:$0xff] }
  0xbd   : > { %v3410_v40 = vld [vmem:[#allocation2 + $0x110] sm:$0xff] }
  0xbf   : > { %6304 = vmatmul.mubr.msk.f32.gmra.mrb[72].mxu0 %vm614_vm2, %v8739_v57  ;;  %6239 = vmatmul.mubr.msk.f32.gmra.mrb[74].mxu1 %vm614_vm2, %v8740_v0  ;;  %v8764_v57 = vld [vmem:[#allocation29_spill] sm:$0xff]  ;;  %v3411_v0 = vld [vmem:[#allocation2 + $0x120] sm:$0xff] }
  0xc0   : > { %6306 = vmatprep.mubr.msk.f32.mxu0 %vm614_vm2, %v8741_v4  ;;  %6241 = vmatprep.mubr.msk.f32.mxu1 %vm614_vm2, %v8742_v21  ;;  %v8765_v4 = vld [vmem:[#allocation30_spill] sm:$0xff]  ;;  %v3412_v21 = vld [vmem:[#allocation2 + $0x128] sm:$0xff] }
  0xc3   : > { %6307 = vmatmul.mubr.msk.f32.gmra.mrb[74].mxu0 %vm614_vm2, %v7700_v38  ;;  %6242 = vmatmul.mubr.msk.f32.gmra.mrb[76].mxu1 %vm614_vm2, %v8743_v37  ;;  %v8744_v38 = vld [vmem:[#allocation9_spill] sm:$0xff]  ;;  %v8766_v37 = vld [vmem:[#allocation31_spill] sm:$0xff] }
  0xc4   : > { %6309 = vmatprep.mubr.msk.f32.mxu0 %vm614_vm2, %v7704_v62  ;;  %6244 = vmatprep.mubr.msk.f32.mxu1 %vm614_vm2, %v7926_v34  ;;  %v7952_v62 = vld [vmem:[#allocation2 + $0x189] sm:$0xff] }
  0xc7   : > { %6310 = vmatmul.mubr.msk.f32.gmra.mrb[76].mxu0 %vm614_vm2, %v7719_v9  ;;  %6245 = vmatmul.mubr.msk.f32.gmra.mrb[78].mxu1 %vm614_vm2, %v7936_v46  ;;  %v8747_v9 = vld [vmem:[#allocation12_spill] sm:$0xff] }
  0xc8   : > { %6312 = vmatprep.mubr.msk.f32.mxu0 %vm614_vm2, %v7938_v48  ;;  %6335 = vmatprep.mubr.msk.f32.mxu1 %vm614_vm2, %v8744_v38  ;;  %v3414_v38 = vld [vmem:[#allocation2 + $0x140] sm:$0xff] }
  0xcb   : > { %6313 = vmatmul.mubr.msk.f32.gmra.mrb[78].mxu0 %vm614_vm2, %v7952_v62  ;;  %6336 = vmatmul.mubr.msk.f32.vlgmr.msra.gmra.mrb[80].mxu1 %vm614_vm2, %v8745_v19  ;;  %v8770_v19 = vld [vmem:[#allocation38_spill] sm:$0xff] }
  0xcc   : > { %6403 = vmatprep.mubr.msk.f32.mxu0 %vm614_vm2, %v3391_v22  ;;  %6744 = vmatpush3.bf16.msra.mxu1 %v7828_v12  ;;  %v8759_v12 = vld [vmem:[#allocation24_spill] sm:$0xff]  ;;  %v8768_v22 = vld [vmem:[#allocation35_spill] sm:$0xff] }
  0xcd   : > { %6338 = vmatprep.mubr.msk.f32.mxu1 %vm614_vm2, %v8746_v59  ;;  %6746 = vmatprep.subr.bf16.mxu1 %v6745_v23 }
  0xcf   : > { %6404 = vmatmul.mubr.msk.f32.vlgmr.msra.gmra.mrb[80].mxu0 %vm614_vm2, %v7282_v30  ;;  %6339 = vmatmul.mubr.msk.f32.gmra.mrb[82].mxu1 %vm614_vm2, %v8747_v9  ;;  %v5510_v30 = vld [vmem:[%s8660_s5 + $0x268] sm:$0xff] }
  0xd0   : > { %6766 = vmatpush3.bf16.msra.mxu0 %v7846_v33  ;;  %6341 = vmatprep.mubr.msk.f32.mxu1 %vm614_vm2, %v8748_v17  ;;  %v6753_v6 = vpack.c.bf16 %v5510_v30, %v5509_v58  ;;  %v3408_v33 = vld [vmem:[#allocation2 + $0xf8] sm:$0xff] }
  0xd1   : > { %6406 = vmatprep.mubr.msk.f32.mxu0 %vm614_vm2, %v7295_v35  ;;  %6748 = vmatpush3.bf16.msra.mxu1 %v6745_v23  ;;  %v5511_v35 = vld [vmem:[%s8660_s5 + $0x270] sm:$0xff]  ;;  %v3421_v58 = vld [vmem:[#allocation2 + $0x198] sm:$0xff] }
  0xd2   : > { %6768 = vmatprep.subr.bf16.mxu0 %v6767_v45  ;;  %6750 = vmatprep.subr.bf16.mxu1 %v6749_v53  ;;  %v3415_v23 = vld [vmem:[#allocation2 + $0x150] sm:$0xff] }
  0xd3   : > { %6407 = vmatmul.mubr.msk.f32.gmra.mrb[82].mxu0 %vm614_vm2, %v7314_v43  ;;  %6342 = vmatmul.mubr.msk.f32.gmra.mrb[84].mxu1 %vm614_vm2, %v8749_v36  ;;  %v5512_v43 = vld [vmem:[%s8660_s5 + $0x278] sm:$0x3]  ;;  %v3856_v36 = vld [vmem:[#allocation2 + $0x49] sm:$0xff] }
  0xd4   : > { %6409 = vmatprep.mubr.msk.f32.mxu0 %vm614_vm2, %v7326_v47  ;;  %6344 = vmatprep.mubr.msk.f32.mxu1 %vm614_vm2, %v8750_v26  ;;  %v6757_v47 = vpack.c.bf16 %v5512_v43, %v5511_v35  ;;  %v3854_v30 = vld [vmem:[#allocation2 + $0x31] sm:$0xff] }
  0xd5   : > { %6770 = vmatpush3.bf16.msra.mxu0 %v6767_v45  ;;  %6752 = vmatpush3.bf16.msra.mxu1 %v6749_v53  ;;  %v3418_v45 = vld [vmem:[#allocation2 + $0x170] sm:$0xff]  ;;  %v8107_v53 = vld [vmem:[#allocation2 + $0x182] sm:$0xff] }
  0xd6   : > { %6772 = vmatprep.subr.bf16.mxu0 %v6771_v25  ;;  %6754 = vmatprep.subr.bf16.mxu1 %v6753_v6 }
  0xd7   : > { %6410 = vmatmul.mubr.msk.f32.gmra.mrb[84].mxu0 %vm614_vm2, %v7338_v52  ;;  %6345 = vmatmul.mubr.msk.f32.gmra.mrb[86].mxu1 %vm614_vm2, %v8751_v42  ;;  %v6779_v52 = vpack.c.bf16 %v5555_v44, %v5554_v28  ;;  %v4319_v28 = vld [vmem:[#allocation2 + $0x4a] sm:$0xff]  ;;  %v3858_v44 = vld [vmem:[#allocation2 + $0x61] sm:$0xff] }
  0xd8   : > { %6412 = vmatprep.mubr.msk.f32.mxu0 %vm614_vm2, %v7352_v56  ;;  %6347 = vmatprep.mubr.msk.f32.mxu1 %vm614_vm2, %v8752_v5  ;;  %v8754_v56 = vld [vmem:[#allocation19_spill] sm:$0xff] }
  0xd9   : > { %6774 = vmatpush3.bf16.msra.mxu0 %v6771_v25  ;;  %6756 = vmatpush3.bf16.msra.mxu1 %v6753_v6 }
  0xda   : > { %6776 = vmatprep.subr.bf16.mxu0 %v6775_v41  ;;  %6759 = vmatprep.subr.msk.bf16.mxu1 %vm7100_vm4, %v6757_v47 }
  0xdb   : > { %6413 = vmatmul.mubr.msk.f32.gmra.mrb[86].mxu0 %vm614_vm2, %v7364_v61  ;;  %6348 = vmatmul.mubr.msk.f32.gmra.mrb[88].mxu1 %vm614_vm2, %v8753_v7  ;;  %v8755_v61 = vld [vmem:[#allocation20_spill] sm:$0xff] }
  0xdc   : > { %6415 = vmatprep.mubr.msk.f32.mxu0 %vm614_vm2, %v7370_v63  ;;  %6350 = vmatprep.mubr.msk.f32.mxu1 %vm614_vm2, %v8754_v56  ;;  %v8756_v63 = vld [vmem:[#allocation21_spill] sm:$0xff] }
  0xdd   : > { %6778 = vmatpush3.bf16.msra.mxu0 %v6775_v41  ;;  %6762 = vmatpush3.bf16.msk.msra.mxu1 %vm7100_vm4, %v6757_v47  ;;  %v4318_v41 = vld [vmem:[#allocation2 + $0x3a] sm:$0xff]  ;;  %v3857_v47 = vld [vmem:[#allocation2 + $0x51] sm:$0xff] }
  0xde   : > { %6781 = vmatprep.subr.msk.bf16.mxu0 %vm7100_vm4, %v6779_v52  ;;  %v4320_v56 = vld [vmem:[#allocation2 + $0x52] sm:$0xff] }
  0xdf   : > { %6416 = vmatmul.mubr.msk.f32.gmra.mrb[88].mxu0 %vm614_vm2, %v7382_v1  ;;  %6351 = vmatmul.mubr.msk.f32.gmra.mrb[90].mxu1 %vm614_vm2, %v8755_v61  ;;  %v3404_v1 = vld [vmem:[#allocation2 + $0xc8] sm:$0xff] }
  0xe0   : > { %6418 = vmatprep.mubr.msk.f32.mxu0 %vm614_vm2, %v7388_v3  ;;  %6353 = vmatprep.mubr.msk.f32.mxu1 %vm614_vm2, %v8756_v63  ;;  %v3405_v3 = vld [vmem:[#allocation2 + $0xd8] sm:$0xff]  ;;  %v3859_v61 = vld [vmem:[#allocation2 + $0x69] sm:$0xff] }
  0xe1   : > { %6784 = vmatpush3.bf16.msk.msra.mxu0 %vm7100_vm4, %v6779_v52  ;;  %v4321_v63 = vld [vmem:[#allocation2 + $0x62] sm:$0xff] }
  0xe3   : > { %6419 = vmatmul.mubr.msk.f32.gmra.mrb[90].mxu0 %vm614_vm2, %v7402_v10  ;;  %6354 = vmatmul.mubr.msk.f32.gmra.mrb[92].mxu1 %vm614_vm2, %v8757_v50  ;;  %v8760_v10 = vld [vmem:[#allocation25_spill] sm:$0xff] }
  0xe4   : > { %6421 = vmatprep.mubr.msk.f32.mxu0 %vm614_vm2, %v7859_v51  ;;  %6356 = vmatprep.mubr.msk.f32.mxu1 %vm614_vm2, %v8758_v11  ;;  %v8762_v51 = vld [vmem:[#allocation27_spill] sm:$0xff]  ;;  %v3860_v50 = vld [vmem:[#allocation2 + $0x79] sm:$0xff] }
  0xe7   : > { %6422 = vmatmul.mubr.msk.f32.gmra.mrb[92].mxu0 %vm614_vm2, %v3404_v1  ;;  %6357 = vmatmul.mubr.msk.f32.gmra.mrb[94].mxu1 %vm614_vm2, %v8759_v12 }
  0xe8   : > { %6424 = vmatprep.mubr.msk.f32.mxu0 %vm614_vm2, %v3405_v3  ;;  %6359 = vmatprep.mubr.msk.f32.mxu1 %vm614_vm2, %v8760_v10  ;;  %v3861_v10 = vld [vmem:[#allocation2 + $0x81] sm:$0xff] }
  0xeb   : > { %6425 = vmatmul.mubr.msk.f32.gmra.mrb[94].mxu0 %vm614_vm2, %v3406_v60  ;;  %6360 = vmatmul.mubr.msk.f32.gmra.mrb[96].mxu1 %vm614_vm2, %v8761_v16  ;;  %v4322_v60 = vld [vmem:[#allocation2 + $0x6a] sm:$0xff] }
  0xec   : > { %6427 = vmatprep.mubr.msk.f32.mxu0 %vm614_vm2, %v3407_v14  ;;  %6362 = vmatprep.mubr.msk.f32.mxu1 %vm614_vm2, %v8762_v51  ;;  %v4323_v14 = vld [vmem:[#allocation2 + $0x7a] sm:$0xff]  ;;  %v3862_v16 = vld [vmem:[#allocation2 + $0x91] sm:$0xff] }
  0xef   : > { %6428 = vmatmul.mubr.msk.f32.gmra.mrb[96].mxu0 %vm614_vm2, %v3408_v33  ;;  %6363 = vmatmul.mubr.msk.f32.gmra.mrb[98].mxu1 %vm614_vm2, %v8763_v27 }
  0xf0   : > { %6430 = vmatprep.mubr.msk.f32.mxu0 %vm614_vm2, %v3409_v8  ;;  %6365 = vmatprep.mubr.msk.f32.mxu1 %vm614_vm2, %v8764_v57  ;;  %v3863_v57 = vld [vmem:[#allocation2 + $0x99] sm:$0xff] }
  0xf3   : > { %6431 = vmatmul.mubr.msk.f32.gmra.mrb[98].mxu0 %vm614_vm2, %v3410_v40  ;;  %6366 = vmatmul.mubr.msk.f32.gmra.mrb[100].mxu1 %vm614_vm2, %v8765_v4  ;;  %v4324_v40 = vld [vmem:[#allocation2 + $0x82] sm:$0xff] }
  0xf4   : > { %6433 = vmatprep.mubr.msk.f32.mxu0 %vm614_vm2, %v3411_v0  ;;  %6368 = vmatprep.mubr.msk.f32.mxu1 %vm614_vm2, %v8766_v37  ;;  %v4325_v0 = vld [vmem:[#allocation2 + $0x92] sm:$0xff]  ;;  %v3864_v4 = vld [vmem:[#allocation2 + $0xa9] sm:$0xff] }
  0xf7   : > { %6434 = vmatmul.mubr.msk.f32.gmra.mrb[100].mxu0 %vm614_vm2, %v3412_v21  ;;  %6369 = vmatmul.mubr.msk.f32.gmra.mrb[102].mxu1 %vm614_vm2, %v8767_v15 }
  0xf8   : > { %6436 = vmatprep.mubr.msk.f32.mxu0 %vm614_vm2, %v3413_v54  ;;  %6371 = vmatprep.mubr.msk.f32.mxu1 %vm614_vm2, %v8768_v22  ;;  %v3865_v22 = vld [vmem:[#allocation2 + $0xb1] sm:$0xff] }
  0xfb   : > { %6437 = vmatmul.mubr.msk.f32.gmra.mrb[102].mxu0 %vm614_vm2, %v3414_v38  ;;  %6372 = vmatmul.mubr.msk.f32.gmra.mrb[104].mxu1 %vm614_vm2, %v8769_v29  ;;  %v4326_v38 = vld [vmem:[#allocation2 + $0x9a] sm:$0xff] }
  0xfc   : > { %6439 = vmatprep.mubr.msk.f32.mxu0 %vm614_vm2, %v3415_v23  ;;  %6374 = vmatprep.mubr.msk.f32.mxu1 %vm614_vm2, %v8770_v19  ;;  %v4327_v23 = vld [vmem:[#allocation2 + $0xaa] sm:$0xff]  ;;  %v3866_v29 = vld [vmem:[#allocation2 + $0xc1] sm:$0xff] }
  0xfe   : > { %v6021_v39 = vpop.f32.mrb[0].mxu1 }
  0xff   : > { %6440 = vmatmul.mubr.msk.f32.gmra.mrb[104].mxu0 %vm614_vm2, %v3416_v18  ;;  %1060 = vst.msk [vmem:[#allocation3 + $0x88] sm:$0xff] %vm614_vm2, %v6021_v39  ;;  %v964_v59 = vpop.f32.mrb[1].mxu1  ;;  %6375 = vmatmul.mubr.msk.f32.gmra.mrb[106].mxu1 %vm614_vm2, %v7714_v2 }
 0x100   : > { %6442 = vmatprep.mubr.msk.f32.mxu0 %vm614_vm2, %v3417_v32  ;;  %1059 = vst.msk [vmem:[#allocation3 + $0x80] sm:$0xff] %vm614_vm2, %v964_v59  ;;  %6377 = vmatprep.mubr.msk.f32.mxu1 %vm614_vm2, %v7721_v55  ;;  %v8120_v55 = vld [vmem:[#allocation2 + $0x18a] sm:$0xff] }
 0x102   : > { %v5997_v49 = vpop.f32.mrb[0].mxu0  ;;  %v6024_v20 = vpop.f32.mrb[2].mxu1 }
 0x103   : > { %1044 = vst.msk [vmem:[#allocation3 + $0x8] sm:$0xff] %vm614_vm2, %v5997_v49  ;;  %v884_v9 = vpop.f32.mrb[1].mxu0  ;;  %6443 = vmatmul.mubr.msk.f32.gmra.mrb[106].mxu0 %vm614_vm2, %v3418_v45  ;;  %1062 = vst.msk [vmem:[#allocation3 + $0x98] sm:$0xff] %vm614_vm2, %v6024_v20  ;;  %v974_v2 = vpop.f32.mrb[3].mxu1  ;;  %6378 = vmatmul.mubr.msk.f32.gmra.mrb[108].mxu1 %vm614_vm2, %v7736_v13  ;;  %v4328_v20 = vld [vmem:[#allocation2 + $0xb2] sm:$0xff] }
 0x104   : > { %1043 = vst.msk [vmem:[#allocation3] sm:$0xff] %vm614_vm2, %v884_v9  ;;  %6445 = vmatprep.mubr.msk.f32.mxu0 %vm614_vm2, %v7926_v34  ;;  %1061 = vst.msk [vmem:[#allocation3 + $0x90] sm:$0xff] %vm614_vm2, %v974_v2  ;;  %6380 = vmatprep.mubr.msk.f32.mxu1 %vm614_vm2, %v8107_v53  ;;  %v3422_v34 = vld [vmem:[#allocation2 + $0x1a0] sm:$0xff]  ;;  %v3867_v2 = vld [vmem:[#allocation2 + $0xc9] sm:$0xff] }
 0x106   : > { %v6000_v17 = vpop.f32.mrb[2].mxu0  ;;  %v6027_v25 = vpop.f32.mrb[4].mxu1 }
 0x107   : > { %1046 = vst.msk [vmem:[#allocation3 + $0x18] sm:$0xff] %vm614_vm2, %v6000_v17  ;;  %v894_v6 = vpop.f32.mrb[3].mxu0  ;;  %6446 = vmatmul.mubr.msk.f32.gmra.mrb[108].mxu0 %vm614_vm2, %v7936_v46  ;;  %1064 = vst.msk [vmem:[#allocation3 + $0xa8] sm:$0xff] %vm614_vm2, %v6027_v25  ;;  %v984_v13 = vpop.f32.mrb[5].mxu1  ;;  %6381 = vmatmul.mubr.msk.f32.gmra.mrb[110].mxu1 %vm614_vm2, %v8120_v55 }
 0x108   : > { %1045 = vst.msk [vmem:[#allocation3 + $0x10] sm:$0xff] %vm614_vm2, %v894_v6  ;;  %6448 = vmatprep.mubr.msk.f32.mxu0 %vm614_vm2, %v3421_v58  ;;  %1063 = vst.msk [vmem:[#allocation3 + $0xa0] sm:$0xff] %vm614_vm2, %v984_v13  ;;  %6471 = vmatprep.mubr.msk.f32.mxu1 %vm614_vm2, %v3854_v30  ;;  %v4329_v58 = vld [vmem:[#allocation2 + $0xc2] sm:$0xff]  ;;  %v3868_v30 = vld [vmem:[#allocation2 + $0xd9] sm:$0xff] }
 0x10a   : > { %v6003_v35 = vpop.f32.mrb[4].mxu0  ;;  %v6030_v46 = vpop.f32.mrb[6].mxu1  ;;  %v1443_v32 = vld [vmem:[#allocation3 + $0x8] sm:$0xff] }
 0x10b   : > { %1048 = vst.msk [vmem:[#allocation3 + $0x28] sm:$0xff] %vm614_vm2, %v6003_v35  ;;  %v904_v43 = vpop.f32.mrb[5].mxu0  ;;  %6449 = vmatmul.mubr.msk.f32.gmra.mrb[110].mxu0 %vm614_vm2, %v3422_v34  ;;  %1066 = vst.msk [vmem:[#allocation3 + $0xb8] sm:$0xff] %vm614_vm2, %v6030_v46  ;;  %v994_v26 = vpop.f32.mrb[7].mxu1  ;;  %6472 = vmatmul.mubr.msk.f32.vlgmr.msra.gmra.mrb[112].mxu1 %vm614_vm2, %v3855_v31  ;;  %v1442_v49 = vld [vmem:[#allocation3] sm:$0xff]  ;;  %v3869_v46 = vld [vmem:[#allocation2 + $0xe1] sm:$0xff] }
 0x10c   : > { %1047 = vst.msk [vmem:[#allocation3 + $0x20] sm:$0xff] %vm614_vm2, %v904_v43  ;;  %6539 = vmatprep.mubr.msk.f32.mxu0 %vm614_vm2, %v4317_v24  ;;  %1065 = vst.msk [vmem:[#allocation3 + $0xb0] sm:$0xff] %vm614_vm2, %v994_v26  ;;  %6474 = vmatprep.mubr.msk.f32.mxu1 %vm614_vm2, %v3856_v36  ;;  %v4330_v36 = vld [vmem:[#allocation2 + $0xca] sm:$0xff]  ;;  %v4331_v43 = vld [vmem:[#allocation2 + $0xda] sm:$0xff] }
 0x10d   : > { %v3870_v26 = vld [vmem:[#allocation2 + $0xf1] sm:$0xff] }
 0x10e   : > { %v6006_v42 = vpop.f32.mrb[6].mxu0  ;;  %v6033_v5 = vpop.f32.mrb[8].mxu1  ;;  %v1445_v6 = vld [vmem:[#allocation3 + $0x18] sm:$0xff] }
 0x10f   : > { %1050 = vst.msk [vmem:[#allocation3 + $0x38] sm:$0xff] %vm614_vm2, %v6006_v42  ;;  %v914_v52 = vpop.f32.mrb[7].mxu0  ;;  %6540 = vmatmul.mubr.msk.f32.vlgmr.msra.gmra.mrb[112].mxu0 %vm614_vm2, %v4318_v41  ;;  %1068 = vst.msk [vmem:[#allocation3 + $0xc8] sm:$0xff] %vm614_vm2, %v6033_v5  ;;  %v1004_v7 = vpop.f32.mrb[9].mxu1  ;;  %6475 = vmatmul.mubr.msk.f32.gmra.mrb[114].mxu1 %vm614_vm2, %v3857_v47  ;;  %v1444_v24 = vld [vmem:[#allocation3 + $0x10] sm:$0xff] }
 0x110   : > { %1049 = vst.msk [vmem:[#allocation3 + $0x30] sm:$0xff] %vm614_vm2, %v914_v52  ;;  %6542 = vmatprep.mubr.msk.f32.mxu0 %vm614_vm2, %v4319_v28  ;;  %1067 = vst.msk [vmem:[#allocation3 + $0xc0] sm:$0xff] %vm614_vm2, %v1004_v7  ;;  %6477 = vmatprep.mubr.msk.f32.mxu1 %vm614_vm2, %v3858_v44  ;;  %v4332_v7 = vld [vmem:[#allocation2 + $0xe2] sm:$0xff] }
 0x112   : > { %v6009_v1 = vpop.f32.mrb[8].mxu0  ;;  %v6036_v11 = vpop.f32.mrb[10].mxu1  ;;  %v1447_v28 = vld [vmem:[#allocation3 + $0x28] sm:$0xff] }
 0x113   : > { %1052 = vst.msk [vmem:[#allocation3 + $0x48] sm:$0xff] %vm614_vm2, %v6009_v1  ;;  %v924_v3 = vpop.f32.mrb[9].mxu0  ;;  %6543 = vmatmul.mubr.msk.f32.gmra.mrb[114].mxu0 %vm614_vm2, %v4320_v56  ;;  %1070 = vst.msk [vmem:[#allocation3 + $0xd8] sm:$0xff] %vm614_vm2, %v6036_v11  ;;  %v1014_v12 = vpop.f32.mrb[11].mxu1  ;;  %6478 = vmatmul.mubr.msk.f32.gmra.mrb[116].mxu1 %vm614_vm2, %v3859_v61  ;;  %v1446_v52 = vld [vmem:[#allocation3 + $0x20] sm:$0xff] }
 0x114   : > { %1051 = vst.msk [vmem:[#allocation3 + $0x40] sm:$0xff] %vm614_vm2, %v924_v3  ;;  %6545 = vmatprep.mubr.msk.f32.mxu0 %vm614_vm2, %v4321_v63  ;;  %1069 = vst.msk [vmem:[#allocation3 + $0xd0] sm:$0xff] %vm614_vm2, %v1014_v12  ;;  %6480 = vmatprep.mubr.msk.f32.mxu1 %vm614_vm2, %v3860_v50  ;;  %v3871_v63 = vld [vmem:[#allocation2 + $0xf9] sm:$0xff]  ;;  %v3872_v3 = vld [vmem:[#allocation2 + $0x109] sm:$0xff] }
 0x115   : > { %v4333_v50 = vld [vmem:[#allocation2 + $0xf2] sm:$0xff] }
 0x116   : > { %v6012_v33 = vpop.f32.mrb[10].mxu0  ;;  %v6039_v51 = vpop.f32.mrb[12].mxu1 }
 0x117   : > { %1054 = vst.msk [vmem:[#allocation3 + $0x58] sm:$0xff] %vm614_vm2, %v6012_v33  ;;  %v934_v8 = vpop.f32.mrb[11].mxu0  ;;  %6546 = vmatmul.mubr.msk.f32.gmra.mrb[116].mxu0 %vm614_vm2, %v4322_v60  ;;  %1072 = vst.msk [vmem:[#allocation3 + $0xe8] sm:$0xff] %vm614_vm2, %v6039_v51  ;;  %v1024_v27 = vpop.f32.mrb[13].mxu1  ;;  %6481 = vmatmul.mubr.msk.f32.gmra.mrb[118].mxu1 %vm614_vm2, %v3861_v10 }
 0x118   : > { %1053 = vst.msk [vmem:[#allocation3 + $0x50] sm:$0xff] %vm614_vm2, %v934_v8  ;;  %6548 = vmatprep.mubr.msk.f32.mxu0 %vm614_vm2, %v4323_v14  ;;  %1071 = vst.msk [vmem:[#allocation3 + $0xe0] sm:$0xff] %vm614_vm2, %v1024_v27  ;;  %6483 = vmatprep.mubr.msk.f32.mxu1 %vm614_vm2, %v3862_v16  ;;  %v1449_v14 = vld [vmem:[#allocation3 + $0x38] sm:$0xff]  ;;  %v1448_v8 = vld [vmem:[#allocation3 + $0x30] sm:$0xff] }
 0x119   : > { %v4334_v27 = vld [vmem:[#allocation2 + $0xfa] sm:$0xff] }
 0x11a   : > { %v6015_v21 = vpop.f32.mrb[12].mxu0  ;;  %v6042_v37 = vpop.f32.mrb[14].mxu1 }
 0x11b   : > { %1056 = vst.msk [vmem:[#allocation3 + $0x68] sm:$0xff] %vm614_vm2, %v6015_v21  ;;  %v944_v54 = vpop.f32.mrb[13].mxu0  ;;  %6549 = vmatmul.mubr.msk.f32.gmra.mrb[118].mxu0 %vm614_vm2, %v4324_v40  ;;  %1074 = vst.msk [vmem:[#allocation3 + $0xf8] sm:$0xff] %vm614_vm2, %v6042_v37  ;;  %v1034_v15 = vpop.f32.mrb[15].mxu1  ;;  %6484 = vmatmul.mubr.msk.f32.gmra.mrb[120].mxu1 %vm614_vm2, %v3863_v57 }
 0x11c   : > { %1055 = vst.msk [vmem:[#allocation3 + $0x60] sm:$0xff] %vm614_vm2, %v944_v54  ;;  %6551 = vmatprep.mubr.msk.f32.mxu0 %vm614_vm2, %v4325_v0  ;;  %1073 = vst.msk [vmem:[#allocation3 + $0xf0] sm:$0xff] %vm614_vm2, %v1034_v15  ;;  %6486 = vmatprep.mubr.msk.f32.mxu1 %vm614_vm2, %v3864_v4  ;;  %v3873_v0 = vld [vmem:[#allocation2 + $0x111] sm:$0xff]  ;;  %v3874_v54 = vld [vmem:[#allocation2 + $0x121] sm:$0xff] }
 0x11d   : > { %v4335_v4 = vld [vmem:[#allocation2 + $0x10a] sm:$0xff] }
 0x11e   : > { %v6018_v18 = vpop.f32.mrb[14].mxu0  ;;  %v6065_v19 = vpop.f32.mrb[16].mxu1 }
 0x11f   : > { %1058 = vst.msk [vmem:[#allocation3 + $0x78] sm:$0xff] %vm614_vm2, %v6018_v18  ;;  %v954_v39 = vpop.f32.mrb[15].mxu0  ;;  %6552 = vmatmul.mubr.msk.f32.gmra.mrb[120].mxu0 %vm614_vm2, %v4326_v38  ;;  %v1475_v59 = vadd.f32 %v6065_v19, %v1443_v32  ;;  %v1283_v45 = vpop.f32.mrb[17].mxu1  ;;  %6487 = vmatmul.mubr.msk.f32.gmra.mrb[122].mxu1 %vm614_vm2, %v3865_v22  ;;  %v1450_v32 = vld [vmem:[#allocation3 + $0x40] sm:$0xff] }
 0x120   : > { %1057 = vst.msk [vmem:[#allocation3 + $0x70] sm:$0xff] %vm614_vm2, %v954_v39  ;;  %6554 = vmatprep.mubr.msk.f32.mxu0 %vm614_vm2, %v4327_v23  ;;  %v1474_v9 = vadd.f32 %v1442_v49, %v1283_v45  ;;  %6489 = vmatprep.mubr.msk.f32.mxu1 %vm614_vm2, %v3866_v29  ;;  %v1451_v23 = vld [vmem:[#allocation3 + $0x48] sm:$0xff]  ;;  %v3875_v49 = vld [vmem:[#allocation2 + $0x129] sm:$0xff] }
 0x121   : > { %1507 = vst.msk [vmem:[#allocation3 + $0x8] sm:$0xff] %vm614_vm2, %v1475_v59  ;;  %v4336_v39 = vld [vmem:[#allocation2 + $0x112] sm:$0xff] }
 0x122   : > { %v6133_v17 = vpop.f32.mrb[16].mxu0  ;;  %1506 = vst.msk [vmem:[#allocation3] sm:$0xff] %vm614_vm2, %v1474_v9  ;;  %v6068_v25 = vpop.f32.mrb[18].mxu1 }
 0x123   : > { %v1746_v13 = vpop.f32.mrb[17].mxu0  ;;  %6555 = vmatmul.mubr.msk.f32.gmra.mrb[122].mxu0 %vm614_vm2, %v4328_v20  ;;  %v1477_v34 = vadd.f32 %v6068_v25, %v1445_v6  ;;  %v1293_v31 = vpop.f32.mrb[19].mxu1  ;;  %6490 = vmatmul.mubr.msk.f32.gmra.mrb[124].mxu1 %vm614_vm2, %v3867_v2  ;;  %v4337_v20 = vld [vmem:[#allocation2 + $0x122] sm:$0xff] }
 0x124   : > { %6557 = vmatprep.mubr.msk.f32.mxu0 %vm614_vm2, %v4329_v58  ;;  %v1476_v35 = vadd.f32 %v1444_v24, %v1293_v31  ;;  %6492 = vmatprep.mubr.msk.f32.mxu1 %vm614_vm2, %v3868_v30  ;;  %v3876_v58 = vld [vmem:[#allocation2 + $0x139] sm:$0xff]  ;;  %v1453_v6 = vld [vmem:[#allocation3 + $0x58] sm:$0xff] }
 0x125   : > { %1509 = vst.msk [vmem:[#allocation3 + $0x18] sm:$0xff] %vm614_vm2, %v1477_v34  ;;  %v1452_v24 = vld [vmem:[#allocation3 + $0x50] sm:$0xff] }
 0x126   : > { %v6136_v41 = vpop.f32.mrb[18].mxu0  ;;  %1508 = vst.msk [vmem:[#allocation3 + $0x10] sm:$0xff] %vm614_vm2, %v1476_v35  ;;  %v6071_v47 = vpop.f32.mrb[20].mxu1 }
 0x127   : > { %v1756_v44 = vpop.f32.mrb[19].mxu0  ;;  %6558 = vmatmul.mubr.msk.f32.gmra.mrb[124].mxu0 %vm614_vm2, %v4330_v36  ;;  %v1479_v42 = vadd.f32 %v6071_v47, %v1447_v28  ;;  %v1303_v5 = vpop.f32.mrb[21].mxu1  ;;  %6493 = vmatmul.mubr.msk.f32.gmra.mrb[126].mxu1 %vm614_vm2, %v3869_v46  ;;  %v4338_v36 = vld [vmem:[#allocation2 + $0x12a] sm:$0xff] }
 0x128   : > { %6560 = vmatprep.mubr.msk.f32.mxu0 %vm614_vm2, %v4331_v43  ;;  %v1478_v56 = vadd.f32 %v1446_v52, %v1303_v5  ;;  %v1906_v61 = vld [vmem:[#allocation3 + $0x8] sm:$0xff]  ;;  %6495 = vmatprep.mubr.msk.f32.mxu1 %vm614_vm2, %v3870_v26  ;;  %v3877_v43 = vld [vmem:[#allocation2 + $0x141] sm:$0xff] }
 0x129   : > { %1511 = vst.msk [vmem:[#allocation3 + $0x28] sm:$0xff] %vm614_vm2, %v1479_v42  ;;  %v1938_v1 = vadd.f32 %v6133_v17, %v1906_v61  ;;  %v1905_v11 = vld [vmem:[#allocation3] sm:$0xff]  ;;  %v4339_v26 = vld [vmem:[#allocation2 + $0x13a] sm:$0xff] }
 0x12a   : > { %v6139_v12 = vpop.f32.mrb[20].mxu0  ;;  %1510 = vst.msk [vmem:[#allocation3 + $0x20] sm:$0xff] %vm614_vm2, %v1478_v56  ;;  %v1937_v60 = vadd.f32 %v1905_v11, %v1746_v13  ;;  %v6074_v10 = vpop.f32.mrb[22].mxu1  ;;  %v3878_v28 = vld [vmem:[#allocation2 + $0x151] sm:$0xff] }
 0x12b   : > { %v1766_v16 = vpop.f32.mrb[21].mxu0  ;;  %6561 = vmatmul.mubr.msk.f32.gmra.mrb[126].mxu0 %vm614_vm2, %v4332_v7  ;;  %1970 = vst.msk [vmem:[#allocation3 + $0x8] sm:$0xff] %vm614_vm2, %v1938_v1  ;;  %v1481_v33 = vadd.f32 %v6074_v10, %v1449_v14  ;;  %v1313_v51 = vpop.f32.mrb[23].mxu1  ;;  %6496 = vmatmul.mubr.msk.f32.gmra.mrb[128].mxu1 %vm614_vm2, %v3871_v63  ;;  %v1455_v52 = vld [vmem:[#allocation3 + $0x68] sm:$0xff]  ;;  %v1454_v63 = vld [vmem:[#allocation3 + $0x60] sm:$0xff] }
 0x12c   : > { %6563 = vmatprep.mubr.msk.f32.mxu0 %vm614_vm2, %v4333_v50  ;;  %1969 = vst.msk [vmem:[#allocation3] sm:$0xff] %vm614_vm2, %v1937_v60  ;;  %v1480_v40 = vadd.f32 %v1448_v8, %v1313_v51  ;;  %v1908_v57 = vld [vmem:[#allocation3 + $0x18] sm:$0xff]  ;;  %6498 = vmatprep.mubr.msk.f32.mxu1 %vm614_vm2, %v3872_v3  ;;  %v3879_v3 = vld [vmem:[#allocation2 + $0x159] sm:$0xff] }
 0x12d   : > { %1513 = vst.msk [vmem:[#allocation3 + $0x38] sm:$0xff] %vm614_vm2, %v1481_v33  ;;  %v1940_v21 = vadd.f32 %v6136_v41, %v1908_v57  ;;  %v1907_v37 = vld [vmem:[#allocation3 + $0x10] sm:$0xff]  ;;  %v3880_v14 = vld [vmem:[#allocation2 + $0x169] sm:$0xff] }
 0x12e   : > { %v6142_v15 = vpop.f32.mrb[22].mxu0  ;;  %1512 = vst.msk [vmem:[#allocation3 + $0x30] sm:$0xff] %vm614_vm2, %v1480_v40  ;;  %v1939_v38 = vadd.f32 %v1907_v37, %v1756_v44  ;;  %v6077_v22 = vpop.f32.mrb[24].mxu1  ;;  %v4340_v50 = vld [vmem:[#allocation2 + $0x142] sm:$0xff] }
 0x12f   : > { %v1776_v29 = vpop.f32.mrb[23].mxu0  ;;  %6564 = vmatmul.mubr.msk.f32.gmra.mrb[128].mxu0 %vm614_vm2, %v4334_v27  ;;  %1972 = vst.msk [vmem:[#allocation3 + $0x18] sm:$0xff] %vm614_vm2, %v1940_v21  ;;  %v1483_v18 = vadd.f32 %v6077_v22, %v1451_v23  ;;  %v1323_v19 = vpop.f32.mrb[25].mxu1  ;;  %6499 = vmatmul.mubr.msk.f32.gmra.mrb[130].mxu1 %vm614_vm2, %v3873_v0  ;;  %v1457_v8 = vld [vmem:[#allocation3 + $0x78] sm:$0xff]  ;;  %v1456_v0 = vld [vmem:[#allocation3 + $0x70] sm:$0xff] }
 0x130   : > { %6566 = vmatprep.mubr.msk.f32.mxu0 %vm614_vm2, %v4335_v4  ;;  %1971 = vst.msk [vmem:[#allocation3 + $0x10] sm:$0xff] %vm614_vm2, %v1939_v38  ;;  %v1482_v59 = vadd.f32 %v1450_v32, %v1323_v19  ;;  %v1910_v45 = vld [vmem:[#allocation3 + $0x28] sm:$0xff]  ;;  %6501 = vmatprep.mubr.msk.f32.mxu1 %vm614_vm2, %v3874_v54 }
 0x131   : > { %1515 = vst.msk [vmem:[#allocation3 + $0x48] sm:$0xff] %vm614_vm2, %v1483_v18  ;;  %v1942_v9 = vadd.f32 %v6139_v12, %v1910_v45  ;;  %v1909_v2 = vld [vmem:[#allocation3 + $0x20] sm:$0xff]  ;;  %v4342_v4 = vld [vmem:[#allocation2 + $0x15a] sm:$0xff] }
 0x132   : > { %v6145_v30 = vpop.f32.mrb[24].mxu0  ;;  %1514 = vst.msk [vmem:[#allocation3 + $0x40] sm:$0xff] %vm614_vm2, %v1482_v59  ;;  %v1941_v17 = vadd.f32 %v1909_v2, %v1766_v16  ;;  %v6080_v25 = vpop.f32.mrb[26].mxu1  ;;  %v4341_v12 = vld [vmem:[#allocation2 + $0x152] sm:$0xff] }
 0x133   : > { %v1786_v13 = vpop.f32.mrb[25].mxu0  ;;  %6567 = vmatmul.mubr.msk.f32.gmra.mrb[130].mxu0 %vm614_vm2, %v4336_v39  ;;  %1974 = vst.msk [vmem:[#allocation3 + $0x28] sm:$0xff] %vm614_vm2, %v1942_v9  ;;  %v1485_v34 = vadd.f32 %v6080_v25, %v1453_v6  ;;  %v1333_v31 = vpop.f32.mrb[27].mxu1  ;;  %6502 = vmatmul.mubr.msk.f32.gmra.mrb[132].mxu1 %vm614_vm2, %v3875_v49  ;;  %v3881_v54 = vld [vmem:[#allocation2 + $0x171] sm:$0xff] }
 0x134   : > { %6569 = vmatprep.mubr.msk.f32.mxu0 %vm614_vm2, %v4337_v20  ;;  %1973 = vst.msk [vmem:[#allocation3 + $0x20] sm:$0xff] %vm614_vm2, %v1941_v17  ;;  %v1484_v35 = vadd.f32 %v1452_v24, %v1333_v31  ;;  %v1912_v46 = vld [vmem:[#allocation3 + $0x38] sm:$0xff]  ;;  %6504 = vmatprep.mubr.msk.f32.mxu1 %vm614_vm2, %v3876_v58  ;;  %v1459_v19 = vld [vmem:[#allocation3 + $0x88] sm:$0xff]  ;;  %v1458_v45 = vld [vmem:[#allocation3 + $0x80] sm:$0xff] }
 0x135   : > { %1517 = vst.msk [vmem:[#allocation3 + $0x58] sm:$0xff] %vm614_vm2, %v1485_v34  ;;  %v1944_v41 = vadd.f32 %v6142_v15, %v1912_v46  ;;  %v1911_v47 = vld [vmem:[#allocation3 + $0x30] sm:$0xff]  ;;  %v4343_v15 = vld [vmem:[#allocation2 + $0x16a] sm:$0xff]  ;;  %v4344_v49 = vld [vmem:[#allocation2 + $0x172] sm:$0xff] }
 0x136   : > { %v6148_v44 = vpop.f32.mrb[26].mxu0  ;;  %1516 = vst.msk [vmem:[#allocation3 + $0x50] sm:$0xff] %vm614_vm2, %v1484_v35  ;;  %v1943_v42 = vadd.f32 %v1911_v47, %v1776_v29  ;;  %v6083_v5 = vpop.f32.mrb[28].mxu1  ;;  %v3885_v46 = vld [vmem:[#allocation2 + $0x1a1] sm:$0xff] }
 0x137   : > { %v1796_v7 = vpop.f32.mrb[27].mxu0  ;;  %6570 = vmatmul.mubr.msk.f32.gmra.mrb[132].mxu0 %vm614_vm2, %v4338_v36  ;;  %1976 = vst.msk [vmem:[#allocation3 + $0x38] sm:$0xff] %vm614_vm2, %v1944_v41  ;;  %v1487_v56 = vadd.f32 %v6083_v5, %v1455_v52  ;;  %v1343_v61 = vpop.f32.mrb[29].mxu1  ;;  %6505 = vmatmul.mubr.msk.f32.gmra.mrb[134].mxu1 %vm614_vm2, %v3877_v43  ;;  %v1460_v36 = vld [vmem:[#allocation3 + $0x90] sm:$0xff]  ;;  %v1462_v52 = vld [vmem:[#allocation3 + $0xa0] sm:$0xff] }
 0x138   : > { %6572 = vmatprep.mubr.msk.f32.mxu0 %vm614_vm2, %v4339_v26  ;;  %1975 = vst.msk [vmem:[#allocation3 + $0x30] sm:$0xff] %vm614_vm2, %v1943_v42  ;;  %v1486_v1 = vadd.f32 %v1454_v63, %v1343_v61  ;;  %v1914_v11 = vld [vmem:[#allocation3 + $0x48] sm:$0xff]  ;;  %6507 = vmatprep.mubr.msk.f32.mxu1 %vm614_vm2, %v3878_v28 }
 0x139   : > { %1519 = vst.msk [vmem:[#allocation3 + $0x68] sm:$0xff] %vm614_vm2, %v1487_v56  ;;  %v1946_v60 = vadd.f32 %v6145_v30, %v1914_v11  ;;  %v1913_v10 = vld [vmem:[#allocation3 + $0x40] sm:$0xff]  ;;  %v3884_v30 = vld [vmem:[#allocation2 + $0x199] sm:$0xff] }
 0x13a   : > { %v6151_v16 = vpop.f32.mrb[28].mxu0  ;;  %1518 = vst.msk [vmem:[#allocation3 + $0x60] sm:$0xff] %vm614_vm2, %v1486_v1  ;;  %v1945_v33 = vadd.f32 %v1913_v10, %v1786_v13  ;;  %v6086_v51 = vpop.f32.mrb[30].mxu1  ;;  %v1461_v13 = vld [vmem:[#allocation3 + $0x98] sm:$0xff]  ;;  %v4347_v43 = vld [vmem:[#allocation2 + $0x19a] sm:$0xff] }
 0x13b   : > { %v1806_v27 = vpop.f32.mrb[29].mxu0  ;;  %6573 = vmatmul.mubr.msk.f32.gmra.mrb[134].mxu0 %vm614_vm2, %v4340_v50  ;;  %1978 = vst.msk [vmem:[#allocation3 + $0x48] sm:$0xff] %vm614_vm2, %v1946_v60  ;;  %v1489_v40 = vadd.f32 %v6086_v51, %v1457_v8  ;;  %v1353_v57 = vpop.f32.mrb[31].mxu1  ;;  %6508 = vmatmul.mubr.msk.f32.gmra.mrb[136].mxu1 %vm614_vm2, %v3879_v3  ;;  %v1465_v3 = vld [vmem:[#allocation3 + $0xb8] sm:$0xff] }
 0x13c   : > { %6575 = vmatprep.mubr.msk.f32.mxu0 %vm614_vm2, %v4341_v12  ;;  %1977 = vst.msk [vmem:[#allocation3 + $0x40] sm:$0xff] %vm614_vm2, %v1945_v33  ;;  %v1488_v21 = vadd.f32 %v1456_v0, %v1353_v57  ;;  %v1916_v37 = vld [vmem:[#allocation3 + $0x58] sm:$0xff]  ;;  %6510 = vmatprep.mubr.msk.f32.mxu1 %vm614_vm2, %v3880_v14  ;;  %v1464_v14 = vld [vmem:[#allocation3 + $0xb0] sm:$0xff]  ;;  %v1467_v0 = vld [vmem:[#allocation3 + $0xc8] sm:$0xff] }
 0x13d   : > { %1521 = vst.msk [vmem:[#allocation3 + $0x78] sm:$0xff] %vm614_vm2, %v1489_v40  ;;  %v1948_v38 = vadd.f32 %v6148_v44, %v1916_v37  ;;  %v1915_v22 = vld [vmem:[#allocation3 + $0x50] sm:$0xff]  ;;  %v1463_v44 = vld [vmem:[#allocation3 + $0xa8] sm:$0xff] }
 0x13e   : > { %v6154_v23 = vpop.f32.mrb[30].mxu0  ;;  %1520 = vst.msk [vmem:[#allocation3 + $0x70] sm:$0xff] %vm614_vm2, %v1488_v21  ;;  %v1947_v29 = vadd.f32 %v1915_v22, %v1796_v7  ;;  %v6089_v18 = vpop.f32.mrb[32].mxu1  ;;  %v4348_v7 = vld [vmem:[#allocation2 + $0x1a2] sm:$0xff] }
 0x13f   : > { %v1816_v32 = vpop.f32.mrb[31].mxu0  ;;  %6576 = vmatmul.mubr.msk.f32.gmra.mrb[136].mxu0 %vm614_vm2, %v4342_v4  ;;  %1980 = vst.msk [vmem:[#allocation3 + $0x58] sm:$0xff] %vm614_vm2, %v1948_v38  ;;  %v1491_v39 = vadd.f32 %v6089_v18, %v1459_v19  ;;  %v1363_v59 = vpop.f32.mrb[33].mxu1  ;;  %6511 = vmatmul.mubr.msk.f32.gmra.mrb[138].mxu1 %vm614_vm2, %v3881_v54  ;;  %v1466_v54 = vld [vmem:[#allocation3 + $0xc0] sm:$0xff] }
 0x140   : > { %6578 = vmatprep.mubr.msk.f32.mxu0 %vm614_vm2, %v4343_v15  ;;  %1979 = vst.msk [vmem:[#allocation3 + $0x50] sm:$0xff] %vm614_vm2, %v1947_v29  ;;  %v1490_v20 = vadd.f32 %v1458_v45, %v1363_v59  ;;  %v1918_v9 = vld [vmem:[#allocation3 + $0x68] sm:$0xff]  ;;  %6513 = vmatprep.mubr.msk.f32.mxu1 %vm614_vm2, %v7938_v48 }
 0x141   : > { %1523 = vst.msk [vmem:[#allocation3 + $0x88] sm:$0xff] %vm614_vm2, %v1491_v39  ;;  %v1950_v2 = vadd.f32 %v6151_v16, %v1918_v9  ;;  %v1917_v58 = vld [vmem:[#allocation3 + $0x60] sm:$0xff] }
 0x142   : > { %v6157_v17 = vpop.f32.mrb[32].mxu0  ;;  %1522 = vst.msk [vmem:[#allocation3 + $0x80] sm:$0xff] %vm614_vm2, %v1490_v20  ;;  %v1949_v25 = vadd.f32 %v1917_v58, %v1806_v27  ;;  %v6092_v6 = vpop.f32.mrb[34].mxu1 }
 0x143   : > { %v1826_v34 = vpop.f32.mrb[33].mxu0  ;;  %6579 = vmatmul.mubr.msk.f32.gmra.mrb[138].mxu0 %vm614_vm2, %v4344_v49  ;;  %1982 = vst.msk [vmem:[#allocation3 + $0x68] sm:$0xff] %vm614_vm2, %v1950_v2  ;;  %v1493_v31 = vadd.f32 %v6092_v6, %v1461_v13  ;;  %v1373_v24 = vpop.f32.mrb[35].mxu1  ;;  %6514 = vmatmul.mubr.msk.f32.gmra.mrb[140].mxu1 %vm614_vm2, %v7952_v62  ;;  %v1468_v49 = vld [vmem:[#allocation3 + $0xd0] sm:$0xff]  ;;  %v1471_v6 = vld [vmem:[#allocation3 + $0xe8] sm:$0xff] }
 0x144   : > { %6581 = vmatprep.mubr.msk.f32.mxu0 %vm614_vm2, %v8107_v53  ;;  %1981 = vst.msk [vmem:[#allocation3 + $0x60] sm:$0xff] %vm614_vm2, %v1949_v25  ;;  %v1492_v48 = vadd.f32 %v1460_v36, %v1373_v24  ;;  %v1920_v35 = vld [vmem:[#allocation3 + $0x78] sm:$0xff]  ;;  %6516 = vmatprep.mubr.msk.f32.mxu1 %vm614_vm2, %v3884_v30  ;;  %v1470_v24 = vld [vmem:[#allocation3 + $0xe0] sm:$0xff] }
 0x145   : > { %1525 = vst.msk [vmem:[#allocation3 + $0x98] sm:$0xff] %vm614_vm2, %v1493_v31  ;;  %v1952_v26 = vadd.f32 %v6154_v23, %v1920_v35  ;;  %v1919_v41 = vld [vmem:[#allocation3 + $0x70] sm:$0xff] }
 0x146   : > { %v6160_v47 = vpop.f32.mrb[34].mxu0  ;;  %1524 = vst.msk [vmem:[#allocation3 + $0x90] sm:$0xff] %vm614_vm2, %v1492_v48  ;;  %v1951_v28 = vadd.f32 %v1919_v41, %v1816_v32  ;;  %v6095_v62 = vpop.f32.mrb[36].mxu1  ;;  %v1469_v32 = vld [vmem:[#allocation3 + $0xd8] sm:$0xff] }
 0x147   : > { %v1836_v42 = vpop.f32.mrb[35].mxu0  ;;  %6582 = vmatmul.mubr.msk.f32.gmra.mrb[140].mxu0 %vm614_vm2, %v8120_v55  ;;  %1984 = vst.msk [vmem:[#allocation3 + $0x78] sm:$0xff] %vm614_vm2, %v1952_v26  ;;  %v1495_v53 = vadd.f32 %v6095_v62, %v1463_v44  ;;  %v1383_v5 = vpop.f32.mrb[37].mxu1  ;;  %6517 = vmatmul.mubr.msk.f32.gmra.mrb[142].mxu1 %vm614_vm2, %v3885_v46 }
 0x148   : > { %6584 = vmatprep.mubr.msk.f32.mxu0 %vm614_vm2, %v4347_v43  ;;  %1983 = vst.msk [vmem:[#allocation3 + $0x70] sm:$0xff] %vm614_vm2, %v1951_v28  ;;  %v1494_v56 = vadd.f32 %v1462_v52, %v1383_v5  ;;  %v1922_v61 = vld [vmem:[#allocation3 + $0x88] sm:$0xff] }
 0x149   : > { %1527 = vst.msk [vmem:[#allocation3 + $0xa8] sm:$0xff] %vm614_vm2, %v1495_v53  ;;  %v1954_v63 = vadd.f32 %v6157_v17, %v1922_v61  ;;  %v1921_v50 = vld [vmem:[#allocation3 + $0x80] sm:$0xff] }
 0x14a   : > { %v6163_v1 = vpop.f32.mrb[36].mxu0  ;;  %1526 = vst.msk [vmem:[#allocation3 + $0xa0] sm:$0xff] %vm614_vm2, %v1494_v56  ;;  %v1953_v55 = vadd.f32 %v1921_v50, %v1826_v34  ;;  %v6098_v11 = vpop.f32.mrb[38].mxu1  ;;  %v2369_v50 = vld [vmem:[#allocation3 + $0x8] sm:$0xff] }
 0x14b   : > { %v1846_v12 = vpop.f32.mrb[37].mxu0  ;;  %6585 = vmatmul.mubr.msk.f32.gmra.mrb[142].mxu0 %vm614_vm2, %v4348_v7  ;;  %1986 = vst.msk [vmem:[#allocation3 + $0x88] sm:$0xff] %vm614_vm2, %v1954_v63  ;;  %v1497_v60 = vadd.f32 %v6098_v11, %v1465_v3  ;;  %v1393_v10 = vpop.f32.mrb[39].mxu1  ;;  %v2368_v3 = vld [vmem:[#allocation3] sm:$0xff] }
 0x14c   : > { %1985 = vst.msk [vmem:[#allocation3 + $0x80] sm:$0xff] %vm614_vm2, %v1953_v55  ;;  %v1496_v16 = vadd.f32 %v1464_v14, %v1393_v10  ;;  %v1924_v33 = vld [vmem:[#allocation3 + $0x98] sm:$0xff] }
 0x14d   : > { %1529 = vst.msk [vmem:[#allocation3 + $0xb8] sm:$0xff] %vm614_vm2, %v1497_v60  ;;  %v1956_v51 = vadd.f32 %v6160_v47, %v1924_v33  ;;  %v1923_v8 = vld [vmem:[#allocation3 + $0x90] sm:$0xff]  ;;  %v1473_v47 = vld [vmem:[#allocation3 + $0xf8] sm:$0xff] }
 0x14e   : > { %v6166_v27 = vpop.f32.mrb[38].mxu0  ;;  %1528 = vst.msk [vmem:[#allocation3 + $0xb0] sm:$0xff] %vm614_vm2, %v1496_v16  ;;  %v1955_v40 = vadd.f32 %v1923_v8, %v1836_v42  ;;  %v6101_v57 = vpop.f32.mrb[40].mxu1  ;;  %v1472_v42 = vld [vmem:[#allocation3 + $0xf0] sm:$0xff]  ;;  %v2371_v8 = vld [vmem:[#allocation3 + $0x18] sm:$0xff] }
 0x14f   : > { %v1856_v4 = vpop.f32.mrb[39].mxu0  ;;  %1988 = vst.msk [vmem:[#allocation3 + $0x98] sm:$0xff] %vm614_vm2, %v1956_v51  ;;  %v1499_v21 = vadd.f32 %v6101_v57, %v1467_v0  ;;  %v1403_v37 = vpop.f32.mrb[41].mxu1  ;;  %v2370_v0 = vld [vmem:[#allocation3 + $0x10] sm:$0xff] }
 0x150   : > { %1987 = vst.msk [vmem:[#allocation3 + $0x90] sm:$0xff] %vm614_vm2, %v1955_v40  ;;  %v1498_v15 = vadd.f32 %v1466_v54, %v1403_v37  ;;  %v1926_v38 = vld [vmem:[#allocation3 + $0xa8] sm:$0xff] }
 0x151   : > { %1531 = vst.msk [vmem:[#allocation3 + $0xc8] sm:$0xff] %vm614_vm2, %v1499_v21  ;;  %v1958_v22 = vadd.f32 %v6163_v1, %v1926_v38  ;;  %v1925_v23 = vld [vmem:[#allocation3 + $0xa0] sm:$0xff] }
 0x152   : > { %v6169_v29 = vpop.f32.mrb[40].mxu0  ;;  %1530 = vst.msk [vmem:[#allocation3 + $0xc0] sm:$0xff] %vm614_vm2, %v1498_v15  ;;  %v1957_v18 = vadd.f32 %v1925_v23, %v1846_v12  ;;  %v6104_v19 = vpop.f32.mrb[42].mxu1  ;;  %v2373_v23 = vld [vmem:[#allocation3 + $0x28] sm:$0xff] }
 0x153   : > { %v1866_v39 = vpop.f32.mrb[41].mxu0  ;;  %1990 = vst.msk [vmem:[#allocation3 + $0xa8] sm:$0xff] %vm614_vm2, %v1958_v22  ;;  %v1501_v59 = vadd.f32 %v6104_v19, %v1469_v32  ;;  %v1413_v45 = vpop.f32.mrb[43].mxu1  ;;  %v2372_v32 = vld [vmem:[#allocation3 + $0x20] sm:$0xff] }
 0x154   : > { %1989 = vst.msk [vmem:[#allocation3 + $0xa0] sm:$0xff] %vm614_vm2, %v1957_v18  ;;  %v1500_v20 = vadd.f32 %v1468_v49, %v1413_v45  ;;  %v1928_v9 = vld [vmem:[#allocation3 + $0xb8] sm:$0xff] }
 0x155   : > { %1533 = vst.msk [vmem:[#allocation3 + $0xd8] sm:$0xff] %vm614_vm2, %v1501_v59  ;;  %v1960_v2 = vadd.f32 %v6166_v27, %v1928_v9  ;;  %v1927_v58 = vld [vmem:[#allocation3 + $0xb0] sm:$0xff] }
 0x156   : > { %v6172_v30 = vpop.f32.mrb[42].mxu0  ;;  %1532 = vst.msk [vmem:[#allocation3 + $0xd0] sm:$0xff] %vm614_vm2, %v1500_v20  ;;  %v1959_v17 = vadd.f32 %v1927_v58, %v1856_v4  ;;  %v6107_v25 = vpop.f32.mrb[44].mxu1  ;;  %v2375_v58 = vld [vmem:[#allocation3 + $0x38] sm:$0xff] }
 0x157   : > { %v1876_v13 = vpop.f32.mrb[43].mxu0  ;;  %1992 = vst.msk [vmem:[#allocation3 + $0xb8] sm:$0xff] %vm614_vm2, %v1960_v2  ;;  %v1503_v34 = vadd.f32 %v6107_v25, %v1471_v6  ;;  %v1423_v31 = vpop.f32.mrb[45].mxu1  ;;  %v2374_v6 = vld [vmem:[#allocation3 + $0x30] sm:$0xff] }
 0x158   : > { %1991 = vst.msk [vmem:[#allocation3 + $0xb0] sm:$0xff] %vm614_vm2, %v1959_v17  ;;  %v1502_v36 = vadd.f32 %v1470_v24, %v1423_v31  ;;  %v1930_v48 = vld [vmem:[#allocation3 + $0xc8] sm:$0xff] }
 0x159   : > { %1535 = vst.msk [vmem:[#allocation3 + $0xe8] sm:$0xff] %vm614_vm2, %v1503_v34  ;;  %v1962_v35 = vadd.f32 %v6169_v29, %v1930_v48  ;;  %v1929_v46 = vld [vmem:[#allocation3 + $0xc0] sm:$0xff] }
 0x15a   : > { %v6175_v43 = vpop.f32.mrb[44].mxu0  ;;  %1534 = vst.msk [vmem:[#allocation3 + $0xe0] sm:$0xff] %vm614_vm2, %v1502_v36  ;;  %v1961_v26 = vadd.f32 %v1929_v46, %v1866_v39  ;;  %v6110_v41 = vpop.f32.mrb[46].mxu1  ;;  %v2377_v46 = vld [vmem:[#allocation3 + $0x48] sm:$0xff] }
 0x15b   : > { %v1886_v28 = vpop.f32.mrb[45].mxu0  ;;  %1994 = vst.msk [vmem:[#allocation3 + $0xc8] sm:$0xff] %vm614_vm2, %v1962_v35  ;;  %v1505_v62 = vadd.f32 %v6110_v41, %v1473_v47  ;;  %v1433_v44 = vpop.f32.mrb[47].mxu1  ;;  %v2376_v47 = vld [vmem:[#allocation3 + $0x40] sm:$0xff] }
 0x15c   : > { %1993 = vst.msk [vmem:[#allocation3 + $0xc0] sm:$0xff] %vm614_vm2, %v1961_v26  ;;  %v1504_v53 = vadd.f32 %v1472_v42, %v1433_v44  ;;  %v1932_v5 = vld [vmem:[#allocation3 + $0xd8] sm:$0xff] }
 0x15d   : > { %1537 = vst.msk [vmem:[#allocation3 + $0xf8] sm:$0xff] %vm614_vm2, %v1505_v62  ;;  %v1964_v52 = vadd.f32 %v6172_v30, %v1932_v5  ;;  %v1931_v7 = vld [vmem:[#allocation3 + $0xd0] sm:$0xff] }
 0x15e   : > { %v6178_v56 = vpop.f32.mrb[46].mxu0  ;;  %1536 = vst.msk [vmem:[#allocation3 + $0xf0] sm:$0xff] %vm614_vm2, %v1504_v53  ;;  %v1963_v61 = vadd.f32 %v1931_v7, %v1876_v13  ;;  %v6201_v63 = vpop.f32.mrb[48].mxu1  ;;  %v2379_v7 = vld [vmem:[#allocation3 + $0x58] sm:$0xff] }
 0x15f   : > { %v1896_v1 = vpop.f32.mrb[47].mxu0  ;;  %1996 = vst.msk [vmem:[#allocation3 + $0xd8] sm:$0xff] %vm614_vm2, %v1964_v52  ;;  %v2401_v55 = vadd.f32 %v6201_v63, %v2369_v50  ;;  %v2209_v11 = vpop.f32.mrb[49].mxu1  ;;  %v2378_v50 = vld [vmem:[#allocation3 + $0x50] sm:$0xff] }
 0x160   : > { %1995 = vst.msk [vmem:[#allocation3 + $0xd0] sm:$0xff] %vm614_vm2, %v1963_v61  ;;  %v2400_v12 = vadd.f32 %v2368_v3, %v2209_v11  ;;  %v1934_v60 = vld [vmem:[#allocation3 + $0xe8] sm:$0xff] }
 0x161   : > { %2433 = vst.msk [vmem:[#allocation3 + $0x8] sm:$0xff] %vm614_vm2, %v2401_v55  ;;  %v1966_v10 = vadd.f32 %v6175_v43, %v1934_v60  ;;  %v1933_v14 = vld [vmem:[#allocation3 + $0xe0] sm:$0xff] }
 0x162   : > { %v6269_v16 = vpop.f32.mrb[48].mxu0  ;;  %2432 = vst.msk [vmem:[#allocation3] sm:$0xff] %vm614_vm2, %v2400_v12  ;;  %v1965_v33 = vadd.f32 %v1933_v14, %v1886_v28  ;;  %v6204_v51 = vpop.f32.mrb[50].mxu1  ;;  %v2381_v14 = vld [vmem:[#allocation3 + $0x68] sm:$0xff] }
 0x163   : > { %v2672_v27 = vpop.f32.mrb[49].mxu0  ;;  %1998 = vst.msk [vmem:[#allocation3 + $0xe8] sm:$0xff] %vm614_vm2, %v1966_v10  ;;  %v2403_v40 = vadd.f32 %v6204_v51, %v2371_v8  ;;  %v2219_v57 = vpop.f32.mrb[51].mxu1  ;;  %v2380_v8 = vld [vmem:[#allocation3 + $0x60] sm:$0xff] }
 0x164   : > { %1997 = vst.msk [vmem:[#allocation3 + $0xe0] sm:$0xff] %vm614_vm2, %v1965_v33  ;;  %v2402_v4 = vadd.f32 %v2370_v0, %v2219_v57  ;;  %v1936_v21 = vld [vmem:[#allocation3 + $0xf8] sm:$0xff] }
 0x165   : > { %2435 = vst.msk [vmem:[#allocation3 + $0x18] sm:$0xff] %vm614_vm2, %v2403_v40  ;;  %v1968_v37 = vadd.f32 %v6178_v56, %v1936_v21  ;;  %v1935_v54 = vld [vmem:[#allocation3 + $0xf0] sm:$0xff] }
 0x166   : > { %v6272_v15 = vpop.f32.mrb[50].mxu0  ;;  %2434 = vst.msk [vmem:[#allocation3 + $0x10] sm:$0xff] %vm614_vm2, %v2402_v4  ;;  %v1967_v38 = vadd.f32 %v1935_v54, %v1896_v1  ;;  %v6207_v22 = vpop.f32.mrb[52].mxu1  ;;  %v2383_v54 = vld [vmem:[#allocation3 + $0x78] sm:$0xff] }
 0x167   : > { %v2682_v29 = vpop.f32.mrb[51].mxu0  ;;  %2000 = vst.msk [vmem:[#allocation3 + $0xf8] sm:$0xff] %vm614_vm2, %v1968_v37  ;;  %v2405_v18 = vadd.f32 %v6207_v22, %v2373_v23  ;;  %v2229_v19 = vpop.f32.mrb[53].mxu1  ;;  %v2382_v23 = vld [vmem:[#allocation3 + $0x70] sm:$0xff] }
 0x168   : > { %1999 = vst.msk [vmem:[#allocation3 + $0xf0] sm:$0xff] %vm614_vm2, %v1967_v38  ;;  %v2404_v39 = vadd.f32 %v2372_v32, %v2229_v19  ;;  %v2832_v59 = vld [vmem:[#allocation3 + $0x8] sm:$0xff] }
 0x169   : > { %2437 = vst.msk [vmem:[#allocation3 + $0x28] sm:$0xff] %vm614_vm2, %v2405_v18  ;;  %v2864_v45 = vadd.f32 %v6269_v16, %v2832_v59  ;;  %v2831_v49 = vld [vmem:[#allocation3] sm:$0xff] }
 0x16a   : > { %v6275_v20 = vpop.f32.mrb[52].mxu0  ;;  %2436 = vst.msk [vmem:[#allocation3 + $0x20] sm:$0xff] %vm614_vm2, %v2404_v39  ;;  %v2863_v9 = vadd.f32 %v2831_v49, %v2672_v27  ;;  %v6210_v2 = vpop.f32.mrb[54].mxu1  ;;  %v2385_v49 = vld [vmem:[#allocation3 + $0x88] sm:$0xff] }
 0x16b   : > { %v2692_v30 = vpop.f32.mrb[53].mxu0  ;;  %2896 = vst.msk [vmem:[#allocation3 + $0x8] sm:$0xff] %vm614_vm2, %v2864_v45  ;;  %v2407_v17 = vadd.f32 %v6210_v2, %v2375_v58  ;;  %v2239_v25 = vpop.f32.mrb[55].mxu1  ;;  %v2384_v58 = vld [vmem:[#allocation3 + $0x80] sm:$0xff] }
 0x16c   : > { %2895 = vst.msk [vmem:[#allocation3] sm:$0xff] %vm614_vm2, %v2863_v9  ;;  %v2406_v13 = vadd.f32 %v2374_v6, %v2239_v25  ;;  %v2834_v34 = vld [vmem:[#allocation3 + $0x18] sm:$0xff] }
 0x16d   : > { %2439 = vst.msk [vmem:[#allocation3 + $0x38] sm:$0xff] %vm614_vm2, %v2407_v17  ;;  %v2866_v31 = vadd.f32 %v6272_v15, %v2834_v34  ;;  %v2833_v24 = vld [vmem:[#allocation3 + $0x10] sm:$0xff] }
 0x16e   : > { %v6278_v36 = vpop.f32.mrb[54].mxu0  ;;  %2438 = vst.msk [vmem:[#allocation3 + $0x30] sm:$0xff] %vm614_vm2, %v2406_v13  ;;  %v2865_v48 = vadd.f32 %v2833_v24, %v2682_v29  ;;  %v6213_v35 = vpop.f32.mrb[56].mxu1  ;;  %v2387_v24 = vld [vmem:[#allocation3 + $0x98] sm:$0xff] }
 0x16f   : > { %v2702_v43 = vpop.f32.mrb[55].mxu0  ;;  %2898 = vst.msk [vmem:[#allocation3 + $0x18] sm:$0xff] %vm614_vm2, %v2866_v31  ;;  %v2409_v26 = vadd.f32 %v6213_v35, %v2377_v46  ;;  %v2249_v41 = vpop.f32.mrb[57].mxu1  ;;  %v2386_v46 = vld [vmem:[#allocation3 + $0x90] sm:$0xff] }
 0x170   : > { %2897 = vst.msk [vmem:[#allocation3 + $0x10] sm:$0xff] %vm614_vm2, %v2865_v48  ;;  %v2408_v28 = vadd.f32 %v2376_v47, %v2249_v41  ;;  %v2836_v62 = vld [vmem:[#allocation3 + $0x28] sm:$0xff] }
 0x171   : > { %2441 = vst.msk [vmem:[#allocation3 + $0x48] sm:$0xff] %vm614_vm2, %v2409_v26  ;;  %v2868_v44 = vadd.f32 %v6275_v20, %v2836_v62  ;;  %v2835_v42 = vld [vmem:[#allocation3 + $0x20] sm:$0xff] }
 0x172   : > { %v6281_v53 = vpop.f32.mrb[56].mxu0  ;;  %2440 = vst.msk [vmem:[#allocation3 + $0x40] sm:$0xff] %vm614_vm2, %v2408_v28  ;;  %v2867_v5 = vadd.f32 %v2835_v42, %v2692_v30  ;;  %v6216_v52 = vpop.f32.mrb[58].mxu1  ;;  %v2389_v42 = vld [vmem:[#allocation3 + $0xa8] sm:$0xff] }
 0x173   : > { %v2712_v56 = vpop.f32.mrb[57].mxu0  ;;  %2900 = vst.msk [vmem:[#allocation3 + $0x28] sm:$0xff] %vm614_vm2, %v2868_v44  ;;  %v2411_v61 = vadd.f32 %v6216_v52, %v2379_v7  ;;  %v2259_v63 = vpop.f32.mrb[59].mxu1  ;;  %v2388_v7 = vld [vmem:[#allocation3 + $0xa0] sm:$0xff] }
 0x174   : > { %2899 = vst.msk [vmem:[#allocation3 + $0x20] sm:$0xff] %vm614_vm2, %v2867_v5  ;;  %v2410_v1 = vadd.f32 %v2378_v50, %v2259_v63  ;;  %v2838_v55 = vld [vmem:[#allocation3 + $0x38] sm:$0xff] }
 0x175   : > { %2443 = vst.msk [vmem:[#allocation3 + $0x58] sm:$0xff] %vm614_vm2, %v2411_v61  ;;  %v2870_v11 = vadd.f32 %v6278_v36, %v2838_v55  ;;  %v2837_v3 = vld [vmem:[#allocation3 + $0x30] sm:$0xff] }
 0x176   : > { %v6284_v12 = vpop.f32.mrb[58].mxu0  ;;  %2442 = vst.msk [vmem:[#allocation3 + $0x50] sm:$0xff] %vm614_vm2, %v2410_v1  ;;  %v2869_v60 = vadd.f32 %v2837_v3, %v2702_v43  ;;  %v6219_v10 = vpop.f32.mrb[60].mxu1  ;;  %v2391_v3 = vld [vmem:[#allocation3 + $0xb8] sm:$0xff] }
 0x177   : > { %v2722_v16 = vpop.f32.mrb[59].mxu0  ;;  %2902 = vst.msk [vmem:[#allocation3 + $0x38] sm:$0xff] %vm614_vm2, %v2870_v11  ;;  %v2413_v33 = vadd.f32 %v6219_v10, %v2381_v14  ;;  %v2269_v51 = vpop.f32.mrb[61].mxu1  ;;  %v2390_v14 = vld [vmem:[#allocation3 + $0xb0] sm:$0xff] }
 0x178   : > { %2901 = vst.msk [vmem:[#allocation3 + $0x30] sm:$0xff] %vm614_vm2, %v2869_v60  ;;  %v2412_v27 = vadd.f32 %v2380_v8, %v2269_v51  ;;  %v2840_v40 = vld [vmem:[#allocation3 + $0x48] sm:$0xff] }
 0x179   : > { %2445 = vst.msk [vmem:[#allocation3 + $0x68] sm:$0xff] %vm614_vm2, %v2413_v33  ;;  %v2872_v57 = vadd.f32 %v6281_v53, %v2840_v40  ;;  %v2839_v0 = vld [vmem:[#allocation3 + $0x40] sm:$0xff] }
 0x17a   : > { %v6287_v4 = vpop.f32.mrb[60].mxu0  ;;  %2444 = vst.msk [vmem:[#allocation3 + $0x60] sm:$0xff] %vm614_vm2, %v2412_v27  ;;  %v2871_v21 = vadd.f32 %v2839_v0, %v2712_v56  ;;  %v6222_v37 = vpop.f32.mrb[62].mxu1  ;;  %v2393_v0 = vld [vmem:[#allocation3 + $0xc8] sm:$0xff] }
 0x17b   : > { %v2732_v15 = vpop.f32.mrb[61].mxu0  ;;  %2904 = vst.msk [vmem:[#allocation3 + $0x48] sm:$0xff] %vm614_vm2, %v2872_v57  ;;  %v2415_v38 = vadd.f32 %v6222_v37, %v2383_v54  ;;  %v2279_v22 = vpop.f32.mrb[63].mxu1  ;;  %v2392_v54 = vld [vmem:[#allocation3 + $0xc0] sm:$0xff] }
 0x17c   : > { %2903 = vst.msk [vmem:[#allocation3 + $0x40] sm:$0xff] %vm614_vm2, %v2871_v21  ;;  %v2414_v29 = vadd.f32 %v2382_v23, %v2279_v22  ;;  %v2842_v18 = vld [vmem:[#allocation3 + $0x58] sm:$0xff] }
 0x17d   : > { %2447 = vst.msk [vmem:[#allocation3 + $0x78] sm:$0xff] %vm614_vm2, %v2415_v38  ;;  %v2874_v19 = vadd.f32 %v6284_v12, %v2842_v18  ;;  %v2841_v32 = vld [vmem:[#allocation3 + $0x50] sm:$0xff] }
 0x17e   : > { %v6290_v39 = vpop.f32.mrb[62].mxu0  ;;  %2446 = vst.msk [vmem:[#allocation3 + $0x70] sm:$0xff] %vm614_vm2, %v2414_v29  ;;  %v2873_v59 = vadd.f32 %v2841_v32, %v2722_v16  ;;  %v6225_v45 = vpop.f32.mrb[64].mxu1  ;;  %v2395_v32 = vld [vmem:[#allocation3 + $0xd8] sm:$0xff] }
 0x17f   : > { %v2742_v20 = vpop.f32.mrb[63].mxu0  ;;  %2906 = vst.msk [vmem:[#allocation3 + $0x58] sm:$0xff] %vm614_vm2, %v2874_v19  ;;  %v2417_v9 = vadd.f32 %v6225_v45, %v2385_v49  ;;  %v2289_v2 = vpop.f32.mrb[65].mxu1  ;;  %v2394_v49 = vld [vmem:[#allocation3 + $0xd0] sm:$0xff] }
 0x180   : > { %2905 = vst.msk [vmem:[#allocation3 + $0x50] sm:$0xff] %vm614_vm2, %v2873_v59  ;;  %v2416_v30 = vadd.f32 %v2384_v58, %v2289_v2  ;;  %v2844_v17 = vld [vmem:[#allocation3 + $0x68] sm:$0xff] }
 0x181   : > { %2449 = vst.msk [vmem:[#allocation3 + $0x88] sm:$0xff] %vm614_vm2, %v2417_v9  ;;  %v2876_v25 = vadd.f32 %v6287_v4, %v2844_v17  ;;  %v2843_v6 = vld [vmem:[#allocation3 + $0x60] sm:$0xff] }
 0x182   : > { %v6293_v13 = vpop.f32.mrb[64].mxu0  ;;  %2448 = vst.msk [vmem:[#allocation3 + $0x80] sm:$0xff] %vm614_vm2, %v2416_v30  ;;  %v2875_v34 = vadd.f32 %v2843_v6, %v2732_v15  ;;  %v6228_v31 = vpop.f32.mrb[66].mxu1  ;;  %v2397_v6 = vld [vmem:[#allocation3 + $0xe8] sm:$0xff] }
 0x183   : > { %v2752_v36 = vpop.f32.mrb[65].mxu0  ;;  %2908 = vst.msk [vmem:[#allocation3 + $0x68] sm:$0xff] %vm614_vm2, %v2876_v25  ;;  %v2419_v48 = vadd.f32 %v6228_v31, %v2387_v24  ;;  %v2299_v35 = vpop.f32.mrb[67].mxu1  ;;  %v2396_v24 = vld [vmem:[#allocation3 + $0xe0] sm:$0xff] }
 0x184   : > { %2907 = vst.msk [vmem:[#allocation3 + $0x60] sm:$0xff] %vm614_vm2, %v2875_v34  ;;  %v2418_v43 = vadd.f32 %v2386_v46, %v2299_v35  ;;  %v2846_v26 = vld [vmem:[#allocation3 + $0x78] sm:$0xff] }
 0x185   : > { %2451 = vst.msk [vmem:[#allocation3 + $0x98] sm:$0xff] %vm614_vm2, %v2419_v48  ;;  %v2878_v41 = vadd.f32 %v6290_v39, %v2846_v26  ;;  %v2845_v47 = vld [vmem:[#allocation3 + $0x70] sm:$0xff] }
 0x186   : > { %v6296_v28 = vpop.f32.mrb[66].mxu0  ;;  %2450 = vst.msk [vmem:[#allocation3 + $0x90] sm:$0xff] %vm614_vm2, %v2418_v43  ;;  %v2877_v62 = vadd.f32 %v2845_v47, %v2742_v20  ;;  %v6231_v44 = vpop.f32.mrb[68].mxu1  ;;  %v2399_v47 = vld [vmem:[#allocation3 + $0xf8] sm:$0xff] }
 0x187   : > { %v2762_v53 = vpop.f32.mrb[67].mxu0  ;;  %2910 = vst.msk [vmem:[#allocation3 + $0x78] sm:$0xff] %vm614_vm2, %v2878_v41  ;;  %v2421_v5 = vadd.f32 %v6231_v44, %v2389_v42  ;;  %v2309_v52 = vpop.f32.mrb[69].mxu1  ;;  %v2398_v42 = vld [vmem:[#allocation3 + $0xf0] sm:$0xff] }
 0x188   : > { %2909 = vst.msk [vmem:[#allocation3 + $0x70] sm:$0xff] %vm614_vm2, %v2877_v62  ;;  %v2420_v56 = vadd.f32 %v2388_v7, %v2309_v52  ;;  %v2848_v61 = vld [vmem:[#allocation3 + $0x88] sm:$0xff] }
 0x189   : > { %2453 = vst.msk [vmem:[#allocation3 + $0xa8] sm:$0xff] %vm614_vm2, %v2421_v5  ;;  %v2880_v63 = vadd.f32 %v6293_v13, %v2848_v61  ;;  %v2847_v50 = vld [vmem:[#allocation3 + $0x80] sm:$0xff] }
 0x18a   : > { %v6299_v1 = vpop.f32.mrb[68].mxu0  ;;  %2452 = vst.msk [vmem:[#allocation3 + $0xa0] sm:$0xff] %vm614_vm2, %v2420_v56  ;;  %v2879_v55 = vadd.f32 %v2847_v50, %v2752_v36  ;;  %v6234_v11 = vpop.f32.mrb[70].mxu1  ;;  %v3295_v50 = vld [vmem:[#allocation3 + $0x8] sm:$0xff] }
 0x18b   : > { %v2772_v12 = vpop.f32.mrb[69].mxu0  ;;  %2912 = vst.msk [vmem:[#allocation3 + $0x88] sm:$0xff] %vm614_vm2, %v2880_v63  ;;  %v2423_v60 = vadd.f32 %v6234_v11, %v2391_v3  ;;  %v2319_v10 = vpop.f32.mrb[71].mxu1  ;;  %v3294_v3 = vld [vmem:[#allocation3] sm:$0xff] }
 0x18c   : > { %2911 = vst.msk [vmem:[#allocation3 + $0x80] sm:$0xff] %vm614_vm2, %v2879_v55  ;;  %v2422_v16 = vadd.f32 %v2390_v14, %v2319_v10  ;;  %v2850_v33 = vld [vmem:[#allocation3 + $0x98] sm:$0xff] }
 0x18d   : > { %2455 = vst.msk [vmem:[#allocation3 + $0xb8] sm:$0xff] %vm614_vm2, %v2423_v60  ;;  %v2882_v51 = vadd.f32 %v6296_v28, %v2850_v33  ;;  %v2849_v8 = vld [vmem:[#allocation3 + $0x90] sm:$0xff] }
 0x18e   : > { %v6302_v27 = vpop.f32.mrb[70].mxu0  ;;  %2454 = vst.msk [vmem:[#allocation3 + $0xb0] sm:$0xff] %vm614_vm2, %v2422_v16  ;;  %v2881_v40 = vadd.f32 %v2849_v8, %v2762_v53  ;;  %v6237_v57 = vpop.f32.mrb[72].mxu1  ;;  %v3297_v8 = vld [vmem:[#allocation3 + $0x18] sm:$0xff] }
 0x18f   : > { %v2782_v4 = vpop.f32.mrb[71].mxu0  ;;  %2914 = vst.msk [vmem:[#allocation3 + $0x98] sm:$0xff] %vm614_vm2, %v2882_v51  ;;  %v2425_v21 = vadd.f32 %v6237_v57, %v2393_v0  ;;  %v2329_v37 = vpop.f32.mrb[73].mxu1  ;;  %v3296_v0 = vld [vmem:[#allocation3 + $0x10] sm:$0xff] }
 0x190   : > { %2913 = vst.msk [vmem:[#allocation3 + $0x90] sm:$0xff] %vm614_vm2, %v2881_v40  ;;  %v2424_v15 = vadd.f32 %v2392_v54, %v2329_v37  ;;  %v2852_v38 = vld [vmem:[#allocation3 + $0xa8] sm:$0xff] }
 0x191   : > { %2457 = vst.msk [vmem:[#allocation3 + $0xc8] sm:$0xff] %vm614_vm2, %v2425_v21  ;;  %v2884_v22 = vadd.f32 %v6299_v1, %v2852_v38  ;;  %v2851_v23 = vld [vmem:[#allocation3 + $0xa0] sm:$0xff] }
 0x192   : > { %v6305_v29 = vpop.f32.mrb[72].mxu0  ;;  %2456 = vst.msk [vmem:[#allocation3 + $0xc0] sm:$0xff] %vm614_vm2, %v2424_v15  ;;  %v2883_v18 = vadd.f32 %v2851_v23, %v2772_v12  ;;  %v6240_v19 = vpop.f32.mrb[74].mxu1  ;;  %v3299_v23 = vld [vmem:[#allocation3 + $0x28] sm:$0xff] }
 0x193   : > { %v2792_v39 = vpop.f32.mrb[73].mxu0  ;;  %2916 = vst.msk [vmem:[#allocation3 + $0xa8] sm:$0xff] %vm614_vm2, %v2884_v22  ;;  %v2427_v59 = vadd.f32 %v6240_v19, %v2395_v32  ;;  %v2339_v45 = vpop.f32.mrb[75].mxu1  ;;  %v3298_v32 = vld [vmem:[#allocation3 + $0x20] sm:$0xff] }
 0x194   : > { %2915 = vst.msk [vmem:[#allocation3 + $0xa0] sm:$0xff] %vm614_vm2, %v2883_v18  ;;  %v2426_v20 = vadd.f32 %v2394_v49, %v2339_v45  ;;  %v2854_v9 = vld [vmem:[#allocation3 + $0xb8] sm:$0xff] }
 0x195   : > { %2459 = vst.msk [vmem:[#allocation3 + $0xd8] sm:$0xff] %vm614_vm2, %v2427_v59  ;;  %v2886_v2 = vadd.f32 %v6302_v27, %v2854_v9  ;;  %v2853_v58 = vld [vmem:[#allocation3 + $0xb0] sm:$0xff] }
 0x196   : > { %v6308_v30 = vpop.f32.mrb[74].mxu0  ;;  %2458 = vst.msk [vmem:[#allocation3 + $0xd0] sm:$0xff] %vm614_vm2, %v2426_v20  ;;  %v2885_v17 = vadd.f32 %v2853_v58, %v2782_v4  ;;  %v6243_v25 = vpop.f32.mrb[76].mxu1  ;;  %v3301_v58 = vld [vmem:[#allocation3 + $0x38] sm:$0xff] }
 0x197   : > { %v2802_v13 = vpop.f32.mrb[75].mxu0  ;;  %2918 = vst.msk [vmem:[#allocation3 + $0xb8] sm:$0xff] %vm614_vm2, %v2886_v2  ;;  %v2429_v34 = vadd.f32 %v6243_v25, %v2397_v6  ;;  %v2349_v31 = vpop.f32.mrb[77].mxu1  ;;  %v3300_v6 = vld [vmem:[#allocation3 + $0x30] sm:$0xff] }
 0x198   : > { %2917 = vst.msk [vmem:[#allocation3 + $0xb0] sm:$0xff] %vm614_vm2, %v2885_v17  ;;  %v2428_v36 = vadd.f32 %v2396_v24, %v2349_v31  ;;  %v2856_v48 = vld [vmem:[#allocation3 + $0xc8] sm:$0xff] }
 0x199   : > { %2461 = vst.msk [vmem:[#allocation3 + $0xe8] sm:$0xff] %vm614_vm2, %v2429_v34  ;;  %v2888_v35 = vadd.f32 %v6305_v29, %v2856_v48  ;;  %v2855_v46 = vld [vmem:[#allocation3 + $0xc0] sm:$0xff] }
 0x19a   : > { %v6311_v43 = vpop.f32.mrb[76].mxu0  ;;  %2460 = vst.msk [vmem:[#allocation3 + $0xe0] sm:$0xff] %vm614_vm2, %v2428_v36  ;;  %v2887_v26 = vadd.f32 %v2855_v46, %v2792_v39  ;;  %v6246_v41 = vpop.f32.mrb[78].mxu1  ;;  %v3303_v46 = vld [vmem:[#allocation3 + $0x48] sm:$0xff] }
 0x19b   : > { %v2812_v28 = vpop.f32.mrb[77].mxu0  ;;  %2920 = vst.msk [vmem:[#allocation3 + $0xc8] sm:$0xff] %vm614_vm2, %v2888_v35  ;;  %v2431_v62 = vadd.f32 %v6246_v41, %v2399_v47  ;;  %v2359_v44 = vpop.f32.mrb[79].mxu1  ;;  %v3302_v47 = vld [vmem:[#allocation3 + $0x40] sm:$0xff] }
 0x19c   : > { %2919 = vst.msk [vmem:[#allocation3 + $0xc0] sm:$0xff] %vm614_vm2, %v2887_v26  ;;  %v2430_v53 = vadd.f32 %v2398_v42, %v2359_v44  ;;  %v2858_v5 = vld [vmem:[#allocation3 + $0xd8] sm:$0xff] }
 0x19d   : > { %2463 = vst.msk [vmem:[#allocation3 + $0xf8] sm:$0xff] %vm614_vm2, %v2431_v62  ;;  %v2890_v52 = vadd.f32 %v6308_v30, %v2858_v5  ;;  %v2857_v7 = vld [vmem:[#allocation3 + $0xd0] sm:$0xff] }
 0x19e   : > { %v6314_v56 = vpop.f32.mrb[78].mxu0  ;;  %2462 = vst.msk [vmem:[#allocation3 + $0xf0] sm:$0xff] %vm614_vm2, %v2430_v53  ;;  %v2889_v61 = vadd.f32 %v2857_v7, %v2802_v13  ;;  %v6337_v63 = vpop.f32.mrb[80].mxu1  ;;  %v3305_v7 = vld [vmem:[#allocation3 + $0x58] sm:$0xff] }
 0x19f   : > { %v2822_v1 = vpop.f32.mrb[79].mxu0  ;;  %2922 = vst.msk [vmem:[#allocation3 + $0xd8] sm:$0xff] %vm614_vm2, %v2890_v52  ;;  %v3327_v55 = vadd.f32 %v6337_v63, %v3295_v50  ;;  %v3135_v11 = vpop.f32.mrb[81].mxu1  ;;  %v3304_v50 = vld [vmem:[#allocation3 + $0x50] sm:$0xff] }
 0x1a0   : > { %2921 = vst.msk [vmem:[#allocation3 + $0xd0] sm:$0xff] %vm614_vm2, %v2889_v61  ;;  %v3326_v12 = vadd.f32 %v3294_v3, %v3135_v11  ;;  %v2860_v60 = vld [vmem:[#allocation3 + $0xe8] sm:$0xff]  ;;  %v8771_v11 = vmov 0.0  }
 0x1a1   : > { %3359 = vst.msk [vmem:[#allocation3 + $0x8] sm:$0xff] %vm614_vm2, %v3327_v55  ;;  %v2892_v10 = vadd.f32 %v6311_v43, %v2860_v60  ;;  %v2859_v14 = vld [vmem:[#allocation3 + $0xe0] sm:$0xff]  ;;  %4844 = vst.msk [vmem:[%s8369_s9] sm:$0xff] %vm614_vm2, %v8771_v11 }
 0x1a2   : > { %v6405_v16 = vpop.f32.mrb[80].mxu0  ;;  %3358 = vst.msk [vmem:[#allocation3] sm:$0xff] %vm614_vm2, %v3326_v12  ;;  %v2891_v33 = vadd.f32 %v2859_v14, %v2812_v28  ;;  %v6340_v51 = vpop.f32.mrb[82].mxu1 }
 0x1a3   : > { %v3599_v27 = vpop.f32.mrb[81].mxu0  ;;  %2924 = vst.msk [vmem:[#allocation3 + $0xe8] sm:$0xff] %vm614_vm2, %v2892_v10  ;;  %v3329_v40 = vadd.f32 %v6340_v51, %v3297_v8  ;;  %v3145_v57 = vpop.f32.mrb[83].mxu1 }
 0x1a4   : > { %2923 = vst.msk [vmem:[#allocation3 + $0xe0] sm:$0xff] %vm614_vm2, %v2891_v33  ;;  %v3328_v4 = vadd.f32 %v3296_v0, %v3145_v57  ;;  %v2862_v21 = vld [vmem:[#allocation3 + $0xf8] sm:$0xff] }
 0x1a5   : > { %3361 = vst.msk [vmem:[#allocation3 + $0x18] sm:$0xff] %vm614_vm2, %v3329_v40  ;;  %v2894_v37 = vadd.f32 %v6314_v56, %v2862_v21  ;;  %v2861_v54 = vld [vmem:[#allocation3 + $0xf0] sm:$0xff] }
 0x1a6   : > { %v6408_v15 = vpop.f32.mrb[82].mxu0  ;;  %3360 = vst.msk [vmem:[#allocation3 + $0x10] sm:$0xff] %vm614_vm2, %v3328_v4  ;;  %v2893_v38 = vadd.f32 %v2861_v54, %v2822_v1  ;;  %v6343_v22 = vpop.f32.mrb[84].mxu1 }
 0x1a7   : > { %v3609_v29 = vpop.f32.mrb[83].mxu0  ;;  %2926 = vst.msk [vmem:[#allocation3 + $0xf8] sm:$0xff] %vm614_vm2, %v2894_v37  ;;  %v3331_v18 = vadd.f32 %v6343_v22, %v3299_v23  ;;  %v3155_v19 = vpop.f32.mrb[85].mxu1 }
 0x1a8   : > { %2925 = vst.msk [vmem:[#allocation3 + $0xf0] sm:$0xff] %vm614_vm2, %v2893_v38  ;;  %v3330_v39 = vadd.f32 %v3298_v32, %v3155_v19  ;;  %v3759_v59 = vld [vmem:[#allocation3 + $0x8] sm:$0xff] }
 0x1a9   : > { %3363 = vst.msk [vmem:[#allocation3 + $0x28] sm:$0xff] %vm614_vm2, %v3331_v18  ;;  %v3791_v45 = vadd.f32 %v6405_v16, %v3759_v59  ;;  %v3758_v49 = vld [vmem:[#allocation3] sm:$0xff]  ;;  %v3307_v16 = vld [vmem:[#allocation3 + $0x68] sm:$0xff] }
 0x1aa   : > { %v6411_v20 = vpop.f32.mrb[84].mxu0  ;;  %3362 = vst.msk [vmem:[#allocation3 + $0x20] sm:$0xff] %vm614_vm2, %v3330_v39  ;;  %v3790_v9 = vadd.f32 %v3758_v49, %v3599_v27  ;;  %v6346_v2 = vpop.f32.mrb[86].mxu1  ;;  %v3306_v27 = vld [vmem:[#allocation3 + $0x60] sm:$0xff] }
 0x1ab   : > { %v3619_v30 = vpop.f32.mrb[85].mxu0  ;;  %3823 = vst.msk [vmem:[#allocation3 + $0x8] sm:$0xff] %vm614_vm2, %v3791_v45  ;;  %v3333_v17 = vadd.f32 %v6346_v2, %v3301_v58  ;;  %v3165_v25 = vpop.f32.mrb[87].mxu1 }
 0x1ac   : > { %3822 = vst.msk [vmem:[#allocation3] sm:$0xff] %vm614_vm2, %v3790_v9  ;;  %v3332_v13 = vadd.f32 %v3300_v6, %v3165_v25  ;;  %v3761_v34 = vld [vmem:[#allocation3 + $0x18] sm:$0xff] }
 0x1ad   : > { %3365 = vst.msk [vmem:[#allocation3 + $0x38] sm:$0xff] %vm614_vm2, %v3333_v17  ;;  %v3793_v31 = vadd.f32 %v6408_v15, %v3761_v34  ;;  %v3760_v24 = vld [vmem:[#allocation3 + $0x10] sm:$0xff]  ;;  %v3309_v15 = vld [vmem:[#allocation3 + $0x78] sm:$0xff] }
 0x1ae   : > { %v6414_v36 = vpop.f32.mrb[86].mxu0  ;;  %3364 = vst.msk [vmem:[#allocation3 + $0x30] sm:$0xff] %vm614_vm2, %v3332_v13  ;;  %v3792_v48 = vadd.f32 %v3760_v24, %v3609_v29  ;;  %v6349_v35 = vpop.f32.mrb[88].mxu1  ;;  %v3308_v29 = vld [vmem:[#allocation3 + $0x70] sm:$0xff] }
 0x1af   : > { %v3629_v43 = vpop.f32.mrb[87].mxu0  ;;  %3825 = vst.msk [vmem:[#allocation3 + $0x18] sm:$0xff] %vm614_vm2, %v3793_v31  ;;  %v3335_v26 = vadd.f32 %v6349_v35, %v3303_v46  ;;  %v3175_v41 = vpop.f32.mrb[89].mxu1 }
 0x1b0   : > { %3824 = vst.msk [vmem:[#allocation3 + $0x10] sm:$0xff] %vm614_vm2, %v3792_v48  ;;  %v3334_v28 = vadd.f32 %v3302_v47, %v3175_v41  ;;  %v3763_v62 = vld [vmem:[#allocation3 + $0x28] sm:$0xff] }
 0x1b1   : > { %3367 = vst.msk [vmem:[#allocation3 + $0x48] sm:$0xff] %vm614_vm2, %v3335_v26  ;;  %v3795_v44 = vadd.f32 %v6411_v20, %v3763_v62  ;;  %v3762_v42 = vld [vmem:[#allocation3 + $0x20] sm:$0xff]  ;;  %v3311_v20 = vld [vmem:[#allocation3 + $0x88] sm:$0xff] }
 0x1b2   : > { %v6417_v53 = vpop.f32.mrb[88].mxu0  ;;  %3366 = vst.msk [vmem:[#allocation3 + $0x40] sm:$0xff] %vm614_vm2, %v3334_v28  ;;  %v3794_v5 = vadd.f32 %v3762_v42, %v3619_v30  ;;  %v6352_v52 = vpop.f32.mrb[90].mxu1  ;;  %v3310_v30 = vld [vmem:[#allocation3 + $0x80] sm:$0xff] }
 0x1b3   : > { %v3639_v56 = vpop.f32.mrb[89].mxu0  ;;  %3827 = vst.msk [vmem:[#allocation3 + $0x28] sm:$0xff] %vm614_vm2, %v3795_v44  ;;  %v3337_v61 = vadd.f32 %v6352_v52, %v3305_v7  ;;  %v3185_v63 = vpop.f32.mrb[91].mxu1 }
 0x1b4   : > { %3826 = vst.msk [vmem:[#allocation3 + $0x20] sm:$0xff] %vm614_vm2, %v3794_v5  ;;  %v3336_v1 = vadd.f32 %v3304_v50, %v3185_v63  ;;  %v3765_v55 = vld [vmem:[#allocation3 + $0x38] sm:$0xff] }
 0x1b5   : > { %3369 = vst.msk [vmem:[#allocation3 + $0x58] sm:$0xff] %vm614_vm2, %v3337_v61  ;;  %v3797_v3 = vadd.f32 %v6414_v36, %v3765_v55  ;;  %v3764_v12 = vld [vmem:[#allocation3 + $0x30] sm:$0xff]  ;;  %v3313_v36 = vld [vmem:[#allocation3 + $0x98] sm:$0xff] }
 0x1b6   : > { %v6420_v60 = vpop.f32.mrb[90].mxu0  ;;  %3368 = vst.msk [vmem:[#allocation3 + $0x50] sm:$0xff] %vm614_vm2, %v3336_v1  ;;  %v3796_v10 = vadd.f32 %v3764_v12, %v3629_v43  ;;  %v6355_v14 = vpop.f32.mrb[92].mxu1  ;;  %v3312_v43 = vld [vmem:[#allocation3 + $0x90] sm:$0xff]  ;;  %v3317_v12 = vld [vmem:[#allocation3 + $0xb8] sm:$0xff] }
 0x1b7   : > { %v3649_v33 = vpop.f32.mrb[91].mxu0  ;;  %3829 = vst.msk [vmem:[#allocation3 + $0x38] sm:$0xff] %vm614_vm2, %v3797_v3  ;;  %v3339_v51 = vadd.f32 %v6355_v14, %v3307_v16  ;;  %v3195_v8 = vpop.f32.mrb[93].mxu1  ;;  %v3316_v16 = vld [vmem:[#allocation3 + $0xb0] sm:$0xff] }
 0x1b8   : > { %3828 = vst.msk [vmem:[#allocation3 + $0x30] sm:$0xff] %vm614_vm2, %v3796_v10  ;;  %v3338_v40 = vadd.f32 %v3306_v27, %v3195_v8  ;;  %v3767_v57 = vld [vmem:[#allocation3 + $0x48] sm:$0xff] }
 0x1b9   : > { %3371 = vst.msk [vmem:[#allocation3 + $0x68] sm:$0xff] %vm614_vm2, %v3339_v51  ;;  %v3799_v0 = vadd.f32 %v6417_v53, %v3767_v57  ;;  %v3766_v4 = vld [vmem:[#allocation3 + $0x40] sm:$0xff]  ;;  %v3315_v53 = vld [vmem:[#allocation3 + $0xa8] sm:$0xff] }
 0x1ba   : > { %v6423_v21 = vpop.f32.mrb[92].mxu0  ;;  %3370 = vst.msk [vmem:[#allocation3 + $0x60] sm:$0xff] %vm614_vm2, %v3338_v40  ;;  %v3798_v37 = vadd.f32 %v3766_v4, %v3639_v56  ;;  %v6358_v54 = vpop.f32.mrb[94].mxu1  ;;  %v3314_v56 = vld [vmem:[#allocation3 + $0xa0] sm:$0xff]  ;;  %v3319_v4 = vld [vmem:[#allocation3 + $0xc8] sm:$0xff] }
 0x1bb   : > { %v3659_v38 = vpop.f32.mrb[93].mxu0  ;;  %3831 = vst.msk [vmem:[#allocation3 + $0x48] sm:$0xff] %vm614_vm2, %v3799_v0  ;;  %v3341_v22 = vadd.f32 %v6358_v54, %v3309_v15  ;;  %v3205_v23 = vpop.f32.mrb[95].mxu1  ;;  %v3318_v15 = vld [vmem:[#allocation3 + $0xc0] sm:$0xff] }
 0x1bc   : > { %3830 = vst.msk [vmem:[#allocation3 + $0x40] sm:$0xff] %vm614_vm2, %v3798_v37  ;;  %v3340_v18 = vadd.f32 %v3308_v29, %v3205_v23  ;;  %v3769_v19 = vld [vmem:[#allocation3 + $0x58] sm:$0xff] }
 0x1bd   : > { %3373 = vst.msk [vmem:[#allocation3 + $0x78] sm:$0xff] %vm614_vm2, %v3341_v22  ;;  %v3801_v32 = vadd.f32 %v6420_v60, %v3769_v19  ;;  %v3768_v39 = vld [vmem:[#allocation3 + $0x50] sm:$0xff] }
 0x1be   : > { %v6426_v59 = vpop.f32.mrb[94].mxu0  ;;  %3372 = vst.msk [vmem:[#allocation3 + $0x70] sm:$0xff] %vm614_vm2, %v3340_v18  ;;  %v3800_v45 = vadd.f32 %v3768_v39, %v3649_v33  ;;  %v6361_v49 = vpop.f32.mrb[96].mxu1  ;;  %v3321_v39 = vld [vmem:[#allocation3 + $0xd8] sm:$0xff] }
 0x1bf   : > { %v3669_v9 = vpop.f32.mrb[95].mxu0  ;;  %3833 = vst.msk [vmem:[#allocation3 + $0x58] sm:$0xff] %vm614_vm2, %v3801_v32  ;;  %v3343_v2 = vadd.f32 %v6361_v49, %v3311_v20  ;;  %v3215_v58 = vpop.f32.mrb[97].mxu1  ;;  %v3320_v20 = vld [vmem:[#allocation3 + $0xd0] sm:$0xff] }
 0x1c0   : > { %3832 = vst.msk [vmem:[#allocation3 + $0x50] sm:$0xff] %vm614_vm2, %v3800_v45  ;;  %v3342_v17 = vadd.f32 %v3310_v30, %v3215_v58  ;;  %v3771_v25 = vld [vmem:[#allocation3 + $0x68] sm:$0xff] }
 0x1c1   : > { %3375 = vst.msk [vmem:[#allocation3 + $0x88] sm:$0xff] %vm614_vm2, %v3343_v2  ;;  %v3803_v6 = vadd.f32 %v6423_v21, %v3771_v25  ;;  %v3770_v13 = vld [vmem:[#allocation3 + $0x60] sm:$0xff] }
 0x1c2   : > { %v6429_v34 = vpop.f32.mrb[96].mxu0  ;;  %3374 = vst.msk [vmem:[#allocation3 + $0x80] sm:$0xff] %vm614_vm2, %v3342_v17  ;;  %v3802_v31 = vadd.f32 %v3770_v13, %v3659_v38  ;;  %v6364_v24 = vpop.f32.mrb[98].mxu1  ;;  %v3323_v13 = vld [vmem:[#allocation3 + $0xe8] sm:$0xff] }
 0x1c3   : > { %v3679_v48 = vpop.f32.mrb[97].mxu0  ;;  %3835 = vst.msk [vmem:[#allocation3 + $0x68] sm:$0xff] %vm614_vm2, %v3803_v6  ;;  %v3345_v35 = vadd.f32 %v6364_v24, %v3313_v36  ;;  %v3225_v46 = vpop.f32.mrb[99].mxu1  ;;  %v3322_v36 = vld [vmem:[#allocation3 + $0xe0] sm:$0xff] }
 0x1c4   : > { %3834 = vst.msk [vmem:[#allocation3 + $0x60] sm:$0xff] %vm614_vm2, %v3802_v31  ;;  %v3344_v26 = vadd.f32 %v3312_v43, %v3225_v46  ;;  %v3773_v41 = vld [vmem:[#allocation3 + $0x78] sm:$0xff] }
 0x1c5   : > { %3377 = vst.msk [vmem:[#allocation3 + $0x98] sm:$0xff] %vm614_vm2, %v3345_v35  ;;  %v3805_v47 = vadd.f32 %v6426_v59, %v3773_v41  ;;  %v3772_v28 = vld [vmem:[#allocation3 + $0x70] sm:$0xff] }
 0x1c6   : > { %v6432_v62 = vpop.f32.mrb[98].mxu0  ;;  %3376 = vst.msk [vmem:[#allocation3 + $0x90] sm:$0xff] %vm614_vm2, %v3344_v26  ;;  %v3804_v44 = vadd.f32 %v3772_v28, %v3669_v9  ;;  %v6367_v42 = vpop.f32.mrb[100].mxu1  ;;  %v3325_v28 = vld [vmem:[#allocation3 + $0xf8] sm:$0xff] }
 0x1c7   : > { %v3689_v5 = vpop.f32.mrb[99].mxu0  ;;  %3837 = vst.msk [vmem:[#allocation3 + $0x78] sm:$0xff] %vm614_vm2, %v3805_v47  ;;  %v3347_v52 = vadd.f32 %v6367_v42, %v3315_v53  ;;  %v3235_v7 = vpop.f32.mrb[101].mxu1  ;;  %v3324_v53 = vld [vmem:[#allocation3 + $0xf0] sm:$0xff] }
 0x1c8   : > { %3836 = vst.msk [vmem:[#allocation3 + $0x70] sm:$0xff] %vm614_vm2, %v3804_v44  ;;  %v3346_v61 = vadd.f32 %v3314_v56, %v3235_v7  ;;  %v3775_v63 = vld [vmem:[#allocation3 + $0x88] sm:$0xff] }
 0x1c9   : > { %3379 = vst.msk [vmem:[#allocation3 + $0xa8] sm:$0xff] %vm614_vm2, %v3347_v52  ;;  %v3807_v50 = vadd.f32 %v6429_v34, %v3775_v63  ;;  %v3774_v1 = vld [vmem:[#allocation3 + $0x80] sm:$0xff] }
 0x1ca   : > { %v6435_v55 = vpop.f32.mrb[100].mxu0  ;;  %3378 = vst.msk [vmem:[#allocation3 + $0xa0] sm:$0xff] %vm614_vm2, %v3346_v61  ;;  %v3806_v11 = vadd.f32 %v3774_v1, %v3679_v48  ;;  %v6370_v3 = vpop.f32.mrb[102].mxu1  ;;  %v4222_v1 = vld [vmem:[#allocation3 + $0x8] sm:$0xff] }
 0x1cb   : > { %v3699_v60 = vpop.f32.mrb[101].mxu0  ;;  %3839 = vst.msk [vmem:[#allocation3 + $0x88] sm:$0xff] %vm614_vm2, %v3807_v50  ;;  %v3349_v10 = vadd.f32 %v6370_v3, %v3317_v12  ;;  %v3245_v14 = vpop.f32.mrb[103].mxu1  ;;  %v4221_v12 = vld [vmem:[#allocation3] sm:$0xff] }
 0x1cc   : > { %3838 = vst.msk [vmem:[#allocation3 + $0x80] sm:$0xff] %vm614_vm2, %v3806_v11  ;;  %v3348_v33 = vadd.f32 %v3316_v16, %v3245_v14  ;;  %v3777_v51 = vld [vmem:[#allocation3 + $0x98] sm:$0xff] }
 0x1cd   : > { %3381 = vst.msk [vmem:[#allocation3 + $0xb8] sm:$0xff] %vm614_vm2, %v3349_v10  ;;  %v3809_v8 = vadd.f32 %v6432_v62, %v3777_v51  ;;  %v3776_v27 = vld [vmem:[#allocation3 + $0x90] sm:$0xff] }
 0x1ce   : > { %v6438_v40 = vpop.f32.mrb[102].mxu0  ;;  %3380 = vst.msk [vmem:[#allocation3 + $0xb0] sm:$0xff] %vm614_vm2, %v3348_v33  ;;  %v3808_v57 = vadd.f32 %v3776_v27, %v3689_v5  ;;  %v6373_v0 = vpop.f32.mrb[104].mxu1  ;;  %v4224_v27 = vld [vmem:[#allocation3 + $0x18] sm:$0xff] }
 0x1cf   : > { %v3709_v21 = vpop.f32.mrb[103].mxu0  ;;  %3841 = vst.msk [vmem:[#allocation3 + $0x98] sm:$0xff] %vm614_vm2, %v3809_v8  ;;  %v3351_v37 = vadd.f32 %v6373_v0, %v3319_v4  ;;  %v3255_v54 = vpop.f32.mrb[105].mxu1  ;;  %v4223_v4 = vld [vmem:[#allocation3 + $0x10] sm:$0xff] }
 0x1d0   : > { %3840 = vst.msk [vmem:[#allocation3 + $0x90] sm:$0xff] %vm614_vm2, %v3808_v57  ;;  %v3350_v38 = vadd.f32 %v3318_v15, %v3255_v54  ;;  %v3779_v22 = vld [vmem:[#allocation3 + $0xa8] sm:$0xff] }
 0x1d1   : > { %3383 = vst.msk [vmem:[#allocation3 + $0xc8] sm:$0xff] %vm614_vm2, %v3351_v37  ;;  %v3811_v23 = vadd.f32 %v6435_v55, %v3779_v22  ;;  %v3778_v29 = vld [vmem:[#allocation3 + $0xa0] sm:$0xff] }
 0x1d2   : > { %v6441_v18 = vpop.f32.mrb[104].mxu0  ;;  %3382 = vst.msk [vmem:[#allocation3 + $0xc0] sm:$0xff] %vm614_vm2, %v3350_v38  ;;  %v3810_v19 = vadd.f32 %v3778_v29, %v3699_v60  ;;  %v6376_v32 = vpop.f32.mrb[106].mxu1  ;;  %v4226_v29 = vld [vmem:[#allocation3 + $0x28] sm:$0xff] }
 0x1d3   : > { %v3719_v59 = vpop.f32.mrb[105].mxu0  ;;  %3843 = vst.msk [vmem:[#allocation3 + $0xa8] sm:$0xff] %vm614_vm2, %v3811_v23  ;;  %v3353_v45 = vadd.f32 %v6376_v32, %v3321_v39  ;;  %v3265_v49 = vpop.f32.mrb[107].mxu1  ;;  %v4225_v39 = vld [vmem:[#allocation3 + $0x20] sm:$0xff] }
 0x1d4   : > { %3842 = vst.msk [vmem:[#allocation3 + $0xa0] sm:$0xff] %vm614_vm2, %v3810_v19  ;;  %v3352_v9 = vadd.f32 %v3320_v20, %v3265_v49  ;;  %v3781_v2 = vld [vmem:[#allocation3 + $0xb8] sm:$0xff] }
 0x1d5   : > { %3385 = vst.msk [vmem:[#allocation3 + $0xd8] sm:$0xff] %vm614_vm2, %v3353_v45  ;;  %v3813_v58 = vadd.f32 %v6438_v40, %v3781_v2  ;;  %v3780_v30 = vld [vmem:[#allocation3 + $0xb0] sm:$0xff] }
 0x1d6   : > { %v6444_v17 = vpop.f32.mrb[106].mxu0  ;;  %3384 = vst.msk [vmem:[#allocation3 + $0xd0] sm:$0xff] %vm614_vm2, %v3352_v9  ;;  %v3812_v25 = vadd.f32 %v3780_v30, %v3709_v21  ;;  %v6379_v6 = vpop.f32.mrb[108].mxu1  ;;  %v4228_v30 = vld [vmem:[#allocation3 + $0x38] sm:$0xff] }
 0x1d7   : > { %v3729_v34 = vpop.f32.mrb[107].mxu0  ;;  %3845 = vst.msk [vmem:[#allocation3 + $0xb8] sm:$0xff] %vm614_vm2, %v3813_v58  ;;  %v3355_v31 = vadd.f32 %v6379_v6, %v3323_v13  ;;  %v3275_v24 = vpop.f32.mrb[109].mxu1  ;;  %v4227_v13 = vld [vmem:[#allocation3 + $0x30] sm:$0xff] }
 0x1d8   : > { %3844 = vst.msk [vmem:[#allocation3 + $0xb0] sm:$0xff] %vm614_vm2, %v3812_v25  ;;  %v3354_v48 = vadd.f32 %v3322_v36, %v3275_v24  ;;  %v3783_v35 = vld [vmem:[#allocation3 + $0xc8] sm:$0xff] }
 0x1d9   : > { %3387 = vst.msk [vmem:[#allocation3 + $0xe8] sm:$0xff] %vm614_vm2, %v3355_v31  ;;  %v3815_v46 = vadd.f32 %v6441_v18, %v3783_v35  ;;  %v3782_v43 = vld [vmem:[#allocation3 + $0xc0] sm:$0xff] }
 0x1da   : > { %v6447_v26 = vpop.f32.mrb[108].mxu0  ;;  %3386 = vst.msk [vmem:[#allocation3 + $0xe0] sm:$0xff] %vm614_vm2, %v3354_v48  ;;  %v3814_v41 = vadd.f32 %v3782_v43, %v3719_v59  ;;  %v6382_v47 = vpop.f32.mrb[110].mxu1  ;;  %v4230_v43 = vld [vmem:[#allocation3 + $0x48] sm:$0xff] }
 0x1db   : > { %v3739_v62 = vpop.f32.mrb[109].mxu0  ;;  %3847 = vst.msk [vmem:[#allocation3 + $0xc8] sm:$0xff] %vm614_vm2, %v3815_v46  ;;  %v3357_v44 = vadd.f32 %v6382_v47, %v3325_v28  ;;  %v3285_v42 = vpop.f32.mrb[111].mxu1  ;;  %v4229_v28 = vld [vmem:[#allocation3 + $0x40] sm:$0xff] }
 0x1dc   : > { %3846 = vst.msk [vmem:[#allocation3 + $0xc0] sm:$0xff] %vm614_vm2, %v3814_v41  ;;  %v3356_v5 = vadd.f32 %v3324_v53, %v3285_v42  ;;  %v3785_v52 = vld [vmem:[#allocation3 + $0xd8] sm:$0xff] }
 0x1dd   : > { %3389 = vst.msk [vmem:[#allocation3 + $0xf8] sm:$0xff] %vm614_vm2, %v3357_v44  ;;  %v3817_v7 = vadd.f32 %v6444_v17, %v3785_v52  ;;  %v3784_v56 = vld [vmem:[#allocation3 + $0xd0] sm:$0xff] }
 0x1de   : > { %v6450_v61 = vpop.f32.mrb[110].mxu0  ;;  %3388 = vst.msk [vmem:[#allocation3 + $0xf0] sm:$0xff] %vm614_vm2, %v3356_v5  ;;  %v3816_v63 = vadd.f32 %v3784_v56, %v3729_v34  ;;  %v6473_v50 = vpop.f32.mrb[112].mxu1 }
 0x1df   : > { %v3749_v55 = vpop.f32.mrb[111].mxu0  ;;  %3849 = vst.msk [vmem:[#allocation3 + $0xd8] sm:$0xff] %vm614_vm2, %v3817_v7  ;;  %v4254_v11 = vadd.f32 %v6473_v50, %v4222_v1  ;;  %v4062_v3 = vpop.f32.mrb[113].mxu1 }
 0x1e0   : > { %3848 = vst.msk [vmem:[#allocation3 + $0xd0] sm:$0xff] %vm614_vm2, %v3816_v63  ;;  %v4253_v60 = vadd.f32 %v4221_v12, %v4062_v3  ;;  %v3787_v10 = vld [vmem:[#allocation3 + $0xe8] sm:$0xff]  ;;  %v4231_v3 = vld [vmem:[#allocation3 + $0x50] sm:$0xff] }
 0x1e1   : > { %4286 = vst.msk [vmem:[#allocation3 + $0x8] sm:$0xff] %vm614_vm2, %v4254_v11  ;;  %v3819_v14 = vadd.f32 %v6447_v26, %v3787_v10  ;;  %v3786_v16 = vld [vmem:[#allocation3 + $0xe0] sm:$0xff] }
 0x1e2   : > { %v6541_v33 = vpop.f32.mrb[112].mxu0  ;;  %4285 = vst.msk [vmem:[#allocation3] sm:$0xff] %vm614_vm2, %v4253_v60  ;;  %v3818_v51 = vadd.f32 %v3786_v16, %v3739_v62  ;;  %v6476_v8 = vpop.f32.mrb[114].mxu1 }
 0x1e3   : > { %v4525_v40 = vpop.f32.mrb[113].mxu0  ;;  %3851 = vst.msk [vmem:[#allocation3 + $0xe8] sm:$0xff] %vm614_vm2, %v3819_v14  ;;  %v4256_v57 = vadd.f32 %v6476_v8, %v4224_v27  ;;  %v4072_v0 = vpop.f32.mrb[115].mxu1 }
 0x1e4   : > { %3850 = vst.msk [vmem:[#allocation3 + $0xe0] sm:$0xff] %vm614_vm2, %v3818_v51  ;;  %v4255_v21 = vadd.f32 %v4223_v4, %v4072_v0  ;;  %v3789_v37 = vld [vmem:[#allocation3 + $0xf8] sm:$0xff] }
 0x1e5   : > { %4288 = vst.msk [vmem:[#allocation3 + $0x18] sm:$0xff] %vm614_vm2, %v4256_v57  ;;  %v3821_v54 = vadd.f32 %v6450_v61, %v3789_v37  ;;  %v3788_v15 = vld [vmem:[#allocation3 + $0xf0] sm:$0xff]  ;;  %v4232_v61 = vld [vmem:[#allocation3 + $0x58] sm:$0xff] }
 0x1e6   : > { %v6544_v38 = vpop.f32.mrb[114].mxu0  ;;  %4287 = vst.msk [vmem:[#allocation3 + $0x10] sm:$0xff] %vm614_vm2, %v4255_v21  ;;  %v3820_v22 = vadd.f32 %v3788_v15, %v3749_v55  ;;  %v6479_v23 = vpop.f32.mrb[116].mxu1  ;;  %v4234_v21 = vld [vmem:[#allocation3 + $0x68] sm:$0xff] }
 0x1e7   : > { %v4535_v18 = vpop.f32.mrb[115].mxu0  ;;  %3853 = vst.msk [vmem:[#allocation3 + $0xf8] sm:$0xff] %vm614_vm2, %v3821_v54  ;;  %v4258_v19 = vadd.f32 %v6479_v23, %v4226_v29  ;;  %v4082_v32 = vpop.f32.mrb[117].mxu1  ;;  %v4233_v29 = vld [vmem:[#allocation3 + $0x60] sm:$0xff] }
 0x1e8   : > { %3852 = vst.msk [vmem:[#allocation3 + $0xf0] sm:$0xff] %vm614_vm2, %v3820_v22  ;;  %v4257_v59 = vadd.f32 %v4225_v39, %v4082_v32  ;;  %v4685_v45 = vld [vmem:[#allocation3 + $0x8] sm:$0xff] }
 0x1e9   : > { %4290 = vst.msk [vmem:[#allocation3 + $0x28] sm:$0xff] %vm614_vm2, %v4258_v19  ;;  %v4717_v49 = vadd.f32 %v6541_v33, %v4685_v45  ;;  %v4684_v20 = vld [vmem:[#allocation3] sm:$0xff] }
 0x1ea   : > { %v6547_v9 = vpop.f32.mrb[116].mxu0  ;;  %4289 = vst.msk [vmem:[#allocation3 + $0x20] sm:$0xff] %vm614_vm2, %v4257_v59  ;;  %v4716_v2 = vadd.f32 %v4684_v20, %v4525_v40  ;;  %v6482_v58 = vpop.f32.mrb[118].mxu1 }
 0x1eb   : > { %v4545_v17 = vpop.f32.mrb[117].mxu0  ;;  %4749 = vst.msk [vmem:[#allocation3 + $0x8] sm:$0xff] %vm614_vm2, %v4717_v49  ;;  %v4260_v25 = vadd.f32 %v6482_v58, %v4228_v30  ;;  %v4092_v6 = vpop.f32.mrb[119].mxu1 }
 0x1ec   : > { %4748 = vst.msk [vmem:[#allocation3] sm:$0xff] %vm614_vm2, %v4716_v2  ;;  %v4259_v34 = vadd.f32 %v4227_v13, %v4092_v6  ;;  %v4687_v31 = vld [vmem:[#allocation3 + $0x18] sm:$0xff] }
 0x1ed   : > { %4292 = vst.msk [vmem:[#allocation3 + $0x38] sm:$0xff] %vm614_vm2, %v4260_v25  ;;  %v4719_v24 = vadd.f32 %v6544_v38, %v4687_v31  ;;  %v4686_v36 = vld [vmem:[#allocation3 + $0x10] sm:$0xff] }
 0x1ee   : > { %v6550_v48 = vpop.f32.mrb[118].mxu0  ;;  %4291 = vst.msk [vmem:[#allocation3 + $0x30] sm:$0xff] %vm614_vm2, %v4259_v34  ;;  %v4718_v35 = vadd.f32 %v4686_v36, %v4535_v18  ;;  %v6485_v46 = vpop.f32.mrb[120].mxu1 }
 0x1ef   : > { %v4555_v26 = vpop.f32.mrb[119].mxu0  ;;  %4751 = vst.msk [vmem:[#allocation3 + $0x18] sm:$0xff] %vm614_vm2, %v4719_v24  ;;  %v4262_v41 = vadd.f32 %v6485_v46, %v4230_v43  ;;  %v4102_v47 = vpop.f32.mrb[121].mxu1  ;;  %v4235_v46 = vld [vmem:[#allocation3 + $0x70] sm:$0xff] }
 0x1f0   : > { %4750 = vst.msk [vmem:[#allocation3 + $0x10] sm:$0xff] %vm614_vm2, %v4718_v35  ;;  %v4261_v62 = vadd.f32 %v4229_v28, %v4102_v47  ;;  %v4689_v44 = vld [vmem:[#allocation3 + $0x28] sm:$0xff] }
 0x1f1   : > { %4294 = vst.msk [vmem:[#allocation3 + $0x48] sm:$0xff] %vm614_vm2, %v4262_v41  ;;  %v4721_v42 = vadd.f32 %v6547_v9, %v4689_v44  ;;  %v4688_v53 = vld [vmem:[#allocation3 + $0x20] sm:$0xff] }
 0x1f2   : > { %v6553_v5 = vpop.f32.mrb[120].mxu0  ;;  %v4781_v52 = vld [vmem:[#allocation3 + $0x8] sm:$0xff]  ;;  %4293 = vst.msk [vmem:[#allocation3 + $0x40] sm:$0xff] %vm614_vm2, %v4261_v62  ;;  %v4720_v7 = vadd.f32 %v4688_v53, %v4545_v17  ;;  %v6488_v56 = vpop.f32.mrb[122].mxu1 }
 0x1f3   : > { %v4565_v63 = vpop.f32.mrb[121].mxu0  ;;  %4813 = vst.msk [vmem:[%s8438_s11 + $0x8] sm:$0xff] %vm614_vm2, %v4781_v52  ;;  %v4916_v50 = vmul.f32 %v4781_v52, %v4781_v52  ;;  %v4780_v1 = vld [vmem:[#allocation3] sm:$0xff]  ;;  %4753 = vst.msk [vmem:[#allocation3 + $0x28] sm:$0xff] %vm614_vm2, %v4721_v42  ;;  %v4264_v55 = vadd.f32 %v6488_v56, %v4232_v61  ;;  %v4112_v11 = vpop.f32.mrb[123].mxu1  ;;  %v4846_v12 = vsel %vm614_vm2, %v4781_v52, 0.0 }
 0x1f4   : > { %4812 = vst.msk [vmem:[%s8438_s11] sm:$0xff] %vm614_vm2, %v4780_v1  ;;  %v4845_v60 = vsel %vm614_vm2, %v4780_v1, 0.0  ;;  %v4915_v10 = vmul.f32 %v4780_v1, %v4780_v1  ;;  %4752 = vst.msk [vmem:[#allocation3 + $0x20] sm:$0xff] %vm614_vm2, %v4720_v7  ;;  %v4263_v14 = vadd.f32 %v4231_v3, %v4112_v11  ;;  %v4691_v16 = vld [vmem:[#allocation3 + $0x38] sm:$0xff] }
 0x1f5   : > { %4296 = vst.msk [vmem:[#allocation3 + $0x58] sm:$0xff] %vm614_vm2, %v4264_v55  ;;  %v4723_v33 = vadd.f32 %v6550_v48, %v4691_v16  ;;  %v4690_v51 = vld [vmem:[#allocation3 + $0x30] sm:$0xff]  ;;  %v4948_v27 = vsel %vm614_vm2, %v4916_v50, 0.0  ;;  %v4847_v54 = vadd.f32 %v4846_v12, %v4845_v60  ;;  %v4236_v48 = vld [vmem:[#allocation3 + $0x78] sm:$0xff]  ;;  %v4238_v60 = vld [vmem:[#allocation3 + $0x88] sm:$0xff] }
 0x1f6   : > { %v6556_v8 = vpop.f32.mrb[122].mxu0  ;;  %v4947_v40 = vsel %vm614_vm2, %v4915_v10, 0.0  ;;  %v4783_v57 = vld [vmem:[#allocation3 + $0x18] sm:$0xff]  ;;  %4295 = vst.msk [vmem:[#allocation3 + $0x50] sm:$0xff] %vm614_vm2, %v4263_v14  ;;  %v4722_v0 = vadd.f32 %v4690_v51, %v4555_v26  ;;  %v6491_v4 = vpop.f32.mrb[124].mxu1  ;;  %v4237_v14 = vld [vmem:[#allocation3 + $0x80] sm:$0xff] }
 0x1f7   : > { %v4575_v37 = vpop.f32.mrb[123].mxu0  ;;  %4815 = vst.msk [vmem:[%s8438_s11 + $0x18] sm:$0xff] %vm614_vm2, %v4783_v57  ;;  %v4918_v15 = vmul.f32 %v4783_v57, %v4783_v57  ;;  %v4782_v38 = vld [vmem:[#allocation3 + $0x10] sm:$0xff]  ;;  %4755 = vst.msk [vmem:[#allocation3 + $0x38] sm:$0xff] %vm614_vm2, %v4723_v33  ;;  %v4266_v22 = vadd.f32 %v6491_v4, %v4234_v21  ;;  %v4122_v23 = vpop.f32.mrb[125].mxu1  ;;  %v4949_v59 = vadd.f32 %v4948_v27, %v4947_v40  ;;  %v4850_v2 = vsel %vm614_vm2, %v4783_v57, 0.0 }
 0x1f8   : > { %4814 = vst.msk [vmem:[%s8438_s11 + $0x10] sm:$0xff] %vm614_vm2, %v4782_v38  ;;  %v4848_v18 = vsel %vm614_vm2, %v4782_v38, 0.0  ;;  %v4917_v19 = vmul.f32 %v4782_v38, %v4782_v38  ;;  %4754 = vst.msk [vmem:[#allocation3 + $0x30] sm:$0xff] %vm614_vm2, %v4722_v0  ;;  %v4265_v32 = vadd.f32 %v4233_v29, %v4122_v23  ;;  %v4693_v39 = vld [vmem:[#allocation3 + $0x48] sm:$0xff] }
 0x1f9   : > { %v4849_v45 = vadd.f32 %v4848_v18, %v4847_v54  ;;  %4298 = vst.msk [vmem:[#allocation3 + $0x68] sm:$0xff] %vm614_vm2, %v4266_v22  ;;  %v4725_v49 = vadd.f32 %v6553_v5, %v4693_v39  ;;  %v4692_v20 = vld [vmem:[#allocation3 + $0x40] sm:$0xff]  ;;  %v4952_v13 = vsel %vm614_vm2, %v4918_v15, 0.0 }
 0x1fa   : > { %v6559_v9 = vpop.f32.mrb[124].mxu0  ;;  %v4950_v58 = vsel %vm614_vm2, %v4917_v19, 0.0  ;;  %v4785_v30 = vld [vmem:[#allocation3 + $0x28] sm:$0xff]  ;;  %4297 = vst.msk [vmem:[#allocation3 + $0x60] sm:$0xff] %vm614_vm2, %v4265_v32  ;;  %v4724_v17 = vadd.f32 %v4692_v20, %v4565_v63  ;;  %v6494_v25 = vpop.f32.mrb[126].mxu1 }
 0x1fb   : > { %v4585_v6 = vpop.f32.mrb[125].mxu0  ;;  %v4951_v34 = vadd.f32 %v4950_v58, %v4949_v59  ;;  %4817 = vst.msk [vmem:[%s8438_s11 + $0x28] sm:$0xff] %vm614_vm2, %v4785_v30  ;;  %v4920_v31 = vmul.f32 %v4785_v30, %v4785_v30  ;;  %v4784_v24 = vld [vmem:[#allocation3 + $0x20] sm:$0xff]  ;;  %v4851_v36 = vadd.f32 %v4850_v2, %v4849_v45  ;;  %4757 = vst.msk [vmem:[#allocation3 + $0x48] sm:$0xff] %vm614_vm2, %v4725_v49  ;;  %v4132_v35 = vpop.f32.mrb[127].mxu1  ;;  %v4854_v52 = vsel %vm614_vm2, %v4785_v30, 0.0 }
 0x1fc   : > { %4816 = vst.msk [vmem:[%s8438_s11 + $0x20] sm:$0xff] %vm614_vm2, %v4784_v24  ;;  %v4852_v43 = vsel %vm614_vm2, %v4784_v24, 0.0  ;;  %v4919_v26 = vmul.f32 %v4784_v24, %v4784_v24  ;;  %4756 = vst.msk [vmem:[#allocation3 + $0x40] sm:$0xff] %vm614_vm2, %v4724_v17  ;;  %v4268_v41 = vadd.f32 %v6494_v25, %v4236_v48  ;;  %v4267_v47 = vadd.f32 %v4235_v46, %v4132_v35  ;;  %v4695_v28 = vld [vmem:[#allocation3 + $0x58] sm:$0xff]  ;;  %v4239_v49 = vld [vmem:[#allocation3 + $0x90] sm:$0xff] }
 0x1fd   : > { %v4853_v62 = vadd.f32 %v4852_v43, %v4851_v36  ;;  %v4953_v44 = vadd.f32 %v4952_v13, %v4951_v34  ;;  %v4727_v42 = vadd.f32 %v6556_v8, %v4695_v28  ;;  %v4694_v53 = vld [vmem:[#allocation3 + $0x50] sm:$0xff]  ;;  %v4956_v1 = vsel %vm614_vm2, %v4920_v31, 0.0  ;;  %v4240_v59 = vld [vmem:[#allocation3 + $0x98] sm:$0xff] }
 0x1fe   : > { %v8474_v5 = vpop.f32.mrb[126].mxu0  ;;  %v4954_v7 = vsel %vm614_vm2, %v4919_v26, 0.0  ;;  %v4787_v56 = vld [vmem:[#allocation3 + $0x38] sm:$0xff]  ;;  %4300 = vst.msk [vmem:[#allocation3 + $0x78] sm:$0xff] %vm614_vm2, %v4268_v41  ;;  %4299 = vst.msk [vmem:[#allocation3 + $0x70] sm:$0xff] %vm614_vm2, %v4267_v47  ;;  %v4726_v61 = vadd.f32 %v4694_v53, %v4575_v37  ;;  %v6497_v63 = vpop.f32.mrb[128].mxu1 }
 0x1ff   : > { %v4595_v50 = vpop.f32.mrb[127].mxu0  ;;  %v4955_v55 = vadd.f32 %v4954_v7, %v4953_v44  ;;  %4819 = vst.msk [vmem:[%s8438_s11 + $0x38] sm:$0xff] %vm614_vm2, %v4787_v56  ;;  %v4922_v11 = vmul.f32 %v4787_v56, %v4787_v56  ;;  %v4786_v3 = vld [vmem:[#allocation3 + $0x30] sm:$0xff]  ;;  %v4855_v12 = vadd.f32 %v4854_v52, %v4853_v62  ;;  %4759 = vst.msk [vmem:[#allocation3 + $0x58] sm:$0xff] %vm614_vm2, %v4727_v42  ;;  %v4142_v10 = vpop.f32.mrb[129].mxu1  ;;  %v4858_v37 = vsel %vm614_vm2, %v4787_v56, 0.0 }
 0x200   : > { %4818 = vst.msk [vmem:[%s8438_s11 + $0x30] sm:$0xff] %vm614_vm2, %v4786_v3  ;;  %v4856_v16 = vsel %vm614_vm2, %v4786_v3, 0.0  ;;  %v4921_v33 = vmul.f32 %v4786_v3, %v4786_v3  ;;  %4758 = vst.msk [vmem:[#allocation3 + $0x50] sm:$0xff] %vm614_vm2, %v4726_v61  ;;  %v4270_v51 = vadd.f32 %v6497_v63, %v4238_v60  ;;  %v4269_v8 = vadd.f32 %v4237_v14, %v4142_v10  ;;  %v4697_v27 = vld [vmem:[#allocation3 + $0x68] sm:$0xff]  ;;  %v4241_v42 = vld [vmem:[#allocation3 + $0xa0] sm:$0xff] }
 0x201   : > { %v4857_v40 = vadd.f32 %v4856_v16, %v4855_v12  ;;  %v4957_v57 = vadd.f32 %v4956_v1, %v4955_v55  ;;  %v4729_v0 = vadd.f32 %v6559_v9, %v4697_v27  ;;  %v4696_v4 = vld [vmem:[#allocation3 + $0x60] sm:$0xff]  ;;  %v4960_v29 = vsel %vm614_vm2, %v4922_v11, 0.0  ;;  %v4242_v62 = vld [vmem:[#allocation3 + $0xa8] sm:$0xff] }
 0x202   : > { %v8488_v21 = vpop.f32.mrb[128].mxu0  ;;  %v4958_v54 = vsel %vm614_vm2, %v4921_v33, 0.0  ;;  %v4789_v15 = vld [vmem:[#allocation3 + $0x48] sm:$0xff]  ;;  %4302 = vst.msk [vmem:[#allocation3 + $0x88] sm:$0xff] %vm614_vm2, %v4270_v51  ;;  %4301 = vst.msk [vmem:[#allocation3 + $0x80] sm:$0xff] %vm614_vm2, %v4269_v8  ;;  %v4728_v38 = vadd.f32 %v4696_v4, %v4585_v6  ;;  %v6500_v22 = vpop.f32.mrb[130].mxu1 }
 0x203   : > { %v4605_v23 = vpop.f32.mrb[129].mxu0  ;;  %v4959_v18 = vadd.f32 %v4958_v54, %v4957_v57  ;;  %4821 = vst.msk [vmem:[%s8438_s11 + $0x48] sm:$0xff] %vm614_vm2, %v4789_v15  ;;  %v4924_v19 = vmul.f32 %v4789_v15, %v4789_v15  ;;  %v4788_v32 = vld [vmem:[#allocation3 + $0x40] sm:$0xff]  ;;  %v4859_v39 = vadd.f32 %v4858_v37, %v4857_v40  ;;  %4761 = vst.msk [vmem:[#allocation3 + $0x68] sm:$0xff] %vm614_vm2, %v4729_v0  ;;  %v4152_v45 = vpop.f32.mrb[131].mxu1  ;;  %v4862_v34 = vsel %vm614_vm2, %v4789_v15, 0.0 }
 0x204   : > { %4820 = vst.msk [vmem:[%s8438_s11 + $0x40] sm:$0xff] %vm614_vm2, %v4788_v32  ;;  %v4860_v20 = vsel %vm614_vm2, %v4788_v32, 0.0  ;;  %v4923_v9 = vmul.f32 %v4788_v32, %v4788_v32  ;;  %4760 = vst.msk [vmem:[#allocation3 + $0x60] sm:$0xff] %vm614_vm2, %v4728_v38  ;;  %v4272_v2 = vadd.f32 %v6500_v22, %v4240_v59  ;;  %v4271_v58 = vadd.f32 %v4239_v49, %v4152_v45  ;;  %v4244_v40 = vld [vmem:[#allocation3 + $0xb8] sm:$0xff]  ;;  %v4243_v0 = vld [vmem:[#allocation3 + $0xb0] sm:$0xff] }
 0x205   : > { %v4861_v30 = vadd.f32 %v4860_v20, %v4859_v39  ;;  %v4961_v17 = vadd.f32 %v4960_v29, %v4959_v18  ;;  %v4699_v25 = vld [vmem:[#allocation3 + $0x78] sm:$0xff]  ;;  %v4698_v6 = vld [vmem:[#allocation3 + $0x70] sm:$0xff]  ;;  %v4964_v43 = vsel %vm614_vm2, %v4924_v19, 0.0  ;;  %v4246_v45 = vld [vmem:[#allocation3 + $0xc8] sm:$0xff] }
 0x206   : > { %v8502_v13 = vpop.f32.mrb[130].mxu0  ;;  %v4962_v31 = vsel %vm614_vm2, %v4923_v9, 0.0  ;;  %v4791_v24 = vld [vmem:[#allocation3 + $0x58] sm:$0xff]  ;;  %4304 = vst.msk [vmem:[#allocation3 + $0x98] sm:$0xff] %vm614_vm2, %v4272_v2  ;;  %4303 = vst.msk [vmem:[#allocation3 + $0x90] sm:$0xff] %vm614_vm2, %v4271_v58  ;;  %v4731_v36 = vadd.f32 %v8474_v5, %v4699_v25  ;;  %v4730_v48 = vadd.f32 %v4698_v6, %v4595_v50  ;;  %v6503_v35 = vpop.f32.mrb[132].mxu1 }
 0x207   : > { %v4615_v46 = vpop.f32.mrb[131].mxu0  ;;  %v4963_v26 = vadd.f32 %v4962_v31, %v4961_v17  ;;  %4823 = vst.msk [vmem:[%s8438_s11 + $0x58] sm:$0xff] %vm614_vm2, %v4791_v24  ;;  %v4926_v41 = vmul.f32 %v4791_v24, %v4791_v24  ;;  %v4790_v47 = vld [vmem:[#allocation3 + $0x50] sm:$0xff]  ;;  %v4863_v28 = vadd.f32 %v4862_v34, %v4861_v30  ;;  %v4162_v44 = vpop.f32.mrb[133].mxu1  ;;  %v4274_v5 = vadd.f32 %v6503_v35, %v4242_v62  ;;  %v4245_v31 = vld [vmem:[#allocation3 + $0xc0] sm:$0xff] }
 0x208   : > { %4822 = vst.msk [vmem:[%s8438_s11 + $0x50] sm:$0xff] %vm614_vm2, %v4790_v47  ;;  %v4864_v53 = vsel %vm614_vm2, %v4790_v47, 0.0  ;;  %v4925_v52 = vmul.f32 %v4790_v47, %v4790_v47  ;;  %4763 = vst.msk [vmem:[#allocation3 + $0x78] sm:$0xff] %vm614_vm2, %v4731_v36  ;;  %v4273_v7 = vadd.f32 %v4241_v42, %v4162_v44  ;;  %v4866_v55 = vsel %vm614_vm2, %v4791_v24, 0.0  ;;  %v4248_v44 = vld [vmem:[#allocation3 + $0xd8] sm:$0xff] }
 0x209   : > { %4762 = vst.msk [vmem:[#allocation3 + $0x70] sm:$0xff] %vm614_vm2, %v4730_v48  ;;  %v4865_v56 = vadd.f32 %v4864_v53, %v4863_v28  ;;  %v4965_v61 = vadd.f32 %v4964_v43, %v4963_v26  ;;  %v4701_v63 = vld [vmem:[#allocation3 + $0x88] sm:$0xff]  ;;  %v4700_v50 = vld [vmem:[#allocation3 + $0x80] sm:$0xff]  ;;  %4306 = vst.msk [vmem:[#allocation3 + $0xa8] sm:$0xff] %vm614_vm2, %v4274_v5  ;;  %v4968_v16 = vsel %vm614_vm2, %v4926_v41, 0.0 }
 0x20a   : > { %v8517_v1 = vpop.f32.mrb[132].mxu0  ;;  %v4966_v11 = vsel %vm614_vm2, %v4925_v52, 0.0  ;;  %v4793_v3 = vld [vmem:[#allocation3 + $0x68] sm:$0xff]  ;;  %4305 = vst.msk [vmem:[#allocation3 + $0xa0] sm:$0xff] %vm614_vm2, %v4273_v7  ;;  %v4733_v12 = vadd.f32 %v8488_v21, %v4701_v63  ;;  %v4732_v60 = vadd.f32 %v4700_v50, %v4605_v23  ;;  %v6506_v10 = vpop.f32.mrb[134].mxu1 }
 0x20b   : > { %v4625_v14 = vpop.f32.mrb[133].mxu0  ;;  %v4967_v33 = vadd.f32 %v4966_v11, %v4965_v61  ;;  %4825 = vst.msk [vmem:[%s8438_s11 + $0x68] sm:$0xff] %vm614_vm2, %v4793_v3  ;;  %v4928_v51 = vmul.f32 %v4793_v3, %v4793_v3  ;;  %v4792_v8 = vld [vmem:[#allocation3 + $0x60] sm:$0xff]  ;;  %v4867_v27 = vadd.f32 %v4866_v55, %v4865_v56  ;;  %v4172_v57 = vpop.f32.mrb[135].mxu1  ;;  %v4276_v21 = vadd.f32 %v6506_v10, %v4244_v40  ;;  %v4247_v11 = vld [vmem:[#allocation3 + $0xd0] sm:$0xff] }
 0x20c   : > { %4824 = vst.msk [vmem:[%s8438_s11 + $0x60] sm:$0xff] %vm614_vm2, %v4792_v8  ;;  %v4868_v4 = vsel %vm614_vm2, %v4792_v8, 0.0  ;;  %v4927_v37 = vmul.f32 %v4792_v8, %v4792_v8  ;;  %4765 = vst.msk [vmem:[#allocation3 + $0x88] sm:$0xff] %vm614_vm2, %v4733_v12  ;;  %v4275_v54 = vadd.f32 %v4243_v0, %v4172_v57  ;;  %v4870_v18 = vsel %vm614_vm2, %v4793_v3, 0.0  ;;  %v4250_v57 = vld [vmem:[#allocation3 + $0xe8] sm:$0xff] }
 0x20d   : > { %4764 = vst.msk [vmem:[#allocation3 + $0x80] sm:$0xff] %vm614_vm2, %v4732_v60  ;;  %v4869_v15 = vadd.f32 %v4868_v4, %v4867_v27  ;;  %v4969_v38 = vadd.f32 %v4968_v16, %v4967_v33  ;;  %v4703_v22 = vld [vmem:[#allocation3 + $0x98] sm:$0xff]  ;;  %v4702_v23 = vld [vmem:[#allocation3 + $0x90] sm:$0xff]  ;;  %4308 = vst.msk [vmem:[#allocation3 + $0xb8] sm:$0xff] %vm614_vm2, %v4276_v21  ;;  %v4972_v25 = vsel %vm614_vm2, %v4928_v51, 0.0 }
 0x20e   : > { %v8532_v29 = vpop.f32.mrb[134].mxu0  ;;  %v4970_v19 = vsel %vm614_vm2, %v4927_v37, 0.0  ;;  %4307 = vst.msk [vmem:[#allocation3 + $0xb0] sm:$0xff] %vm614_vm2, %v4275_v54  ;;  %v4735_v32 = vadd.f32 %v8502_v13, %v4703_v22  ;;  %v4734_v39 = vadd.f32 %v4702_v23, %v4615_v46  ;;  %v6509_v59 = vpop.f32.mrb[136].mxu1 }
 0x20f   : > { %v4635_v49 = vpop.f32.mrb[135].mxu0  ;;  %v4971_v20 = vadd.f32 %v4970_v19, %v4969_v38  ;;  %v4795_v9 = vld [vmem:[#allocation3 + $0x78] sm:$0xff]  ;;  %v4871_v58 = vadd.f32 %v4870_v18, %v4869_v15  ;;  %v4278_v30 = vadd.f32 %v6509_v59, %v4246_v45  ;;  %v4182_v17 = vpop.f32.mrb[137].mxu1  ;;  %v4249_v19 = vld [vmem:[#allocation3 + $0xe0] sm:$0xff] }
 0x210   : > { %v4794_v2 = vld [vmem:[#allocation3 + $0x70] sm:$0xff]  ;;  %4827 = vst.msk [vmem:[%s8438_s11 + $0x78] sm:$0xff] %vm614_vm2, %v4795_v9  ;;  %v4930_v6 = vmul.f32 %v4795_v9, %v4795_v9  ;;  %4767 = vst.msk [vmem:[#allocation3 + $0x98] sm:$0xff] %vm614_vm2, %v4735_v32  ;;  %v4277_v48 = vadd.f32 %v4245_v31, %v4182_v17  ;;  %v4705_v35 = vld [vmem:[#allocation3 + $0xa8] sm:$0xff]  ;;  %v4874_v26 = vsel %vm614_vm2, %v4795_v9, 0.0 }
 0x211   : > { %4826 = vst.msk [vmem:[%s8438_s11 + $0x70] sm:$0xff] %vm614_vm2, %v4794_v2  ;;  %v4872_v34 = vsel %vm614_vm2, %v4794_v2, 0.0  ;;  %v4929_v13 = vmul.f32 %v4794_v2, %v4794_v2  ;;  %4766 = vst.msk [vmem:[#allocation3 + $0x90] sm:$0xff] %vm614_vm2, %v4734_v39  ;;  %v4973_v36 = vadd.f32 %v4972_v25, %v4971_v20  ;;  %v4704_v46 = vld [vmem:[#allocation3 + $0xa0] sm:$0xff]  ;;  %v4737_v47 = vadd.f32 %v8517_v1, %v4705_v35  ;;  %v4252_v17 = vld [vmem:[#allocation3 + $0xf8] sm:$0xff] }
 0x212   : > { %v4873_v24 = vadd.f32 %v4872_v34, %v4871_v58  ;;  %4310 = vst.msk [vmem:[#allocation3 + $0xc8] sm:$0xff] %vm614_vm2, %v4278_v30  ;;  %v6577_v43 = vpop.f32.mrb[136].mxu0  ;;  %v4736_v28 = vadd.f32 %v4704_v46, %v4625_v14  ;;  %v6512_v62 = vpop.f32.mrb[138].mxu1  ;;  %4309 = vst.msk [vmem:[#allocation3 + $0xc0] sm:$0xff] %vm614_vm2, %v4277_v48  ;;  %v4976_v63 = vsel %vm614_vm2, %v4930_v6, 0.0 }
 0x213   : > { %v4974_v41 = vsel %vm614_vm2, %v4929_v13, 0.0  ;;  %v8551_v42 = vpop.f32.mrb[137].mxu0  ;;  %v4797_v52 = vld [vmem:[#allocation3 + $0x88] sm:$0xff]  ;;  %v4280_v56 = vadd.f32 %v6512_v62, %v4248_v44  ;;  %v4192_v61 = vpop.f32.mrb[139].mxu1  ;;  %4769 = vst.msk [vmem:[#allocation3 + $0xa8] sm:$0xff] %vm614_vm2, %v4737_v47 }
 0x214   : > { %v4975_v53 = vadd.f32 %v4974_v41, %v4973_v36  ;;  %v4796_v5 = vld [vmem:[#allocation3 + $0x80] sm:$0xff]  ;;  %v4875_v7 = vadd.f32 %v4874_v26, %v4873_v24  ;;  %4829 = vst.msk [vmem:[%s8438_s11 + $0x88] sm:$0xff] %vm614_vm2, %v4797_v52  ;;  %v4932_v50 = vmul.f32 %v4797_v52, %v4797_v52  ;;  %4768 = vst.msk [vmem:[#allocation3 + $0xa0] sm:$0xff] %vm614_vm2, %v4736_v28  ;;  %v4707_v10 = vld [vmem:[#allocation3 + $0xb8] sm:$0xff]  ;;  %v4878_v33 = vsel %vm614_vm2, %v4797_v52, 0.0 }
 0x215   : > { %4828 = vst.msk [vmem:[%s8438_s11 + $0x80] sm:$0xff] %vm614_vm2, %v4796_v5  ;;  %v4876_v1 = vsel %vm614_vm2, %v4796_v5, 0.0  ;;  %v4931_v55 = vmul.f32 %v4796_v5, %v4796_v5  ;;  %4312 = vst.msk [vmem:[#allocation3 + $0xd8] sm:$0xff] %vm614_vm2, %v4280_v56  ;;  %v4279_v60 = vadd.f32 %v4247_v11, %v4192_v61  ;;  %v4706_v14 = vld [vmem:[#allocation3 + $0xb0] sm:$0xff]  ;;  %v4739_v8 = vadd.f32 %v8532_v29, %v4707_v10 }
 0x216   : > { %v4877_v3 = vadd.f32 %v4876_v1, %v4875_v7  ;;  %v4977_v12 = vadd.f32 %v4976_v63, %v4975_v53  ;;  %v6580_v16 = vpop.f32.mrb[138].mxu0  ;;  %v4738_v27 = vadd.f32 %v4706_v14, %v4635_v49  ;;  %v6515_v40 = vpop.f32.mrb[140].mxu1  ;;  %v4980_v22 = vsel %vm614_vm2, %v4932_v50, 0.0  ;;  %v4251_v41 = vld [vmem:[#allocation3 + $0xf0] sm:$0xff] }
 0x217   : > { %v4978_v51 = vsel %vm614_vm2, %v4931_v55, 0.0  ;;  %v8566_v0 = vpop.f32.mrb[139].mxu0  ;;  %v4799_v37 = vld [vmem:[#allocation3 + $0x98] sm:$0xff]  ;;  %4311 = vst.msk [vmem:[#allocation3 + $0xd0] sm:$0xff] %vm614_vm2, %v4279_v60  ;;  %v4282_v15 = vadd.f32 %v6515_v40, %v4250_v57  ;;  %v4202_v38 = vpop.f32.mrb[141].mxu1  ;;  %4771 = vst.msk [vmem:[#allocation3 + $0xb8] sm:$0xff] %vm614_vm2, %v4739_v8 }
 0x218   : > { %v4979_v4 = vadd.f32 %v4978_v51, %v4977_v12  ;;  %v4798_v21 = vld [vmem:[#allocation3 + $0x90] sm:$0xff]  ;;  %v4879_v54 = vadd.f32 %v4878_v33, %v4877_v3  ;;  %4831 = vst.msk [vmem:[%s8438_s11 + $0x98] sm:$0xff] %vm614_vm2, %v4799_v37  ;;  %v4934_v23 = vmul.f32 %v4799_v37, %v4799_v37  ;;  %4770 = vst.msk [vmem:[#allocation3 + $0xb0] sm:$0xff] %vm614_vm2, %v4738_v27  ;;  %v4882_v9 = vsel %vm614_vm2, %v4799_v37, 0.0 }
 0x219   : > { %4830 = vst.msk [vmem:[%s8438_s11 + $0x90] sm:$0xff] %vm614_vm2, %v4798_v21  ;;  %v4880_v29 = vsel %vm614_vm2, %v4798_v21, 0.0  ;;  %v4933_v18 = vmul.f32 %v4798_v21, %v4798_v21  ;;  %v4709_v32 = vld [vmem:[#allocation3 + $0xc8] sm:$0xff]  ;;  %4314 = vst.msk [vmem:[#allocation3 + $0xe8] sm:$0xff] %vm614_vm2, %v4282_v15  ;;  %v4281_v45 = vadd.f32 %v4249_v19, %v4202_v38  ;;  %v4708_v58 = vld [vmem:[#allocation3 + $0xc0] sm:$0xff] }
 0x21a   : > { %v4881_v39 = vadd.f32 %v4880_v29, %v4879_v54  ;;  %v4981_v59 = vadd.f32 %v4980_v22, %v4979_v4  ;;  %v4741_v49 = vadd.f32 %v6577_v43, %v4709_v32  ;;  %v6583_v20 = vpop.f32.mrb[140].mxu0  ;;  %v6518_v30 = vpop.f32.mrb[142].mxu1  ;;  %v4801_v34 = vld [vmem:[#allocation3 + $0xa8] sm:$0xff]  ;;  %v4740_v24 = vadd.f32 %v4708_v58, %v8551_v42 }
 0x21b   : > { %v4982_v2 = vsel %vm614_vm2, %v4933_v18, 0.0  ;;  %v4665_v25 = vpop.f32.mrb[141].mxu0  ;;  %v4800_v13 = vld [vmem:[#allocation3 + $0xa0] sm:$0xff]  ;;  %4313 = vst.msk [vmem:[#allocation3 + $0xe0] sm:$0xff] %vm614_vm2, %v4281_v45  ;;  %v4284_v36 = vadd.f32 %v6518_v30, %v4252_v17  ;;  %v4212_v48 = vpop.f32.mrb[143].mxu1  ;;  %v4984_v35 = vsel %vm614_vm2, %v4934_v23, 0.0  ;;  %v4936_v46 = vmul.f32 %v4801_v34, %v4801_v34 }
 0x21c   : > { %v4983_v6 = vadd.f32 %v4982_v2, %v4981_v59  ;;  %v4883_v31 = vadd.f32 %v4882_v9, %v4881_v39  ;;  %4773 = vst.msk [vmem:[#allocation3 + $0xc8] sm:$0xff] %vm614_vm2, %v4741_v49  ;;  %4833 = vst.msk [vmem:[%s8438_s11 + $0xa8] sm:$0xff] %vm614_vm2, %v4801_v34  ;;  %v4884_v43 = vsel %vm614_vm2, %v4800_v13, 0.0  ;;  %v4935_v26 = vmul.f32 %v4800_v13, %v4800_v13  ;;  %v4711_v47 = vld [vmem:[#allocation3 + $0xd8] sm:$0xff] }
 0x21d   : > { %4832 = vst.msk [vmem:[%s8438_s11 + $0xa0] sm:$0xff] %vm614_vm2, %v4800_v13  ;;  %4772 = vst.msk [vmem:[#allocation3 + $0xc0] sm:$0xff] %vm614_vm2, %v4740_v24  ;;  %v4283_v44 = vadd.f32 %v4251_v41, %v4212_v48  ;;  %v4743_v42 = vadd.f32 %v6580_v16, %v4711_v47  ;;  %v4886_v52 = vsel %vm614_vm2, %v4801_v34, 0.0  ;;  %v4988_v11 = vsel %vm614_vm2, %v4936_v46, 0.0 }
 0x21e   : > { %v4885_v28 = vadd.f32 %v4884_v43, %v4883_v31  ;;  %v4985_v62 = vadd.f32 %v4984_v35, %v4983_v6  ;;  %4316 = vst.msk [vmem:[#allocation3 + $0xf8] sm:$0xff] %vm614_vm2, %v4284_v36  ;;  %v6586_v53 = vpop.f32.mrb[142].mxu0  ;;  %v4986_v5 = vsel %vm614_vm2, %v4935_v26, 0.0  ;;  %v4710_v7 = vld [vmem:[#allocation3 + $0xd0] sm:$0xff]  ;;  %v4803_v63 = vld [vmem:[#allocation3 + $0xb8] sm:$0xff] }
 0x21f   : > { %v4675_v56 = vpop.f32.mrb[143].mxu0  ;;  %v4802_v50 = vld [vmem:[#allocation3 + $0xb0] sm:$0xff]  ;;  %4315 = vst.msk [vmem:[#allocation3 + $0xf0] sm:$0xff] %vm614_vm2, %v4283_v44  ;;  %4775 = vst.msk [vmem:[#allocation3 + $0xd8] sm:$0xff] %vm614_vm2, %v4743_v42  ;;  %v4742_v55 = vadd.f32 %v4710_v7, %v8566_v0  ;;  %v4938_v3 = vmul.f32 %v4803_v63, %v4803_v63  ;;  %v4890_v51 = vsel %vm614_vm2, %v4803_v63, 0.0 }
 0x220   : > { %v4987_v61 = vadd.f32 %v4986_v5, %v4985_v62  ;;  %v4887_v1 = vadd.f32 %v4886_v52, %v4885_v28  ;;  %4835 = vst.msk [vmem:[%s8438_s11 + $0xb8] sm:$0xff] %vm614_vm2, %v4803_v63  ;;  %4834 = vst.msk [vmem:[%s8438_s11 + $0xb0] sm:$0xff] %vm614_vm2, %v4802_v50  ;;  %v4888_v12 = vsel %vm614_vm2, %v4802_v50, 0.0  ;;  %v4937_v60 = vmul.f32 %v4802_v50, %v4802_v50  ;;  %v4713_v10 = vld [vmem:[#allocation3 + $0xe8] sm:$0xff] }
 0x221   : > { %4774 = vst.msk [vmem:[#allocation3 + $0xd0] sm:$0xff] %vm614_vm2, %v4742_v55  ;;  %v4745_v33 = vadd.f32 %v6583_v20, %v4713_v10  ;;  %v4992_v4 = vsel %vm614_vm2, %v4938_v3, 0.0 }
 0x222   : > { %v4889_v14 = vadd.f32 %v4888_v12, %v4887_v1  ;;  %v4989_v16 = vadd.f32 %v4988_v11, %v4987_v61  ;;  %v4990_v8 = vsel %vm614_vm2, %v4937_v60, 0.0  ;;  %v4712_v40 = vld [vmem:[#allocation3 + $0xe0] sm:$0xff] }
 0x223   : > { %v4805_v27 = vld [vmem:[#allocation3 + $0xc8] sm:$0xff]  ;;  %4777 = vst.msk [vmem:[#allocation3 + $0xe8] sm:$0xff] %vm614_vm2, %v4745_v33  ;;  %v4744_v21 = vadd.f32 %v4712_v40, %v4665_v25 }
 0x224   : > { %v4991_v57 = vadd.f32 %v4990_v8, %v4989_v16  ;;  %4837 = vst.msk [vmem:[%s8438_s11 + $0xc8] sm:$0xff] %vm614_vm2, %v4805_v27  ;;  %v4891_v0 = vadd.f32 %v4890_v51, %v4889_v14  ;;  %v4804_v37 = vld [vmem:[#allocation3 + $0xc0] sm:$0xff]  ;;  %v4940_v15 = vmul.f32 %v4805_v27, %v4805_v27  ;;  %v4894_v39 = vsel %vm614_vm2, %v4805_v27, 0.0 }
 0x225   : > { %v4715_v54 = vld [vmem:[#allocation3 + $0xf8] sm:$0xff]  ;;  %4836 = vst.msk [vmem:[%s8438_s11 + $0xc0] sm:$0xff] %vm614_vm2, %v4804_v37  ;;  %v4892_v38 = vsel %vm614_vm2, %v4804_v37, 0.0  ;;  %v4939_v22 = vmul.f32 %v4804_v37, %v4804_v37  ;;  %4776 = vst.msk [vmem:[#allocation3 + $0xe0] sm:$0xff] %vm614_vm2, %v4744_v21 }
 0x226   : > { %v4993_v23 = vadd.f32 %v4992_v4, %v4991_v57  ;;  %v4893_v29 = vadd.f32 %v4892_v38, %v4891_v0  ;;  %v4807_v18 = vld [vmem:[#allocation3 + $0xd8] sm:$0xff]  ;;  %v4747_v19 = vadd.f32 %v6586_v53, %v4715_v54  ;;  %v4714_v32 = vld [vmem:[#allocation3 + $0xf0] sm:$0xff]  ;;  %v4996_v2 = vsel %vm614_vm2, %v4940_v15, 0.0 }
 0x227   : > { %v4994_v59 = vsel %vm614_vm2, %v4939_v22, 0.0  ;;  %4839 = vst.msk [vmem:[%s8438_s11 + $0xd8] sm:$0xff] %vm614_vm2, %v4807_v18  ;;  %v4746_v45 = vadd.f32 %v4714_v32, %v4675_v56  ;;  %v4942_v58 = vmul.f32 %v4807_v18, %v4807_v18  ;;  %v4898_v13 = vsel %vm614_vm2, %v4807_v18, 0.0 }
 0x228   : > { %v4995_v49 = vadd.f32 %v4994_v59, %v4993_v23  ;;  %v4806_v20 = vld [vmem:[#allocation3 + $0xd0] sm:$0xff]  ;;  %v4895_v9 = vadd.f32 %v4894_v39, %v4893_v29  ;;  %4779 = vst.msk [vmem:[#allocation3 + $0xf8] sm:$0xff] %vm614_vm2, %v4747_v19 }
 0x229   : > { %4838 = vst.msk [vmem:[%s8438_s11 + $0xd0] sm:$0xff] %vm614_vm2, %v4806_v20  ;;  %v4896_v30 = vsel %vm614_vm2, %v4806_v20, 0.0  ;;  %v4941_v17 = vmul.f32 %v4806_v20, %v4806_v20  ;;  %4778 = vst.msk [vmem:[#allocation3 + $0xf0] sm:$0xff] %vm614_vm2, %v4746_v45  ;;  %v5000_v48 = vsel %vm614_vm2, %v4942_v58, 0.0 }
 0x22a   : > { %v4897_v25 = vadd.f32 %v4896_v30, %v4895_v9  ;;  %v4997_v6 = vadd.f32 %v4996_v2, %v4995_v49  ;;  %v4809_v34 = vld [vmem:[#allocation3 + $0xe8] sm:$0xff] }
 0x22b   : > { %v4998_v31 = vsel %vm614_vm2, %v4941_v17, 0.0  ;;  %4841 = vst.msk [vmem:[%s8438_s11 + $0xe8] sm:$0xff] %vm614_vm2, %v4809_v34  ;;  %v4944_v46 = vmul.f32 %v4809_v34, %v4809_v34  ;;  %v4902_v62 = vsel %vm614_vm2, %v4809_v34, 0.0 }
 0x22c   : > { %v4999_v24 = vadd.f32 %v4998_v31, %v4997_v6  ;;  %v4899_v36 = vadd.f32 %v4898_v13, %v4897_v25  ;;  %v4808_v35 = vld [vmem:[#allocation3 + $0xe0] sm:$0xff] }
 0x22d   : > { %4840 = vst.msk [vmem:[%s8438_s11 + $0xe0] sm:$0xff] %vm614_vm2, %v4808_v35  ;;  %v4900_v43 = vsel %vm614_vm2, %v4808_v35, 0.0  ;;  %v4943_v26 = vmul.f32 %v4808_v35, %v4808_v35  ;;  %v5004_v56 = vsel %vm614_vm2, %v4944_v46, 0.0 }
 0x22e   : > { %v5001_v41 = vadd.f32 %v5000_v48, %v4999_v24  ;;  %v4901_v47 = vadd.f32 %v4900_v43, %v4899_v36 }
 0x22f   : > { %v4811_v28 = vld [vmem:[#allocation3 + $0xf8] sm:$0xff]  ;;  %v5002_v44 = vsel %vm614_vm2, %v4943_v26, 0.0 }
 0x230   : > { %4843 = vst.msk [vmem:[%s8438_s11 + $0xf8] sm:$0xff] %vm614_vm2, %v4811_v28  ;;  %v4810_v42 = vld [vmem:[#allocation3 + $0xf0] sm:$0xff]  ;;  %v5003_v53 = vadd.f32 %v5002_v44, %v5001_v41  ;;  %v4903_v52 = vadd.f32 %v4902_v62, %v4901_v47  ;;  %v4946_v61 = vmul.f32 %v4811_v28, %v4811_v28  ;;  %v4906_v55 = vsel %vm614_vm2, %v4811_v28, 0.0 }
 0x231   : > { %4842 = vst.msk [vmem:[%s8438_s11 + $0xf0] sm:$0xff] %vm614_vm2, %v4810_v42  ;;  %v4904_v5 = vsel %vm614_vm2, %v4810_v42, 0.0  ;;  %v4945_v7 = vmul.f32 %v4810_v42, %v4810_v42 }
 0x232   : > { %v4905_v63 = vadd.f32 %v4904_v5, %v4903_v52  ;;  %v5005_v50 = vadd.f32 %v5004_v56, %v5003_v53  ;;  %v5008_v12 = vsel %vm614_vm2, %v4946_v61, 0.0 }
 0x233   : > { %v5006_v1 = vsel %vm614_vm2, %v4945_v7, 0.0 }
 0x234   : > { %v4907_v11 = vadd.f32 %v4906_v55, %v4905_v63  ;;  %v5007_v3 = vadd.f32 %v5006_v1, %v5005_v50 }
 0x236   : > { %v4908_v60 = vrot.slane %v4907_v11, 4  ;;  %v5009_v10 = vadd.f32 %v5008_v12, %v5007_v3 }
 0x238   : > { %v4909_v14 = vadd.f32 %v4908_v60, %v4907_v11  ;;  %v5010_v16 = vrot.slane %v5009_v10, 4 }
 0x23a   : > { %v4910_v33 = vrot.slane %v4909_v14, 2  ;;  %v5011_v51 = vadd.f32 %v5010_v16, %v5009_v10 }
 0x23c   : > { %v4911_v8 = vadd.f32 %v4910_v33, %v4909_v14  ;;  %v5012_v27 = vrot.slane %v5011_v51, 2 }
 0x23e   : > { %v4912_v40 = vrot.slane %v4911_v8, 1  ;;  %v5013_v57 = vadd.f32 %v5012_v27, %v5011_v51 }
 0x240   : > { %v4913_v0 = vadd.f32 %v4912_v40, %v4911_v8  ;;  %v5014_v4 = vrot.slane %v5013_v57, 1 }
 0x242   : > { %4914 = vst.msk [vmem:[%s8369_s9] sm:$0x1] %vm468_vm0, %v4913_v0  ;;  %v5015_v37 = vadd.f32 %v5014_v4, %v5013_v57 }
 0x244   : > { %5016 = vst.msk [vmem:[%s8369_s9 + $0x1] sm:$0x1] %vm468_vm0, %v5015_v37 }
 0x245 PF: > { %s18_s26 = sadd.s32 1, %s6843_s26   ;;  %s8772_s24 = smov %s6839_s25 }
 0x246   : > { %p15_p5 = scmp.ge.s32.totalorder %s18_s26, 4   ;;  %s8773_s25 = smov %s8775_s27 }
 0x248   :  { %17 = sbr.rel (!%p15_p5) target bundleno = 2 (0x2), region = 103 }

</bundles_post_ra>
